<compile_context>
chip_gen: v7x
topology: tpu7x:2x2x1
jax: 0.10.0
libtpu: 0.0.40
codegen_flags: <defaults>
</compile_context>

<pallas_src>
import functools

import jax
import jax.numpy as jnp
from jax import lax
from jax.experimental import pallas as pl
from jax.experimental.pallas import tpu as pltpu

EPS = 1e-5                      # nn.BatchNorm1d default eps
STRIDE4 = 5                     # final ConvTranspose1d stride
K4 = 133                        # final ConvTranspose1d kernel size
KTAPS4 = -(-K4 // STRIDE4)      # 27 taps per output phase


# ----------------------------------------------------------------------------------
# Single fused Pallas kernel
# ----------------------------------------------------------------------------------
def _decoder_kernel(up1_ref, sel2_ref, sel3_ref, sel4_ref,
                    r2_ref, r3_ref, r4_ref,
                    w1t_ref, ws2_ref, ws3_ref, w4s_ref,
                    bgb1_ref, bgb2_ref, bgb3_ref, gb4_ref,
                    o_ref, *, n_batch, l_out4):
    f32 = jnp.float32

    def shifted(a):
        # a: (L, C) channels-last.  Returns (a[l+1], a[l-1]) with zero boundary rows.
        c = a.shape[1]
        z = jnp.zeros((1, c), f32)
        x_p1 = jnp.concatenate([a[1:, :], z], axis=0)
        x_m1 = jnp.concatenate([z, a[:-1, :]], axis=0)
        return x_p1, x_m1

    def bn_relu(ys, gamma, beta):
        # Training-mode BatchNorm1d over (batch, length) per channel: one-pass
        # statistics folded into a single scale/shift, fused with ReLU.
        inv_count = 1.0 / float(len(ys) * ys[0].shape[0])
        s = ys[0].sum(axis=0, keepdims=True)
        sq = (ys[0] * ys[0]).sum(axis=0, keepdims=True)
        for y in ys[1:]:
            s = s + y.sum(axis=0, keepdims=True)
            sq = sq + (y * y).sum(axis=0, keepdims=True)
        mean = s * inv_count
        var = sq * inv_count - mean * mean
        scale = gamma * lax.rsqrt(var + EPS)
        shift = beta - mean * scale
        return [jnp.maximum(y * scale + shift, 0.0) for y in ys]

    # ---------------- layer 1: ConvT(1->32, k3, s1, p1) + BN + ReLU ----------------
    # (the first unpool was already applied to the kernel input in the wrapper glue)
    w1_0, w1_1, w1_2 = w1t_ref[0:1, :], w1t_ref[1:2, :], w1t_ref[2:3, :]
    b1, g1, bt1 = bgb1_ref[0:1, :], bgb1_ref[1:2, :], bgb1_ref[2:3, :]
    ys = []
    for b in range(n_batch):
        up = up1_ref[b]                                       # (2*L0, 1)
        x_p1, x_m1 = shifted(up)
        # Cin == 1: the contraction degenerates to three VPU broadcasts.
        ys.append(x_p1 * w1_0 + up * w1_1 + x_m1 * w1_2 + b1)  # (2*L0, 32)
    acts = bn_relu(ys, g1, bt1)

    # ---------- layers 2 & 3: MaxUnpool + ConvT(32->32, k3) + BN + ReLU ------------
    def unpool_conv3(acts, r_ref, sel_ref, ws_ref, bgb_ref):
        r = r_ref[...]                                        # (2L, L) row-repeat op
        ws = ws_ref[...]                                      # (3*C, C) stacked taps
        bias, gamma, beta = bgb_ref[0:1, :], bgb_ref[1:2, :], bgb_ref[2:3, :]
        ys = []
        for b in range(n_batch):
            # unpool = (repeat rows) * (0/1 select) — no scatter.
            up = jnp.dot(r, acts[b], preferred_element_type=f32) * sel_ref[b]
            x_p1, x_m1 = shifted(up)
            xs = jnp.concatenate([x_p1, up, x_m1], axis=1)    # (2L, 3*C): K = 96
            ys.append(jnp.dot(xs, ws, preferred_element_type=f32) + bias)
        return bn_relu(ys, gamma, beta)

    acts = unpool_conv3(acts, r2_ref, sel2_ref, ws2_ref, bgb2_ref)
    acts = unpool_conv3(acts, r3_ref, sel3_ref, ws3_ref, bgb3_ref)

    # -------- layer 4: MaxUnpool + ConvT(32->1, k=133, s=5) + BN(1) + ReLU ---------
    # 5-phase decomposition: output position j = 5q + r with
    #   Y[q, r] = sum_{m,c} up[q - m, c] * w4[c, 0, 5m + r]
    r4 = r4_ref[...]
    w4s = w4s_ref[...]                                        # (27*C, 5)
    g4, bt4 = gb4_ref[0:1, 0:1], gb4_ref[0:1, 1:2]
    l4 = r4_ref.shape[0]
    c4 = sel4_ref.shape[2]
    q_pad = o_ref.shape[1]
    pad_l = KTAPS4 - 1
    pad_r = q_pad - l4
    ys = []
    for b in range(n_batch):
        up = jnp.dot(r4, acts[b], preferred_element_type=f32) * sel4_ref[b]   # (L4, 32)
        xpad = jnp.concatenate(
            [jnp.zeros((pad_l, c4), f32), up, jnp.zeros((pad_r, c4), f32)], axis=0)
        taps = [xpad[pad_l - m: pad_l - m + q_pad, :] for m in range(KTAPS4)]
        xs = jnp.concatenate(taps, axis=1)                    # (q_pad, 27*C)
        # Conv bias omitted on purpose: it cancels exactly under training-mode BN.
        ys.append(jnp.dot(xs, w4s, preferred_element_type=f32))   # (q_pad, 5)

    # BN(1) statistics over the N * l_out4 real outputs.  The padded tail entries of
    # Y are exactly zero (zero input padding x zero weight padding), so summing the
    # whole array and dividing by N * l_out4 gives the exact batch statistics.
    inv_count = 1.0 / float(n_batch * l_out4)
    s = ys[0].sum(keepdims=True)
    sq = (ys[0] * ys[0]).sum(keepdims=True)
    for y in ys[1:]:
        s = s + y.sum(keepdims=True)
        sq = sq + (y * y).sum(keepdims=True)
    mean = s * inv_count
    var = sq * inv_count - mean * mean
    scale = g4 * lax.rsqrt(var + EPS)
    shift = bt4 - mean * scale
    for b in range(n_batch):
        o_ref[b] = jnp.maximum(ys[b] * scale + shift, 0.0)


# ----------------------------------------------------------------------------------
# Wrapper glue: parameter repacking, scatter-free unpool masks, single pallas_call
# ----------------------------------------------------------------------------------
def _vmem_spec():
    return pl.BlockSpec(memory_space=pltpu.MemorySpace.VMEM)


def _unpool_sel_cl(idx):
    """Channels-last 0/1 selection mask for nn.MaxUnpool1d(2, stride=2)."""
    l_out = 2 * idx.shape[2]
    idx_rep = jnp.repeat(idx, 2, axis=2)                      # [n, c, j] = idx[n, c, j//2]
    j = jnp.arange(l_out, dtype=idx_rep.dtype)[None, None, :]
    return jnp.transpose((idx_rep == j).astype(jnp.float32), (0, 2, 1))   # (N, 2L, C)


def _repeat2_matrix(l_in):
    """R[j, i] = 1 iff i == j // 2  — static row-duplication operator (2L, L)."""
    j = jnp.arange(2 * l_in)[:, None]
    i = jnp.arange(l_in)[None, :]
    return (i == j // 2).astype(jnp.float32)


def _stack_taps3(w):
    """(Cin, Cout, 3) -> (3*Cin, Cout), ordered [tap0; tap1; tap2] (K = 96 matmul)."""
    return jnp.concatenate([w[:, :, 0], w[:, :, 1], w[:, :, 2]], axis=0)


def _phase_weights(w4):
    """(Cin, 1, 133) -> (KTAPS4*Cin, 5):  W[m*Cin + c, r] = w4[c, 0, 5m + r] (0-padded)."""
    cin = w4.shape[0]
    wpad = jnp.pad(w4[:, 0, :], ((0, 0), (0, KTAPS4 * STRIDE4 - K4)))   # (Cin, 135)
    return jnp.transpose(wpad.reshape(cin, KTAPS4, STRIDE4), (1, 0, 2)).reshape(
        KTAPS4 * cin, STRIDE4)


def decoder_forward(x, pool_indices, p):
    idx = list(pool_indices)   # mirror the PyTorch .pop() semantics on a copy
    idx1 = idx.pop()           # (N, 1, L0)
    idx2 = idx.pop()           # (N, 32, 2*L0)
    idx3 = idx.pop()           # (N, 32, 4*L0)
    idx4 = idx.pop()           # (N, 32, 8*L0)

    n, _, l0 = x.shape
    l1, l2, l3, l4 = 2 * l0, 4 * l0, 8 * l0, 16 * l0
    l_out4 = (l4 - 1) * STRIDE4 + K4
    q_pad = ((l4 + KTAPS4 - 1 + 7) // 8) * 8   # phase-count padded to a sublane multiple

    # First unpool applied here (its input is the kernel input): vectorised
    # repeat + compare-mask, no XLA scatter.
    up1 = jnp.repeat(x, 2, axis=2) * (
        jnp.repeat(idx1, 2, axis=2) == jnp.arange(l1, dtype=idx1.dtype)[None, None, :])
    up1 = jnp.transpose(up1.astype(jnp.float32), (0, 2, 1))          # (N, 2*L0, 1)

    sel2 = _unpool_sel_cl(idx2)                                      # (N, L2, 32)
    sel3 = _unpool_sel_cl(idx3)                                      # (N, L3, 32)
    sel4 = _unpool_sel_cl(idx4)                                      # (N, L4, 32)
    r2, r3, r4 = _repeat2_matrix(l1), _repeat2_matrix(l2), _repeat2_matrix(l3)

    w1t = jnp.transpose(p['w1'][0], (1, 0))                          # (3, 32)
    ws2 = _stack_taps3(p['w2'])                                      # (96, 32)
    ws3 = _stack_taps3(p['w3'])                                      # (96, 32)
    w4s = _phase_weights(p['w4'])                                    # (864, 5)

    bgb1 = jnp.stack([p['b1'], p['g1'], p['bt1']], axis=0)           # (3, 32)
    bgb2 = jnp.stack([p['b2'], p['g2'], p['bt2']], axis=0)
    bgb3 = jnp.stack([p['b3'], p['g3'], p['bt3']], axis=0)
    gb4 = jnp.stack([p['g4'], p['bt4']], axis=0).reshape(1, 2)       # [[gamma4, beta4]]

    kernel = functools.partial(_decoder_kernel, n_batch=n, l_out4=l_out4)
    out = pl.pallas_call(
        kernel,
        out_shape=jax.ShapeDtypeStruct((n, q_pad, STRIDE4), jnp.float32),
        in_specs=[_vmem_spec() for _ in range(15)],
        out_specs=_vmem_spec(),
    )(up1, sel2, sel3, sel4, r2, r3, r4, w1t, ws2, ws3, w4s, bgb1, bgb2, bgb3, gb4)

    # Interleave the 5 output phases: out[n, q, r] is output position 5*q + r.
    y = out.reshape(n, q_pad * STRIDE4)[:, :l_out4]
    return y.reshape(n, 1, l_out4)


# ----------------------------------------------------------------------------------
# Pure-JAX reference (no Pallas) for the correctness check
# ----------------------------------------------------------------------------------
def _ref_max_unpool1d(x_ncl, indices):
    n, c, l = x_ncl.shape
    out = jnp.zeros((n, c, 2 * l), x_ncl.dtype)
    n_i = jnp.arange(n)[:, None, None]
    c_i = jnp.arange(c)[None, :, None]
    return out.at[n_i, c_i, indices].set(x_ncl)


def _ref_convt3_bn_relu(x, w, b, g, bt):
    xp = jnp.pad(x, ((0, 0), (0, 0), (1, 1)))
    y = (jnp.einsum('nci,co->noi', xp[:, :, 2:], w[:, :, 0])
         + jnp.einsum('nci,co->noi', xp[:, :, 1:-1], w[:, :, 1])
         + jnp.einsum('nci,co->noi', xp[:, :, :-2], w[:, :, 2])
         + b[None, :, None])
    mean = jnp.mean(y, axis=(0, 2), keepdims=True)
    var = jnp.mean((y - mean) ** 2, axis=(0, 2), keepdims=True)
    yh = (y - mean) * lax.rsqrt(var + EPS)
    return jnp.maximum(g[None, :, None] * yh + bt[None, :, None], 0.0)


def _ref_final(x, w, b, g, bt):
    n, cin, l_in = x.shape
    k = w.shape[2]
    l_out = (l_in - 1) * STRIDE4 + k
    y = jnp.zeros((n, l_out), jnp.float32)
    for i in range(l_in):
        y = y.at[:, STRIDE4 * i:STRIDE4 * i + k].add(
            jnp.einsum('nc,ck->nk', x[:, :, i], w[:, 0, :]))
    y = y + b[0]
    mean = jnp.mean(y)
    var = jnp.mean((y - mean) ** 2)
    yh = (y - mean) * lax.rsqrt(var + EPS)
    return jnp.maximum(g[0] * yh + bt[0], 0.0).reshape(n, 1, l_out)


def decoder_forward_ref(x, pool_indices, p):
    idx = list(pool_indices)
    x = _ref_max_unpool1d(x, idx.pop())
    x = _ref_convt3_bn_relu(x, p['w1'], p['b1'], p['g1'], p['bt1'])
    x = _ref_max_unpool1d(x, idx.pop())
    x = _ref_convt3_bn_relu(x, p['w2'], p['b2'], p['g2'], p['bt2'])
    x = _ref_max_unpool1d(x, idx.pop())
    x = _ref_convt3_bn_relu(x, p['w3'], p['b3'], p['g3'], p['bt3'])
    x = _ref_max_unpool1d(x, idx.pop())
    return _ref_final(x, p['w4'], p['b4'], p['g4'], p['bt4'])


# ----------------------------------------------------------------------------------
if __name__ == "__main__":
    key = jax.random.PRNGKey(0)
    keys = jax.random.split(key, 24)
    N, L0 = 2, 8   # input x: (N, 1, L0)

    params = {
        'w1': 0.2 * jax.random.normal(keys[0], (1, 32, 3), jnp.float32),
        'b1': 0.1 * jax.random.normal(keys[1], (32,), jnp.float32),
        'g1': 1.0 + 0.1 * jax.random.normal(keys[2], (32,), jnp.float32),
        'bt1': 0.1 * jax.random.normal(keys[3], (32,), jnp.float32),
        'w2': 0.2 * jax.random.normal(keys[4], (32, 32, 3), jnp.float32),
        'b2': 0.1 * jax.random.normal(keys[5], (32,), jnp.float32),
        'g2': 1.0 + 0.1 * jax.random.normal(keys[6], (32,), jnp.float32),
        'bt2': 0.1 * jax.random.normal(keys[7], (32,), jnp.float32),
        'w3': 0.2 * jax.random.normal(keys[8], (32, 32, 3), jnp.float32),
        'b3': 0.1 * jax.random.normal(keys[9], (32,), jnp.float32),
        'g3': 1.0 + 0.1 * jax.random.normal(keys[10], (32,), jnp.float32),
        'bt3': 0.1 * jax.random.normal(keys[11], (32,), jnp.float32),
        'w4': 0.05 * jax.random.normal(keys[12], (32, 1, 133), jnp.float32),
        'b4': 0.1 * jax.random.normal(keys[13], (1,), jnp.float32),
        'g4': 1.0 + 0.1 * jax.random.normal(keys[14], (1,), jnp.float32),
        'bt4': 0.1 * jax.random.normal(keys[15], (1,), jnp.float32),
    }

    x = jax.random.normal(keys[16], (N, 1, L0), jnp.float32)

    def make_idx(k, shape):
        # valid MaxUnpool1d(2,2) indices: element i came from slot 2*i or 2*i+1
        off = jax.random.bernoulli(k, 0.5, shape).astype(jnp.int32)
        L = shape[-1]
        return 2 * jnp.arange(L, dtype=jnp.int32)[None, None, :] + off

    # list is popped from the end: the LAST entry feeds the FIRST unpool
    pool_indices = [
        make_idx(keys[17], (N, 32, 8 * L0)),   # 4th unpool
        make_idx(keys[18], (N, 32, 4 * L0)),   # 3rd unpool
        make_idx(keys[19], (N, 32, 2 * L0)),   # 2nd unpool
        make_idx(keys[20], (N, 1, L0)),        # 1st unpool
    ]

    out = jax.jit(decoder_forward)(x, pool_indices, params)
    out = jax.block_until_ready(out)

    assert out.shape == (N, 1, 80 * L0 + 128), out.shape
    ref = decoder_forward_ref(x, pool_indices, params)
    max_err = float(jnp.max(jnp.abs(out - ref)))
    if not max_err < 2e-3:
        raise AssertionError(f"kernel/reference mismatch: max abs err = {max_err}")

    print("KERNEL_OK")
</pallas_src>

<mosaic_0001>
module attributes {stable_mosaic.version = 11 : i64} {
  func.func @_decoder_kernel(%arg0: memref<2x16x1xf32, #tpu.memory_space<vmem>>, %arg1: memref<2x32x32xf32, #tpu.memory_space<vmem>>, %arg2: memref<2x64x32xf32, #tpu.memory_space<vmem>>, %arg3: memref<2x128x32xf32, #tpu.memory_space<vmem>>, %arg4: memref<32x16xf32, #tpu.memory_space<vmem>>, %arg5: memref<64x32xf32, #tpu.memory_space<vmem>>, %arg6: memref<128x64xf32, #tpu.memory_space<vmem>>, %arg7: memref<3x32xf32, #tpu.memory_space<vmem>>, %arg8: memref<96x32xf32, #tpu.memory_space<vmem>>, %arg9: memref<96x32xf32, #tpu.memory_space<vmem>>, %arg10: memref<864x5xf32, #tpu.memory_space<vmem>>, %arg11: memref<3x32xf32, #tpu.memory_space<vmem>>, %arg12: memref<3x32xf32, #tpu.memory_space<vmem>>, %arg13: memref<3x32xf32, #tpu.memory_space<vmem>>, %arg14: memref<1x2xf32, #tpu.memory_space<vmem>>, %arg15: memref<2x160x5xf32, #tpu.memory_space<vmem>>) attributes {dimension_semantics = [], scalar_prefetch = 0 : i64, scratch_operands = 0 : i64, tpu.core_type = #tpu.core_type<tc>} {
    %c0 = arith.constant 0 : index
    %c0_0 = arith.constant 0 : index
    %0 = vector.load %arg7[%c0, %c0_0] : memref<3x32xf32, #tpu.memory_space<vmem>>, vector<1x32xf32>
    %c1 = arith.constant 1 : index
    %c0_1 = arith.constant 0 : index
    %1 = vector.load %arg7[%c1, %c0_1] : memref<3x32xf32, #tpu.memory_space<vmem>>, vector<1x32xf32>
    %c2 = arith.constant 2 : index
    %c0_2 = arith.constant 0 : index
    %2 = vector.load %arg7[%c2, %c0_2] : memref<3x32xf32, #tpu.memory_space<vmem>>, vector<1x32xf32>
    %c0_3 = arith.constant 0 : index
    %c0_4 = arith.constant 0 : index
    %3 = vector.load %arg11[%c0_3, %c0_4] : memref<3x32xf32, #tpu.memory_space<vmem>>, vector<1x32xf32>
    %c1_5 = arith.constant 1 : index
    %c0_6 = arith.constant 0 : index
    %4 = vector.load %arg11[%c1_5, %c0_6] : memref<3x32xf32, #tpu.memory_space<vmem>>, vector<1x32xf32>
    %c2_7 = arith.constant 2 : index
    %c0_8 = arith.constant 0 : index
    %5 = vector.load %arg11[%c2_7, %c0_8] : memref<3x32xf32, #tpu.memory_space<vmem>>, vector<1x32xf32>
    %c0_9 = arith.constant 0 : index
    %c0_10 = arith.constant 0 : index
    %c0_11 = arith.constant 0 : index
    %6 = vector.load %arg0[%c0_9, %c0_10, %c0_11] : memref<2x16x1xf32, #tpu.memory_space<vmem>>, vector<1x16x1xf32>
    %7 = vector.shape_cast %6 : vector<1x16x1xf32> to vector<16x1xf32>
    %cst = arith.constant 0.000000e+00 : f32
    %8 = vector.broadcast %cst : f32 to vector<1x1xf32>
    %9 = vector.extract_strided_slice %7 {offsets = [1, 0], sizes = [15, 1], strides = [1, 1]} : vector<16x1xf32> to vector<15x1xf32>
    %10 = tpu.concatenate %9, %8 in 0 : vector<15x1xf32>, vector<1x1xf32> -> vector<16x1xf32>
    %11 = vector.extract_strided_slice %7 {offsets = [0, 0], sizes = [15, 1], strides = [1, 1]} : vector<16x1xf32> to vector<15x1xf32>
    %12 = tpu.concatenate %8, %11 in 0 : vector<1x1xf32>, vector<15x1xf32> -> vector<16x1xf32>
    %13 = vector.broadcast %10 : vector<16x1xf32> to vector<16x32xf32>
    %14 = vector.broadcast %0 : vector<1x32xf32> to vector<16x32xf32>
    %15 = arith.mulf %13, %14 : vector<16x32xf32>
    %16 = vector.broadcast %7 : vector<16x1xf32> to vector<16x32xf32>
    %17 = vector.broadcast %1 : vector<1x32xf32> to vector<16x32xf32>
    %18 = arith.mulf %16, %17 : vector<16x32xf32>
    %19 = arith.addf %15, %18 : vector<16x32xf32>
    %20 = vector.broadcast %12 : vector<16x1xf32> to vector<16x32xf32>
    %21 = vector.broadcast %2 : vector<1x32xf32> to vector<16x32xf32>
    %22 = arith.mulf %20, %21 : vector<16x32xf32>
    %23 = arith.addf %19, %22 : vector<16x32xf32>
    %24 = vector.broadcast %3 : vector<1x32xf32> to vector<16x32xf32>
    %25 = arith.addf %23, %24 : vector<16x32xf32>
    %c1_12 = arith.constant 1 : index
    %c0_13 = arith.constant 0 : index
    %c0_14 = arith.constant 0 : index
    %26 = vector.load %arg0[%c1_12, %c0_13, %c0_14] : memref<2x16x1xf32, #tpu.memory_space<vmem>>, vector<1x16x1xf32>
    %27 = vector.shape_cast %26 : vector<1x16x1xf32> to vector<16x1xf32>
    %cst_15 = arith.constant 0.000000e+00 : f32
    %28 = vector.broadcast %cst_15 : f32 to vector<1x1xf32>
    %29 = vector.extract_strided_slice %27 {offsets = [1, 0], sizes = [15, 1], strides = [1, 1]} : vector<16x1xf32> to vector<15x1xf32>
    %30 = tpu.concatenate %29, %28 in 0 : vector<15x1xf32>, vector<1x1xf32> -> vector<16x1xf32>
    %31 = vector.extract_strided_slice %27 {offsets = [0, 0], sizes = [15, 1], strides = [1, 1]} : vector<16x1xf32> to vector<15x1xf32>
    %32 = tpu.concatenate %28, %31 in 0 : vector<1x1xf32>, vector<15x1xf32> -> vector<16x1xf32>
    %33 = vector.broadcast %30 : vector<16x1xf32> to vector<16x32xf32>
    %34 = vector.broadcast %0 : vector<1x32xf32> to vector<16x32xf32>
    %35 = arith.mulf %33, %34 : vector<16x32xf32>
    %36 = vector.broadcast %27 : vector<16x1xf32> to vector<16x32xf32>
    %37 = vector.broadcast %1 : vector<1x32xf32> to vector<16x32xf32>
    %38 = arith.mulf %36, %37 : vector<16x32xf32>
    %39 = arith.addf %35, %38 : vector<16x32xf32>
    %40 = vector.broadcast %32 : vector<16x1xf32> to vector<16x32xf32>
    %41 = vector.broadcast %2 : vector<1x32xf32> to vector<16x32xf32>
    %42 = arith.mulf %40, %41 : vector<16x32xf32>
    %43 = arith.addf %39, %42 : vector<16x32xf32>
    %44 = vector.broadcast %3 : vector<1x32xf32> to vector<16x32xf32>
    %45 = arith.addf %43, %44 : vector<16x32xf32>
    %cst_16 = arith.constant dense<0.000000e+00> : vector<32xf32>
    %46 = vector.multi_reduction <add>, %25, %cst_16 [0] : vector<16x32xf32> to vector<32xf32>
    %47 = vector.shape_cast %46 : vector<32xf32> to vector<1x32xf32>
    %48 = arith.mulf %25, %25 : vector<16x32xf32>
    %cst_17 = arith.constant dense<0.000000e+00> : vector<32xf32>
    %49 = vector.multi_reduction <add>, %48, %cst_17 [0] : vector<16x32xf32> to vector<32xf32>
    %50 = vector.shape_cast %49 : vector<32xf32> to vector<1x32xf32>
    %cst_18 = arith.constant dense<0.000000e+00> : vector<32xf32>
    %51 = vector.multi_reduction <add>, %45, %cst_18 [0] : vector<16x32xf32> to vector<32xf32>
    %52 = vector.shape_cast %51 : vector<32xf32> to vector<1x32xf32>
    %53 = arith.addf %47, %52 : vector<1x32xf32>
    %54 = arith.mulf %45, %45 : vector<16x32xf32>
    %cst_19 = arith.constant dense<0.000000e+00> : vector<32xf32>
    %55 = vector.multi_reduction <add>, %54, %cst_19 [0] : vector<16x32xf32> to vector<32xf32>
    %56 = vector.shape_cast %55 : vector<32xf32> to vector<1x32xf32>
    %57 = arith.addf %50, %56 : vector<1x32xf32>
    %cst_20 = arith.constant 3.125000e-02 : f32
    %58 = vector.broadcast %cst_20 : f32 to vector<1x32xf32>
    %59 = arith.mulf %53, %58 : vector<1x32xf32>
    %cst_21 = arith.constant 3.125000e-02 : f32
    %60 = vector.broadcast %cst_21 : f32 to vector<1x32xf32>
    %61 = arith.mulf %57, %60 : vector<1x32xf32>
    %62 = arith.mulf %59, %59 : vector<1x32xf32>
    %63 = arith.subf %61, %62 : vector<1x32xf32>
    %cst_22 = arith.constant 9.99999974E-6 : f32
    %64 = vector.broadcast %cst_22 : f32 to vector<1x32xf32>
    %65 = arith.addf %63, %64 : vector<1x32xf32>
    %66 = math.rsqrt %65 : vector<1x32xf32>
    %67 = arith.mulf %4, %66 : vector<1x32xf32>
    %68 = arith.mulf %59, %67 : vector<1x32xf32>
    %69 = arith.subf %5, %68 : vector<1x32xf32>
    %70 = vector.broadcast %67 : vector<1x32xf32> to vector<16x32xf32>
    %71 = arith.mulf %25, %70 : vector<16x32xf32>
    %72 = vector.broadcast %69 : vector<1x32xf32> to vector<16x32xf32>
    %73 = arith.addf %71, %72 : vector<16x32xf32>
    %cst_23 = arith.constant 0.000000e+00 : f32
    %74 = vector.broadcast %cst_23 : f32 to vector<16x32xf32>
    %75 = arith.maximumf %73, %74 : vector<16x32xf32>
    %76 = vector.broadcast %67 : vector<1x32xf32> to vector<16x32xf32>
    %77 = arith.mulf %45, %76 : vector<16x32xf32>
    %78 = vector.broadcast %69 : vector<1x32xf32> to vector<16x32xf32>
    %79 = arith.addf %77, %78 : vector<16x32xf32>
    %cst_24 = arith.constant 0.000000e+00 : f32
    %80 = vector.broadcast %cst_24 : f32 to vector<16x32xf32>
    %81 = arith.maximumf %79, %80 : vector<16x32xf32>
    %c0_25 = arith.constant 0 : index
    %c0_26 = arith.constant 0 : index
    %82 = vector.load %arg4[%c0_25, %c0_26] : memref<32x16xf32, #tpu.memory_space<vmem>>, vector<32x16xf32>
    %c0_27 = arith.constant 0 : index
    %c0_28 = arith.constant 0 : index
    %83 = vector.load %arg8[%c0_27, %c0_28] : memref<96x32xf32, #tpu.memory_space<vmem>>, vector<96x32xf32>
    %c0_29 = arith.constant 0 : index
    %c0_30 = arith.constant 0 : index
    %84 = vector.load %arg12[%c0_29, %c0_30] : memref<3x32xf32, #tpu.memory_space<vmem>>, vector<1x32xf32>
    %c1_31 = arith.constant 1 : index
    %c0_32 = arith.constant 0 : index
    %85 = vector.load %arg12[%c1_31, %c0_32] : memref<3x32xf32, #tpu.memory_space<vmem>>, vector<1x32xf32>
    %c2_33 = arith.constant 2 : index
    %c0_34 = arith.constant 0 : index
    %86 = vector.load %arg12[%c2_33, %c0_34] : memref<3x32xf32, #tpu.memory_space<vmem>>, vector<1x32xf32>
    %cst_35 = arith.constant dense<0.000000e+00> : vector<32x32xf32>
    %87 = tpu.matmul %82, %75, %cst_35 {dimension_numbers = #tpu.dot_dimension_numbers<[1], [0], [0], [1], [0, 0, 1, 1], [], []>} : vector<32x16xf32>, vector<16x32xf32>, vector<32x32xf32> -> vector<32x32xf32>
    %c0_36 = arith.constant 0 : index
    %c0_37 = arith.constant 0 : index
    %c0_38 = arith.constant 0 : index
    %88 = vector.load %arg1[%c0_36, %c0_37, %c0_38] : memref<2x32x32xf32, #tpu.memory_space<vmem>>, vector<1x32x32xf32>
    %89 = vector.shape_cast %88 : vector<1x32x32xf32> to vector<32x32xf32>
    %90 = arith.mulf %87, %89 : vector<32x32xf32>
    %cst_39 = arith.constant 0.000000e+00 : f32
    %91 = vector.broadcast %cst_39 : f32 to vector<1x32xf32>
    %92 = vector.extract_strided_slice %90 {offsets = [1, 0], sizes = [31, 32], strides = [1, 1]} : vector<32x32xf32> to vector<31x32xf32>
    %93 = tpu.concatenate %92, %91 in 0 : vector<31x32xf32>, vector<1x32xf32> -> vector<32x32xf32>
    %94 = vector.extract_strided_slice %90 {offsets = [0, 0], sizes = [31, 32], strides = [1, 1]} : vector<32x32xf32> to vector<31x32xf32>
    %95 = tpu.concatenate %91, %94 in 0 : vector<1x32xf32>, vector<31x32xf32> -> vector<32x32xf32>
    %96 = tpu.concatenate %93, %90, %95 in 1 : vector<32x32xf32>, vector<32x32xf32>, vector<32x32xf32> -> vector<32x96xf32>
    %cst_40 = arith.constant dense<0.000000e+00> : vector<32x32xf32>
    %97 = tpu.matmul %96, %83, %cst_40 {dimension_numbers = #tpu.dot_dimension_numbers<[1], [0], [0], [1], [0, 0, 1, 1], [], []>} : vector<32x96xf32>, vector<96x32xf32>, vector<32x32xf32> -> vector<32x32xf32>
    %98 = vector.broadcast %84 : vector<1x32xf32> to vector<32x32xf32>
    %99 = arith.addf %97, %98 : vector<32x32xf32>
    %cst_41 = arith.constant dense<0.000000e+00> : vector<32x32xf32>
    %100 = tpu.matmul %82, %81, %cst_41 {dimension_numbers = #tpu.dot_dimension_numbers<[1], [0], [0], [1], [0, 0, 1, 1], [], []>} : vector<32x16xf32>, vector<16x32xf32>, vector<32x32xf32> -> vector<32x32xf32>
    %c1_42 = arith.constant 1 : index
    %c0_43 = arith.constant 0 : index
    %c0_44 = arith.constant 0 : index
    %101 = vector.load %arg1[%c1_42, %c0_43, %c0_44] : memref<2x32x32xf32, #tpu.memory_space<vmem>>, vector<1x32x32xf32>
    %102 = vector.shape_cast %101 : vector<1x32x32xf32> to vector<32x32xf32>
    %103 = arith.mulf %100, %102 : vector<32x32xf32>
    %cst_45 = arith.constant 0.000000e+00 : f32
    %104 = vector.broadcast %cst_45 : f32 to vector<1x32xf32>
    %105 = vector.extract_strided_slice %103 {offsets = [1, 0], sizes = [31, 32], strides = [1, 1]} : vector<32x32xf32> to vector<31x32xf32>
    %106 = tpu.concatenate %105, %104 in 0 : vector<31x32xf32>, vector<1x32xf32> -> vector<32x32xf32>
    %107 = vector.extract_strided_slice %103 {offsets = [0, 0], sizes = [31, 32], strides = [1, 1]} : vector<32x32xf32> to vector<31x32xf32>
    %108 = tpu.concatenate %104, %107 in 0 : vector<1x32xf32>, vector<31x32xf32> -> vector<32x32xf32>
    %109 = tpu.concatenate %106, %103, %108 in 1 : vector<32x32xf32>, vector<32x32xf32>, vector<32x32xf32> -> vector<32x96xf32>
    %cst_46 = arith.constant dense<0.000000e+00> : vector<32x32xf32>
    %110 = tpu.matmul %109, %83, %cst_46 {dimension_numbers = #tpu.dot_dimension_numbers<[1], [0], [0], [1], [0, 0, 1, 1], [], []>} : vector<32x96xf32>, vector<96x32xf32>, vector<32x32xf32> -> vector<32x32xf32>
    %111 = vector.broadcast %84 : vector<1x32xf32> to vector<32x32xf32>
    %112 = arith.addf %110, %111 : vector<32x32xf32>
    %cst_47 = arith.constant dense<0.000000e+00> : vector<32xf32>
    %113 = vector.multi_reduction <add>, %99, %cst_47 [0] : vector<32x32xf32> to vector<32xf32>
    %114 = vector.shape_cast %113 : vector<32xf32> to vector<1x32xf32>
    %115 = arith.mulf %99, %99 : vector<32x32xf32>
    %cst_48 = arith.constant dense<0.000000e+00> : vector<32xf32>
    %116 = vector.multi_reduction <add>, %115, %cst_48 [0] : vector<32x32xf32> to vector<32xf32>
    %117 = vector.shape_cast %116 : vector<32xf32> to vector<1x32xf32>
    %cst_49 = arith.constant dense<0.000000e+00> : vector<32xf32>
    %118 = vector.multi_reduction <add>, %112, %cst_49 [0] : vector<32x32xf32> to vector<32xf32>
    %119 = vector.shape_cast %118 : vector<32xf32> to vector<1x32xf32>
    %120 = arith.addf %114, %119 : vector<1x32xf32>
    %121 = arith.mulf %112, %112 : vector<32x32xf32>
    %cst_50 = arith.constant dense<0.000000e+00> : vector<32xf32>
    %122 = vector.multi_reduction <add>, %121, %cst_50 [0] : vector<32x32xf32> to vector<32xf32>
    %123 = vector.shape_cast %122 : vector<32xf32> to vector<1x32xf32>
    %124 = arith.addf %117, %123 : vector<1x32xf32>
    %cst_51 = arith.constant 1.562500e-02 : f32
    %125 = vector.broadcast %cst_51 : f32 to vector<1x32xf32>
    %126 = arith.mulf %120, %125 : vector<1x32xf32>
    %cst_52 = arith.constant 1.562500e-02 : f32
    %127 = vector.broadcast %cst_52 : f32 to vector<1x32xf32>
    %128 = arith.mulf %124, %127 : vector<1x32xf32>
    %129 = arith.mulf %126, %126 : vector<1x32xf32>
    %130 = arith.subf %128, %129 : vector<1x32xf32>
    %cst_53 = arith.constant 9.99999974E-6 : f32
    %131 = vector.broadcast %cst_53 : f32 to vector<1x32xf32>
    %132 = arith.addf %130, %131 : vector<1x32xf32>
    %133 = math.rsqrt %132 : vector<1x32xf32>
    %134 = arith.mulf %85, %133 : vector<1x32xf32>
    %135 = arith.mulf %126, %134 : vector<1x32xf32>
    %136 = arith.subf %86, %135 : vector<1x32xf32>
    %137 = vector.broadcast %134 : vector<1x32xf32> to vector<32x32xf32>
    %138 = arith.mulf %99, %137 : vector<32x32xf32>
    %139 = vector.broadcast %136 : vector<1x32xf32> to vector<32x32xf32>
    %140 = arith.addf %138, %139 : vector<32x32xf32>
    %cst_54 = arith.constant 0.000000e+00 : f32
    %141 = vector.broadcast %cst_54 : f32 to vector<32x32xf32>
    %142 = arith.maximumf %140, %141 : vector<32x32xf32>
    %143 = vector.broadcast %134 : vector<1x32xf32> to vector<32x32xf32>
    %144 = arith.mulf %112, %143 : vector<32x32xf32>
    %145 = vector.broadcast %136 : vector<1x32xf32> to vector<32x32xf32>
    %146 = arith.addf %144, %145 : vector<32x32xf32>
    %cst_55 = arith.constant 0.000000e+00 : f32
    %147 = vector.broadcast %cst_55 : f32 to vector<32x32xf32>
    %148 = arith.maximumf %146, %147 : vector<32x32xf32>
    %c0_56 = arith.constant 0 : index
    %c0_57 = arith.constant 0 : index
    %149 = vector.load %arg5[%c0_56, %c0_57] : memref<64x32xf32, #tpu.memory_space<vmem>>, vector<64x32xf32>
    %c0_58 = arith.constant 0 : index
    %c0_59 = arith.constant 0 : index
    %150 = vector.load %arg9[%c0_58, %c0_59] : memref<96x32xf32, #tpu.memory_space<vmem>>, vector<96x32xf32>
    %c0_60 = arith.constant 0 : index
    %c0_61 = arith.constant 0 : index
    %151 = vector.load %arg13[%c0_60, %c0_61] : memref<3x32xf32, #tpu.memory_space<vmem>>, vector<1x32xf32>
    %c1_62 = arith.constant 1 : index
    %c0_63 = arith.constant 0 : index
    %152 = vector.load %arg13[%c1_62, %c0_63] : memref<3x32xf32, #tpu.memory_space<vmem>>, vector<1x32xf32>
    %c2_64 = arith.constant 2 : index
    %c0_65 = arith.constant 0 : index
    %153 = vector.load %arg13[%c2_64, %c0_65] : memref<3x32xf32, #tpu.memory_space<vmem>>, vector<1x32xf32>
    %cst_66 = arith.constant dense<0.000000e+00> : vector<64x32xf32>
    %154 = tpu.matmul %149, %142, %cst_66 {dimension_numbers = #tpu.dot_dimension_numbers<[1], [0], [0], [1], [0, 0, 1, 1], [], []>} : vector<64x32xf32>, vector<32x32xf32>, vector<64x32xf32> -> vector<64x32xf32>
    %c0_67 = arith.constant 0 : index
    %c0_68 = arith.constant 0 : index
    %c0_69 = arith.constant 0 : index
    %155 = vector.load %arg2[%c0_67, %c0_68, %c0_69] : memref<2x64x32xf32, #tpu.memory_space<vmem>>, vector<1x64x32xf32>
    %156 = vector.shape_cast %155 : vector<1x64x32xf32> to vector<64x32xf32>
    %157 = arith.mulf %154, %156 : vector<64x32xf32>
    %cst_70 = arith.constant 0.000000e+00 : f32
    %158 = vector.broadcast %cst_70 : f32 to vector<1x32xf32>
    %159 = vector.extract_strided_slice %157 {offsets = [1, 0], sizes = [63, 32], strides = [1, 1]} : vector<64x32xf32> to vector<63x32xf32>
    %160 = tpu.concatenate %159, %158 in 0 : vector<63x32xf32>, vector<1x32xf32> -> vector<64x32xf32>
    %161 = vector.extract_strided_slice %157 {offsets = [0, 0], sizes = [63, 32], strides = [1, 1]} : vector<64x32xf32> to vector<63x32xf32>
    %162 = tpu.concatenate %158, %161 in 0 : vector<1x32xf32>, vector<63x32xf32> -> vector<64x32xf32>
    %163 = tpu.concatenate %160, %157, %162 in 1 : vector<64x32xf32>, vector<64x32xf32>, vector<64x32xf32> -> vector<64x96xf32>
    %cst_71 = arith.constant dense<0.000000e+00> : vector<64x32xf32>
    %164 = tpu.matmul %163, %150, %cst_71 {dimension_numbers = #tpu.dot_dimension_numbers<[1], [0], [0], [1], [0, 0, 1, 1], [], []>} : vector<64x96xf32>, vector<96x32xf32>, vector<64x32xf32> -> vector<64x32xf32>
    %165 = vector.broadcast %151 : vector<1x32xf32> to vector<64x32xf32>
    %166 = arith.addf %164, %165 : vector<64x32xf32>
    %cst_72 = arith.constant dense<0.000000e+00> : vector<64x32xf32>
    %167 = tpu.matmul %149, %148, %cst_72 {dimension_numbers = #tpu.dot_dimension_numbers<[1], [0], [0], [1], [0, 0, 1, 1], [], []>} : vector<64x32xf32>, vector<32x32xf32>, vector<64x32xf32> -> vector<64x32xf32>
    %c1_73 = arith.constant 1 : index
    %c0_74 = arith.constant 0 : index
    %c0_75 = arith.constant 0 : index
    %168 = vector.load %arg2[%c1_73, %c0_74, %c0_75] : memref<2x64x32xf32, #tpu.memory_space<vmem>>, vector<1x64x32xf32>
    %169 = vector.shape_cast %168 : vector<1x64x32xf32> to vector<64x32xf32>
    %170 = arith.mulf %167, %169 : vector<64x32xf32>
    %cst_76 = arith.constant 0.000000e+00 : f32
    %171 = vector.broadcast %cst_76 : f32 to vector<1x32xf32>
    %172 = vector.extract_strided_slice %170 {offsets = [1, 0], sizes = [63, 32], strides = [1, 1]} : vector<64x32xf32> to vector<63x32xf32>
    %173 = tpu.concatenate %172, %171 in 0 : vector<63x32xf32>, vector<1x32xf32> -> vector<64x32xf32>
    %174 = vector.extract_strided_slice %170 {offsets = [0, 0], sizes = [63, 32], strides = [1, 1]} : vector<64x32xf32> to vector<63x32xf32>
    %175 = tpu.concatenate %171, %174 in 0 : vector<1x32xf32>, vector<63x32xf32> -> vector<64x32xf32>
    %176 = tpu.concatenate %173, %170, %175 in 1 : vector<64x32xf32>, vector<64x32xf32>, vector<64x32xf32> -> vector<64x96xf32>
    %cst_77 = arith.constant dense<0.000000e+00> : vector<64x32xf32>
    %177 = tpu.matmul %176, %150, %cst_77 {dimension_numbers = #tpu.dot_dimension_numbers<[1], [0], [0], [1], [0, 0, 1, 1], [], []>} : vector<64x96xf32>, vector<96x32xf32>, vector<64x32xf32> -> vector<64x32xf32>
    %178 = vector.broadcast %151 : vector<1x32xf32> to vector<64x32xf32>
    %179 = arith.addf %177, %178 : vector<64x32xf32>
    %cst_78 = arith.constant dense<0.000000e+00> : vector<32xf32>
    %180 = vector.multi_reduction <add>, %166, %cst_78 [0] : vector<64x32xf32> to vector<32xf32>
    %181 = vector.shape_cast %180 : vector<32xf32> to vector<1x32xf32>
    %182 = arith.mulf %166, %166 : vector<64x32xf32>
    %cst_79 = arith.constant dense<0.000000e+00> : vector<32xf32>
    %183 = vector.multi_reduction <add>, %182, %cst_79 [0] : vector<64x32xf32> to vector<32xf32>
    %184 = vector.shape_cast %183 : vector<32xf32> to vector<1x32xf32>
    %cst_80 = arith.constant dense<0.000000e+00> : vector<32xf32>
    %185 = vector.multi_reduction <add>, %179, %cst_80 [0] : vector<64x32xf32> to vector<32xf32>
    %186 = vector.shape_cast %185 : vector<32xf32> to vector<1x32xf32>
    %187 = arith.addf %181, %186 : vector<1x32xf32>
    %188 = arith.mulf %179, %179 : vector<64x32xf32>
    %cst_81 = arith.constant dense<0.000000e+00> : vector<32xf32>
    %189 = vector.multi_reduction <add>, %188, %cst_81 [0] : vector<64x32xf32> to vector<32xf32>
    %190 = vector.shape_cast %189 : vector<32xf32> to vector<1x32xf32>
    %191 = arith.addf %184, %190 : vector<1x32xf32>
    %cst_82 = arith.constant 7.812500e-03 : f32
    %192 = vector.broadcast %cst_82 : f32 to vector<1x32xf32>
    %193 = arith.mulf %187, %192 : vector<1x32xf32>
    %cst_83 = arith.constant 7.812500e-03 : f32
    %194 = vector.broadcast %cst_83 : f32 to vector<1x32xf32>
    %195 = arith.mulf %191, %194 : vector<1x32xf32>
    %196 = arith.mulf %193, %193 : vector<1x32xf32>
    %197 = arith.subf %195, %196 : vector<1x32xf32>
    %cst_84 = arith.constant 9.99999974E-6 : f32
    %198 = vector.broadcast %cst_84 : f32 to vector<1x32xf32>
    %199 = arith.addf %197, %198 : vector<1x32xf32>
    %200 = math.rsqrt %199 : vector<1x32xf32>
    %201 = arith.mulf %152, %200 : vector<1x32xf32>
    %202 = arith.mulf %193, %201 : vector<1x32xf32>
    %203 = arith.subf %153, %202 : vector<1x32xf32>
    %204 = vector.broadcast %201 : vector<1x32xf32> to vector<64x32xf32>
    %205 = arith.mulf %166, %204 : vector<64x32xf32>
    %206 = vector.broadcast %203 : vector<1x32xf32> to vector<64x32xf32>
    %207 = arith.addf %205, %206 : vector<64x32xf32>
    %cst_85 = arith.constant 0.000000e+00 : f32
    %208 = vector.broadcast %cst_85 : f32 to vector<64x32xf32>
    %209 = arith.maximumf %207, %208 : vector<64x32xf32>
    %210 = vector.broadcast %201 : vector<1x32xf32> to vector<64x32xf32>
    %211 = arith.mulf %179, %210 : vector<64x32xf32>
    %212 = vector.broadcast %203 : vector<1x32xf32> to vector<64x32xf32>
    %213 = arith.addf %211, %212 : vector<64x32xf32>
    %cst_86 = arith.constant 0.000000e+00 : f32
    %214 = vector.broadcast %cst_86 : f32 to vector<64x32xf32>
    %215 = arith.maximumf %213, %214 : vector<64x32xf32>
    %c0_87 = arith.constant 0 : index
    %c0_88 = arith.constant 0 : index
    %216 = vector.load %arg6[%c0_87, %c0_88] : memref<128x64xf32, #tpu.memory_space<vmem>>, vector<128x64xf32>
    %c0_89 = arith.constant 0 : index
    %c0_90 = arith.constant 0 : index
    %217 = vector.load %arg10[%c0_89, %c0_90] : memref<864x5xf32, #tpu.memory_space<vmem>>, vector<864x5xf32>
    %c0_91 = arith.constant 0 : index
    %c0_92 = arith.constant 0 : index
    %218 = vector.load %arg14[%c0_91, %c0_92] : memref<1x2xf32, #tpu.memory_space<vmem>>, vector<1x1xf32>
    %c0_93 = arith.constant 0 : index
    %c1_94 = arith.constant 1 : index
    %219 = vector.load %arg14[%c0_93, %c1_94] : memref<1x2xf32, #tpu.memory_space<vmem>>, vector<1x1xf32>
    %cst_95 = arith.constant dense<0.000000e+00> : vector<128x32xf32>
    %220 = tpu.matmul %216, %209, %cst_95 {dimension_numbers = #tpu.dot_dimension_numbers<[1], [0], [0], [1], [0, 0, 1, 1], [], []>} : vector<128x64xf32>, vector<64x32xf32>, vector<128x32xf32> -> vector<128x32xf32>
    %c0_96 = arith.constant 0 : index
    %c0_97 = arith.constant 0 : index
    %c0_98 = arith.constant 0 : index
    %221 = vector.load %arg3[%c0_96, %c0_97, %c0_98] : memref<2x128x32xf32, #tpu.memory_space<vmem>>, vector<1x128x32xf32>
    %222 = vector.shape_cast %221 : vector<1x128x32xf32> to vector<128x32xf32>
    %223 = arith.mulf %220, %222 : vector<128x32xf32>
    %cst_99 = arith.constant 0.000000e+00 : f32
    %224 = vector.broadcast %cst_99 : f32 to vector<26x32xf32>
    %cst_100 = arith.constant 0.000000e+00 : f32
    %225 = vector.broadcast %cst_100 : f32 to vector<32x32xf32>
    %226 = tpu.concatenate %224, %223, %225 in 0 : vector<26x32xf32>, vector<128x32xf32>, vector<32x32xf32> -> vector<186x32xf32>
    %227 = vector.extract_strided_slice %226 {offsets = [26, 0], sizes = [160, 32], strides = [1, 1]} : vector<186x32xf32> to vector<160x32xf32>
    %228 = vector.extract_strided_slice %226 {offsets = [25, 0], sizes = [160, 32], strides = [1, 1]} : vector<186x32xf32> to vector<160x32xf32>
    %229 = vector.extract_strided_slice %226 {offsets = [24, 0], sizes = [160, 32], strides = [1, 1]} : vector<186x32xf32> to vector<160x32xf32>
    %230 = vector.extract_strided_slice %226 {offsets = [23, 0], sizes = [160, 32], strides = [1, 1]} : vector<186x32xf32> to vector<160x32xf32>
    %231 = vector.extract_strided_slice %226 {offsets = [22, 0], sizes = [160, 32], strides = [1, 1]} : vector<186x32xf32> to vector<160x32xf32>
    %232 = vector.extract_strided_slice %226 {offsets = [21, 0], sizes = [160, 32], strides = [1, 1]} : vector<186x32xf32> to vector<160x32xf32>
    %233 = vector.extract_strided_slice %226 {offsets = [20, 0], sizes = [160, 32], strides = [1, 1]} : vector<186x32xf32> to vector<160x32xf32>
    %234 = vector.extract_strided_slice %226 {offsets = [19, 0], sizes = [160, 32], strides = [1, 1]} : vector<186x32xf32> to vector<160x32xf32>
    %235 = vector.extract_strided_slice %226 {offsets = [18, 0], sizes = [160, 32], strides = [1, 1]} : vector<186x32xf32> to vector<160x32xf32>
    %236 = vector.extract_strided_slice %226 {offsets = [17, 0], sizes = [160, 32], strides = [1, 1]} : vector<186x32xf32> to vector<160x32xf32>
    %237 = vector.extract_strided_slice %226 {offsets = [16, 0], sizes = [160, 32], strides = [1, 1]} : vector<186x32xf32> to vector<160x32xf32>
    %238 = vector.extract_strided_slice %226 {offsets = [15, 0], sizes = [160, 32], strides = [1, 1]} : vector<186x32xf32> to vector<160x32xf32>
    %239 = vector.extract_strided_slice %226 {offsets = [14, 0], sizes = [160, 32], strides = [1, 1]} : vector<186x32xf32> to vector<160x32xf32>
    %240 = vector.extract_strided_slice %226 {offsets = [13, 0], sizes = [160, 32], strides = [1, 1]} : vector<186x32xf32> to vector<160x32xf32>
    %241 = vector.extract_strided_slice %226 {offsets = [12, 0], sizes = [160, 32], strides = [1, 1]} : vector<186x32xf32> to vector<160x32xf32>
    %242 = vector.extract_strided_slice %226 {offsets = [11, 0], sizes = [160, 32], strides = [1, 1]} : vector<186x32xf32> to vector<160x32xf32>
    %243 = vector.extract_strided_slice %226 {offsets = [10, 0], sizes = [160, 32], strides = [1, 1]} : vector<186x32xf32> to vector<160x32xf32>
    %244 = vector.extract_strided_slice %226 {offsets = [9, 0], sizes = [160, 32], strides = [1, 1]} : vector<186x32xf32> to vector<160x32xf32>
    %245 = vector.extract_strided_slice %226 {offsets = [8, 0], sizes = [160, 32], strides = [1, 1]} : vector<186x32xf32> to vector<160x32xf32>
    %246 = vector.extract_strided_slice %226 {offsets = [7, 0], sizes = [160, 32], strides = [1, 1]} : vector<186x32xf32> to vector<160x32xf32>
    %247 = vector.extract_strided_slice %226 {offsets = [6, 0], sizes = [160, 32], strides = [1, 1]} : vector<186x32xf32> to vector<160x32xf32>
    %248 = vector.extract_strided_slice %226 {offsets = [5, 0], sizes = [160, 32], strides = [1, 1]} : vector<186x32xf32> to vector<160x32xf32>
    %249 = vector.extract_strided_slice %226 {offsets = [4, 0], sizes = [160, 32], strides = [1, 1]} : vector<186x32xf32> to vector<160x32xf32>
    %250 = vector.extract_strided_slice %226 {offsets = [3, 0], sizes = [160, 32], strides = [1, 1]} : vector<186x32xf32> to vector<160x32xf32>
    %251 = vector.extract_strided_slice %226 {offsets = [2, 0], sizes = [160, 32], strides = [1, 1]} : vector<186x32xf32> to vector<160x32xf32>
    %252 = vector.extract_strided_slice %226 {offsets = [1, 0], sizes = [160, 32], strides = [1, 1]} : vector<186x32xf32> to vector<160x32xf32>
    %253 = vector.extract_strided_slice %226 {offsets = [0, 0], sizes = [160, 32], strides = [1, 1]} : vector<186x32xf32> to vector<160x32xf32>
    %254 = tpu.concatenate %227, %228, %229, %230, %231, %232, %233, %234, %235, %236, %237, %238, %239, %240, %241, %242 in 1 : vector<160x32xf32>, vector<160x32xf32>, vector<160x32xf32>, vector<160x32xf32>, vector<160x32xf32>, vector<160x32xf32>, vector<160x32xf32>, vector<160x32xf32>, vector<160x32xf32>, vector<160x32xf32>, vector<160x32xf32>, vector<160x32xf32>, vector<160x32xf32>, vector<160x32xf32>, vector<160x32xf32>, vector<160x32xf32> -> vector<160x512xf32>
    %255 = tpu.concatenate %243, %244, %245, %246, %247, %248, %249, %250, %251, %252, %253 in 1 : vector<160x32xf32>, vector<160x32xf32>, vector<160x32xf32>, vector<160x32xf32>, vector<160x32xf32>, vector<160x32xf32>, vector<160x32xf32>, vector<160x32xf32>, vector<160x32xf32>, vector<160x32xf32>, vector<160x32xf32> -> vector<160x352xf32>
    %256 = tpu.concatenate %254, %255 in 1 : vector<160x512xf32>, vector<160x352xf32> -> vector<160x864xf32>
    %cst_101 = arith.constant dense<0.000000e+00> : vector<160x5xf32>
    %257 = tpu.matmul %256, %217, %cst_101 {dimension_numbers = #tpu.dot_dimension_numbers<[1], [0], [0], [1], [0, 0, 1, 1], [], []>} : vector<160x864xf32>, vector<864x5xf32>, vector<160x5xf32> -> vector<160x5xf32>
    %cst_102 = arith.constant dense<0.000000e+00> : vector<128x32xf32>
    %258 = tpu.matmul %216, %215, %cst_102 {dimension_numbers = #tpu.dot_dimension_numbers<[1], [0], [0], [1], [0, 0, 1, 1], [], []>} : vector<128x64xf32>, vector<64x32xf32>, vector<128x32xf32> -> vector<128x32xf32>
    %c1_103 = arith.constant 1 : index
    %c0_104 = arith.constant 0 : index
    %c0_105 = arith.constant 0 : index
    %259 = vector.load %arg3[%c1_103, %c0_104, %c0_105] : memref<2x128x32xf32, #tpu.memory_space<vmem>>, vector<1x128x32xf32>
    %260 = vector.shape_cast %259 : vector<1x128x32xf32> to vector<128x32xf32>
    %261 = arith.mulf %258, %260 : vector<128x32xf32>
    %cst_106 = arith.constant 0.000000e+00 : f32
    %262 = vector.broadcast %cst_106 : f32 to vector<26x32xf32>
    %cst_107 = arith.constant 0.000000e+00 : f32
    %263 = vector.broadcast %cst_107 : f32 to vector<32x32xf32>
    %264 = tpu.concatenate %262, %261, %263 in 0 : vector<26x32xf32>, vector<128x32xf32>, vector<32x32xf32> -> vector<186x32xf32>
    %265 = vector.extract_strided_slice %264 {offsets = [26, 0], sizes = [160, 32], strides = [1, 1]} : vector<186x32xf32> to vector<160x32xf32>
    %266 = vector.extract_strided_slice %264 {offsets = [25, 0], sizes = [160, 32], strides = [1, 1]} : vector<186x32xf32> to vector<160x32xf32>
    %267 = vector.extract_strided_slice %264 {offsets = [24, 0], sizes = [160, 32], strides = [1, 1]} : vector<186x32xf32> to vector<160x32xf32>
    %268 = vector.extract_strided_slice %264 {offsets = [23, 0], sizes = [160, 32], strides = [1, 1]} : vector<186x32xf32> to vector<160x32xf32>
    %269 = vector.extract_strided_slice %264 {offsets = [22, 0], sizes = [160, 32], strides = [1, 1]} : vector<186x32xf32> to vector<160x32xf32>
    %270 = vector.extract_strided_slice %264 {offsets = [21, 0], sizes = [160, 32], strides = [1, 1]} : vector<186x32xf32> to vector<160x32xf32>
    %271 = vector.extract_strided_slice %264 {offsets = [20, 0], sizes = [160, 32], strides = [1, 1]} : vector<186x32xf32> to vector<160x32xf32>
    %272 = vector.extract_strided_slice %264 {offsets = [19, 0], sizes = [160, 32], strides = [1, 1]} : vector<186x32xf32> to vector<160x32xf32>
    %273 = vector.extract_strided_slice %264 {offsets = [18, 0], sizes = [160, 32], strides = [1, 1]} : vector<186x32xf32> to vector<160x32xf32>
    %274 = vector.extract_strided_slice %264 {offsets = [17, 0], sizes = [160, 32], strides = [1, 1]} : vector<186x32xf32> to vector<160x32xf32>
    %275 = vector.extract_strided_slice %264 {offsets = [16, 0], sizes = [160, 32], strides = [1, 1]} : vector<186x32xf32> to vector<160x32xf32>
    %276 = vector.extract_strided_slice %264 {offsets = [15, 0], sizes = [160, 32], strides = [1, 1]} : vector<186x32xf32> to vector<160x32xf32>
    %277 = vector.extract_strided_slice %264 {offsets = [14, 0], sizes = [160, 32], strides = [1, 1]} : vector<186x32xf32> to vector<160x32xf32>
    %278 = vector.extract_strided_slice %264 {offsets = [13, 0], sizes = [160, 32], strides = [1, 1]} : vector<186x32xf32> to vector<160x32xf32>
    %279 = vector.extract_strided_slice %264 {offsets = [12, 0], sizes = [160, 32], strides = [1, 1]} : vector<186x32xf32> to vector<160x32xf32>
    %280 = vector.extract_strided_slice %264 {offsets = [11, 0], sizes = [160, 32], strides = [1, 1]} : vector<186x32xf32> to vector<160x32xf32>
    %281 = vector.extract_strided_slice %264 {offsets = [10, 0], sizes = [160, 32], strides = [1, 1]} : vector<186x32xf32> to vector<160x32xf32>
    %282 = vector.extract_strided_slice %264 {offsets = [9, 0], sizes = [160, 32], strides = [1, 1]} : vector<186x32xf32> to vector<160x32xf32>
    %283 = vector.extract_strided_slice %264 {offsets = [8, 0], sizes = [160, 32], strides = [1, 1]} : vector<186x32xf32> to vector<160x32xf32>
    %284 = vector.extract_strided_slice %264 {offsets = [7, 0], sizes = [160, 32], strides = [1, 1]} : vector<186x32xf32> to vector<160x32xf32>
    %285 = vector.extract_strided_slice %264 {offsets = [6, 0], sizes = [160, 32], strides = [1, 1]} : vector<186x32xf32> to vector<160x32xf32>
    %286 = vector.extract_strided_slice %264 {offsets = [5, 0], sizes = [160, 32], strides = [1, 1]} : vector<186x32xf32> to vector<160x32xf32>
    %287 = vector.extract_strided_slice %264 {offsets = [4, 0], sizes = [160, 32], strides = [1, 1]} : vector<186x32xf32> to vector<160x32xf32>
    %288 = vector.extract_strided_slice %264 {offsets = [3, 0], sizes = [160, 32], strides = [1, 1]} : vector<186x32xf32> to vector<160x32xf32>
    %289 = vector.extract_strided_slice %264 {offsets = [2, 0], sizes = [160, 32], strides = [1, 1]} : vector<186x32xf32> to vector<160x32xf32>
    %290 = vector.extract_strided_slice %264 {offsets = [1, 0], sizes = [160, 32], strides = [1, 1]} : vector<186x32xf32> to vector<160x32xf32>
    %291 = vector.extract_strided_slice %264 {offsets = [0, 0], sizes = [160, 32], strides = [1, 1]} : vector<186x32xf32> to vector<160x32xf32>
    %292 = tpu.concatenate %265, %266, %267, %268, %269, %270, %271, %272, %273, %274, %275, %276, %277, %278, %279, %280 in 1 : vector<160x32xf32>, vector<160x32xf32>, vector<160x32xf32>, vector<160x32xf32>, vector<160x32xf32>, vector<160x32xf32>, vector<160x32xf32>, vector<160x32xf32>, vector<160x32xf32>, vector<160x32xf32>, vector<160x32xf32>, vector<160x32xf32>, vector<160x32xf32>, vector<160x32xf32>, vector<160x32xf32>, vector<160x32xf32> -> vector<160x512xf32>
    %293 = tpu.concatenate %281, %282, %283, %284, %285, %286, %287, %288, %289, %290, %291 in 1 : vector<160x32xf32>, vector<160x32xf32>, vector<160x32xf32>, vector<160x32xf32>, vector<160x32xf32>, vector<160x32xf32>, vector<160x32xf32>, vector<160x32xf32>, vector<160x32xf32>, vector<160x32xf32>, vector<160x32xf32> -> vector<160x352xf32>
    %294 = tpu.concatenate %292, %293 in 1 : vector<160x512xf32>, vector<160x352xf32> -> vector<160x864xf32>
    %cst_108 = arith.constant dense<0.000000e+00> : vector<160x5xf32>
    %295 = tpu.matmul %294, %217, %cst_108 {dimension_numbers = #tpu.dot_dimension_numbers<[1], [0], [0], [1], [0, 0, 1, 1], [], []>} : vector<160x864xf32>, vector<864x5xf32>, vector<160x5xf32> -> vector<160x5xf32>
    %296 = vector.shape_cast %257 : vector<160x5xf32> to vector<1x160x5xf32>
    %cst_109 = arith.constant dense<0.000000e+00> : vector<1xf32>
    %297 = vector.multi_reduction <add>, %296, %cst_109 [1, 2] : vector<1x160x5xf32> to vector<1xf32>
    %298 = vector.shape_cast %297 : vector<1xf32> to vector<1x1x1xf32>
    %299 = vector.extract %298[0, 0, 0] : f32 from vector<1x1x1xf32>
    %300 = vector.broadcast %299 : f32 to vector<1x1xf32>
    %301 = arith.mulf %257, %257 : vector<160x5xf32>
    %302 = vector.shape_cast %301 : vector<160x5xf32> to vector<1x160x5xf32>
    %cst_110 = arith.constant dense<0.000000e+00> : vector<1xf32>
    %303 = vector.multi_reduction <add>, %302, %cst_110 [1, 2] : vector<1x160x5xf32> to vector<1xf32>
    %304 = vector.shape_cast %303 : vector<1xf32> to vector<1x1x1xf32>
    %305 = vector.extract %304[0, 0, 0] : f32 from vector<1x1x1xf32>
    %306 = vector.broadcast %305 : f32 to vector<1x1xf32>
    %307 = vector.shape_cast %295 : vector<160x5xf32> to vector<1x160x5xf32>
    %cst_111 = arith.constant dense<0.000000e+00> : vector<1xf32>
    %308 = vector.multi_reduction <add>, %307, %cst_111 [1, 2] : vector<1x160x5xf32> to vector<1xf32>
    %309 = vector.shape_cast %308 : vector<1xf32> to vector<1x1x1xf32>
    %310 = vector.extract %309[0, 0, 0] : f32 from vector<1x1x1xf32>
    %311 = vector.broadcast %310 : f32 to vector<1x1xf32>
    %312 = arith.addf %300, %311 : vector<1x1xf32>
    %313 = arith.mulf %295, %295 : vector<160x5xf32>
    %314 = vector.shape_cast %313 : vector<160x5xf32> to vector<1x160x5xf32>
    %cst_112 = arith.constant dense<0.000000e+00> : vector<1xf32>
    %315 = vector.multi_reduction <add>, %314, %cst_112 [1, 2] : vector<1x160x5xf32> to vector<1xf32>
    %316 = vector.shape_cast %315 : vector<1xf32> to vector<1x1x1xf32>
    %317 = vector.extract %316[0, 0, 0] : f32 from vector<1x1x1xf32>
    %318 = vector.broadcast %317 : f32 to vector<1x1xf32>
    %319 = arith.addf %306, %318 : vector<1x1xf32>
    %cst_113 = arith.constant 6.51041686E-4 : f32
    %320 = vector.broadcast %cst_113 : f32 to vector<1x1xf32>
    %321 = arith.mulf %312, %320 : vector<1x1xf32>
    %cst_114 = arith.constant 6.51041686E-4 : f32
    %322 = vector.broadcast %cst_114 : f32 to vector<1x1xf32>
    %323 = arith.mulf %319, %322 : vector<1x1xf32>
    %324 = arith.mulf %321, %321 : vector<1x1xf32>
    %325 = arith.subf %323, %324 : vector<1x1xf32>
    %cst_115 = arith.constant 9.99999974E-6 : f32
    %326 = vector.broadcast %cst_115 : f32 to vector<1x1xf32>
    %327 = arith.addf %325, %326 : vector<1x1xf32>
    %328 = math.rsqrt %327 : vector<1x1xf32>
    %329 = arith.mulf %218, %328 : vector<1x1xf32>
    %330 = arith.mulf %321, %329 : vector<1x1xf32>
    %331 = arith.subf %219, %330 : vector<1x1xf32>
    %332 = vector.broadcast %329 : vector<1x1xf32> to vector<160x5xf32>
    %333 = arith.mulf %257, %332 : vector<160x5xf32>
    %334 = vector.broadcast %331 : vector<1x1xf32> to vector<160x5xf32>
    %335 = arith.addf %333, %334 : vector<160x5xf32>
    %cst_116 = arith.constant 0.000000e+00 : f32
    %336 = vector.broadcast %cst_116 : f32 to vector<160x5xf32>
    %337 = arith.maximumf %335, %336 : vector<160x5xf32>
    %c0_117 = arith.constant 0 : index
    %c0_118 = arith.constant 0 : index
    %c0_119 = arith.constant 0 : index
    %338 = vector.load %arg15[%c0_117, %c0_118, %c0_119] : memref<2x160x5xf32, #tpu.memory_space<vmem>>, vector<1x160x5xf32>
    %339 = vector.shape_cast %338 : vector<1x160x5xf32> to vector<160x5xf32>
    %340 = vector.shape_cast %337 : vector<160x5xf32> to vector<1x160x5xf32>
    tpu.vector_store %arg15[%c0_117, %c0_118, %c0_119], %340 {strides = array<i32>} : memref<2x160x5xf32, #tpu.memory_space<vmem>>, vector<1x160x5xf32>,
    %341 = vector.broadcast %329 : vector<1x1xf32> to vector<160x5xf32>
    %342 = arith.mulf %295, %341 : vector<160x5xf32>
    %343 = vector.broadcast %331 : vector<1x1xf32> to vector<160x5xf32>
    %344 = arith.addf %342, %343 : vector<160x5xf32>
    %cst_120 = arith.constant 0.000000e+00 : f32
    %345 = vector.broadcast %cst_120 : f32 to vector<160x5xf32>
    %346 = arith.maximumf %344, %345 : vector<160x5xf32>
    %c1_121 = arith.constant 1 : index
    %c0_122 = arith.constant 0 : index
    %c0_123 = arith.constant 0 : index
    %347 = vector.load %arg15[%c1_121, %c0_122, %c0_123] : memref<2x160x5xf32, #tpu.memory_space<vmem>>, vector<1x160x5xf32>
    %348 = vector.shape_cast %347 : vector<1x160x5xf32> to vector<160x5xf32>
    %349 = vector.shape_cast %346 : vector<160x5xf32> to vector<1x160x5xf32>
    tpu.vector_store %arg15[%c1_121, %c0_122, %c0_123], %349 {strides = array<i32>} : memref<2x160x5xf32, #tpu.memory_space<vmem>>, vector<1x160x5xf32>,
    return
  }
}

</mosaic_0001>

<bundles_post_ra>
// kernel: decoder_forward.1
= control target key start
LH: loop header
LB: loop body
LE: loop exit
PB: predicated region body
PF: predicated region fallthrough
CT: control target
= control target key end

     0   :  { %v8142_v0 = vmov 0   ;;  %vm60_vm0 = vcmask 1046528   ;;  %vm66_vm1 = vcmask 1040384   ;;  %vm270_vm2 = vcmask 130048   ;;  %s8143_s20 = smov 32   ;;  %s8144_s24 = smov 64   ;;  %s13119_s0 = inlined_call_operand.vmem [shape: f32[2,16,1], index: 0, kind: input, shape index: {}]   ;;  %s13120_s4 = inlined_call_operand.vmem [shape: f32[32,16], index: 4, kind: input, shape index: {}]   ;;  %s13121_s7 = inlined_call_operand.vmem [shape: f32[3,32], index: 7, kind: input, shape index: {}]   ;;  %s13122_s11 = inlined_call_operand.vmem [shape: f32[3,32], index: 11, kind: input, shape index: {}]   ;;  %s13123_s8 = inlined_call_operand.vmem [shape: f32[96,32], index: 8, kind: input, shape index: {}]   ;;  %s13124_s1 = inlined_call_operand.vmem [shape: f32[2,32,32], index: 1, kind: input, shape index: {}]   ;;  %s13125_s5 = inlined_call_operand.vmem [shape: f32[64,32], index: 5, kind: input, shape index: {}]   ;;  %s13126_s12 = inlined_call_operand.vmem [shape: f32[3,32], index: 12, kind: input, shape index: {}]   ;;  %s13127_s9 = inlined_call_operand.vmem [shape: f32[96,32], index: 9, kind: input, shape index: {}]   ;;  %s13128_s2 = inlined_call_operand.vmem [shape: f32[2,64,32], index: 2, kind: input, shape index: {}]   ;;  %s13129_s10 = inlined_call_operand.vmem [shape: f32[864,5], index: 10, kind: input, shape index: {}]   ;;  %s13130_s6 = inlined_call_operand.vmem [shape: f32[128,64], index: 6, kind: input, shape index: {}]   ;;  %s13131_s13 = inlined_call_operand.vmem [shape: f32[3,32], index: 13, kind: input, shape index: {}]   ;;  %s13132_s3 = inlined_call_operand.vmem [shape: f32[2,128,32], index: 3, kind: input, shape index: {}]   ;;  %s13133_s14 = inlined_call_operand.vmem [shape: f32[1,2], index: 14, kind: input, shape index: {}]   ;;  %s13134_s15 = inlined_call_operand.vmem [shape: f32[2,160,5], index: 15, kind: output, shape index: {}]  }
   0x1   :  { %7709 = vset.pattern.permute.xlu1 %v8142_v0  ;;  %v56_v1 = vld [vmem:[%s13119_s0] sm:$0xff]  ;;  %7710 = vset.pattern.permute.xlu0 %v8142_v0  ;;  %v57_v2 = vld [vmem:[%s13119_s0 + $0x8] sm:$0xff]  ;;  %v6274_v3 = vld [vmem:[%s13119_s0 + $0x18] sm:$0xff]  ;;  %vm179_vm3 = vcmask 261120   ;;  %vm430_vm4 = vcmask 523264   ;;  %vm439_vm5 = vcmask 785408  }
   0x2   :  { %88 = vperm.xlu1 %7709, %v56_v1   ;;  %v61_v4 = vrot.slane %v56_v1, 1  ;;  %v62_v5 = vrot.slane %v57_v2, 1  ;;  %v132_v6 = vrot.slane %v6274_v3, 1  ;;  %v6273_v7 = vld [vmem:[%s13119_s0 + $0x10] sm:$0xff]  ;;  %v67_v13 = vrot.slane %v56_v1, 7  ;;  %v8253_v21 = vld [vmem:[%s13120_s4] sm:$0xff] }
   0x3   :  { %v131_v10 = vrot.slane %v6273_v7, 1  ;;  %v68_v14 = vrot.slane %v57_v2, 7  ;;  %v136_v16 = vrot.slane %v6273_v7, 7  ;;  %v137_v17 = vrot.slane %v6274_v3, 7  ;;  %6669 = vmatprep.mubr.msk.f32.mxu0 %vm270_vm2, %v8253_v21  ;;  %v6270_v28 = vld [vmem:[%s13121_s7 + $0x1] ss:$0 sm:$0xff] }
   0x4   :  { %v63_v8 = vsel %vm60_vm0, %v61_v4, %v62_v5  ;;  %v65_v9 = vsel %vm60_vm0, %v62_v5, 0.0  ;;  %v135_v11 = vsel %vm60_vm0, %v132_v6, 0.0  ;;  %v71_v18 = vsel %vm66_vm1, 0.0, %v67_v13  ;;  %v6269_v29 = vld [vmem:[%s13121_s7] ss:$0 sm:$0xff]  ;;  %s8147_s29 = smov 96  }
   0x5   :  { %73 = vperm.xlu0 %7710, %v63_v8   ;;  %v133_v12 = vsel %vm60_vm0, %v131_v10, %v132_v6  ;;  %v69_v15 = vsel %vm66_vm1, %v67_v13, %v68_v14  ;;  %v138_v19 = vsel %vm66_vm1, %v136_v16, %v137_v17  ;;  %v140_v20 = vsel %vm66_vm1, 0.0, %v136_v16  ;;  %v6271_v32 = vld [vmem:[%s13121_s7 + $0x2] ss:$0 sm:$0xff]  ;;  %v6272_v41 = vld [vmem:[%s13122_s11] ss:$0 sm:$0xff] }
   0x6   :  { %92 = vperm.xlu1 %7709, %v57_v2   ;;  %vm2699_vm6 = vcmask 1045504   ;;  %vm2202_vm7 = vcmask 1041408   ;;  %vm2601_vm8 = vcmask 1044480   ;;  %vm2445_vm9 = vcmask 1042432  }
   0x7   :  { %vm2543_vm10 = vcmask 1043456   ;;  %vm5834_vm11 = vcmask 39936  }
   0x9   :  { %78 = vperm.xlu0 %7710, %v65_v9  }
   0xa   :  { %147 = vperm.xlu1 %7709, %v135_v11  }
   0xd   :  { %142 = vperm.xlu0 %7710, %v133_v12  }
   0xe   :  { %157 = vperm.xlu1 %7709, %v6274_v3  }
  0x11   :  { %153 = vperm.xlu0 %7710, %v6273_v7  }
  0x12   :  { %109 = vperm.xlu1 %7709, %v69_v15  }
  0x15   :  { %105 = vperm.xlu0 %7710, %v71_v18  }
  0x16   :  { %170 = vperm.xlu1 %7709, %v138_v19  }
  0x19   :  { %166 = vperm.xlu0 %7710, %v140_v20  }
  0x81   :  { %v89_v22 = vpop.permute.xlu1 %88 }
  0x82   :  { %v99_v35 = vmul.f32 %v6270_v28, %v89_v22 }
  0x84   :  { %v74_v23 = vpop.permute.xlu0 %73 }
  0x85   :  { %v93_v24 = vpop.permute.xlu1 %92  ;;  %v85_v36 = vmul.f32 %v6269_v29, %v74_v23 }
  0x86   :  { %v100_v33 = vmul.f32 %v6270_v28, %v93_v24 }
  0x87   :  { %v101_v45 = vadd.f32 %v99_v35, %v85_v36 }
  0x88   :  { %v79_v25 = vpop.permute.xlu0 %78 }
  0x89   :  { %v148_v26 = vpop.permute.xlu1 %147  ;;  %v86_v31 = vmul.f32 %v6269_v29, %v79_v25 }
  0x8a   :  { %v151_v42 = vmul.f32 %v6269_v29, %v148_v26 }
  0x8b   :  { %v102_v38 = vadd.f32 %v100_v33, %v86_v31 }
  0x8c   :  { %v143_v27 = vpop.permute.xlu0 %142 }
  0x8d   :  { %v158_v30 = vpop.permute.xlu1 %157  ;;  %v150_v52 = vmul.f32 %v6269_v29, %v143_v27 }
  0x8e   :  { %v161_v39 = vmul.f32 %v6270_v28, %v158_v30 }
  0x90   :  { %v154_v34 = vpop.permute.xlu0 %153  ;;  %v163_v49 = vadd.f32 %v161_v39, %v151_v42 }
  0x91   :  { %v110_v37 = vpop.permute.xlu1 %109  ;;  %v160_v46 = vmul.f32 %v6270_v28, %v154_v34 }
  0x92   :  { %v117_v40 = vmul.f32 %v6271_v32, %v110_v37 }
  0x93   :  { %v162_v56 = vadd.f32 %v160_v46, %v150_v52  ;;  %v231_v46 = vlaneseq }
  0x94   :  { %v119_v43 = vadd.f32 %v117_v40, %v102_v38  ;;  %v106_v44 = vpop.permute.xlu0 %105 }
  0x95   :  { %v116_v47 = vmul.f32 %v6271_v32, %v106_v44  ;;  %v171_v48 = vpop.permute.xlu1 %170 }
  0x96   :  { %v8269_v50 = vadd.f32 %v6272_v41, %v119_v43  ;;  %v174_v51 = vmul.f32 %v6271_v32, %v171_v48  ;;  %v54_v48 = vld [vmem:[%s13122_s11 + $0x1] sm:$0x1] }
  0x97   :  { %v118_v53 = vadd.f32 %v116_v47, %v101_v45  ;;  %v232_v47 = vshrl.u32 %v231_v46, 7 }
  0x98   :  { %v176_v54 = vadd.f32 %v174_v51, %v163_v49  ;;  %v167_v55 = vpop.permute.xlu0 %166  ;;  %v190_v57 = vmul.f32 %v8269_v50, %v8269_v50  ;;  %v181_v61 = vsel %vm179_vm3, %v8269_v50, 0.0 }
  0x99   :  { %v124_v58 = vadd.f32 %v6272_v41, %v118_v53  ;;  %v173_v59 = vmul.f32 %v6271_v32, %v167_v55  ;;  %v8290_v49 = vsub.s32 0, %v232_v47  ;;  %v55_v53 = vld [vmem:[%s13122_s11 + $0x2] sm:$0x1] }
  0x9a   :  { %v8273_v60 = vadd.f32 %v6272_v41, %v176_v54  ;;  %v192_v2 = vsel %vm179_vm3, %v190_v57, 0.0 }
  0x9b   :  { %v180_v62 = vsel %vm179_vm3, %v124_v58, 0.0  ;;  %v189_v63 = vmul.f32 %v124_v58, %v124_v58  ;;  %v175_v0 = vadd.f32 %v173_v59, %v162_v56  ;;  %13363 = vst [vmem:[#allocation2_spill] sm:$0xff] %v8290_v49 }
  0x9c   :  { %v182_v1 = vadd.f32 %v181_v61, %v180_v62  ;;  %v211_v4 = vmul.f32 %v8273_v60, %v8273_v60  ;;  %v201_v8 = vsel %vm179_vm3, %v8273_v60, 0.0 }
  0x9d   :  { %v191_v3 = vsel %vm179_vm3, %v189_v63, 0.0  ;;  %v177_v5 = vadd.f32 %v6272_v41, %v175_v0 }
  0x9e   :  { %v183_v6 = vrot.slane %v182_v1, 4  ;;  %v193_v7 = vadd.f32 %v192_v2, %v191_v3  ;;  %v213_v14 = vsel %vm179_vm3, %v211_v4, 0.0 }
  0x9f   :  { %v200_v9 = vsel %vm179_vm3, %v177_v5, 0.0  ;;  %v210_v10 = vmul.f32 %v177_v5, %v177_v5 }
  0xa0   :  { %v184_v11 = vadd.f32 %v183_v6, %v182_v1  ;;  %v194_v12 = vrot.slane %v193_v7, 4  ;;  %v202_v13 = vadd.f32 %v201_v8, %v200_v9 }
  0xa1   :  { %v212_v15 = vsel %vm179_vm3, %v210_v10, 0.0 }
  0xa2   :  { %v185_v16 = vrot.slane %v184_v11, 2  ;;  %v195_v17 = vadd.f32 %v194_v12, %v193_v7  ;;  %v203_v18 = vrot.slane %v202_v13, 4  ;;  %v214_v19 = vadd.f32 %v213_v14, %v212_v15  ;;  %v257_v12 = vld [vmem:[%s13123_s8 + $0x10] sm:$0xff]  ;;  %v259_v15 = vld [vmem:[%s13123_s8 + $0x20] sm:$0xff] }
  0xa4   :  { %v186_v20 = vadd.f32 %v185_v16, %v184_v11  ;;  %v196_v22 = vrot.slane %v195_v17, 2  ;;  %v204_v23 = vadd.f32 %v203_v18, %v202_v13  ;;  %v215_v24 = vrot.slane %v214_v19, 4  ;;  %v256_v11 = vld [vmem:[%s13123_s8 + $0x8] sm:$0xff]  ;;  %v261_v18 = vld [vmem:[%s13123_s8 + $0x30] sm:$0xff] }
  0xa5   :  { %v260_v16 = vld [vmem:[%s13123_s8 + $0x28] sm:$0xff] }
  0xa6   :  { %v197_v25 = vadd.f32 %v196_v22, %v195_v17  ;;  %v205_v26 = vrot.slane %v204_v23, 2  ;;  %v216_v27 = vadd.f32 %v215_v24, %v214_v19  ;;  %v187_v28 = vrot.slane %v186_v20, 1  ;;  %v262_v19 = vld [vmem:[%s13123_s8 + $0x38] sm:$0xff]  ;;  %v263_v22 = vld [vmem:[%s13123_s8 + $0x40] sm:$0xff] }
  0xa7   :  { %v7057_v17 = vpack.c.bf16 %v260_v16, %v259_v15 }
  0xa8   :  { %v206_v29 = vadd.f32 %v205_v26, %v204_v23  ;;  %v217_v30 = vrot.slane %v216_v27, 2  ;;  %v198_v31 = vrot.slane %v197_v25, 1  ;;  %v188_v34 = vadd.f32 %v187_v28, %v186_v20  ;;  %v264_v23 = vld [vmem:[%s13123_s8 + $0x48] sm:$0xff]  ;;  %v266_v26 = vld [vmem:[%s13123_s8 + $0x58] sm:$0xff] }
  0xa9   :  { %v7061_v20 = vpack.c.bf16 %v262_v19, %v261_v18  ;;  %v7065_v24 = vpack.c.bf16 %v264_v23, %v263_v22  ;;  %v369_v28 = vld [vmem:[%s13124_s1 + $0x8] sm:$0xff] }
  0xaa   :  { %v207_v32 = vrot.slane %v206_v29, 1  ;;  %v218_v33 = vadd.f32 %v217_v30, %v216_v27  ;;  %v199_v37 = vadd.f32 %v198_v31, %v197_v25  ;;  %v265_v25 = vld [vmem:[%s13123_s8 + $0x50] sm:$0xff] }
  0xab   :  { %v7069_v27 = vpack.c.bf16 %v266_v26, %v265_v25 }
  0xac   :  { %v208_v35 = vadd.f32 %v207_v32, %v206_v29  ;;  %v219_v36 = vrot.slane %v218_v33, 1  ;;  %v368_v29 = vld [vmem:[%s13124_s1] sm:$0xff] }
  0xae   :  { %v220_v38 = vadd.f32 %v219_v36, %v218_v33  ;;  %v209_v39 = vadd.f32 %v208_v35, %v188_v34  ;;  %v371_v34 = vld [vmem:[%s13124_s1 + $0x18] sm:$0xff] }
  0xb0   :  { %v221_v40 = vadd.f32 %v220_v38, %v199_v37  ;;  %v222_v41 = vmul.f32 0.03125, %v209_v39  ;;  %v370_v37 = vld [vmem:[%s13124_s1 + $0x10] sm:$0xff] }
  0xb2   :  { %v223_v42 = vmul.f32 0.03125, %v221_v40  ;;  %v224_v43 = vmul.f32 %v222_v41, %v222_v41 }
  0xb4   :  { %v225_v44 = vsub.f32 %v223_v42, %v224_v43 }
  0xb6   :  { %v226_v45 = vadd.f32 1e-05, %v225_v44 }
  0xb8   :  { %8118 = vrsqrt.f32 %v226_v45  ;;  %v6289_v45 = vld [vmem:[%s13124_s1 + $0x28] sm:$0xff] }
  0xc2   :  { %v8119_v51 = vpop.eup %8118 }
  0xc3   :  { %v228_v52 = vmul.f32 %v8119_v51, %v54_v48 }
  0xc5   :  { %v229_v54 = vmul.f32 %v228_v52, %v222_v41  ;;  %v234_v55 = vrot.slane %v228_v52, %v8290_v49  ;;  %v6288_v52 = vld [vmem:[%s13124_s1 + $0x20] sm:$0xff] }
  0xc7   :  { %v230_v56 = vsub.f32 %v55_v53, %v229_v54  ;;  %v235_v57 = vmul.f32 %v234_v55, %v124_v58  ;;  %v236_v59 = vmul.f32 %v234_v55, %v8269_v50  ;;  %v245_v62 = vmul.f32 %v234_v55, %v177_v5  ;;  %v252_v50 = vld [vmem:[%s13120_s4 + $0x8] sm:$0xff]  ;;  %v253_v58 = vld [vmem:[%s13120_s4 + $0x10] sm:$0xff]  ;;  %v255_v5 = vld [vmem:[%s13123_s8] sm:$0xff] }
  0xc8   :  { %v246_v63 = vmul.f32 %v234_v55, %v8273_v60  ;;  %v254_v60 = vld [vmem:[%s13120_s4 + $0x18] sm:$0xff]  ;;  %v7049_v13 = vpack.c.bf16 %v256_v11, %v255_v5 }
  0xc9   :  { %v240_v61 = vrot.slane %v230_v56, %v8290_v49 }
  0xca   :  { %7050 = vmatprep.subr.bf16.mxu1 %v7049_v13 }
  0xcb   :  { %v241_v0 = vadd.f32 %v240_v61, %v235_v57  ;;  %v242_v1 = vadd.f32 %v240_v61, %v236_v59  ;;  %v247_v2 = vadd.f32 %v245_v62, %v240_v61  ;;  %v248_v3 = vadd.f32 %v246_v63, %v240_v61  ;;  %7052 = vmatpush3.bf16.msra.mxu1 %v7049_v13  ;;  %v6291_v62 = vld [vmem:[%s13124_s1 + $0x38] sm:$0xff] }
  0xcd   :  { %v243_v4 = vmax.f32 %v241_v0, 0.0  ;;  %v244_v6 = vmax.f32 %v242_v1, 0.0  ;;  %v249_v7 = vmax.f32 %v247_v2, 0.0  ;;  %v250_v8 = vmax.f32 %v248_v3, 0.0  ;;  %v6290_v3 = vld [vmem:[%s13124_s1 + $0x30] sm:$0xff] }
  0xcf   :  { %v7045_v9 = vpack.c.bf16 %v244_v6, %v243_v4  ;;  %v7073_v10 = vpack.c.bf16 %v250_v8, %v249_v7 }
  0xd1   :  { %7046 = vmatprep.subr.bf16.mxu0 %v7045_v9 }
  0xd2   :  { %7048 = vmatpush3.bf16.msra.mxu0 %v7045_v9 }
  0xd3   :  { %7074 = vmatprep.subr.bf16.mxu0 %v7073_v10 }
  0xd5   :  { %6670 = vmatmul.mubr.msk.f32.vlgmr.msra.gmra.mrb[0].mxu0 %vm270_vm2, %v252_v50 }
  0xd6   :  { %7076 = vmatpush3.bf16.msra.mxu0 %v7073_v10  ;;  %6672 = vmatprep.mubr.msk.f32.mxu0 %vm270_vm2, %v253_v58 }
  0xd7   :  { %7078 = vmatprep.subr.bf16.mxu0 %v7049_v13 }
  0xd9   :  { %6673 = vmatmul.mubr.msk.f32.gmra.mrb[2].mxu0 %vm270_vm2, %v254_v60 }
  0xda   :  { %6709 = vmatprep.mubr.msk.f32.mxu0 %vm270_vm2, %v8253_v21  ;;  %v258_v21 = vld [vmem:[%s13123_s8 + $0x18] sm:$0xff] }
  0xdb   :  { %v7053_v14 = vpack.c.bf16 %v258_v21, %v257_v12 }
  0xdd   :  { %6710 = vmatmul.mubr.msk.f32.vlgmr.msra.gmra.mrb[4].mxu0 %vm270_vm2, %v252_v50  ;;  %7054 = vmatprep.subr.bf16.mxu1 %v7053_v14 }
  0xde   :  { %6712 = vmatprep.mubr.msk.f32.mxu0 %vm270_vm2, %v253_v58  ;;  %7080 = vmatpush3.bf16.msra.mxu0 %v7049_v13 }
  0xdf   :  { %7082 = vmatprep.subr.bf16.mxu0 %v7053_v14  ;;  %7056 = vmatpush3.bf16.msra.mxu1 %v7053_v14 }
  0xe0   :  { %7058 = vmatprep.subr.bf16.mxu1 %v7057_v17 }
  0xe1   :  { %6713 = vmatmul.mubr.msk.f32.gmra.mrb[6].mxu0 %vm270_vm2, %v254_v60 }
  0xe2   :  { %7084 = vmatpush3.bf16.msra.mxu0 %v7053_v14 }
  0xe3   :  { %7086 = vmatprep.subr.bf16.mxu0 %v7057_v17  ;;  %7060 = vmatpush3.bf16.msra.mxu1 %v7057_v17 }
  0xe4   :  { %7062 = vmatprep.subr.bf16.mxu1 %v7061_v20 }
  0xe6   :  { %7088 = vmatpush3.bf16.msra.mxu0 %v7057_v17 }
  0xe7   :  { %7090 = vmatprep.subr.bf16.mxu0 %v7061_v20  ;;  %7064 = vmatpush3.bf16.msra.mxu1 %v7061_v20 }
  0xe8   :  { %7066 = vmatprep.subr.bf16.mxu1 %v7065_v24 }
  0xea   :  { %7092 = vmatpush3.bf16.msra.mxu0 %v7061_v20 }
  0xeb   :  { %7094 = vmatprep.subr.bf16.mxu0 %v7065_v24  ;;  %7068 = vmatpush3.bf16.msra.mxu1 %v7065_v24 }
  0xec   :  { %7070 = vmatprep.subr.bf16.mxu1 %v7069_v27 }
  0xee   :  { %7096 = vmatpush3.bf16.msra.mxu0 %v7065_v24 }
  0xef   :  { %7098 = vmatprep.subr.bf16.mxu0 %v7069_v27  ;;  %7072 = vmatpush3.bf16.msra.mxu1 %v7069_v27 }
  0xf2   :  { %7100 = vmatpush3.bf16.msra.mxu0 %v7069_v27 }
 0x1a8   :  { %v6671_v30 = vpop.f32.mrb[0].mxu0 }
 0x1a9   :  { %v373_v31 = vmul.f32 %v6671_v30, %v369_v28  ;;  %v349_v32 = vpop.f32.mrb[1].mxu0 }
 0x1aa   :  { %v372_v33 = vmul.f32 %v368_v29, %v349_v32 }
 0x1ab   :  { %v381_v35 = vrot.slane %v373_v31, 1  ;;  %v393_v36 = vrot.slane %v373_v31, 7  ;;  %403 = vrot.lane.b32.xlu0 %v373_v31, %s8143_s20 }
 0x1ac   :  { %v380_v38 = vrot.slane %v372_v33, 1  ;;  %v6674_v39 = vpop.f32.mrb[2].mxu0  ;;  %v392_v40 = vrot.slane %v372_v33, 7 }
 0x1ad   :  { %v8365_v41 = vmul.f32 %v6674_v39, %v371_v34  ;;  %v359_v42 = vpop.f32.mrb[3].mxu0 }
 0x1ae   :  { %v374_v43 = vmul.f32 %v370_v37, %v359_v42  ;;  %v400_v44 = vsel %vm66_vm1, 0.0, %v392_v40  ;;  %v394_v46 = vsel %vm66_vm1, %v392_v40, %v393_v36  ;;  %v382_v47 = vsel %vm60_vm0, %v380_v38, %v381_v35 }
 0x1af   :  { %v385_v48 = vrot.slane %v8365_v41, 1  ;;  %v397_v51 = vrot.slane %v8365_v41, 7  ;;  %401 = vrot.lane.b32.xlu0 %v372_v33, %s8143_s20  ;;  %414 = vrot.lane.b32.xlu1 %v400_v44, %s8144_s24 }
 0x1b0   :  { %v383_v53 = vrot.slane %v374_v43, 1  ;;  %v395_v54 = vrot.slane %v374_v43, 7  ;;  %v6711_v55 = vpop.f32.mrb[4].mxu0 }
 0x1b1   :  { %v628_v56 = vmul.f32 %v6711_v55, %v6289_v45  ;;  %v603_v57 = vpop.f32.mrb[5].mxu0  ;;  %v889_v55 = vld [vmem:[%s13125_s5] sm:$0xff] }
 0x1b2   :  { %v627_v59 = vmul.f32 %v6288_v52, %v603_v57  ;;  %v396_v61 = vsel %vm66_vm1, %v393_v36, %v395_v54  ;;  %v398_v63 = vsel %vm66_vm1, %v395_v54, %v397_v51  ;;  %v384_v0 = vsel %vm60_vm0, %v381_v35, %v383_v53 }
 0x1b3   :  { %v636_v1 = vrot.slane %v628_v56, 1  ;;  %v648_v2 = vrot.slane %v628_v56, 7  ;;  %416 = vrot.lane.b32.xlu0 %v394_v46, %s8144_s24  ;;  %418 = vrot.lane.b32.xlu1 %v396_v61, %s8144_s24  ;;  %v386_v4 = vsel %vm60_vm0, %v383_v53, %v385_v48 }
 0x1b4   :  { %v635_v6 = vrot.slane %v627_v59, 1  ;;  %v6714_v7 = vpop.f32.mrb[6].mxu0  ;;  %v647_v8 = vrot.slane %v627_v59, 7 }
 0x1b5   :  { %v8394_v9 = vmul.f32 %v6714_v7, %v6291_v62  ;;  %v613_v10 = vpop.f32.mrb[7].mxu0 }
 0x1b6   :  { %v629_v50 = vmul.f32 %v6290_v3, %v613_v10  ;;  %v649_v58 = vsel %vm66_vm1, %v647_v8, %v648_v2  ;;  %v637_v60 = vsel %vm60_vm0, %v635_v6, %v636_v1  ;;  %v655_v21 = vsel %vm66_vm1, 0.0, %v647_v8 }
 0x1b7   :  { %v640_v5 = vrot.slane %v8394_v9, 1  ;;  %v652_v11 = vrot.slane %v8394_v9, 7  ;;  %407 = vrot.lane.b32.xlu0 %v8365_v41, %s8143_s20  ;;  %656 = vrot.lane.b32.xlu1 %v627_v59, %s8143_s20 }
 0x1b8   :  { %v638_v12 = vrot.slane %v629_v50, 1  ;;  %v650_v13 = vrot.slane %v629_v50, 7 }
 0x1b9   :  { %v646_v53 = vsel %vm60_vm0, %v640_v5, 0.0 }
 0x1ba   :  { %v651_v14 = vsel %vm66_vm1, %v648_v2, %v650_v13  ;;  %v653_v15 = vsel %vm66_vm1, %v650_v13, %v652_v11  ;;  %v639_v16 = vsel %vm60_vm0, %v636_v1, %v638_v12  ;;  %v641_v17 = vsel %vm60_vm0, %v638_v12, %v640_v5 }
 0x1bb   :  { %405 = vrot.lane.b32.xlu0 %v374_v43, %s8143_s20  ;;  %669 = vrot.lane.b32.xlu1 %v655_v21, %s8144_s24  ;;  %v391_v43 = vsel %vm60_vm0, %v385_v48, 0.0 }
 0x1bf   :  { %658 = vrot.lane.b32.xlu0 %v628_v56, %s8143_s20  ;;  %671 = vrot.lane.b32.xlu1 %v649_v58, %s8144_s24  ;;  %v6279_v56 = vld [vmem:[%s13126_s12] ss:$0 sm:$0xff] }
 0x1c3   :  { %662 = vrot.lane.b32.xlu0 %v8394_v9, %s8143_s20  ;;  %660 = vrot.lane.b32.xlu1 %v629_v50, %s8143_s20 }
 0x1c7   :  { %420 = vrot.lane.b32.xlu0 %v398_v63, %s8144_s24  ;;  %673 = vrot.lane.b32.xlu1 %v651_v14, %s8144_s24 }
 0x1cb   :  { %675 = vrot.lane.b32.xlu1 %v653_v15, %s8144_s24 }
 0x21d   :  { %v404_v18 = vpop.permute.xlu0 %403 }
 0x21e   :  { %v427_v24 = vsel %vm179_vm3, %v384_v0, %v404_v18 }
 0x221   :  { %v402_v19 = vpop.permute.xlu0 %401  ;;  %v415_v20 = vpop.permute.xlu1 %414 }
 0x222   :  { %v426_v22 = vsel %vm179_vm3, %v382_v47, %v402_v19 }
 0x223   :  { %v431_v23 = vsel %vm430_vm4, %v426_v22, %v415_v20 }
 0x224   :  { %6699 = vmatprep.mubr.msk.f32.mxu1 %vm439_vm5, %v431_v23 }
 0x225   :  { %v417_v25 = vpop.permute.xlu0 %416  ;;  %v419_v26 = vpop.permute.xlu1 %418 }
 0x226   :  { %v432_v27 = vsel %vm430_vm4, %v427_v24, %v417_v25 }
 0x227   :  { %6700 = vmatmul.mubr.msk.f32.vlgmr.msra.gmra.mrb[0].mxu1 %vm439_vm5, %v432_v27 }
 0x229   :  { %v408_v28 = vpop.permute.xlu0 %407  ;;  %v657_v29 = vpop.permute.xlu1 %656 }
 0x22a   :  { %v681_v30 = vsel %vm179_vm3, %v637_v60, %v657_v29  ;;  %v429_v44 = vsel %vm179_vm3, %v391_v43, %v408_v28 }
 0x22d   :  { %v406_v31 = vpop.permute.xlu0 %405  ;;  %v670_v32 = vpop.permute.xlu1 %669 }
 0x22e   :  { %v428_v33 = vsel %vm179_vm3, %v386_v4, %v406_v31  ;;  %v685_v34 = vsel %vm430_vm4, %v681_v30, %v670_v32 }
 0x22f   :  { %6739 = vmatprep.mubr.msk.f32.mxu0 %vm439_vm5, %v685_v34  ;;  %v433_v35 = vsel %vm430_vm4, %v428_v33, %v419_v26 }
 0x230   :  { %6702 = vmatprep.mubr.msk.f32.mxu1 %vm439_vm5, %v433_v35 }
 0x231   :  { %v659_v36 = vpop.permute.xlu0 %658  ;;  %v672_v37 = vpop.permute.xlu1 %671 }
 0x232   :  { %v682_v38 = vsel %vm179_vm3, %v639_v16, %v659_v36 }
 0x233   :  { %v686_v39 = vsel %vm430_vm4, %v682_v38, %v672_v37 }
 0x234   :  { %6740 = vmatmul.mubr.msk.f32.vlgmr.msra.gmra.mrb[8].mxu0 %vm439_vm5, %v686_v39 }
 0x235   :  { %v663_v40 = vpop.permute.xlu0 %662  ;;  %v661_v42 = vpop.permute.xlu1 %660 }
 0x236   :  { %v683_v45 = vsel %vm179_vm3, %v641_v17, %v661_v42  ;;  %v684_v41 = vsel %vm179_vm3, %v646_v53, %v663_v40 }
 0x239   :  { %v421_v46 = vpop.permute.xlu0 %420  ;;  %v674_v47 = vpop.permute.xlu1 %673 }
 0x23a   :  { %v434_v51 = vsel %vm430_vm4, %v429_v44, %v421_v46  ;;  %v687_v52 = vsel %vm430_vm4, %v683_v45, %v674_v47 }
 0x23b   :  { %6703 = vmatmul.mubr.msk.f32.gmra.mrb[2].mxu1 %vm439_vm5, %v434_v51  ;;  %6742 = vmatprep.mubr.msk.f32.mxu0 %vm439_vm5, %v687_v52 }
 0x23c   :  { %6753 = vmatprep.mubr.msk.f32.mxu1 %vm179_vm3, %v889_v55 }
 0x23d   :  { %v676_v54 = vpop.permute.xlu1 %675 }
 0x23e   :  { %v688_v48 = vsel %vm430_vm4, %v684_v41, %v676_v54 }
 0x23f   :  { %6743 = vmatmul.mubr.msk.f32.gmra.mrb[10].mxu0 %vm439_vm5, %v688_v48 }
 0x240   :  { %6809 = vmatprep.mubr.msk.f32.mxu0 %vm179_vm3, %v889_v55 }
 0x2fa   :  { %v6701_v57 = vpop.f32.mrb[0].mxu1 }
 0x2fb   :  { %v8454_v59 = vadd.f32 %v6701_v57, %v6279_v56  ;;  %v518_v61 = vpop.f32.mrb[1].mxu1 }
 0x2fc   :  { %v8456_v62 = vadd.f32 %v6279_v56, %v518_v61 }
 0x2fd   :  { %v787_v63 = vsel %vm179_vm3, %v8454_v59, 0.0  ;;  %v800_v0 = vmul.f32 %v8454_v59, %v8454_v59 }
 0x2fe   :  { %v786_v1 = vsel %vm179_vm3, %v8456_v62, 0.0  ;;  %v799_v2 = vmul.f32 %v8456_v62, %v8456_v62 }
 0x2ff   :  { %v804_v3 = vsel %vm179_vm3, %v800_v0, 0.0  ;;  %v788_v4 = vadd.f32 %v787_v63, %v786_v1 }
 0x300   :  { %v803_v6 = vsel %vm179_vm3, %v799_v2, 0.0 }
 0x301   :  { %v805_v7 = vadd.f32 %v804_v3, %v803_v6 }
 0x307   :  { %v6741_v8 = vpop.f32.mrb[8].mxu0 }
 0x308   :  { %v8468_v9 = vadd.f32 %v6741_v8, %v6279_v56  ;;  %v767_v10 = vpop.f32.mrb[9].mxu0 }
 0x309   :  { %v8470_v50 = vadd.f32 %v6279_v56, %v767_v10 }
 0x30a   :  { %v817_v58 = vsel %vm179_vm3, %v8468_v9, 0.0  ;;  %v831_v60 = vmul.f32 %v8468_v9, %v8468_v9 }
 0x30b   :  { %v816_v5 = vsel %vm179_vm3, %v8470_v50, 0.0  ;;  %v830_v11 = vmul.f32 %v8470_v50, %v8470_v50 }
 0x30c   :  { %v835_v12 = vsel %vm179_vm3, %v831_v60, 0.0  ;;  %v818_v13 = vadd.f32 %v817_v58, %v816_v5 }
 0x30d   :  { %v834_v21 = vsel %vm179_vm3, %v830_v11, 0.0 }
 0x30e   :  { %v836_v14 = vadd.f32 %v835_v12, %v834_v21  ;;  %v6704_v15 = vpop.f32.mrb[2].mxu1 }
 0x30f   :  { %v8482_v16 = vadd.f32 %v6704_v15, %v6279_v56  ;;  %v528_v17 = vpop.f32.mrb[3].mxu1  ;;  %v268_v15 = vld [vmem:[%s13126_s12 + $0x1] sm:$0x1] }
 0x310   :  { %v8484_v18 = vadd.f32 %v6279_v56, %v528_v17 }
 0x311   :  { %v802_v19 = vmul.f32 %v8482_v16, %v8482_v16  ;;  %v791_v27 = vsel %vm179_vm3, %v8482_v16, 0.0 }
 0x312   :  { %v789_v20 = vsel %vm179_vm3, %v8484_v18, 0.0  ;;  %v801_v22 = vmul.f32 %v8484_v18, %v8484_v18  ;;  %v6744_v23 = vpop.f32.mrb[10].mxu0 }
 0x313   :  { %v790_v24 = vadd.f32 %v789_v20, %v788_v4  ;;  %v8492_v25 = vadd.f32 %v6744_v23, %v6279_v56  ;;  %v777_v26 = vpop.f32.mrb[11].mxu0  ;;  %v808_v32 = vsel %vm179_vm3, %v802_v19, 0.0  ;;  %v269_v20 = vld [vmem:[%s13126_s12 + $0x2] sm:$0x1] }
 0x314   :  { %v806_v28 = vsel %vm179_vm3, %v801_v22, 0.0  ;;  %v778_v29 = vadd.f32 %v6279_v56, %v777_v26 }
 0x315   :  { %v792_v30 = vadd.f32 %v791_v27, %v790_v24  ;;  %v807_v31 = vadd.f32 %v806_v28, %v805_v7  ;;  %v833_v33 = vmul.f32 %v8492_v25, %v8492_v25  ;;  %v821_v39 = vsel %vm179_vm3, %v8492_v25, 0.0 }
 0x316   :  { %v819_v34 = vsel %vm179_vm3, %v778_v29, 0.0  ;;  %v832_v35 = vmul.f32 %v778_v29, %v778_v29 }
 0x317   :  { %v793_v36 = vrot.slane %v792_v30, 4  ;;  %v809_v37 = vadd.f32 %v808_v32, %v807_v31  ;;  %v820_v38 = vadd.f32 %v819_v34, %v818_v13  ;;  %v839_v46 = vsel %vm179_vm3, %v833_v33, 0.0 }
 0x318   :  { %v837_v40 = vsel %vm179_vm3, %v832_v35, 0.0 }
 0x319   :  { %v794_v42 = vadd.f32 %v793_v36, %v792_v30  ;;  %v810_v43 = vrot.slane %v809_v37, 4  ;;  %v822_v44 = vadd.f32 %v821_v39, %v820_v38  ;;  %v838_v45 = vadd.f32 %v837_v40, %v836_v14 }
 0x31b   :  { %v795_v47 = vrot.slane %v794_v42, 2  ;;  %v811_v51 = vadd.f32 %v810_v43, %v809_v37  ;;  %v823_v52 = vrot.slane %v822_v44, 4  ;;  %v840_v53 = vadd.f32 %v839_v46, %v838_v45 }
 0x31d   :  { %v796_v41 = vadd.f32 %v795_v47, %v794_v42  ;;  %v812_v54 = vrot.slane %v811_v51, 2  ;;  %v824_v48 = vadd.f32 %v823_v52, %v822_v44  ;;  %v841_v55 = vrot.slane %v840_v53, 4  ;;  %v890_v52 = vld [vmem:[%s13125_s5 + $0x8] sm:$0xff] }
 0x31f   :  { %v813_v56 = vadd.f32 %v812_v54, %v811_v51  ;;  %v825_v57 = vrot.slane %v824_v48, 2  ;;  %v842_v61 = vadd.f32 %v841_v55, %v840_v53  ;;  %v797_v63 = vrot.slane %v796_v41, 1  ;;  %v891_v53 = vld [vmem:[%s13125_s5 + $0x10] sm:$0xff]  ;;  %v893_v54 = vld [vmem:[%s13125_s5 + $0x20] sm:$0xff] }
 0x320   :  { %v895_v55 = vld [vmem:[%s13125_s5 + $0x30] sm:$0xff] }
 0x321   :  { %v826_v0 = vadd.f32 %v825_v57, %v824_v48  ;;  %v843_v1 = vrot.slane %v842_v61, 2  ;;  %v814_v2 = vrot.slane %v813_v56, 1  ;;  %v798_v6 = vadd.f32 %v797_v63, %v796_v41  ;;  %v892_v41 = vld [vmem:[%s13125_s5 + $0x18] sm:$0xff]  ;;  %v894_v48 = vld [vmem:[%s13125_s5 + $0x28] sm:$0xff]  ;;  %v897_v57 = vld [vmem:[%s13127_s9] sm:$0xff] }
 0x322   :  { %v899_v63 = vld [vmem:[%s13127_s9 + $0x10] sm:$0xff] }
 0x323   :  { %v827_v3 = vrot.slane %v826_v0, 1  ;;  %v844_v4 = vadd.f32 %v843_v1, %v842_v61  ;;  %v815_v10 = vadd.f32 %v814_v2, %v813_v56  ;;  %v896_v56 = vld [vmem:[%s13125_s5 + $0x38] sm:$0xff]  ;;  %v898_v61 = vld [vmem:[%s13127_s9 + $0x8] sm:$0xff] }
 0x324   :  { %v900_v1 = vld [vmem:[%s13127_s9 + $0x18] sm:$0xff] }
 0x325   :  { %v828_v7 = vadd.f32 %v827_v3, %v826_v0  ;;  %v845_v8 = vrot.slane %v844_v4, 1  ;;  %v7109_v0 = vpack.c.bf16 %v898_v61, %v897_v57  ;;  %v7113_v2 = vpack.c.bf16 %v900_v1, %v899_v63  ;;  %v901_v3 = vld [vmem:[%s13127_s9 + $0x20] sm:$0xff] }
 0x327   :  { %v829_v58 = vadd.f32 %v828_v7, %v798_v6  ;;  %v846_v60 = vadd.f32 %v845_v8, %v844_v4  ;;  %v902_v4 = vld [vmem:[%s13127_s9 + $0x28] sm:$0xff]  ;;  %v903_v7 = vld [vmem:[%s13127_s9 + $0x30] sm:$0xff]  ;;  %v904_v8 = vld [vmem:[%s13127_s9 + $0x38] sm:$0xff] }
 0x328   :  { %v7117_v6 = vpack.c.bf16 %v902_v4, %v901_v3 }
 0x329   :  { %v847_v5 = vadd.f32 %v846_v60, %v815_v10  ;;  %v848_v11 = vmul.f32 0.015625, %v829_v58  ;;  %v7121_v10 = vpack.c.bf16 %v904_v8, %v903_v7  ;;  %v905_v58 = vld [vmem:[%s13127_s9 + $0x40] sm:$0xff]  ;;  %v906_v60 = vld [vmem:[%s13127_s9 + $0x48] sm:$0xff] }
 0x32b   :  { %v849_v12 = vmul.f32 0.015625, %v847_v5  ;;  %v850_v13 = vmul.f32 %v848_v11, %v848_v11  ;;  %v7125_v5 = vpack.c.bf16 %v906_v60, %v905_v58  ;;  %v6328_v60 = vld [vmem:[%s13128_s2 + $0x78] sm:$0xff] }
 0x32d   :  { %v851_v21 = vsub.f32 %v849_v12, %v850_v13  ;;  %v6322_v12 = vld [vmem:[%s13128_s2 + $0x48] sm:$0xff]  ;;  %v1041_v13 = vld [vmem:[%s13128_s2] sm:$0xff] }
 0x32f   :  { %v852_v14 = vadd.f32 1e-05, %v851_v21  ;;  %v6321_v21 = vld [vmem:[%s13128_s2 + $0x40] sm:$0xff] }
 0x331   :  { %8120 = vrsqrt.f32 %v852_v14  ;;  %v907_v14 = vld [vmem:[%s13127_s9 + $0x50] sm:$0xff] }
 0x33b   :  { %v8121_v17 = vpop.eup %8120 }
 0x33c   :  { %v854_v19 = vmul.f32 %v8121_v17, %v268_v15  ;;  %v908_v15 = vld [vmem:[%s13127_s9 + $0x58] sm:$0xff] }
 0x33e   :  { %v855_v22 = vmul.f32 %v854_v19, %v848_v11  ;;  %v860_v23 = vrot.slane %v854_v19, %v8290_v49  ;;  %v1042_v11 = vld [vmem:[%s13128_s2 + $0x8] sm:$0xff] }
 0x340   :  { %v856_v24 = vsub.f32 %v269_v20, %v855_v22  ;;  %v879_v26 = vmul.f32 %v860_v23, %v778_v29  ;;  %v861_v27 = vmul.f32 %v860_v23, %v8456_v62  ;;  %v862_v28 = vmul.f32 %v860_v23, %v8454_v59 }
 0x341   :  { %v877_v30 = vmul.f32 %v860_v23, %v8470_v50  ;;  %v878_v31 = vmul.f32 %v860_v23, %v8468_v9  ;;  %v863_v32 = vmul.f32 %v860_v23, %v8484_v18  ;;  %v864_v33 = vmul.f32 %v860_v23, %v8482_v16 }
 0x342   :  { %v868_v34 = vrot.slane %v856_v24, %v8290_v49  ;;  %v880_v35 = vmul.f32 %v860_v23, %v8492_v25  ;;  %v7129_v20 = vpack.c.bf16 %v908_v15, %v907_v14  ;;  %v6327_v14 = vld [vmem:[%s13128_s2 + $0x70] sm:$0xff] }
 0x343   :  { %v1047_v15 = vld [vmem:[%s13128_s2 + $0x30] sm:$0xff] }
 0x344   :  { %v869_v36 = vadd.f32 %v868_v34, %v861_v27  ;;  %v870_v37 = vadd.f32 %v868_v34, %v862_v28  ;;  %v881_v38 = vadd.f32 %v877_v30, %v868_v34  ;;  %v882_v29 = vadd.f32 %v878_v31, %v868_v34  ;;  %v1044_v30 = vld [vmem:[%s13128_s2 + $0x18] sm:$0xff] }
 0x345   :  { %v871_v39 = vadd.f32 %v868_v34, %v863_v32  ;;  %v872_v62 = vadd.f32 %v868_v34, %v864_v33  ;;  %v883_v40 = vadd.f32 %v879_v26, %v868_v34  ;;  %v884_v59 = vadd.f32 %v880_v35, %v868_v34  ;;  %v6324_v31 = vld [vmem:[%s13128_s2 + $0x58] sm:$0xff]  ;;  %v1043_v34 = vld [vmem:[%s13128_s2 + $0x10] sm:$0xff] }
 0x346   :  { %v873_v42 = vmax.f32 %v869_v36, 0.0  ;;  %v874_v50 = vmax.f32 %v870_v37, 0.0  ;;  %v885_v43 = vmax.f32 %v881_v38, 0.0  ;;  %v886_v9 = vmax.f32 %v882_v29, 0.0  ;;  %v6323_v35 = vld [vmem:[%s13128_s2 + $0x50] sm:$0xff] }
 0x347   :  { %v875_v44 = vmax.f32 %v871_v39, 0.0  ;;  %v876_v18 = vmax.f32 %v872_v62, 0.0  ;;  %v887_v45 = vmax.f32 %v883_v40, 0.0  ;;  %v888_v16 = vmax.f32 %v884_v59, 0.0 }
 0x348   :  { %v7101_v46 = vpack.c.bf16 %v874_v50, %v873_v42  ;;  %v7133_v47 = vpack.c.bf16 %v886_v9, %v885_v43 }
 0x349   :  { %v7105_v51 = vpack.c.bf16 %v876_v18, %v875_v44  ;;  %v7137_v25 = vpack.c.bf16 %v888_v16, %v887_v45 }
 0x34a   :  { %7102 = vmatprep.subr.bf16.mxu1 %v7101_v46  ;;  %7134 = vmatprep.subr.bf16.mxu0 %v7133_v47 }
 0x34b   :  { %7104 = vmatpush3.bf16.msra.mxu1 %v7101_v46  ;;  %7136 = vmatpush3.bf16.msra.mxu0 %v7133_v47  ;;  %v6326_v46 = vld [vmem:[%s13128_s2 + $0x68] sm:$0xff] }
 0x34c   :  { %7106 = vmatprep.subr.bf16.mxu1 %v7105_v51  ;;  %7138 = vmatprep.subr.bf16.mxu0 %v7137_v25  ;;  %v1046_v47 = vld [vmem:[%s13128_s2 + $0x28] sm:$0xff] }
 0x34f   :  { %7108 = vmatpush3.bf16.msra.mxu1 %v7105_v51  ;;  %7140 = vmatpush3.bf16.msra.mxu0 %v7137_v25 }
 0x350   :  { %7110 = vmatprep.subr.bf16.mxu1 %v7109_v0  ;;  %7142 = vmatprep.subr.bf16.mxu0 %v7109_v0 }
 0x352   :  { %6754 = vmatmul.mubr.msk.f32.vlgmr.msra.gmra.mrb[4].mxu1 %vm179_vm3, %v890_v52  ;;  %6810 = vmatmul.mubr.msk.f32.vlgmr.msra.gmra.mrb[12].mxu0 %vm179_vm3, %v890_v52 }
 0x353   :  { %6756 = vmatprep.mubr.msk.f32.mxu1 %vm179_vm3, %v891_v53  ;;  %6812 = vmatprep.mubr.msk.f32.mxu0 %vm179_vm3, %v891_v53 }
 0x354   :  { %7112 = vmatpush3.bf16.msra.mxu1 %v7109_v0  ;;  %7144 = vmatpush3.bf16.msra.mxu0 %v7109_v0 }
 0x355   :  { %7114 = vmatprep.subr.bf16.mxu1 %v7113_v2  ;;  %7146 = vmatprep.subr.bf16.mxu0 %v7113_v2 }
 0x356   :  { %6757 = vmatmul.mubr.msk.f32.gmra.mrb[6].mxu1 %vm179_vm3, %v892_v41  ;;  %6813 = vmatmul.mubr.msk.f32.gmra.mrb[14].mxu0 %vm179_vm3, %v892_v41  ;;  %v6325_v41 = vld [vmem:[%s13128_s2 + $0x60] sm:$0xff] }
 0x357   :  { %6815 = vmatprep.mubr.msk.f32.mxu0 %vm179_vm3, %v893_v54  ;;  %6759 = vmatprep.mubr.msk.f32.mxu1 %vm179_vm3, %v893_v54  ;;  %v1045_v54 = vld [vmem:[%s13128_s2 + $0x20] sm:$0xff] }
 0x358   :  { %7116 = vmatpush3.bf16.msra.mxu1 %v7113_v2  ;;  %7148 = vmatpush3.bf16.msra.mxu0 %v7113_v2 }
 0x359   :  { %7118 = vmatprep.subr.bf16.mxu1 %v7117_v6  ;;  %7150 = vmatprep.subr.bf16.mxu0 %v7117_v6 }
 0x35a   :  { %6816 = vmatmul.mubr.msk.f32.gmra.mrb[16].mxu0 %vm179_vm3, %v894_v48  ;;  %6760 = vmatmul.mubr.msk.f32.gmra.mrb[8].mxu1 %vm179_vm3, %v894_v48 }
 0x35b   :  { %6818 = vmatprep.mubr.msk.f32.mxu0 %vm179_vm3, %v895_v55  ;;  %6762 = vmatprep.mubr.msk.f32.mxu1 %vm179_vm3, %v895_v55 }
 0x35c   :  { %7120 = vmatpush3.bf16.msra.mxu1 %v7117_v6  ;;  %7152 = vmatpush3.bf16.msra.mxu0 %v7117_v6 }
 0x35d   :  { %7122 = vmatprep.subr.bf16.mxu1 %v7121_v10  ;;  %7154 = vmatprep.subr.bf16.mxu0 %v7121_v10 }
 0x35e   :  { %6819 = vmatmul.mubr.msk.f32.gmra.mrb[18].mxu0 %vm179_vm3, %v896_v56  ;;  %6763 = vmatmul.mubr.msk.f32.gmra.mrb[10].mxu1 %vm179_vm3, %v896_v56 }
 0x360   :  { %7124 = vmatpush3.bf16.msra.mxu1 %v7121_v10  ;;  %7156 = vmatpush3.bf16.msra.mxu0 %v7121_v10 }
 0x361   :  { %7126 = vmatprep.subr.bf16.mxu1 %v7125_v5  ;;  %7158 = vmatprep.subr.bf16.mxu0 %v7125_v5 }
 0x364   :  { %7128 = vmatpush3.bf16.msra.mxu1 %v7125_v5  ;;  %7160 = vmatpush3.bf16.msra.mxu0 %v7125_v5  ;;  %v1048_v5 = vld [vmem:[%s13128_s2 + $0x38] sm:$0xff] }
 0x365   :  { %7130 = vmatprep.subr.bf16.mxu1 %v7129_v20  ;;  %7162 = vmatprep.subr.bf16.mxu0 %v7129_v20 }
 0x368   :  { %7132 = vmatpush3.bf16.msra.mxu1 %v7129_v20  ;;  %7164 = vmatpush3.bf16.msra.mxu0 %v7129_v20 }
 0x425   :  { %v6755_v17 = vpop.f32.mrb[4].mxu1  ;;  %v6811_v19 = vpop.f32.mrb[12].mxu0 }
 0x426   :  { %v8603_v22 = vmul.f32 %v6755_v17, %v1042_v11  ;;  %v8605_v23 = vmul.f32 %v6811_v19, %v6322_v12  ;;  %v1002_v24 = vpop.f32.mrb[5].mxu1  ;;  %v1370_v26 = vpop.f32.mrb[13].mxu0 }
 0x427   :  { %v8607_v27 = vmul.f32 %v1041_v13, %v1002_v24  ;;  %v8609_v28 = vmul.f32 %v6321_v21, %v1370_v26 }
 0x428   :  { %v1066_v32 = vrot.slane %v8603_v22, 1  ;;  %v1090_v33 = vrot.slane %v8603_v22, 7  ;;  %1108 = vrot.lane.b32.xlu0 %v8603_v22, %s8143_s20  ;;  %v1435_v36 = vrot.slane %v8605_v23, 1  ;;  %v1459_v37 = vrot.slane %v8605_v23, 7 }
 0x429   :  { %1475 = vrot.lane.b32.xlu1 %v8609_v28, %s8143_s20  ;;  %v6758_v38 = vpop.f32.mrb[6].mxu1  ;;  %v6814_v29 = vpop.f32.mrb[14].mxu0  ;;  %v1089_v39 = vrot.slane %v8607_v27, 7  ;;  %v1458_v62 = vrot.slane %v8609_v28, 7  ;;  %v1065_v40 = vrot.slane %v8607_v27, 1  ;;  %v1434_v59 = vrot.slane %v8609_v28, 1 }
 0x42a   :  { %v8635_v42 = vmul.f32 %v6758_v38, %v1044_v30  ;;  %v8637_v50 = vmul.f32 %v6814_v29, %v6324_v31  ;;  %v1012_v43 = vpop.f32.mrb[7].mxu1  ;;  %v1380_v9 = vpop.f32.mrb[15].mxu0 }
 0x42b   :  { %v8639_v44 = vmul.f32 %v1043_v34, %v1012_v43  ;;  %v8641_v18 = vmul.f32 %v6323_v35, %v1380_v9  ;;  %v1105_v45 = vsel %vm66_vm1, 0.0, %v1089_v39  ;;  %v1474_v16 = vsel %vm66_vm1, 0.0, %v1458_v62 }
 0x42c   :  { %v1070_v51 = vrot.slane %v8635_v42, 1  ;;  %v1094_v25 = vrot.slane %v8635_v42, 7  ;;  %v1439_v52 = vrot.slane %v8637_v50, 1  ;;  %v1463_v53 = vrot.slane %v8637_v50, 7  ;;  %1477 = vrot.lane.b32.xlu0 %v8605_v23, %s8143_s20 }
 0x42d   :  { %v1068_v48 = vrot.slane %v8639_v44, 1  ;;  %v1092_v55 = vrot.slane %v8639_v44, 7  ;;  %v1437_v56 = vrot.slane %v8641_v18, 1  ;;  %v1461_v57 = vrot.slane %v8641_v18, 7  ;;  %1131 = vrot.lane.b32.xlu1 %v1105_v45, %s8144_s24  ;;  %v6817_v61 = vpop.f32.mrb[16].mxu0  ;;  %v6761_v63 = vpop.f32.mrb[8].mxu1 }
 0x42e   :  { %v8668_v0 = vmul.f32 %v6817_v61, %v6326_v46  ;;  %v1091_v1 = vsel %vm66_vm1, %v1089_v39, %v1090_v33  ;;  %v1390_v2 = vpop.f32.mrb[17].mxu0  ;;  %v1460_v3 = vsel %vm66_vm1, %v1458_v62, %v1459_v37  ;;  %v8672_v4 = vmul.f32 %v6761_v63, %v1046_v47  ;;  %v1022_v6 = vpop.f32.mrb[9].mxu1 }
 0x42f   :  { %v8674_v7 = vmul.f32 %v6325_v41, %v1390_v2  ;;  %v8676_v8 = vmul.f32 %v1045_v54, %v1022_v6  ;;  %v1093_v10 = vsel %vm66_vm1, %v1090_v33, %v1092_v55  ;;  %v1462_v58 = vsel %vm66_vm1, %v1459_v37, %v1461_v57 }
 0x430   :  { %1106 = vrot.lane.b32.xlu0 %v8607_v27, %s8143_s20  ;;  %v1443_v11 = vrot.slane %v8668_v0, 1  ;;  %v1467_v12 = vrot.slane %v8668_v0, 7  ;;  %v1074_v13 = vrot.slane %v8672_v4, 1  ;;  %v1098_v21 = vrot.slane %v8672_v4, 7 }
 0x431   :  { %1500 = vrot.lane.b32.xlu1 %v1474_v16, %s8144_s24  ;;  %v1441_v17 = vrot.slane %v8674_v7, 1  ;;  %v1465_v19 = vrot.slane %v8674_v7, 7  ;;  %v1072_v20 = vrot.slane %v8676_v8, 1  ;;  %v1096_v24 = vrot.slane %v8676_v8, 7  ;;  %v6820_v26 = vpop.f32.mrb[18].mxu0  ;;  %v6764_v30 = vpop.f32.mrb[10].mxu1 }
 0x432   :  { %v8703_v31 = vmul.f32 %v6820_v26, %v6328_v60  ;;  %v1095_v33 = vsel %vm66_vm1, %v1092_v55, %v1094_v25  ;;  %v1400_v34 = vpop.f32.mrb[19].mxu0  ;;  %v1464_v35 = vsel %vm66_vm1, %v1461_v57, %v1463_v53  ;;  %v8707_v37 = vmul.f32 %v6764_v30, %v1048_v5  ;;  %v1032_v38 = vpop.f32.mrb[11].mxu1 }
 0x433   :  { %v1424_v29 = vmul.f32 %v6327_v14, %v1400_v34  ;;  %v1055_v39 = vmul.f32 %v1047_v15, %v1032_v38  ;;  %v1097_v62 = vsel %vm66_vm1, %v1094_v25, %v1096_v24  ;;  %v1466_v43 = vsel %vm66_vm1, %v1463_v53, %v1465_v19 }
 0x434   :  { %1133 = vrot.lane.b32.xlu0 %v1091_v1, %s8144_s24  ;;  %v1447_v9 = vrot.slane %v8703_v31, 1  ;;  %v1471_v45 = vrot.slane %v8703_v31, 7  ;;  %v1078_v16 = vrot.slane %v8707_v37, 1  ;;  %v1102_v46 = vrot.slane %v8707_v37, 7 }
 0x435   :  { %1502 = vrot.lane.b32.xlu1 %v1460_v3, %s8144_s24  ;;  %v1445_v47 = vrot.slane %v1424_v29, 1  ;;  %v1469_v41 = vrot.slane %v1424_v29, 7  ;;  %v1076_v54 = vrot.slane %v1055_v39, 1  ;;  %v1100_v55 = vrot.slane %v1055_v39, 7 }
 0x436   :  { %v1099_v25 = vsel %vm66_vm1, %v1096_v24, %v1098_v21  ;;  %v1468_v53 = vsel %vm66_vm1, %v1465_v19, %v1467_v12  ;;  %v1069_v57 = vsel %vm60_vm0, %v1066_v32, %v1068_v48  ;;  %v1436_v61 = vsel %vm60_vm0, %v1434_v59, %v1435_v36 }
 0x437   :  { %v1101_v63 = vsel %vm66_vm1, %v1098_v21, %v1100_v55  ;;  %v1470_v1 = vsel %vm66_vm1, %v1467_v12, %v1469_v41  ;;  %v1103_v2 = vsel %vm66_vm1, %v1100_v55, %v1102_v46  ;;  %v1472_v3 = vsel %vm66_vm1, %v1469_v41, %v1471_v45 }
 0x438   :  { %1112 = vrot.lane.b32.xlu0 %v8635_v42, %s8143_s20  ;;  %v1438_v6 = vsel %vm60_vm0, %v1435_v36, %v1437_v56  ;;  %v1067_v28 = vsel %vm60_vm0, %v1065_v40, %v1066_v32  ;;  %v8748_v59 = vsel %vm60_vm0, %v1070_v51, %v1072_v20  ;;  %v8755_v60 = vsel %vm60_vm0, %v1437_v56, %v1439_v52 }
 0x439   :  { %1479 = vrot.lane.b32.xlu1 %v8641_v18, %s8143_s20  ;;  %v8762_v22 = vsel %vm60_vm0, %v1439_v52, %v1441_v17  ;;  %v8769_v23 = vsel %vm60_vm0, %v1068_v48, %v1070_v51  ;;  %v8772_v27 = vsel %vm60_vm0, %v1074_v13, %v1076_v54  ;;  %v8775_v32 = vsel %vm60_vm0, %v1441_v17, %v1443_v11 }
 0x43a   :  { %v8778_v36 = vsel %vm60_vm0, %v1443_v11, %v1445_v47  ;;  %v8781_v40 = vsel %vm60_vm0, %v1072_v20, %v1074_v13  ;;  %v8786_v42 = vsel %vm60_vm0, %v1445_v47, %v1447_v9  ;;  %v8791_v18 = vsel %vm60_vm0, %v1076_v54, %v1078_v16 }
 0x43c   :  { %1481 = vrot.lane.b32.xlu0 %v8637_v50, %s8143_s20  ;;  %v13135_v50 = vmov 0.0  }
 0x43d   :  { %1135 = vrot.lane.b32.xlu1 %v1093_v10, %s8144_s24  ;;  %v8825_v51 = vrot.slane %v13135_v50, 6 }
 0x43f   :  { %13365 = vst [vmem:[#allocation4_spill] sm:$0xff] %v8825_v51  ;;  %v7716_v48 = vpack.i.bf16 %v8825_v51, %v8825_v51 }
 0x440   :  { %1110 = vrot.lane.b32.xlu0 %v8639_v44, %s8143_s20  ;;  %v8821_v44 = vrot.slane %v13135_v50, 7 }
 0x441   :  { %1504 = vrot.lane.b32.xlu1 %v1462_v58, %s8144_s24 }
 0x442   :  { %13364 = vst [vmem:[#allocation3_spill] sm:$0xff] %v8821_v44  ;;  %v7711_v52 = vpack.i.bf16 %v8821_v44, %v8821_v44 }
 0x444   :  { %1137 = vrot.lane.b32.xlu0 %v1095_v33, %s8144_s24 }
 0x445   :  { %1506 = vrot.lane.b32.xlu1 %v1464_v35, %s8144_s24 }
 0x448   :  { %1116 = vrot.lane.b32.xlu0 %v8672_v4, %s8143_s20 }
 0x449   :  { %1483 = vrot.lane.b32.xlu1 %v8674_v7, %s8143_s20 }
 0x44c   :  { %1485 = vrot.lane.b32.xlu0 %v8668_v0, %s8143_s20 }
 0x44d   :  { %1139 = vrot.lane.b32.xlu1 %v1097_v62, %s8144_s24 }
 0x450   :  { %1114 = vrot.lane.b32.xlu0 %v8676_v8, %s8143_s20 }
 0x451   :  { %1508 = vrot.lane.b32.xlu1 %v1466_v43, %s8144_s24 }
 0x454   :  { %1141 = vrot.lane.b32.xlu0 %v1099_v25, %s8144_s24 }
 0x455   :  { %1510 = vrot.lane.b32.xlu1 %v1468_v53, %s8144_s24 }
 0x458   :  { %1120 = vrot.lane.b32.xlu0 %v8707_v37, %s8143_s20 }
 0x459   :  { %1487 = vrot.lane.b32.xlu1 %v1424_v29, %s8143_s20 }
 0x45c   :  { %1489 = vrot.lane.b32.xlu0 %v8703_v31, %s8143_s20  ;;  %v1949_v31 = vld [vmem:[%s13129_s10 + $0x308] sm:$0xff] }
 0x45d   :  { %1143 = vrot.lane.b32.xlu1 %v1101_v63, %s8144_s24 }
 0x460   :  { %1118 = vrot.lane.b32.xlu0 %v1055_v39, %s8143_s20 }
 0x461   :  { %1512 = vrot.lane.b32.xlu1 %v1470_v1, %s8144_s24 }
 0x464   :  { %1145 = vrot.lane.b32.xlu0 %v1103_v2, %s8144_s24 }
 0x465   :  { %1514 = vrot.lane.b32.xlu1 %v1472_v3, %s8144_s24 }
 0x468   :  { %7712 = vrot.lane.b32.xlu0 %v7711_v52, %s8143_s20 }
 0x469   :  { %7717 = vrot.lane.b32.xlu1 %v7716_v48, %s8144_s24 }
 0x49a   :  { %v1109_v56 = vpop.permute.xlu0 %1108 }
 0x49b   :  { %v1476_v0 = vpop.permute.xlu1 %1475  ;;  %v1156_v13 = vsel %vm179_vm3, %v1069_v57, %v1109_v56 }
 0x49c   :  { %v1524_v10 = vsel %vm179_vm3, %v1436_v61, %v1476_v0 }
 0x49e   :  { %v1478_v4 = vpop.permute.xlu0 %1477 }
 0x49f   :  { %v1132_v7 = vpop.permute.xlu1 %1131  ;;  %v1525_v14 = vsel %vm179_vm3, %v1438_v6, %v1478_v4 }
 0x4a2   :  { %v1107_v8 = vpop.permute.xlu0 %1106 }
 0x4a3   :  { %v1155_v58 = vsel %vm179_vm3, %v1067_v28, %v1107_v8  ;;  %v1501_v5 = vpop.permute.xlu1 %1500  ;;  %v1088_v8 = vsel %vm60_vm0, %v1078_v16, 0.0  ;;  %v1948_v16 = vld [vmem:[%s13129_s10 + $0x300] sm:$0xff] }
 0x4a4   :  { %v1532_v11 = vsel %vm430_vm4, %v1524_v10, %v1501_v5  ;;  %v1163_v12 = vsel %vm430_vm4, %v1155_v58, %v1132_v7 }
 0x4a5   :  { %6789 = vmatprep.mubr.msk.f32.mxu1 %vm439_vm5, %v1163_v12  ;;  %6845 = vmatprep.mubr.msk.f32.mxu0 %vm439_vm5, %v1532_v11  ;;  %v1950_v12 = vld [vmem:[%s13129_s10 + $0x310] sm:$0xff] }
 0x4a6   :  { %v1134_v21 = vpop.permute.xlu0 %1133 }
 0x4a7   :  { %v1164_v15 = vsel %vm430_vm4, %v1156_v13, %v1134_v21  ;;  %v1503_v17 = vpop.permute.xlu1 %1502  ;;  %v1951_v13 = vld [vmem:[%s13129_s10 + $0x318] sm:$0xff] }
 0x4a8   :  { %v1533_v19 = vsel %vm430_vm4, %v1525_v14, %v1503_v17  ;;  %6790 = vmatmul.mubr.msk.f32.vlgmr.msra.gmra.mrb[12].mxu1 %vm439_vm5, %v1164_v15  ;;  %v8915_v21 = vpack.c.bf16 %v1951_v13, %v1950_v12  ;;  %v1952_v14 = vld [vmem:[%s13129_s10 + $0x320] sm:$0xff]  ;;  %v1953_v15 = vld [vmem:[%s13129_s10 + $0x328] sm:$0xff]  ;;  %v1954_v17 = vld [vmem:[%s13129_s10 + $0x330] sm:$0xff] }
 0x4a9   :  { %6846 = vmatmul.mubr.msk.f32.vlgmr.msra.gmra.mrb[20].mxu0 %vm439_vm5, %v1533_v19 }
 0x4aa   :  { %v1113_v20 = vpop.permute.xlu0 %1112  ;;  %13367 = vst [vmem:[#allocation6_spill] sm:$0xff] %v8915_v21 }
 0x4ab   :  { %v1480_v24 = vpop.permute.xlu1 %1479  ;;  %v1158_v62 = vsel %vm179_vm3, %v8748_v59, %v1113_v20 }
 0x4ac   :  { %v1526_v34 = vsel %vm179_vm3, %v8755_v60, %v1480_v24  ;;  %v8927_v24 = vpack.c.bf16 %v1953_v15, %v1952_v14 }
 0x4ae   :  { %v1482_v26 = vpop.permute.xlu0 %1481  ;;  %13368 = vst [vmem:[#allocation7_spill] sm:$0xff] %v8927_v24 }
 0x4af   :  { %v1136_v30 = vpop.permute.xlu1 %1135  ;;  %v1527_v45 = vsel %vm179_vm3, %v8762_v22, %v1482_v26  ;;  %v1955_v26 = vld [vmem:[%s13129_s10 + $0x338] sm:$0xff] }
 0x4b2   :  { %v1111_v33 = vpop.permute.xlu0 %1110 }
 0x4b3   :  { %v1157_v35 = vsel %vm179_vm3, %v8769_v23, %v1111_v33  ;;  %v1505_v38 = vpop.permute.xlu1 %1504 }
 0x4b4   :  { %v1534_v29 = vsel %vm430_vm4, %v1526_v34, %v1505_v38  ;;  %v1165_v39 = vsel %vm430_vm4, %v1157_v35, %v1136_v30  ;;  %v8934_v38 = vpack.c.bf16 %v1955_v26, %v1954_v17 }
 0x4b5   :  { %6792 = vmatprep.mubr.msk.f32.mxu1 %vm439_vm5, %v1165_v39  ;;  %6848 = vmatprep.mubr.msk.f32.mxu0 %vm439_vm5, %v1534_v29 }
 0x4b6   :  { %v1138_v43 = vpop.permute.xlu0 %1137  ;;  %13369 = vst [vmem:[#allocation8_spill] sm:$0xff] %v8934_v38 }
 0x4b7   :  { %v1166_v46 = vsel %vm430_vm4, %v1158_v62, %v1138_v43  ;;  %v1507_v47 = vpop.permute.xlu1 %1506  ;;  %v1956_v62 = vld [vmem:[%s13129_s10 + $0x340] sm:$0xff]  ;;  %v1957_v43 = vld [vmem:[%s13129_s10 + $0x348] sm:$0xff] }
 0x4b8   :  { %v1535_v41 = vsel %vm430_vm4, %v1527_v45, %v1507_v47  ;;  %6793 = vmatmul.mubr.msk.f32.gmra.mrb[14].mxu1 %vm439_vm5, %v1166_v46 }
 0x4b9   :  { %6849 = vmatmul.mubr.msk.f32.gmra.mrb[22].mxu0 %vm439_vm5, %v1535_v41 }
 0x4ba   :  { %v1117_v54 = vpop.permute.xlu0 %1116 }
 0x4bb   :  { %v1484_v55 = vpop.permute.xlu1 %1483  ;;  %v1160_v6 = vsel %vm179_vm3, %v8772_v27, %v1117_v54  ;;  %v8958_v54 = vpack.c.bf16 %v1957_v43, %v1956_v62 }
 0x4bc   :  { %v1528_v61 = vsel %vm179_vm3, %v8775_v32, %v1484_v55  ;;  %v1958_v55 = vld [vmem:[%s13129_s10 + $0x350] sm:$0xff] }
 0x4bd   :  { %13374 = vst [vmem:[#allocation13_spill] sm:$0xff] %v8958_v54 }
 0x4be   :  { %v1486_v25 = vpop.permute.xlu0 %1485 }
 0x4bf   :  { %v1140_v53 = vpop.permute.xlu1 %1139  ;;  %v1529_v59 = vsel %vm179_vm3, %v8778_v36, %v1486_v25  ;;  %v1959_v25 = vld [vmem:[%s13129_s10 + $0x358] sm:$0xff] }
 0x4c2   :  { %v1115_v57 = vpop.permute.xlu0 %1114 }
 0x4c3   :  { %v1159_v63 = vsel %vm179_vm3, %v8781_v40, %v1115_v57  ;;  %v1509_v1 = vpop.permute.xlu1 %1508 }
 0x4c4   :  { %v1536_v2 = vsel %vm430_vm4, %v1528_v61, %v1509_v1  ;;  %v1167_v3 = vsel %vm430_vm4, %v1159_v63, %v1140_v53  ;;  %v8973_v61 = vpack.c.bf16 %v1959_v25, %v1958_v55  ;;  %v1836_v63 = vld [vmem:[%s13130_s6] sm:$0xff] }
 0x4c5   :  { %6795 = vmatprep.mubr.msk.f32.mxu1 %vm439_vm5, %v1167_v3  ;;  %6851 = vmatprep.mubr.msk.f32.mxu0 %vm439_vm5, %v1536_v2  ;;  %v8989_v1 = vld [vmem:[%s13131_s13] ss:$0 sm:$0xff] }
 0x4c6   :  { %v1142_v28 = vpop.permute.xlu0 %1141  ;;  %13376 = vst [vmem:[#allocation15_spill] sm:$0xff] %v8973_v61 }
 0x4c7   :  { %v1168_v60 = vsel %vm430_vm4, %v1160_v6, %v1142_v28  ;;  %v1511_v22 = vpop.permute.xlu1 %1510 }
 0x4c8   :  { %v1537_v23 = vsel %vm430_vm4, %v1529_v59, %v1511_v22  ;;  %6796 = vmatmul.mubr.msk.f32.gmra.mrb[16].mxu1 %vm439_vm5, %v1168_v60 }
 0x4c9   :  { %6852 = vmatmul.mubr.msk.f32.gmra.mrb[24].mxu0 %vm439_vm5, %v1537_v23 }
 0x4ca   :  { %v1121_v32 = vpop.permute.xlu0 %1120 }
 0x4cb   :  { %v1488_v40 = vpop.permute.xlu1 %1487  ;;  %v1162_v10 = vsel %vm179_vm3, %v1088_v8, %v1121_v32 }
 0x4cc   :  { %v1530_v27 = vsel %vm179_vm3, %v8786_v42, %v1488_v40  ;;  %v1457_v42 = vsel %vm60_vm0, %v1447_v9, 0.0  ;;  %v8905_v9 = vpack.c.bf16 %v1949_v31, %v1948_v16 }
 0x4ce   :  { %v1490_v52 = vpop.permute.xlu0 %1489  ;;  %13366 = vst [vmem:[#allocation5_spill] sm:$0xff] %v8905_v9  ;;  %7326 = vmatprep.subr.bf16.mxu1 %v8905_v9 }
 0x4cf   :  { %v1144_v48 = vpop.permute.xlu1 %1143  ;;  %v1531_v58 = vsel %vm179_vm3, %v1457_v42, %v1490_v52  ;;  %7328 = vmatpush3.bf16.msra.mxu1 %v8905_v9 }
 0x4d0   :  { %7330 = vmatprep.subr.bf16.mxu1 %v8915_v21 }
 0x4d2   :  { %v1119_v56 = vpop.permute.xlu0 %1118 }
 0x4d3   :  { %v1161_v36 = vsel %vm179_vm3, %v8791_v18, %v1119_v56  ;;  %v1513_v0 = vpop.permute.xlu1 %1512  ;;  %7332 = vmatpush3.bf16.msra.mxu1 %v8915_v21 }
 0x4d4   :  { %v1538_v4 = vsel %vm430_vm4, %v1530_v27, %v1513_v0  ;;  %v1169_v7 = vsel %vm430_vm4, %v1161_v36, %v1144_v48  ;;  %7334 = vmatprep.subr.bf16.mxu1 %v8927_v24 }
 0x4d5   :  { %6798 = vmatprep.mubr.msk.f32.mxu1 %vm439_vm5, %v1169_v7  ;;  %6854 = vmatprep.mubr.msk.f32.mxu0 %vm439_vm5, %v1538_v4 }
 0x4d6   :  { %v1146_v18 = vpop.permute.xlu0 %1145 }
 0x4d7   :  { %v1170_v5 = vsel %vm430_vm4, %v1162_v10, %v1146_v18  ;;  %v1515_v11 = vpop.permute.xlu1 %1514  ;;  %7336 = vmatpush3.bf16.msra.mxu1 %v8927_v24 }
 0x4d8   :  { %v1539_v37 = vsel %vm430_vm4, %v1531_v58, %v1515_v11  ;;  %6799 = vmatmul.mubr.msk.f32.gmra.mrb[18].mxu1 %vm439_vm5, %v1170_v5  ;;  %7338 = vmatprep.subr.bf16.mxu1 %v8934_v38 }
 0x4d9   :  { %6855 = vmatmul.mubr.msk.f32.gmra.mrb[26].mxu0 %vm439_vm5, %v1539_v37 }
 0x4da   :  { %v7713_v19 = vpop.permute.xlu0 %7712  ;;  %6873 = vmatprep.mubr.msk.f32.mxu0 %vm430_vm4, %v1836_v63 }
 0x4db   :  { %v7718_v20 = vpop.permute.xlu1 %7717  ;;  %v7715_v30 = vunpack.i.h.bf16 %v7713_v19  ;;  %v7714_v33 = vunpack.i.l.bf16 %v7713_v19  ;;  %7340 = vmatpush3.bf16.msra.mxu1 %v8934_v38 }
 0x4dc   :  { %v7720_v34 = vunpack.i.h.bf16 %v7718_v20  ;;  %v7719_v35 = vunpack.i.l.bf16 %v7718_v20  ;;  %7342 = vmatprep.subr.bf16.mxu1 %v8958_v54 }
 0x4dd   :  { %v3024_v29 = vsel %vm179_vm3, 0.0, %v7715_v30  ;;  %v2923_v39 = vsel %vm179_vm3, 0.0, %v7714_v33 }
 0x4de   :  { %v8945_v45 = vsel %vm430_vm4, %v2923_v39, %v7720_v34  ;;  %v8948_v46 = vsel %vm430_vm4, %v2923_v39, %v7719_v35  ;;  %v8951_v47 = vsel %vm430_vm4, %v3024_v29, %v7720_v34 }
 0x4df   :  { %13370 = vst [vmem:[#allocation9_spill] sm:$0xff] %v8945_v45  ;;  %13371 = vst [vmem:[#allocation10_spill] sm:$0xff] %v8948_v46  ;;  %v8955_v41 = vrot.slane %v8948_v46, 2  ;;  %v3110_v53 = vrot.slane %v8951_v47, 2  ;;  %7344 = vmatpush3.bf16.msra.mxu1 %v8958_v54 }
 0x4e0   :  { %13372 = vst [vmem:[#allocation11_spill] sm:$0xff] %v8951_v47  ;;  %7346 = vmatprep.subr.bf16.mxu1 %v8973_v61 }
 0x4e1   :  { %13373 = vst [vmem:[#allocation12_spill] sm:$0xff] %v8955_v41  ;;  %v8970_v57 = vsel %vm2699_vm6, %v3110_v53, %v8955_v41 }
 0x4e2   :  { %13375 = vst [vmem:[#allocation14_spill] sm:$0xff] %v8970_v57  ;;  %6921 = vmatprep.mubr.msk.f32.mxu1 %vm439_vm5, %v8970_v57 }
 0x4e3   :  { %7348 = vmatpush3.bf16.msra.mxu1 %v8973_v61 }
 0x4e6   :  { %6922 = vmatmul.mubr.msk.f32.vlgmr.msra.gmra.mrb[20].mxu1 %vm439_vm5, %v8955_v41 }
 0x57b   :  { %v6791_v2 = vpop.f32.mrb[12].mxu1 }
 0x57c   :  { %v8992_v3 = vadd.f32 %v6791_v2, %v8989_v1  ;;  %v1265_v6 = vpop.f32.mrb[13].mxu1  ;;  %v6847_v28 = vpop.f32.mrb[20].mxu0 }
 0x57d   :  { %v8995_v59 = vadd.f32 %v8989_v1, %v1265_v6  ;;  %v8998_v60 = vadd.f32 %v6847_v28, %v8989_v1  ;;  %v1630_v22 = vpop.f32.mrb[21].mxu0 }
 0x57e   :  { %v1670_v23 = vsel %vm179_vm3, %v8992_v3, 0.0  ;;  %v1691_v32 = vmul.f32 %v8992_v3, %v8992_v3  ;;  %v9005_v40 = vadd.f32 %v8989_v1, %v1630_v22 }
 0x57f   :  { %v1669_v52 = vsel %vm179_vm3, %v8995_v59, 0.0  ;;  %v1690_v48 = vmul.f32 %v8995_v59, %v8995_v59  ;;  %v1720_v56 = vsel %vm179_vm3, %v8998_v60, 0.0  ;;  %v1742_v27 = vmul.f32 %v8998_v60, %v8998_v60 }
 0x580   :  { %v1699_v36 = vsel %vm179_vm3, %v1691_v32, 0.0  ;;  %v1671_v0 = vadd.f32 %v1670_v23, %v1669_v52  ;;  %v1719_v4 = vsel %vm179_vm3, %v9005_v40, 0.0  ;;  %v1741_v7 = vmul.f32 %v9005_v40, %v9005_v40 }
 0x581   :  { %v1698_v8 = vsel %vm179_vm3, %v1690_v48, 0.0  ;;  %v1750_v10 = vsel %vm179_vm3, %v1742_v27, 0.0  ;;  %v1721_v42 = vadd.f32 %v1720_v56, %v1719_v4 }
 0x582   :  { %v1700_v18 = vadd.f32 %v1699_v36, %v1698_v8  ;;  %v1749_v58 = vsel %vm179_vm3, %v1741_v7, 0.0 }
 0x583   :  { %v1751_v5 = vadd.f32 %v1750_v10, %v1749_v58 }
 0x58b   :  { %v6794_v11 = vpop.f32.mrb[14].mxu1 }
 0x58c   :  { %v9024_v37 = vadd.f32 %v6794_v11, %v8989_v1  ;;  %v1275_v16 = vpop.f32.mrb[15].mxu1  ;;  %v6850_v31 = vpop.f32.mrb[22].mxu0 }
 0x58d   :  { %v9027_v12 = vadd.f32 %v8989_v1, %v1275_v16  ;;  %v9030_v13 = vadd.f32 %v6850_v31, %v8989_v1  ;;  %v1640_v14 = vpop.f32.mrb[23].mxu0 }
 0x58e   :  { %v9033_v15 = vadd.f32 %v8989_v1, %v1640_v14  ;;  %v1693_v17 = vmul.f32 %v9024_v37, %v9024_v37  ;;  %v1674_v35 = vsel %vm179_vm3, %v9024_v37, 0.0 }
 0x58f   :  { %v1672_v19 = vsel %vm179_vm3, %v9027_v12, 0.0  ;;  %v1692_v20 = vmul.f32 %v9027_v12, %v9027_v12  ;;  %v1744_v30 = vmul.f32 %v9030_v13, %v9030_v13  ;;  %v1724_v43 = vsel %vm179_vm3, %v9030_v13, 0.0 }
 0x590   :  { %v1673_v26 = vadd.f32 %v1672_v19, %v1671_v0  ;;  %v1722_v33 = vsel %vm179_vm3, %v9033_v15, 0.0  ;;  %v1743_v34 = vmul.f32 %v9033_v15, %v9033_v15  ;;  %v1703_v53 = vsel %vm179_vm3, %v1693_v17, 0.0 }
 0x591   :  { %v1701_v29 = vsel %vm179_vm3, %v1692_v20, 0.0  ;;  %v1723_v39 = vadd.f32 %v1722_v33, %v1721_v42  ;;  %v1754_v6 = vsel %vm179_vm3, %v1744_v30, 0.0 }
 0x592   :  { %v1702_v62 = vadd.f32 %v1701_v29, %v1700_v18  ;;  %v1752_v55 = vsel %vm179_vm3, %v1743_v34, 0.0  ;;  %v1675_v25 = vadd.f32 %v1674_v35, %v1673_v26 }
 0x593   :  { %v1753_v63 = vadd.f32 %v1752_v55, %v1751_v5  ;;  %v1725_v2 = vadd.f32 %v1724_v43, %v1723_v39 }
 0x594   :  { %v1704_v28 = vadd.f32 %v1703_v53, %v1702_v62 }
 0x595   :  { %v1755_v22 = vadd.f32 %v1754_v6, %v1753_v63 }
 0x59b   :  { %v6797_v23 = vpop.f32.mrb[16].mxu1 }
 0x59c   :  { %v9056_v32 = vadd.f32 %v6797_v23, %v8989_v1  ;;  %v1285_v52 = vpop.f32.mrb[17].mxu1  ;;  %v6853_v48 = vpop.f32.mrb[24].mxu0 }
 0x59d   :  { %v9059_v56 = vadd.f32 %v8989_v1, %v1285_v52  ;;  %v9062_v27 = vadd.f32 %v6853_v48, %v8989_v1  ;;  %v1650_v36 = vpop.f32.mrb[25].mxu0 }
 0x59e   :  { %v9065_v0 = vadd.f32 %v8989_v1, %v1650_v36  ;;  %v1695_v4 = vmul.f32 %v9056_v32, %v9056_v32  ;;  %v1678_v5 = vsel %vm179_vm3, %v9056_v32, 0.0 }
 0x59f   :  { %v1676_v7 = vsel %vm179_vm3, %v9059_v56, 0.0  ;;  %v1694_v8 = vmul.f32 %v9059_v56, %v9059_v56  ;;  %v1746_v42 = vmul.f32 %v9062_v27, %v9062_v27  ;;  %v1728_v14 = vsel %vm179_vm3, %v9062_v27, 0.0 }
 0x5a0   :  { %v1677_v10 = vadd.f32 %v1676_v7, %v1675_v25  ;;  %v1726_v18 = vsel %vm179_vm3, %v9065_v0, 0.0  ;;  %v1745_v58 = vmul.f32 %v9065_v0, %v9065_v0  ;;  %v1707_v20 = vsel %vm179_vm3, %v1695_v4, 0.0 }
 0x5a1   :  { %v1705_v11 = vsel %vm179_vm3, %v1694_v8, 0.0  ;;  %v1727_v16 = vadd.f32 %v1726_v18, %v1725_v2  ;;  %v1758_v33 = vsel %vm179_vm3, %v1746_v42, 0.0 }
 0x5a2   :  { %v1706_v31 = vadd.f32 %v1705_v11, %v1704_v28  ;;  %v1756_v17 = vsel %vm179_vm3, %v1745_v58, 0.0  ;;  %v1679_v19 = vadd.f32 %v1678_v5, %v1677_v10 }
 0x5a3   :  { %v1757_v26 = vadd.f32 %v1756_v17, %v1755_v22  ;;  %v1729_v30 = vadd.f32 %v1728_v14, %v1727_v16 }
 0x5a4   :  { %v1708_v34 = vadd.f32 %v1707_v20, %v1706_v31 }
 0x5a5   :  { %v1759_v35 = vadd.f32 %v1758_v33, %v1757_v26 }
 0x5ab   :  { %v6800_v29 = vpop.f32.mrb[18].mxu1 }
 0x5ac   :  { %v9088_v39 = vadd.f32 %v6800_v29, %v8989_v1  ;;  %v1295_v62 = vpop.f32.mrb[19].mxu1  ;;  %v6856_v43 = vpop.f32.mrb[26].mxu0 }
 0x5ad   :  { %v9091_v55 = vadd.f32 %v8989_v1, %v1295_v62  ;;  %v9094_v25 = vadd.f32 %v6856_v43, %v8989_v1  ;;  %v1660_v53 = vpop.f32.mrb[27].mxu0 }
 0x5ae   :  { %v1661_v63 = vadd.f32 %v8989_v1, %v1660_v53  ;;  %v1697_v2 = vmul.f32 %v9088_v39, %v9088_v39  ;;  %v1682_v36 = vsel %vm179_vm3, %v9088_v39, 0.0 }
 0x5af   :  { %v1680_v6 = vsel %vm179_vm3, %v9091_v55, 0.0  ;;  %v1696_v28 = vmul.f32 %v9091_v55, %v9091_v55  ;;  %v1748_v23 = vmul.f32 %v9094_v25, %v9094_v25  ;;  %v1732_v10 = vsel %vm179_vm3, %v9094_v25, 0.0 }
 0x5b0   :  { %v1681_v22 = vadd.f32 %v1680_v6, %v1679_v19  ;;  %v1730_v52 = vsel %vm179_vm3, %v1661_v63, 0.0  ;;  %v1747_v48 = vmul.f32 %v1661_v63, %v1661_v63  ;;  %v1711_v18 = vsel %vm179_vm3, %v1697_v2, 0.0 }
 0x5b1   :  { %v1709_v1 = vsel %vm179_vm3, %v1696_v28, 0.0  ;;  %v1731_v4 = vadd.f32 %v1730_v52, %v1729_v30  ;;  %v1762_v31 = vsel %vm179_vm3, %v1748_v23, 0.0 }
 0x5b2   :  { %v1683_v7 = vadd.f32 %v1682_v36, %v1681_v22  ;;  %v1710_v8 = vadd.f32 %v1709_v1, %v1708_v34  ;;  %v1760_v42 = vsel %vm179_vm3, %v1747_v48, 0.0 }
 0x5b3   :  { %v1733_v58 = vadd.f32 %v1732_v10, %v1731_v4  ;;  %v1761_v5 = vadd.f32 %v1760_v42, %v1759_v35 }
 0x5b4   :  { %v1684_v11 = vrot.slane %v1683_v7, 4  ;;  %v1712_v16 = vadd.f32 %v1711_v18, %v1710_v8 }
 0x5b5   :  { %v1734_v14 = vrot.slane %v1733_v58, 4  ;;  %v1763_v17 = vadd.f32 %v1762_v31, %v1761_v5 }
 0x5b6   :  { %v1685_v19 = vadd.f32 %v1684_v11, %v1683_v7  ;;  %v1713_v20 = vrot.slane %v1712_v16, 4 }
 0x5b7   :  { %v1735_v26 = vadd.f32 %v1734_v14, %v1733_v58  ;;  %v1764_v30 = vrot.slane %v1763_v17, 4 }
 0x5b8   :  { %v1686_v33 = vrot.slane %v1685_v19, 2  ;;  %v1714_v34 = vadd.f32 %v1713_v20, %v1712_v16  ;;  %v910_v16 = vld [vmem:[%s13131_s13 + $0x1] sm:$0x1] }
 0x5b9   :  { %v1736_v29 = vrot.slane %v1735_v26, 2  ;;  %v1765_v62 = vadd.f32 %v1764_v30, %v1763_v17  ;;  %v911_v17 = vld [vmem:[%s13131_s13 + $0x2] sm:$0x1]  ;;  %s8149_s13 = smov 1  }
 0x5ba   :  { %v1687_v43 = vadd.f32 %v1686_v33, %v1685_v19  ;;  %v1715_v53 = vrot.slane %v1714_v34, 2 }
 0x5bb   :  { %v1737_v6 = vadd.f32 %v1736_v29, %v1735_v26  ;;  %v1766_v2 = vrot.slane %v1765_v62, 2 }
 0x5bc   :  { %v1688_v28 = vrot.slane %v1687_v43, 1  ;;  %v1716_v35 = vadd.f32 %v1715_v53, %v1714_v34 }
 0x5bd   :  { %v1738_v22 = vrot.slane %v1737_v6, 1  ;;  %v1767_v52 = vadd.f32 %v1766_v2, %v1765_v62 }
 0x5be   :  { %v1689_v48 = vadd.f32 %v1688_v28, %v1687_v43  ;;  %v1717_v23 = vrot.slane %v1716_v35, 1 }
 0x5bf   :  { %v1739_v36 = vadd.f32 %v1738_v22, %v1737_v6  ;;  %v1768_v1 = vrot.slane %v1767_v52, 1 }
 0x5c0   :  { %v1718_v4 = vadd.f32 %v1717_v23, %v1716_v35 }
 0x5c1   :  { %v1740_v7 = vadd.f32 %v1739_v36, %v1689_v48  ;;  %v1769_v8 = vadd.f32 %v1768_v1, %v1767_v52 }
 0x5c3   :  { %v1770_v10 = vadd.f32 %v1769_v8, %v1718_v4  ;;  %v1771_v42 = vmul.f32 0.0078125, %v1740_v7 }
 0x5c5   :  { %v1772_v18 = vmul.f32 0.0078125, %v1770_v10  ;;  %v1773_v58 = vmul.f32 %v1771_v42, %v1771_v42 }
 0x5c7   :  { %v1774_v5 = vsub.f32 %v1772_v18, %v1773_v58 }
 0x5c9   :  { %v1775_v11 = vadd.f32 1e-05, %v1774_v5 }
 0x5cb   :  { %8122 = vrsqrt.f32 %v1775_v11 }
 0x5d5   :  { %v8123_v31 = vpop.eup %8122 }
 0x5d6   :  { %v1777_v14 = vmul.f32 %v8123_v31, %v910_v16 }
 0x5d8   :  { %v1778_v19 = vmul.f32 %v1777_v14, %v1771_v42  ;;  %v1783_v20 = vrot.slane %v1777_v14, %v8290_v49 }
 0x5da   :  { %v1779_v26 = vsub.f32 %v911_v17, %v1778_v19  ;;  %v1818_v30 = vmul.f32 %v1783_v20, %v1661_v63  ;;  %v1784_v33 = vmul.f32 %v1783_v20, %v8995_v59  ;;  %v1785_v34 = vmul.f32 %v1783_v20, %v8992_v3 }
 0x5db   :  { %v1812_v29 = vmul.f32 %v1783_v20, %v9005_v40  ;;  %v1813_v62 = vmul.f32 %v1783_v20, %v8998_v60  ;;  %v1786_v43 = vmul.f32 %v1783_v20, %v9027_v12  ;;  %v1787_v53 = vmul.f32 %v1783_v20, %v9024_v37 }
 0x5dc   :  { %v1795_v6 = vrot.slane %v1779_v26, %v8290_v49  ;;  %v1814_v2 = vmul.f32 %v1783_v20, %v9033_v15  ;;  %v1815_v28 = vmul.f32 %v1783_v20, %v9030_v13  ;;  %v1788_v63 = vmul.f32 %v1783_v20, %v9059_v56 }
 0x5dd   :  { %v1789_v59 = vmul.f32 %v1783_v20, %v9056_v32  ;;  %v1816_v3 = vmul.f32 %v1783_v20, %v9065_v0  ;;  %v1817_v40 = vmul.f32 %v1783_v20, %v9062_v27  ;;  %v1790_v60 = vmul.f32 %v1783_v20, %v9091_v55 }
 0x5de   :  { %v1796_v35 = vadd.f32 %v1795_v6, %v1784_v33  ;;  %v1797_v12 = vadd.f32 %v1795_v6, %v1785_v34  ;;  %v1820_v22 = vadd.f32 %v1812_v29, %v1795_v6  ;;  %v1821_v37 = vadd.f32 %v1813_v62, %v1795_v6 }
 0x5df   :  { %v1798_v52 = vadd.f32 %v1795_v6, %v1786_v43  ;;  %v1799_v48 = vadd.f32 %v1795_v6, %v1787_v53  ;;  %v1822_v23 = vadd.f32 %v1814_v2, %v1795_v6  ;;  %v1823_v15 = vadd.f32 %v1815_v28, %v1795_v6 }
 0x5e0   :  { %v1804_v36 = vmax.f32 %v1796_v35, 0.0  ;;  %v1805_v13 = vmax.f32 %v1797_v12, 0.0  ;;  %v1828_v1 = vmax.f32 %v1820_v22, 0.0  ;;  %v1829_v56 = vmax.f32 %v1821_v37, 0.0  ;;  %v1844_v35 = vld [vmem:[%s13130_s6 + $0x40] sm:$0xff]  ;;  %v1845_v12 = vld [vmem:[%s13130_s6 + $0x48] sm:$0xff] }
 0x5e1   :  { %v1806_v4 = vmax.f32 %v1798_v52, 0.0  ;;  %v1807_v32 = vmax.f32 %v1799_v48, 0.0  ;;  %v1830_v7 = vmax.f32 %v1822_v23, 0.0  ;;  %v1831_v0 = vmax.f32 %v1823_v15, 0.0  ;;  %v1846_v22 = vld [vmem:[%s13130_s6 + $0x50] sm:$0xff]  ;;  %v1847_v37 = vld [vmem:[%s13130_s6 + $0x58] sm:$0xff] }
 0x5e2   :  { %v7165_v8 = vpack.c.bf16 %v1805_v13, %v1804_v36  ;;  %v7349_v27 = vpack.c.bf16 %v1829_v56, %v1828_v1  ;;  %v1800_v10 = vadd.f32 %v1795_v6, %v1788_v63  ;;  %v1801_v55 = vadd.f32 %v1795_v6, %v1789_v59  ;;  %v1848_v52 = vld [vmem:[%s13130_s6 + $0x60] sm:$0xff]  ;;  %v1849_v48 = vld [vmem:[%s13130_s6 + $0x68] sm:$0xff]  ;;  %v1850_v23 = vld [vmem:[%s13130_s6 + $0x70] sm:$0xff] }
 0x5e3   :  { %v7169_v42 = vpack.c.bf16 %v1807_v32, %v1806_v4  ;;  %v7353_v18 = vpack.c.bf16 %v1831_v0, %v1830_v7  ;;  %v1824_v58 = vadd.f32 %v1816_v3, %v1795_v6  ;;  %v1825_v5 = vadd.f32 %v1817_v40, %v1795_v6  ;;  %v1841_v3 = vld [vmem:[%s13130_s6 + $0x28] sm:$0xff]  ;;  %v1842_v40 = vld [vmem:[%s13130_s6 + $0x30] sm:$0xff]  ;;  %v1851_v15 = vld [vmem:[%s13130_s6 + $0x78] sm:$0xff] }
 0x5e4   :  { %7166 = vmatprep.subr.bf16.mxu0 %v7165_v8  ;;  %7350 = vmatprep.subr.bf16.mxu1 %v7349_v27  ;;  %v1808_v11 = vmax.f32 %v1800_v10, 0.0  ;;  %v1809_v16 = vmax.f32 %v1801_v55, 0.0  ;;  %v1791_v31 = vmul.f32 %v1783_v20, %v9088_v39  ;;  %v1802_v14 = vadd.f32 %v1795_v6, %v1790_v60  ;;  %v1843_v60 = vld [vmem:[%s13130_s6 + $0x38] sm:$0xff]  ;;  %v2155_v36 = vld [vmem:[%s13132_s3 + $0x8] sm:$0xff]  ;;  %v2154_v13 = vld [vmem:[%s13132_s3] sm:$0xff] }
 0x5e5   :  { %7168 = vmatpush3.bf16.msra.mxu0 %v7165_v8  ;;  %7352 = vmatpush3.bf16.msra.mxu1 %v7349_v27  ;;  %v1832_v17 = vmax.f32 %v1824_v58, 0.0  ;;  %v1833_v19 = vmax.f32 %v1825_v5, 0.0  ;;  %v1819_v26 = vmul.f32 %v1783_v20, %v9094_v25  ;;  %v1826_v33 = vadd.f32 %v1818_v30, %v1795_v6  ;;  %v1837_v25 = vld [vmem:[%s13130_s6 + $0x8] sm:$0xff]  ;;  %v1838_v20 = vld [vmem:[%s13130_s6 + $0x10] sm:$0xff]  ;;  %v1839_v30 = vld [vmem:[%s13130_s6 + $0x18] sm:$0xff] }
 0x5e6   :  { %7170 = vmatprep.subr.bf16.mxu0 %v7169_v42  ;;  %7354 = vmatprep.subr.bf16.mxu1 %v7353_v18  ;;  %v7173_v34 = vpack.c.bf16 %v1809_v16, %v1808_v11  ;;  %v1803_v29 = vadd.f32 %v1795_v6, %v1791_v31  ;;  %v1810_v62 = vmax.f32 %v1802_v14, 0.0  ;;  %v2157_v7 = vld [vmem:[%s13132_s3 + $0x18] sm:$0xff]  ;;  %v2156_v8 = vld [vmem:[%s13132_s3 + $0x10] sm:$0xff]  ;;  %v2159_v11 = vld [vmem:[%s13132_s3 + $0x28] sm:$0xff] }
 0x5e7   :  { %v7357_v43 = vpack.c.bf16 %v1833_v19, %v1832_v17  ;;  %v1827_v53 = vadd.f32 %v1819_v26, %v1795_v6  ;;  %v1834_v2 = vmax.f32 %v1826_v33, 0.0  ;;  %v1840_v6 = vld [vmem:[%s13130_s6 + $0x20] sm:$0xff] }
 0x5e8   :  { %v1811_v28 = vmax.f32 %v1803_v29, 0.0  ;;  %v2158_v31 = vld [vmem:[%s13132_s3 + $0x20] sm:$0xff] }
 0x5e9   :  { %7172 = vmatpush3.bf16.msra.mxu0 %v7169_v42  ;;  %7356 = vmatpush3.bf16.msra.mxu1 %v7353_v18  ;;  %v1835_v39 = vmax.f32 %v1827_v53, 0.0 }
 0x5ea   :  { %7174 = vmatprep.subr.bf16.mxu0 %v7173_v34  ;;  %7358 = vmatprep.subr.bf16.mxu1 %v7357_v43  ;;  %v7177_v63 = vpack.c.bf16 %v1811_v28, %v1810_v62 }
 0x5eb   :  { %v7361_v59 = vpack.c.bf16 %v1835_v39, %v1834_v2 }
 0x5ed   :  { %7176 = vmatpush3.bf16.msra.mxu0 %v7173_v34  ;;  %7360 = vmatpush3.bf16.msra.mxu1 %v7357_v43 }
 0x5ee   :  { %7178 = vmatprep.subr.bf16.mxu0 %v7177_v63  ;;  %7362 = vmatprep.subr.bf16.mxu1 %v7361_v59 }
 0x5f1   :  { %7180 = vmatpush3.bf16.msra.mxu0 %v7177_v63  ;;  %7364 = vmatpush3.bf16.msra.mxu1 %v7361_v59  ;;  %v2161_v63 = vld [vmem:[%s13132_s3 + $0x38] sm:$0xff] }
 0x5f4   :  { %6874 = vmatmul.mubr.msk.f32.vlgmr.msra.gmra.mrb[28].mxu0 %vm430_vm4, %v1837_v25  ;;  %v2160_v25 = vld [vmem:[%s13132_s3 + $0x30] sm:$0xff] }
 0x5f5   :  { %6876 = vmatprep.mubr.msk.f32.mxu0 %vm430_vm4, %v1838_v20 }
 0x5f8   :  { %6877 = vmatmul.mubr.msk.f32.gmra.mrb[30].mxu0 %vm430_vm4, %v1839_v30 }
 0x5f9   :  { %6879 = vmatprep.mubr.msk.f32.mxu0 %vm430_vm4, %v1840_v6 }
 0x5fc   :  { %6880 = vmatmul.mubr.msk.f32.gmra.mrb[32].mxu0 %vm430_vm4, %v1841_v3 }
 0x5fd   :  { %6882 = vmatprep.mubr.msk.f32.mxu0 %vm430_vm4, %v1842_v40 }
 0x600   :  { %6883 = vmatmul.mubr.msk.f32.gmra.mrb[34].mxu0 %vm430_vm4, %v1843_v60 }
 0x601   :  { %6885 = vmatprep.mubr.msk.f32.mxu0 %vm430_vm4, %v1844_v35 }
 0x604   :  { %6886 = vmatmul.mubr.msk.f32.gmra.mrb[36].mxu0 %vm430_vm4, %v1845_v12 }
 0x605   :  { %6888 = vmatprep.mubr.msk.f32.mxu0 %vm430_vm4, %v1846_v22 }
 0x608   :  { %6889 = vmatmul.mubr.msk.f32.gmra.mrb[38].mxu0 %vm430_vm4, %v1847_v37 }
 0x609   :  { %6891 = vmatprep.mubr.msk.f32.mxu0 %vm430_vm4, %v1848_v52 }
 0x60c   :  { %6892 = vmatmul.mubr.msk.f32.gmra.mrb[40].mxu0 %vm430_vm4, %v1849_v48  ;;  %v2163_v48 = vld [vmem:[%s13132_s3 + $0x48] sm:$0xff] }
 0x60d   :  { %6894 = vmatprep.mubr.msk.f32.mxu0 %vm430_vm4, %v1850_v23 }
 0x610   :  { %6895 = vmatmul.mubr.msk.f32.gmra.mrb[42].mxu0 %vm430_vm4, %v1851_v15  ;;  %v2162_v15 = vld [vmem:[%s13132_s3 + $0x40] sm:$0xff] }
 0x6c7   :  { %v6875_v1 = vpop.f32.mrb[28].mxu0 }
 0x6c8   :  { %v2171_v56 = vmul.f32 %v6875_v1, %v2155_v36  ;;  %v2075_v4 = vpop.f32.mrb[29].mxu0 }
 0x6c9   :  { %v2170_v32 = vmul.f32 %v2154_v13, %v2075_v4 }
 0x6ca   :  { %v2204_v0 = vrot.slane %v2171_v56, 6 }
 0x6cb   :  { %v2203_v27 = vrot.slane %v2170_v32, 6  ;;  %v6878_v10 = vpop.f32.mrb[30].mxu0 }
 0x6cc   :  { %v2173_v55 = vmul.f32 %v6878_v10, %v2157_v7  ;;  %v2085_v42 = vpop.f32.mrb[31].mxu0 }
 0x6cd   :  { %v9210_v18 = vsel %vm2202_vm7, %v2203_v27, %v2204_v0  ;;  %v9213_v58 = vsel %vm2202_vm7, 0.0, %v2203_v27  ;;  %v2172_v5 = vmul.f32 %v2156_v8, %v2085_v42 }
 0x6ce   :  { %v2208_v16 = vrot.slane %v2173_v55, 6  ;;  %v9222_v14 = vrot.slane %v9213_v58, 7  ;;  %v2257_v17 = vrot.slane %v9210_v18, 7  ;;  %v9226_v33 = vrot.slane %v9213_v58, 6  ;;  %v2165_v55 = vld [vmem:[%s13132_s3 + $0x58] sm:$0xff] }
 0x6cf   :  { %v2206_v19 = vrot.slane %v2172_v5, 6  ;;  %v6881_v26 = vpop.f32.mrb[32].mxu0  ;;  %v2350_v53 = vrot.slane %v9210_v18, 6  ;;  %v2164_v5 = vld [vmem:[%s13132_s3 + $0x50] sm:$0xff] }
 0x6d0   :  { %v2175_v34 = vmul.f32 %v6881_v26, %v2159_v11  ;;  %v2095_v29 = vpop.f32.mrb[33].mxu0  ;;  %v2894_v62 = vsel %vm66_vm1, %v8821_v44, %v9222_v14  ;;  %v2258_v43 = vsel %vm66_vm1, %v9222_v14, %v2257_v17  ;;  %v2901_v6 = vsel %vm2202_vm7, %v8825_v51, %v9226_v33 }
 0x6d1   :  { %v9235_v2 = vsel %vm2202_vm7, %v2204_v0, %v2206_v19  ;;  %v9238_v28 = vsel %vm2202_vm7, %v2206_v19, %v2208_v16  ;;  %v2174_v39 = vmul.f32 %v2158_v31, %v2095_v29  ;;  %2897 = vrot.lane.b32.xlu0 %v2894_v62, %s8143_s20  ;;  %2294 = vrot.lane.b32.xlu1 %v2258_v43, %s8143_s20 }
 0x6d2   :  { %v2212_v59 = vrot.slane %v2175_v34, 6  ;;  %v2351_v60 = vsel %vm2202_vm7, %v9226_v33, %v2350_v53  ;;  %v2259_v35 = vrot.slane %v9235_v2, 7  ;;  %v2261_v12 = vrot.slane %v9238_v28, 7 }
 0x6d3   :  { %v2210_v20 = vrot.slane %v2174_v39, 6  ;;  %v6884_v30 = vpop.f32.mrb[34].mxu0  ;;  %v2352_v1 = vrot.slane %v9235_v2, 6  ;;  %v2354_v56 = vrot.slane %v9238_v28, 6 }
 0x6d4   :  { %v2177_v3 = vmul.f32 %v6884_v30, %v2161_v63  ;;  %v2105_v40 = vpop.f32.mrb[35].mxu0  ;;  %v2262_v7 = vsel %vm66_vm1, %v2259_v35, %v2261_v12  ;;  %v2260_v0 = vsel %vm66_vm1, %v2257_v17, %v2259_v35 }
 0x6d5   :  { %v9256_v22 = vsel %vm2202_vm7, %v2208_v16, %v2210_v20  ;;  %v9259_v37 = vsel %vm2202_vm7, %v2210_v20, %v2212_v59  ;;  %v2176_v52 = vmul.f32 %v2160_v25, %v2105_v40  ;;  %2902 = vrot.lane.b32.xlu0 %v2901_v6, %s8144_s24  ;;  %2387 = vrot.lane.b32.xlu1 %v2351_v60, %s8144_s24 }
 0x6d6   :  { %v2216_v23 = vrot.slane %v2177_v3, 6  ;;  %v2355_v16 = vsel %vm2202_vm7, %v2352_v1, %v2354_v56  ;;  %v2353_v17 = vsel %vm2202_vm7, %v2350_v53, %v2352_v1  ;;  %v2263_v34 = vrot.slane %v9256_v22, 7  ;;  %v2167_v53 = vld [vmem:[%s13132_s3 + $0x68] sm:$0xff] }
 0x6d7   :  { %v2214_v36 = vrot.slane %v2176_v52, 6  ;;  %v6887_v13 = vpop.f32.mrb[36].mxu0  ;;  %v2265_v29 = vrot.slane %v9259_v37, 7  ;;  %v2356_v20 = vrot.slane %v9256_v22, 6  ;;  %v2358_v30 = vrot.slane %v9259_v37, 6 }
 0x6d8   :  { %v2179_v4 = vmul.f32 %v6887_v13, %v2163_v48  ;;  %v2115_v32 = vpop.f32.mrb[37].mxu0  ;;  %v2264_v40 = vsel %vm66_vm1, %v2261_v12, %v2263_v34  ;;  %v2168_v12 = vld [vmem:[%s13132_s3 + $0x70] sm:$0xff]  ;;  %v2455_v57 = vrot.slane %v9256_v22, 5  ;;  %v2806_v61 = vrot.slane %v9256_v22, 1 }
 0x6d9   :  { %v9274_v8 = vsel %vm2202_vm7, %v2212_v59, %v2214_v36  ;;  %v9277_v27 = vsel %vm2202_vm7, %v2214_v36, %v2216_v23  ;;  %v2178_v10 = vmul.f32 %v2162_v15, %v2115_v32  ;;  %2298 = vrot.lane.b32.xlu1 %v2262_v7, %s8143_s20  ;;  %2296 = vrot.lane.b32.xlu0 %v2260_v0, %s8143_s20  ;;  %v2166_v59 = vld [vmem:[%s13132_s3 + $0x60] sm:$0xff]  ;;  %v2169_v15 = vld [vmem:[%s13132_s3 + $0x78] sm:$0xff]  ;;  %v2711_v24 = vrot.slane %v9259_v37, 2 }
 0x6da   :  { %v2220_v42 = vrot.slane %v2179_v4, 6  ;;  %v2266_v3 = vsel %vm66_vm1, %v2263_v34, %v2265_v29  ;;  %v2359_v13 = vsel %vm2202_vm7, %v2356_v20, %v2358_v30  ;;  %v2357_v32 = vsel %vm2202_vm7, %v2354_v56, %v2356_v20 }
 0x6db   :  { %v2218_v11 = vrot.slane %v2178_v10, 6  ;;  %v6890_v31 = vpop.f32.mrb[38].mxu0  ;;  %v2267_v7 = vrot.slane %v9274_v8, 7  ;;  %v2269_v0 = vrot.slane %v9277_v27, 7 }
 0x6dc   :  { %v2181_v19 = vmul.f32 %v6890_v31, %v2165_v55  ;;  %v2125_v26 = vpop.f32.mrb[39].mxu0 }
 0x6dd   :  { %v9292_v62 = vsel %vm2202_vm7, %v2216_v23, %v2218_v11  ;;  %v9295_v43 = vsel %vm2202_vm7, %v2218_v11, %v2220_v42  ;;  %2391 = vrot.lane.b32.xlu1 %v2355_v16, %s8144_s24  ;;  %2389 = vrot.lane.b32.xlu0 %v2353_v17, %s8144_s24  ;;  %v2180_v39 = vmul.f32 %v2164_v5, %v2125_v26  ;;  %v2362_v26 = vrot.slane %v9277_v27, 6 }
 0x6de   :  { %v2224_v63 = vrot.slane %v2181_v19, 6  ;;  %v2270_v56 = vsel %vm66_vm1, %v2267_v7, %v2269_v0  ;;  %v2268_v17 = vsel %vm66_vm1, %v2265_v29, %v2267_v7  ;;  %v2360_v19 = vrot.slane %v9274_v8, 6 }
 0x6df   :  { %v2222_v25 = vrot.slane %v2180_v39, 6  ;;  %v6893_v6 = vpop.f32.mrb[40].mxu0  ;;  %v2271_v29 = vrot.slane %v9292_v62, 7  ;;  %v2814_v45 = vrot.slane %v9292_v62, 1 }
 0x6e0   :  { %v2183_v60 = vmul.f32 %v6893_v6, %v2167_v53  ;;  %v2135_v35 = vpop.f32.mrb[41].mxu0  ;;  %v2363_v53 = vsel %vm2202_vm7, %v2360_v19, %v2362_v26  ;;  %v2364_v6 = vrot.slane %v9292_v62, 6 }
 0x6e1   :  { %v9310_v52 = vsel %vm2202_vm7, %v2220_v42, %v2222_v25  ;;  %v9313_v48 = vsel %vm2202_vm7, %v2222_v25, %v2224_v63  ;;  %2302 = vrot.lane.b32.xlu1 %v2266_v3, %s8143_s20  ;;  %2300 = vrot.lane.b32.xlu0 %v2264_v40, %s8143_s20  ;;  %v2182_v23 = vmul.f32 %v2166_v59, %v2135_v35  ;;  %v2273_v59 = vrot.slane %v9295_v43, 7 }
 0x6e2   :  { %v2228_v36 = vrot.slane %v2183_v60, 6  ;;  %v2272_v20 = vsel %vm66_vm1, %v2269_v0, %v2271_v29  ;;  %v2366_v3 = vrot.slane %v9295_v43, 6  ;;  %v2365_v40 = vsel %vm2202_vm7, %v2362_v26, %v2364_v6 }
 0x6e3   :  { %v2226_v1 = vrot.slane %v2182_v23, 6  ;;  %v6896_v4 = vpop.f32.mrb[42].mxu0  ;;  %v2274_v25 = vsel %vm66_vm1, %v2271_v29, %v2273_v59  ;;  %v2275_v60 = vrot.slane %v9310_v52, 7  ;;  %v2277_v35 = vrot.slane %v9313_v48, 7 }
 0x6e4   :  { %v2185_v10 = vmul.f32 %v6896_v4, %v2169_v15  ;;  %v2145_v55 = vpop.f32.mrb[43].mxu0 }
 0x6e5   :  { %2395 = vrot.lane.b32.xlu1 %v2359_v13, %s8144_s24  ;;  %2393 = vrot.lane.b32.xlu0 %v2357_v32, %s8144_s24  ;;  %v9330_v42 = vsel %vm2202_vm7, %v2224_v63, %v2226_v1  ;;  %v9333_v5 = vsel %vm2202_vm7, %v2226_v1, %v2228_v36  ;;  %v2184_v11 = vmul.f32 %v2168_v12, %v2145_v55  ;;  %v2370_v12 = vrot.slane %v9313_v48, 6 }
 0x6e6   :  { %13377 = vst [vmem:[#allocation16_spill] sm:$0xff] %v9333_v5  ;;  %v2232_v16 = vrot.slane %v2185_v10, 6  ;;  %v2361_v63 = vsel %vm2202_vm7, %v2358_v30, %v2360_v19  ;;  %v2367_v30 = vsel %vm2202_vm7, %v2364_v6, %v2366_v3  ;;  %v2278_v23 = vsel %vm66_vm1, %v2275_v60, %v2277_v35 }
 0x6e7   :  { %v2230_v31 = vrot.slane %v2184_v11, 6  ;;  %v2276_v15 = vsel %vm66_vm1, %v2273_v59, %v2275_v60  ;;  %v2279_v4 = vrot.slane %v9330_v42, 7  ;;  %v2281_v32 = vrot.slane %v9333_v5, 7  ;;  %v1857_v60 = vld [vmem:[%s13129_s10 + $0x28] sm:$0xff] }
 0x6e8   :  { %v9378_v7 = vsel %vm2202_vm7, %v2232_v16, 0.0  ;;  %v2372_v55 = vrot.slane %v9330_v42, 6  ;;  %v2374_v11 = vrot.slane %v9333_v5, 6  ;;  %v13158_v59 = vmov 0.0|0.0  }
 0x6e9   :  { %2306 = vrot.lane.b32.xlu1 %v2270_v56, %s8143_s20  ;;  %2304 = vrot.lane.b32.xlu0 %v2268_v17, %s8143_s20  ;;  %v9342_v34 = vsel %vm2202_vm7, %v2228_v36, %v2230_v31  ;;  %v9345_v39 = vsel %vm2202_vm7, %v2230_v31, %v2232_v16  ;;  %v2368_v36 = vrot.slane %v9310_v52, 6  ;;  %13380 = vst [vmem:[#allocation19_spill] sm:$0xff] %v9378_v7  ;;  %v2287_v31 = vrot.slane %v9378_v7, 7  ;;  %v1852_v56 = vld [vmem:[%s13129_s10] sm:$0xff]  ;;  %v1853_v16 = vld [vmem:[%s13129_s10 + $0x8] sm:$0xff] }
 0x6ea   :  { %13378 = vst [vmem:[#allocation17_spill] sm:$0xff] %v9342_v34  ;;  %13379 = vst [vmem:[#allocation18_spill] sm:$0xff] %v9345_v39  ;;  %v2282_v0 = vsel %vm66_vm1, %v2279_v4, %v2281_v32  ;;  %v2280_v10 = vsel %vm66_vm1, %v2277_v35, %v2279_v4  ;;  %v2375_v17 = vsel %vm2202_vm7, %v2372_v55, %v2374_v11  ;;  %v2283_v26 = vrot.slane %v9342_v34, 7 }
 0x6eb   :  { %v2371_v13 = vsel %vm2202_vm7, %v2368_v36, %v2370_v12  ;;  %v2369_v1 = vsel %vm2202_vm7, %v2366_v3, %v2368_v36  ;;  %v2373_v19 = vsel %vm2202_vm7, %v2370_v12, %v2372_v55  ;;  %v2290_v29 = vsel %vm66_vm1, %v2287_v31, %v8821_v44  ;;  %7181 = vmatprep.subr.bf16.mxu0 %v13158_v59  ;;  %v1858_v12 = vld [vmem:[%s13129_s10 + $0x30] sm:$0xff] }
 0x6ec   :  { %7365 = vmatprep.subr.bf16.mxu1 %v13158_v59  ;;  %v2285_v6 = vrot.slane %v9345_v39, 7  ;;  %v2376_v3 = vrot.slane %v9342_v34, 6  ;;  %v2605_v4 = vrot.slane %v9210_v18, 3 }
 0x6ed   :  { %2399 = vrot.lane.b32.xlu1 %v2363_v53, %s8144_s24  ;;  %2397 = vrot.lane.b32.xlu0 %v2361_v63, %s8144_s24  ;;  %v1854_v53 = vld [vmem:[%s13129_s10 + $0x10] sm:$0xff]  ;;  %v1855_v63 = vld [vmem:[%s13129_s10 + $0x18] sm:$0xff] }
 0x6ee   :  { %v2286_v35 = vsel %vm66_vm1, %v2283_v26, %v2285_v6  ;;  %v2288_v55 = vsel %vm66_vm1, %v2285_v6, %v2287_v31  ;;  %v9463_v31 = vrot.slane %v13135_v50, 2  ;;  %v2701_v6 = vrot.slane %v9213_v58, 2 }
 0x6f1   :  { %2310 = vrot.lane.b32.xlu1 %v2274_v25, %s8143_s20  ;;  %2308 = vrot.lane.b32.xlu0 %v2272_v20, %s8143_s20  ;;  %v9407_v25 = vpack.c.bf16 %v1853_v16, %v1852_v56  ;;  %v2284_v20 = vsel %vm66_vm1, %v2281_v32, %v2283_v26  ;;  %v13137_v32 = vrot.slane %v9235_v2, 3  ;;  %v1860_v16 = vld [vmem:[%s13129_s10 + $0x40] sm:$0xff] }
 0x6f3   :  { %7183 = vmatpush1.bf16.msra.mxu0 %v9407_v25 }
 0x6f4   :  { %7184 = vmatprep.subr.bf16.mxu0 %v13158_v59 }
 0x6f5   :  { %2403 = vrot.lane.b32.xlu1 %v2367_v30, %s8144_s24  ;;  %2401 = vrot.lane.b32.xlu0 %v2365_v40, %s8144_s24  ;;  %v9414_v30 = vpack.c.bf16 %v1855_v63, %v1854_v53  ;;  %v1856_v40 = vld [vmem:[%s13129_s10 + $0x20] sm:$0xff]  ;;  %v2703_v53 = vrot.slane %v9210_v18, 2  ;;  %v13136_v63 = vrot.slane %v9235_v2, 2 }
 0x6f6   :  { %v9429_v36 = vpack.c.bf16 %v1857_v60, %v1856_v40  ;;  %v9484_v40 = vrot.slane %v13135_v50, 5  ;;  %v1862_v60 = vld [vmem:[%s13129_s10 + $0x50] sm:$0xff] }
 0x6f7   :  { %7186 = vmatpush1.bf16.msra.mxu0 %v9414_v30 }
 0x6f8   :  { %7187 = vmatprep.subr.bf16.mxu0 %v13158_v59 }
 0x6f9   :  { %2314 = vrot.lane.b32.xlu1 %v2278_v23, %s8143_s20  ;;  %2312 = vrot.lane.b32.xlu0 %v2276_v15, %s8143_s20  ;;  %v2377_v23 = vsel %vm2202_vm7, %v2374_v11, %v2376_v3  ;;  %v2378_v15 = vrot.slane %v9345_v39, 6  ;;  %v9449_v11 = vrot.slane %v9378_v7, 6 }
 0x6fb   :  { %7189 = vmatpush1.bf16.msra.mxu0 %v9429_v36 }
 0x6fc   :  { %7190 = vmatprep.subr.bf16.mxu0 %v13158_v59 }
 0x6fd   :  { %2407 = vrot.lane.b32.xlu1 %v2371_v13, %s8144_s24  ;;  %2405 = vrot.lane.b32.xlu0 %v2369_v1, %s8144_s24  ;;  %v1859_v13 = vld [vmem:[%s13129_s10 + $0x38] sm:$0xff]  ;;  %v9440_v1 = vrot.slane %v13135_v50, 3 }
 0x6fe   :  { %v9452_v56 = vpack.c.bf16 %v1859_v13, %v1858_v12  ;;  %v9495_v12 = vrot.slane %v13135_v50, 1  ;;  %v2802_v50 = vrot.slane %v9235_v2, 1 }
 0x700   :  { %7192 = vmatpush1.bf16.msra.mxu0 %v9452_v56 }
 0x701   :  { %2318 = vrot.lane.b32.xlu1 %v2282_v0, %s8143_s20  ;;  %2316 = vrot.lane.b32.xlu0 %v2280_v10, %s8143_s20  ;;  %v2603_v0 = vrot.slane %v9213_v58, 3  ;;  %v2379_v10 = vsel %vm2202_vm7, %v2376_v3, %v2378_v15 }
 0x702   :  { %7193 = vmatprep.subr.bf16.mxu0 %v13158_v59 }
 0x703   :  { %v2604_v26 = vsel %vm2601_vm8, %v9440_v1, %v2603_v0 }
 0x705   :  { %2411 = vrot.lane.b32.xlu1 %v2375_v17, %s8144_s24  ;;  %2409 = vrot.lane.b32.xlu0 %v2373_v19, %s8144_s24  ;;  %v1861_v17 = vld [vmem:[%s13129_s10 + $0x48] sm:$0xff]  ;;  %v2608_v19 = vsel %vm2601_vm8, %v2605_v4, %v13137_v32  ;;  %v2709_v32 = vrot.slane %v9256_v22, 2 }
 0x706   :  { %v9478_v3 = vpack.c.bf16 %v1861_v17, %v1860_v16  ;;  %v2800_v16 = vrot.slane %v9210_v18, 1 }
 0x708   :  { %7195 = vmatpush1.bf16.msra.mxu0 %v9478_v3 }
 0x709   :  { %2326 = vrot.lane.b32.xlu1 %v2290_v29, %s8143_s20  ;;  %2320 = vrot.lane.b32.xlu0 %v2284_v20, %s8143_s20  ;;  %v2381_v29 = vsel %vm2202_vm7, %v2378_v15, %v9449_v11  ;;  %v2606_v20 = vsel %vm2601_vm8, %v2603_v0, %v2605_v4  ;;  %v2447_v15 = vrot.slane %v9213_v58, 5  ;;  %v2706_v4 = vsel %vm2699_vm6, %v2703_v53, %v13136_v63 }
 0x70a   :  { %v7721_v13 = vpack.i.bf16 %v2606_v20, %v2604_v26  ;;  %v2449_v0 = vrot.slane %v9210_v18, 5  ;;  %v1865_v26 = vld [vmem:[%s13129_s10 + $0x68] sm:$0xff]  ;;  %7196 = vmatprep.subr.bf16.mxu0 %v13158_v59  ;;  %v2803_v63 = vsel %vm60_vm0, %v2800_v16, %v2802_v50 }
 0x70d   :  { %2322 = vrot.lane.b32.xlu1 %v2286_v35, %s8143_s20  ;;  %2413 = vrot.lane.b32.xlu0 %v2377_v23, %s8144_s24  ;;  %v1863_v35 = vld [vmem:[%s13129_s10 + $0x58] sm:$0xff]  ;;  %v7726_v23 = vpack.i.bf16 %v2608_v19, %v9222_v14  ;;  %v2702_v14 = vsel %vm2699_vm6, %v9463_v31, %v2701_v6  ;;  %v1864_v19 = vld [vmem:[%s13129_s10 + $0x60] sm:$0xff] }
 0x70e   :  { %v9508_v17 = vpack.c.bf16 %v1863_v35, %v1862_v60  ;;  %v2611_v35 = vrot.slane %v9256_v22, 3 }
 0x710   :  { %7198 = vmatpush1.bf16.msra.mxu0 %v9508_v17 }
 0x711   :  { %2415 = vrot.lane.b32.xlu1 %v2379_v10, %s8144_s24  ;;  %2324 = vrot.lane.b32.xlu0 %v2288_v55, %s8143_s20  ;;  %v2798_v10 = vrot.slane %v9213_v58, 1  ;;  %v2704_v55 = vsel %vm2699_vm6, %v2701_v6, %v2703_v53  ;;  %v7736_v53 = vpack.i.bf16 %v2706_v4, %v9226_v33  ;;  %v2450_v6 = vsel %vm2445_vm9, %v2447_v15, %v2449_v0  ;;  %v1866_v4 = vld [vmem:[%s13129_s10 + $0x70] sm:$0xff] }
 0x712   :  { %v7731_v20 = vpack.i.bf16 %v2704_v55, %v2702_v14  ;;  %v9530_v33 = vpack.c.bf16 %v1865_v26, %v1864_v19  ;;  %7199 = vmatprep.subr.bf16.mxu0 %v13158_v59  ;;  %v2453_v26 = vrot.slane %v9238_v28, 5 }
 0x713   :  { %v2799_v60 = vsel %vm60_vm0, %v9495_v12, %v2798_v10 }
 0x714   :  { %7201 = vmatpush1.bf16.msra.mxu0 %v9530_v33  ;;  %v2456_v54 = vsel %vm2445_vm9, %v2453_v26, %v2455_v57 }
 0x715   :  { %3030 = vrot.lane.b32.xlu1 %v9449_v11, %s8144_s24  ;;  %2417 = vrot.lane.b32.xlu0 %v2381_v29, %s8144_s24  ;;  %v2448_v29 = vsel %vm2445_vm9, %v9484_v40, %v2447_v15  ;;  %v2609_v15 = vrot.slane %v9238_v28, 3 }
 0x716   :  { %v7746_v14 = vpack.i.bf16 %v2450_v6, %v2448_v29  ;;  %v13381_v29 = vrot.slane %v9235_v2, 3  ;;  %7202 = vmatprep.subr.bf16.mxu0 %v13158_v59 }
 0x717   :  { %v2612_v19 = vsel %vm2601_vm8, %v2609_v15, %v2611_v35 }
 0x718   :  { %v2610_v6 = vsel %vm2601_vm8, %v13381_v29, %v2609_v15 }
 0x719   :  { %7727 = vrot.lane.b32.xlu1 %v7726_v23, %s8143_s20  ;;  %7722 = vrot.lane.b32.xlu0 %v7721_v13, %s8143_s20  ;;  %v2801_v23 = vsel %vm60_vm0, %v2798_v10, %v2800_v16  ;;  %v2451_v13 = vrot.slane %v9235_v2, 5  ;;  %v1867_v10 = vld [vmem:[%s13129_s10 + $0x78] sm:$0xff]  ;;  %v1869_v16 = vld [vmem:[%s13129_s10 + $0x88] sm:$0xff] }
 0x71a   :  { %v7741_v55 = vpack.i.bf16 %v2801_v23, %v2799_v60  ;;  %v9549_v49 = vpack.c.bf16 %v1867_v10, %v1866_v4  ;;  %v2707_v60 = vrot.slane %v9238_v28, 2  ;;  %v7756_v23 = vpack.i.bf16 %v2612_v19, %v2610_v6 }
 0x71b   :  { %v2615_v4 = vrot.slane %v9274_v8, 3 }
 0x71c   :  { %v2710_v29 = vsel %vm2699_vm6, %v2707_v60, %v2709_v32  ;;  %7204 = vmatpush1.bf16.msra.mxu0 %v9549_v49 }
 0x71d   :  { %7737 = vrot.lane.b32.xlu1 %v7736_v53, %s8144_s24  ;;  %7732 = vrot.lane.b32.xlu0 %v7731_v20, %s8144_s24  ;;  %v2804_v53 = vrot.slane %v9238_v28, 1  ;;  %v2452_v20 = vsel %vm2445_vm9, %v2449_v0, %v2451_v13  ;;  %v1868_v0 = vld [vmem:[%s13129_s10 + $0x80] sm:$0xff] }
 0x71e   :  { %v7751_v10 = vpack.i.bf16 %v2452_v20, %v2803_v63  ;;  %v9572_v19 = vpack.c.bf16 %v1869_v16, %v1868_v0  ;;  %v13382_v63 = vrot.slane %v9235_v2, 2  ;;  %v1871_v20 = vld [vmem:[%s13129_s10 + $0x98] sm:$0xff]  ;;  %v2457_v0 = vrot.slane %v9259_v37, 5  ;;  %7205 = vmatprep.subr.bf16.mxu0 %v13158_v59 }
 0x71f   :  { %v2805_v15 = vsel %vm60_vm0, %v2802_v50, %v2804_v53  ;;  %v2808_v16 = vrot.slane %v9259_v37, 1  ;;  %v2807_v38 = vsel %vm60_vm0, %v2804_v53, %v2806_v61 }
 0x720   :  { %v2708_v50 = vsel %vm2699_vm6, %v13382_v63, %v2707_v60  ;;  %7207 = vmatpush1.bf16.msra.mxu0 %v9572_v19 }
 0x721   :  { %7747 = vrot.lane.b32.xlu1 %v7746_v14, %s8147_s29  ;;  %7742 = vrot.lane.b32.xlu0 %v7741_v55, %s8147_s29  ;;  %v2454_v14 = vsel %vm2445_vm9, %v2451_v13, %v2453_v26  ;;  %v2613_v55 = vrot.slane %v9259_v37, 3  ;;  %v1870_v13 = vld [vmem:[%s13129_s10 + $0x90] sm:$0xff]  ;;  %v7761_v60 = vpack.i.bf16 %v2710_v29, %v2708_v50  ;;  %v2458_v26 = vsel %vm2445_vm9, %v2455_v57, %v2457_v0 }
 0x722   :  { %v9595_v21 = vpack.c.bf16 %v1871_v20, %v1870_v13  ;;  %v2809_v53 = vsel %vm60_vm0, %v2806_v61, %v2808_v16  ;;  %7208 = vmatprep.subr.bf16.mxu0 %v13158_v59  ;;  %v7771_v29 = vpack.i.bf16 %v2456_v54, %v2807_v38  ;;  %v2619_v50 = vrot.slane %v9292_v62, 3  ;;  %v1874_v38 = vld [vmem:[%s13129_s10 + $0xb0] sm:$0xff]  ;;  %v1875_v54 = vld [vmem:[%s13129_s10 + $0xb8] sm:$0xff] }
 0x723   :  { %v2616_v6 = vsel %vm2601_vm8, %v2613_v55, %v2615_v4  ;;  %v2614_v63 = vsel %vm2601_vm8, %v2611_v35, %v2613_v55  ;;  %v1873_v35 = vld [vmem:[%s13129_s10 + $0xa8] sm:$0xff]  ;;  %v2617_v55 = vrot.slane %v9277_v27, 3  ;;  %v2459_v13 = vrot.slane %v9274_v8, 5 }
 0x724   :  { %v7776_v9 = vpack.i.bf16 %v2616_v6, %v2614_v63  ;;  %v2810_v20 = vrot.slane %v9274_v8, 1  ;;  %v2712_v6 = vsel %vm2699_vm6, %v2709_v32, %v2711_v24  ;;  %7210 = vmatpush1.bf16.msra.mxu0 %v9595_v21  ;;  %v7786_v61 = vpack.i.bf16 %v2458_v26, %v2809_v53 }
 0x725   :  { %7757 = vrot.lane.b32.xlu1 %v7756_v23, %s8143_s20  ;;  %7752 = vrot.lane.b32.xlu0 %v7751_v10, %s8147_s29  ;;  %v2713_v23 = vrot.slane %v9274_v8, 2  ;;  %v7766_v10 = vpack.i.bf16 %v2454_v14, %v2805_v15  ;;  %v1872_v14 = vld [vmem:[%s13129_s10 + $0xa0] sm:$0xff]  ;;  %v2461_v32 = vrot.slane %v9277_v27, 5  ;;  %v2620_v63 = vsel %vm2601_vm8, %v2617_v55, %v2619_v50 }
 0x726   :  { %v9615_v57 = vpack.c.bf16 %v1873_v35, %v1872_v14  ;;  %7211 = vmatprep.subr.bf16.mxu0 %v13158_v59  ;;  %v2460_v14 = vsel %vm2445_vm9, %v2457_v0, %v2459_v13  ;;  %v2811_v35 = vsel %vm60_vm0, %v2808_v16, %v2810_v20  ;;  %v2717_v26 = vrot.slane %v9292_v62, 2  ;;  %v1877_v0 = vld [vmem:[%s13129_s10 + $0xc8] sm:$0xff] }
 0x727   :  { %v2714_v15 = vsel %vm2699_vm6, %v2711_v24, %v2713_v23  ;;  %v2618_v24 = vsel %vm2601_vm8, %v2615_v4, %v2617_v55  ;;  %v9635_v53 = vpack.c.bf16 %v1875_v54, %v1874_v38  ;;  %v1876_v4 = vld [vmem:[%s13129_s10 + $0xc0] sm:$0xff]  ;;  %v7791_v16 = vpack.i.bf16 %v2460_v14, %v2811_v35 }
 0x728   :  { %7213 = vmatpush1.bf16.msra.mxu0 %v9615_v57  ;;  %v2462_v55 = vsel %vm2445_vm9, %v2459_v13, %v2461_v32  ;;  %v13153_v38 = vrot.slane %v9310_v52, 3  ;;  %v2463_v54 = vrot.slane %v9292_v62, 5  ;;  %v1879_v13 = vld [vmem:[%s13129_s10 + $0xd8] sm:$0xff]  ;;  %v2816_v14 = vrot.slane %v9295_v43, 1 }
 0x729   :  { %7767 = vrot.lane.b32.xlu1 %v7766_v10, %s8147_s29  ;;  %7762 = vrot.lane.b32.xlu0 %v7761_v60, %s8144_s24  ;;  %v7781_v10 = vpack.i.bf16 %v2714_v15, %v2712_v6  ;;  %v2812_v60 = vrot.slane %v9277_v27, 1  ;;  %v7796_v15 = vpack.i.bf16 %v2620_v63, %v2618_v24  ;;  %v9655_v24 = vpack.c.bf16 %v1877_v0, %v1876_v4 }
 0x72a   :  { %7214 = vmatprep.subr.bf16.mxu0 %v13158_v59  ;;  %v2465_v63 = vrot.slane %v9295_v43, 5  ;;  %v2719_v0 = vrot.slane %v9295_v43, 2 }
 0x72b   :  { %v2813_v6 = vsel %vm60_vm0, %v2810_v20, %v2812_v60 }
 0x72c   :  { %7216 = vmatpush1.bf16.msra.mxu0 %v9635_v53  ;;  %v7806_v20 = vpack.i.bf16 %v2462_v55, %v2813_v6  ;;  %v2815_v55 = vsel %vm60_vm0, %v2812_v60, %v2814_v45  ;;  %v2817_v60 = vsel %vm60_vm0, %v2814_v45, %v2816_v14 }
 0x72d   :  { %7777 = vrot.lane.b32.xlu1 %v7776_v9, %s8143_s20  ;;  %7772 = vrot.lane.b32.xlu0 %v7771_v29, %s8147_s29  ;;  %v2715_v9 = vrot.slane %v9277_v27, 2  ;;  %v2621_v29 = vrot.slane %v9295_v43, 3 }
 0x72e   :  { %7217 = vmatprep.subr.bf16.mxu0 %v13158_v59 }
 0x72f   :  { %v2622_v35 = vsel %vm2601_vm8, %v2619_v50, %v2621_v29  ;;  %v2624_v4 = vsel %vm2601_vm8, %v2621_v29, %v13153_v38  ;;  %v1880_v50 = vld [vmem:[%s13129_s10 + $0xe0] sm:$0xff]  ;;  %v1881_v29 = vld [vmem:[%s13129_s10 + $0xe8] sm:$0xff]  ;;  %v2818_v38 = vrot.slane %v9310_v52, 1 }
 0x730   :  { %7219 = vmatpush1.bf16.msra.mxu0 %v9655_v24  ;;  %v9699_v45 = vpack.c.bf16 %v1881_v29, %v1880_v50 }
 0x731   :  { %7787 = vrot.lane.b32.xlu1 %v7786_v61, %s8147_s29  ;;  %7782 = vrot.lane.b32.xlu0 %v7781_v10, %s8144_s24  ;;  %v2716_v61 = vsel %vm2699_vm6, %v2713_v23, %v2715_v9  ;;  %v2718_v10 = vsel %vm2699_vm6, %v2715_v9, %v2717_v26  ;;  %v1878_v23 = vld [vmem:[%s13129_s10 + $0xd0] sm:$0xff] }
 0x732   :  { %v7801_v9 = vpack.i.bf16 %v2718_v10, %v2716_v61  ;;  %v9677_v6 = vpack.c.bf16 %v1879_v13, %v1878_v23  ;;  %v7816_v61 = vpack.i.bf16 %v2624_v4, %v2622_v35  ;;  %7220 = vmatprep.subr.bf16.mxu0 %v13158_v59  ;;  %v2720_v23 = vsel %vm2699_vm6, %v2717_v26, %v2719_v0  ;;  %v1882_v26 = vld [vmem:[%s13129_s10 + $0xf0] sm:$0xff] }
 0x733   :  { %v13156_v35 = vrot.slane %v9313_v48, 1 }
 0x734   :  { %7222 = vmatpush1.bf16.msra.mxu0 %v9677_v6 }
 0x735   :  { %7797 = vrot.lane.b32.xlu1 %v7796_v15, %s8143_s20  ;;  %7792 = vrot.lane.b32.xlu0 %v7791_v16, %s8147_s29  ;;  %v13157_v15 = vrot.slane %v9310_v52, 2  ;;  %v2464_v16 = vsel %vm2445_vm9, %v2461_v32, %v2463_v54  ;;  %v2466_v32 = vsel %vm2445_vm9, %v2463_v54, %v2465_v63  ;;  %v1883_v54 = vld [vmem:[%s13129_s10 + $0xf8] sm:$0xff]  ;;  %v2821_v29 = vsel %vm60_vm0, %v2818_v38, %v13156_v35 }
 0x736   :  { %v7811_v10 = vpack.i.bf16 %v2464_v16, %v2815_v55  ;;  %7223 = vmatprep.subr.bf16.mxu0 %v13158_v59  ;;  %v7826_v4 = vpack.i.bf16 %v2466_v32, %v2817_v60  ;;  %v13154_v55 = vrot.slane %v9378_v7, 2 }
 0x737   :  { %v2722_v13 = vsel %vm2699_vm6, %v2719_v0, %v13157_v15 }
 0x738   :  { %v7821_v0 = vpack.i.bf16 %v2722_v13, %v2720_v23  ;;  %7225 = vmatpush1.bf16.msra.mxu0 %v9699_v45 }
 0x739   :  { %7807 = vrot.lane.b32.xlu1 %v7806_v20, %s8147_s29  ;;  %7802 = vrot.lane.b32.xlu0 %v7801_v9, %s8144_s24  ;;  %v2467_v20 = vrot.slane %v9310_v52, 5  ;;  %v13155_v9 = vrot.slane %v9313_v48, 5 }
 0x73a   :  { %7226 = vmatprep.subr.bf16.mxu0 %v13158_v59 }
 0x73b   :  { %v2468_v16 = vsel %vm2445_vm9, %v2465_v63, %v2467_v20  ;;  %v2470_v50 = vsel %vm2445_vm9, %v2467_v20, %v13155_v9  ;;  %v9724_v63 = vpop.f32.mrb[20].mxu1 }
 0x73c   :  { %13383 = vst [vmem:[#allocation20_spill] sm:$0xff] %v9724_v63  ;;  %v9727_v32 = vpop.f32.mrb[21].mxu1  ;;  %v7836_v13 = vpack.i.bf16 %v2470_v50, %v2821_v29 }
 0x73d   :  { %7817 = vrot.lane.b32.xlu1 %v7816_v61, %s8143_s20  ;;  %7812 = vrot.lane.b32.xlu0 %v7811_v10, %s8147_s29  ;;  %v2819_v61 = vsel %vm60_vm0, %v2816_v14, %v2818_v38  ;;  %v9720_v10 = vpack.c.bf16 %v1883_v54, %v1882_v26  ;;  %13384 = vst [vmem:[#allocation21_spill] sm:$0xff] %v9727_v32 }
 0x73e   :  { %v7831_v20 = vpack.i.bf16 %v2468_v16, %v2819_v61  ;;  %v2383_v38 = vsel %vm2202_vm7, %v9449_v11, %v8825_v51  ;;  %v2735_v14 = vsel %vm2699_vm6, %v13154_v55, %v9463_v31 }
 0x73f   :  { %7228 = vmatpush1.bf16.msra.mxu0 %v9720_v10 }
 0x740   :  { %7229 = vmatprep.subr.bf16.mxu0 %v13158_v59 }
 0x741   :  { %7827 = vrot.lane.b32.xlu1 %v7826_v4, %s8147_s29  ;;  %7822 = vrot.lane.b32.xlu0 %v7821_v0, %s8144_s24  ;;  %v7841_v0 = vpack.i.bf16 %v2383_v38, %v2735_v14 }
 0x743   :  { %v2898_v60 = vpop.permute.xlu0 %2897  ;;  %v2295_v23 = vpop.permute.xlu1 %2294 }
 0x744   :  { %v3025_v26 = vsel %vm179_vm3, %v9213_v58, %v2898_v60  ;;  %v2906_v54 = vsel %vm179_vm3, %v9210_v18, %v2295_v23 }
 0x745   :  { %7837 = vrot.lane.b32.xlu1 %v7836_v13, %s8147_s29  ;;  %7832 = vrot.lane.b32.xlu0 %v7831_v20, %s8147_s29 }
 0x747   :  { %v2903_v11 = vpop.permute.xlu0 %2902  ;;  %v2388_v4 = vpop.permute.xlu1 %2387 }
 0x748   :  { %v9745_v16 = vsel %vm430_vm4, %v3025_v26, %v2903_v11  ;;  %v9748_v50 = vsel %vm430_vm4, %v2906_v54, %v2388_v4 }
 0x749   :  { %13385 = vst [vmem:[#allocation22_spill] sm:$0xff] %v9745_v16  ;;  %v3124_v29 = vrot.slane %v9745_v16, 2  ;;  %v3130_v61 = vrot.slane %v9748_v50, 2  ;;  %7842 = vrot.lane.b32.xlu1 %v7841_v0, %s8144_s24 }
 0x74b   :  { %v2299_v13 = vpop.permute.xlu1 %2298  ;;  %v2297_v60 = vpop.permute.xlu0 %2296  ;;  %v3125_v23 = vsel %vm2699_vm6, %v8955_v41, %v3124_v29  ;;  %v3131_v20 = vsel %vm2699_vm6, %v3124_v29, %v3130_v61 }
 0x74c   :  { %6924 = vmatprep.mubr.msk.f32.mxu1 %vm439_vm5, %v3125_v23  ;;  %v2908_v38 = vsel %vm179_vm3, %v9238_v28, %v2299_v13  ;;  %v2907_v14 = vsel %vm179_vm3, %v9235_v2, %v2297_v60 }
 0x74d   :  { %6925 = vmatmul.mubr.msk.f32.gmra.mrb[22].mxu1 %vm439_vm5, %v3131_v20 }
 0x74f   :  { %v2392_v26 = vpop.permute.xlu1 %2391  ;;  %v2390_v54 = vpop.permute.xlu0 %2389 }
 0x750   :  { %v9763_v11 = vsel %vm430_vm4, %v2908_v38, %v2392_v26  ;;  %v9766_v4 = vsel %vm430_vm4, %v2907_v14, %v2390_v54 }
 0x751   :  { %v3142_v0 = vrot.slane %v9763_v11, 2  ;;  %v3136_v29 = vrot.slane %v9766_v4, 2 }
 0x753   :  { %v2303_v23 = vpop.permute.xlu1 %2302  ;;  %v2301_v20 = vpop.permute.xlu0 %2300  ;;  %v3137_v55 = vsel %vm2699_vm6, %v3130_v61, %v3136_v29  ;;  %v3143_v13 = vsel %vm2699_vm6, %v3136_v29, %v3142_v0 }
 0x754   :  { %6927 = vmatprep.mubr.msk.f32.mxu1 %vm439_vm5, %v3137_v55  ;;  %v2910_v60 = vsel %vm179_vm3, %v9259_v37, %v2303_v23  ;;  %v2909_v38 = vsel %vm179_vm3, %v9256_v22, %v2301_v20 }
 0x755   :  { %6928 = vmatmul.mubr.msk.f32.gmra.mrb[24].mxu1 %vm439_vm5, %v3143_v13 }
 0x757   :  { %v2396_v14 = vpop.permute.xlu1 %2395  ;;  %v2394_v26 = vpop.permute.xlu0 %2393 }
 0x758   :  { %v9779_v54 = vsel %vm430_vm4, %v2910_v60, %v2396_v14  ;;  %v9782_v9 = vsel %vm430_vm4, %v2909_v38, %v2394_v26 }
 0x759   :  { %v3154_v61 = vrot.slane %v9779_v54, 2  ;;  %v3148_v55 = vrot.slane %v9782_v9, 2 }
 0x75b   :  { %v2307_v29 = vpop.permute.xlu1 %2306  ;;  %v2305_v13 = vpop.permute.xlu0 %2304  ;;  %v3149_v35 = vsel %vm2699_vm6, %v3142_v0, %v3148_v55  ;;  %v3155_v23 = vsel %vm2699_vm6, %v3148_v55, %v3154_v61 }
 0x75c   :  { %6930 = vmatprep.mubr.msk.f32.mxu1 %vm439_vm5, %v3149_v35  ;;  %v2912_v20 = vsel %vm179_vm3, %v9277_v27, %v2307_v29  ;;  %v2911_v60 = vsel %vm179_vm3, %v9274_v8, %v2305_v13 }
 0x75d   :  { %6931 = vmatmul.mubr.msk.f32.gmra.mrb[26].mxu1 %vm439_vm5, %v3155_v23 }
 0x75f   :  { %v2400_v38 = vpop.permute.xlu1 %2399  ;;  %v2398_v14 = vpop.permute.xlu0 %2397 }
 0x760   :  { %v9795_v26 = vsel %vm430_vm4, %v2912_v20, %v2400_v38  ;;  %v9798_v15 = vsel %vm430_vm4, %v2911_v60, %v2398_v14 }
 0x761   :  { %v3166_v0 = vrot.slane %v9795_v26, 2  ;;  %v3160_v35 = vrot.slane %v9798_v15, 2 }
 0x763   :  { %v2311_v55 = vpop.permute.xlu1 %2310  ;;  %v2309_v23 = vpop.permute.xlu0 %2308  ;;  %v3161_v59 = vsel %vm2699_vm6, %v3154_v61, %v3160_v35  ;;  %v3167_v29 = vsel %vm2699_vm6, %v3160_v35, %v3166_v0 }
 0x764   :  { %6933 = vmatprep.mubr.msk.f32.mxu1 %vm439_vm5, %v3161_v59  ;;  %v2914_v13 = vsel %vm179_vm3, %v9295_v43, %v2311_v55  ;;  %v2913_v20 = vsel %vm179_vm3, %v9292_v62, %v2309_v23 }
 0x765   :  { %6934 = vmatmul.mubr.msk.f32.gmra.mrb[28].mxu1 %vm439_vm5, %v3167_v29 }
 0x767   :  { %v2404_v60 = vpop.permute.xlu1 %2403  ;;  %v2402_v38 = vpop.permute.xlu0 %2401 }
 0x768   :  { %v9811_v14 = vsel %vm430_vm4, %v2914_v13, %v2404_v60  ;;  %v9814_v63 = vsel %vm430_vm4, %v2913_v20, %v2402_v38 }
 0x769   :  { %v3178_v61 = vrot.slane %v9811_v14, 2  ;;  %v3172_v59 = vrot.slane %v9814_v63, 2 }
 0x76b   :  { %v2315_v35 = vpop.permute.xlu1 %2314  ;;  %v2313_v29 = vpop.permute.xlu0 %2312  ;;  %v3173_v32 = vsel %vm2699_vm6, %v3166_v0, %v3172_v59  ;;  %v3179_v55 = vsel %vm2699_vm6, %v3172_v59, %v3178_v61 }
 0x76c   :  { %6936 = vmatprep.mubr.msk.f32.mxu1 %vm439_vm5, %v3173_v32  ;;  %v2916_v23 = vsel %vm179_vm3, %v9313_v48, %v2315_v35  ;;  %v2915_v13 = vsel %vm179_vm3, %v9310_v52, %v2313_v29 }
 0x76d   :  { %6937 = vmatmul.mubr.msk.f32.gmra.mrb[30].mxu1 %vm439_vm5, %v3179_v55 }
 0x76f   :  { %v2408_v20 = vpop.permute.xlu1 %2407  ;;  %v2406_v60 = vpop.permute.xlu0 %2405 }
 0x770   :  { %v9827_v38 = vsel %vm430_vm4, %v2916_v23, %v2408_v20  ;;  %v9830_v41 = vsel %vm430_vm4, %v2915_v13, %v2406_v60 }
 0x771   :  { %13386 = vst [vmem:[#allocation23_spill] sm:$0xff] %v9827_v38  ;;  %v3190_v0 = vrot.slane %v9827_v38, 2  ;;  %v3184_v32 = vrot.slane %v9830_v41, 2 }
 0x773   :  { %v2319_v59 = vpop.permute.xlu1 %2318  ;;  %v2317_v55 = vpop.permute.xlu0 %2316  ;;  %v3185_v16 = vsel %vm2699_vm6, %v3178_v61, %v3184_v32  ;;  %v3191_v35 = vsel %vm2699_vm6, %v3184_v32, %v3190_v0 }
 0x774   :  { %6939 = vmatprep.mubr.msk.f32.mxu1 %vm439_vm5, %v3185_v16  ;;  %v2918_v29 = vsel %vm179_vm3, %v9333_v5, %v2319_v59  ;;  %v2917_v23 = vsel %vm179_vm3, %v9330_v42, %v2317_v55 }
 0x775   :  { %6940 = vmatmul.mubr.msk.f32.gmra.mrb[32].mxu1 %vm439_vm5, %v3191_v35 }
 0x777   :  { %v2412_v13 = vpop.permute.xlu1 %2411  ;;  %v2410_v20 = vpop.permute.xlu0 %2409 }
 0x778   :  { %v9843_v60 = vsel %vm430_vm4, %v2918_v29, %v2412_v13  ;;  %v9846_v47 = vsel %vm430_vm4, %v2917_v23, %v2410_v20 }
 0x779   :  { %13387 = vst [vmem:[#allocation24_spill] sm:$0xff] %v9843_v60  ;;  %13388 = vst [vmem:[#allocation25_spill] sm:$0xff] %v9846_v47  ;;  %v3202_v61 = vrot.slane %v9843_v60, 2  ;;  %v3196_v16 = vrot.slane %v9846_v47, 2 }
 0x77b   :  { %v2327_v32 = vpop.permute.xlu1 %2326  ;;  %v2321_v35 = vpop.permute.xlu0 %2320  ;;  %v3197_v46 = vsel %vm2699_vm6, %v3190_v0, %v3196_v16  ;;  %v3203_v59 = vsel %vm2699_vm6, %v3196_v16, %v3202_v61 }
 0x77c   :  { %6942 = vmatprep.mubr.msk.f32.mxu1 %vm439_vm5, %v3197_v46  ;;  %v2919_v55 = vsel %vm179_vm3, %v9342_v34, %v2321_v35 }
 0x77d   :  { %6943 = vmatmul.mubr.msk.f32.gmra.mrb[34].mxu1 %vm439_vm5, %v3203_v59  ;;  %v9869_v59 = vsel %vm179_vm3, 0.0, %v2327_v32 }
 0x77e   :  { %13391 = vst [vmem:[#allocation28_spill] sm:$0xff] %v9869_v59 }
 0x77f   :  { %v2323_v29 = vpop.permute.xlu1 %2322  ;;  %v2414_v23 = vpop.permute.xlu0 %2413 }
 0x780   :  { %v9857_v13 = vsel %vm430_vm4, %v2919_v55, %v2414_v23  ;;  %v2920_v51 = vsel %vm179_vm3, %v9345_v39, %v2323_v29 }
 0x781   :  { %13389 = vst [vmem:[#allocation26_spill] sm:$0xff] %v9857_v13  ;;  %v3208_v20 = vrot.slane %v9857_v13, 2 }
 0x783   :  { %v2416_v0 = vpop.permute.xlu1 %2415  ;;  %v2325_v60 = vpop.permute.xlu0 %2324  ;;  %v3209_v16 = vsel %vm2699_vm6, %v3202_v61, %v3208_v20 }
 0x784   :  { %v9864_v46 = vsel %vm430_vm4, %v2920_v51, %v2416_v0  ;;  %6945 = vmatprep.mubr.msk.f32.mxu1 %vm439_vm5, %v3209_v16  ;;  %v2921_v55 = vsel %vm179_vm3, %v9378_v7, %v2325_v60 }
 0x785   :  { %13390 = vst [vmem:[#allocation27_spill] sm:$0xff] %v9864_v46  ;;  %v3212_v35 = vrot.slane %v9864_v46, 2 }
 0x787   :  { %v3031_v23 = vpop.permute.xlu1 %3030  ;;  %v2418_v13 = vpop.permute.xlu0 %2417  ;;  %v3213_v29 = vsel %vm2699_vm6, %v3208_v20, %v3212_v35  ;;  %v13393_v20 = vmov 0.0  }
 0x788   :  { %v3033_v61 = vsel %vm430_vm4, %v9869_v59, %v3031_v23  ;;  %v9877_v51 = vsel %vm430_vm4, %v2921_v55, %v2418_v13  ;;  %6946 = vmatmul.mubr.msk.f32.gmra.mrb[36].mxu1 %vm439_vm5, %v3213_v29  ;;  %v9886_v23 = vrot.slane %v13393_v20, 4  ;;  %v2545_v13 = vrot.slane %v9213_v58, 4  ;;  %v8126_v55 = vld [vmem:[%s13130_s6] sm:$0xff]  ;;  %v8127_v20 = vld [vmem:[%s13130_s6 + $0x8] sm:$0xff] }
 0x789   :  { %13392 = vst [vmem:[#allocation29_spill] sm:$0xff] %v9877_v51  ;;  %v3223_v0 = vrot.slane %v3033_v61, 2  ;;  %v3215_v16 = vrot.slane %v9877_v51, 2  ;;  %v2549_v51 = vrot.slane %v9235_v2, 4 }
 0x78a   :  { %13394 = vst [vmem:[#allocation30_spill] sm:$0xff] %v9886_v23 }
 0x78b   :  { %v7728_v32 = vpop.permute.xlu1 %7727  ;;  %v7723_v46 = vpop.permute.xlu0 %7722  ;;  %v3216_v44 = vsel %vm2699_vm6, %v3212_v35, %v3215_v16  ;;  %v3224_v60 = vsel %vm2699_vm6, %v3215_v16, %v3223_v0  ;;  %v2547_v35 = vrot.slane %v9210_v18, 4  ;;  %v8128_v18 = vld [vmem:[%s13130_s6 + $0x10] sm:$0xff] }
 0x78c   :  { %6948 = vmatprep.mubr.msk.f32.mxu1 %vm439_vm5, %v3216_v44  ;;  %v7729_v29 = vunpack.i.l.bf16 %v7728_v32  ;;  %v7724_v61 = vunpack.i.l.bf16 %v7723_v46  ;;  %v7725_v16 = vunpack.i.h.bf16 %v7723_v46  ;;  %v7730_v38 = vunpack.i.h.bf16 %v7728_v32 }
 0x78d   :  { %6949 = vmatmul.mubr.msk.f32.gmra.mrb[38].mxu1 %vm439_vm5, %v3224_v60  ;;  %v13396_v46 = vmov 0.0|0.0  }
 0x78e   :  { %6967 = vmatprep.mubr.msk.f32.mxu1 %vm430_vm4, %v8126_v55  ;;  %v2546_v55 = vsel %vm2543_vm10, %v9886_v23, %v2545_v13  ;;  %v2905_v7 = vsel %vm179_vm3, %v9213_v58, %v7729_v29 }
 0x78f   :  { %v7738_v0 = vpop.permute.xlu1 %7737  ;;  %v7733_v44 = vpop.permute.xlu0 %7732  ;;  %v2964_v2 = vsel %vm179_vm3, %v2546_v55, %v7724_v61  ;;  %v8129_v61 = vld [vmem:[%s13130_s6 + $0x18] sm:$0xff] }
 0x790   :  { %v7739_v60 = vunpack.i.l.bf16 %v7738_v0  ;;  %v7734_v59 = vunpack.i.l.bf16 %v7733_v44  ;;  %v7735_v47 = vunpack.i.h.bf16 %v7733_v44  ;;  %v7740_v58 = vunpack.i.h.bf16 %v7738_v0 }
 0x791   :  { %6968 = vmatmul.mubr.msk.f32.vlgmr.msra.gmra.mrb[40].mxu1 %vm430_vm4, %v8127_v20  ;;  %v2548_v20 = vsel %vm2543_vm10, %v2545_v13, %v2547_v35  ;;  %v2550_v0 = vsel %vm2543_vm10, %v2547_v35, %v2549_v51  ;;  %v8131_v35 = vld [vmem:[%s13130_s6 + $0x28] sm:$0xff] }
 0x792   :  { %6970 = vmatprep.mubr.msk.f32.mxu1 %vm430_vm4, %v8128_v18  ;;  %7367 = vmatpush1.bf16.msra.mxu1 %v9407_v25  ;;  %v2965_v32 = vsel %vm179_vm3, %v2548_v20, %v7725_v16  ;;  %v2924_v13 = vsel %vm430_vm4, %v2905_v7, %v7739_v60  ;;  %v2984_v29 = vsel %vm430_vm4, %v2964_v2, %v7734_v59  ;;  %v8130_v7 = vld [vmem:[%s13130_s6 + $0x20] sm:$0xff] }
 0x793   :  { %v9910_v39 = vpop.permute.xlu1 %7747  ;;  %v7743_v23 = vpop.permute.xlu0 %7742  ;;  %7368 = vmatprep.subr.bf16.mxu1 %v13396_v46  ;;  %v2985_v25 = vsel %vm430_vm4, %v2965_v32, %v7735_v47  ;;  %v2966_v2 = vsel %vm179_vm3, %v2550_v0, %v7730_v38 }
 0x794   :  { %13395 = vst [vmem:[#allocation31_spill] sm:$0xff] %v9910_v39  ;;  %v7750_v44 = vunpack.i.h.bf16 %v9910_v39  ;;  %v13187_v34 = vunpack.i.l.bf16 %v9910_v39  ;;  %v7745_v18 = vunpack.i.h.bf16 %v7743_v23  ;;  %v7744_v5 = vunpack.i.l.bf16 %v7743_v23 }
 0x795   :  { %6971 = vmatmul.mubr.msk.f32.gmra.mrb[42].mxu1 %vm430_vm4, %v8129_v61  ;;  %v8132_v61 = vld [vmem:[%s13130_s6 + $0x30] sm:$0xff] }
 0x796   :  { %v2945_v23 = vsel %vm439_vm5, %v9748_v50, %v7750_v44  ;;  %v2944_v16 = vsel %vm439_vm5, %v2924_v13, %v13187_v34  ;;  %6973 = vmatprep.mubr.msk.f32.mxu1 %vm430_vm4, %v8130_v7  ;;  %v9934_v59 = vsel %vm439_vm5, %v2984_v29, %v7744_v5  ;;  %v3005_v20 = vsel %vm439_vm5, %v2985_v25, %v7745_v18 }
 0x797   :  { %13397 = vst [vmem:[#allocation32_spill] sm:$0xff] %v9934_v59  ;;  %v9937_v60 = vrot.slane %v2945_v23, 2  ;;  %v3096_v47 = vrot.slane %v2944_v16, 2  ;;  %v7758_v55 = vpop.permute.xlu1 %7757  ;;  %v7753_v50 = vpop.permute.xlu0 %7752  ;;  %7370 = vmatpush1.bf16.msra.mxu1 %v9414_v30  ;;  %v2986_v5 = vsel %vm430_vm4, %v2966_v2, %v7740_v58  ;;  %v13186_v29 = vrot.slane %v9934_v59, 2 }
 0x798   :  { %v7755_v44 = vunpack.i.h.bf16 %v7753_v50  ;;  %v7754_v32 = vunpack.i.l.bf16 %v7753_v50  ;;  %7371 = vmatprep.subr.bf16.mxu1 %v13396_v46  ;;  %v7759_v13 = vunpack.i.l.bf16 %v7758_v55  ;;  %v3100_v18 = vrot.slane %v3005_v20, 2 }
 0x799   :  { %13398 = vst [vmem:[#allocation33_spill] sm:$0xff] %v9937_v60  ;;  %6974 = vmatmul.mubr.msk.f32.gmra.mrb[44].mxu1 %vm430_vm4, %v8131_v35  ;;  %v2553_v30 = vrot.slane %v9256_v22, 4  ;;  %v3098_v38 = vsel %vm2699_vm6, %v3096_v47, %v9937_v60  ;;  %v13399_v23 = vrot.slane %v9238_v28, 4  ;;  %v7760_v20 = vunpack.i.h.bf16 %v7758_v55 }
 0x79a   :  { %6976 = vmatprep.mubr.msk.f32.mxu1 %vm430_vm4, %v8132_v61  ;;  %v3006_v58 = vsel %vm439_vm5, %v2986_v5, %v7754_v32  ;;  %v2946_v25 = vsel %vm439_vm5, %v9766_v4, %v7755_v44  ;;  %v9965_v22 = vsel %vm2699_vm6, %v13186_v29, %v3100_v18  ;;  %v8133_v5 = vld [vmem:[%s13130_s6 + $0x38] sm:$0xff]  ;;  %v2555_v35 = vrot.slane %v9259_v37, 4  ;;  %v8134_v61 = vld [vmem:[%s13130_s6 + $0x40] sm:$0xff] }
 0x79b   :  { %v2552_v16 = vsel %vm2543_vm10, %v2549_v51, %v13399_v23  ;;  %13400 = vst [vmem:[#allocation34_spill] sm:$0xff] %v9965_v22  ;;  %v7768_v7 = vpop.permute.xlu1 %7767  ;;  %v7763_v0 = vpop.permute.xlu0 %7762  ;;  %v3115_v47 = vrot.slane %v3006_v58, 2  ;;  %v3113_v50 = vrot.slane %v2946_v25, 2  ;;  %7373 = vmatpush1.bf16.msra.mxu1 %v9429_v36  ;;  %3376 = vmatprep.mubr.f32.mxu0 %v9965_v22 }
 0x79c   :  { %v7770_v2 = vunpack.i.h.bf16 %v7768_v7  ;;  %v7769_v4 = vunpack.i.l.bf16 %v7768_v7  ;;  %v7764_v44 = vunpack.i.l.bf16 %v7763_v0  ;;  %7374 = vmatprep.subr.bf16.mxu1 %v13396_v46  ;;  %v2967_v51 = vsel %vm179_vm3, %v2552_v16, %v7759_v13  ;;  %3377 = vmatmul.mubr.f32.vlgmr.msra.gmra.mrb[44].mxu0 %v3098_v38 }
 0x79d   :  { %v7765_v32 = vunpack.i.h.bf16 %v7763_v0  ;;  %6977 = vmatmul.mubr.msk.f32.gmra.mrb[46].mxu1 %vm430_vm4, %v8133_v5  ;;  %v9976_v36 = vsel %vm2699_vm6, %v3100_v18, %v3115_v47  ;;  %v9983_v13 = vsel %vm2699_vm6, %v9937_v60, %v3113_v50  ;;  %v13403_v18 = vmov %v13399_v23  ;;  %v13499_v60 = vld [vmem:[#allocation30_spill] sm:$0xff] }
 0x79e   :  { %13401 = vst [vmem:[#allocation35_spill] sm:$0xff] %v9976_v36  ;;  %v2987_v55 = vsel %vm430_vm4, %v2967_v51, %v7764_v44  ;;  %3381 = vmatprep.mubr.f32.mxu0 %v9976_v36  ;;  %13402 = vst [vmem:[#allocation36_spill] sm:$0xff] %v9983_v13  ;;  %v2947_v38 = vsel %vm439_vm5, %v9763_v11, %v7770_v2  ;;  %6979 = vmatprep.mubr.msk.f32.mxu1 %vm430_vm4, %v8134_v61  ;;  %v8135_v51 = vld [vmem:[%s13130_s6 + $0x48] sm:$0xff] }
 0x79f   :  { %v2554_v58 = vsel %vm2543_vm10, %v13403_v18, %v2553_v30  ;;  %v7778_v25 = vpop.permute.xlu1 %7777  ;;  %v7773_v23 = vpop.permute.xlu0 %7772  ;;  %v3007_v37 = vsel %vm439_vm5, %v2987_v55, %v7769_v4  ;;  %v3120_v16 = vrot.slane %v2947_v38, 2  ;;  %7376 = vmatpush1.bf16.msra.mxu1 %v9452_v56  ;;  %v2556_v56 = vsel %vm2543_vm10, %v2553_v30, %v2555_v35 }
 0x7a0   :  { %v2968_v7 = vsel %vm179_vm3, %v2554_v58, %v7760_v20  ;;  %v7775_v11 = vunpack.i.h.bf16 %v7773_v23  ;;  %v7774_v0 = vunpack.i.l.bf16 %v7773_v23  ;;  %7377 = vmatprep.subr.bf16.mxu1 %v13396_v46  ;;  %v7779_v44 = vunpack.i.l.bf16 %v7778_v25  ;;  %3382 = vmatmul.mubr.f32.gmra.mrb[46].mxu0 %v9983_v13 }
 0x7a1   :  { %v2988_v2 = vsel %vm430_vm4, %v2968_v7, %v7765_v32  ;;  %v3122_v28 = vrot.slane %v3007_v37, 2  ;;  %6980 = vmatmul.mubr.msk.f32.gmra.mrb[48].mxu1 %vm430_vm4, %v8135_v51  ;;  %v2557_v20 = vrot.slane %v9274_v8, 4  ;;  %v8136_v32 = vld [vmem:[%s13130_s6 + $0x50] sm:$0xff]  ;;  %v7780_v55 = vunpack.i.h.bf16 %v7778_v25 }
 0x7a2   :  { %v3008_v4 = vsel %vm439_vm5, %v2988_v2, %v7774_v0  ;;  %v2948_v5 = vsel %vm439_vm5, %v9782_v9, %v7775_v11  ;;  %6982 = vmatprep.mubr.msk.f32.mxu1 %vm430_vm4, %v8136_v32  ;;  %v10017_v30 = vsel %vm2699_vm6, %v3113_v50, %v3120_v16  ;;  %v2969_v25 = vsel %vm179_vm3, %v2556_v56, %v7779_v44  ;;  %v8138_v2 = vld [vmem:[%s13130_s6 + $0x60] sm:$0xff] }
 0x7a3   :  { %v7788_v38 = vpop.permute.xlu1 %7787  ;;  %v7783_v61 = vpop.permute.xlu0 %7782  ;;  %v10014_v18 = vsel %vm2699_vm6, %v3115_v47, %v3122_v28  ;;  %13405 = vst [vmem:[#allocation38_spill] sm:$0xff] %v10017_v30  ;;  %v3128_v8 = vrot.slane %v3008_v4, 2  ;;  %7379 = vmatpush1.bf16.msra.mxu1 %v9478_v3  ;;  %v3126_v37 = vrot.slane %v2948_v5, 2  ;;  %v8137_v3 = vld [vmem:[%s13130_s6 + $0x58] sm:$0xff]  ;;  %v2559_v11 = vrot.slane %v9277_v27, 4 }
 0x7a4   :  { %13404 = vst [vmem:[#allocation37_spill] sm:$0xff] %v10014_v18  ;;  %v7790_v58 = vunpack.i.h.bf16 %v7788_v38  ;;  %v7789_v9 = vunpack.i.l.bf16 %v7788_v38  ;;  %v7784_v23 = vunpack.i.l.bf16 %v7783_v61  ;;  %3386 = vmatprep.mubr.f32.mxu0 %v10014_v18  ;;  %7380 = vmatprep.subr.bf16.mxu1 %v13396_v46  ;;  %v7785_v7 = vunpack.i.h.bf16 %v7783_v61 }
 0x7a5   :  { %3387 = vmatmul.mubr.f32.gmra.mrb[48].mxu0 %v10017_v30  ;;  %v10025_v47 = vsel %vm2699_vm6, %v3122_v28, %v3128_v8  ;;  %6983 = vmatmul.mubr.msk.f32.gmra.mrb[50].mxu1 %vm430_vm4, %v8137_v3  ;;  %v2558_v44 = vsel %vm2543_vm10, %v2555_v35, %v2557_v20 }
 0x7a6   :  { %13406 = vst [vmem:[#allocation39_spill] sm:$0xff] %v10025_v47  ;;  %v2989_v50 = vsel %vm430_vm4, %v2969_v25, %v7784_v23  ;;  %3391 = vmatprep.mubr.f32.mxu0 %v10025_v47  ;;  %v2949_v0 = vsel %vm439_vm5, %v9779_v54, %v7790_v58  ;;  %6985 = vmatprep.mubr.msk.f32.mxu1 %vm430_vm4, %v8138_v2  ;;  %v8139_v58 = vld [vmem:[%s13130_s6 + $0x68] sm:$0xff]  ;;  %v8140_v23 = vld [vmem:[%s13130_s6 + $0x70] sm:$0xff] }
 0x7a7   :  { %v7798_v28 = vpop.permute.xlu1 %7797  ;;  %v7793_v51 = vpop.permute.xlu0 %7792  ;;  %v3009_v56 = vsel %vm439_vm5, %v2989_v50, %v7789_v9  ;;  %v3132_v4 = vrot.slane %v2949_v0, 2  ;;  %7382 = vmatpush1.bf16.msra.mxu1 %v9508_v17  ;;  %v2970_v27 = vsel %vm179_vm3, %v2558_v44, %v7780_v55  ;;  %v10045_v54 = vsel %vm2699_vm6, %v3120_v16, %v3126_v37 }
 0x7a8   :  { %v7795_v5 = vunpack.i.h.bf16 %v7793_v51  ;;  %v7794_v32 = vunpack.i.l.bf16 %v7793_v51  ;;  %13407 = vst [vmem:[#allocation40_spill] sm:$0xff] %v10045_v54  ;;  %7383 = vmatprep.subr.bf16.mxu1 %v13396_v46  ;;  %v2990_v38 = vsel %vm430_vm4, %v2970_v27, %v7785_v7  ;;  %v7799_v61 = vunpack.i.l.bf16 %v7798_v28 }
 0x7a9   :  { %3392 = vmatmul.mubr.f32.gmra.mrb[50].mxu0 %v10045_v54  ;;  %v3134_v35 = vrot.slane %v3009_v56, 2  ;;  %6986 = vmatmul.mubr.msk.f32.gmra.mrb[52].mxu1 %vm430_vm4, %v8139_v58  ;;  %v2560_v17 = vsel %vm2543_vm10, %v2557_v20, %v2559_v11  ;;  %v2561_v55 = vrot.slane %v9292_v62, 4  ;;  %v7800_v25 = vunpack.i.h.bf16 %v7798_v28 }
 0x7aa   :  { %v3010_v16 = vsel %vm439_vm5, %v2990_v38, %v7794_v32  ;;  %v2950_v9 = vsel %vm439_vm5, %v9798_v15, %v7795_v5  ;;  %6988 = vmatprep.mubr.msk.f32.mxu1 %vm430_vm4, %v8140_v23  ;;  %v10067_v20 = vsel %vm2699_vm6, %v3126_v37, %v3132_v4  ;;  %v2971_v28 = vsel %vm179_vm3, %v2560_v17, %v7799_v61 }
 0x7ab   :  { %v7808_v7 = vpop.permute.xlu1 %7807  ;;  %v7803_v3 = vpop.permute.xlu0 %7802  ;;  %v10064_v50 = vsel %vm2699_vm6, %v3128_v8, %v3134_v35  ;;  %13409 = vst [vmem:[#allocation42_spill] sm:$0xff] %v10067_v20  ;;  %v3140_v62 = vrot.slane %v3010_v16, 2  ;;  %7385 = vmatpush1.bf16.msra.mxu1 %v9530_v33  ;;  %v3138_v44 = vrot.slane %v2950_v9, 2  ;;  %v8141_v33 = vld [vmem:[%s13130_s6 + $0x78] sm:$0xff]  ;;  %v2563_v56 = vrot.slane %v9295_v43, 4 }
 0x7ac   :  { %13408 = vst [vmem:[#allocation41_spill] sm:$0xff] %v10064_v50  ;;  %v7810_v0 = vunpack.i.h.bf16 %v7808_v7  ;;  %v7809_v15 = vunpack.i.l.bf16 %v7808_v7  ;;  %v7804_v2 = vunpack.i.l.bf16 %v7803_v3  ;;  %3396 = vmatprep.mubr.f32.mxu0 %v10064_v50  ;;  %7386 = vmatprep.subr.bf16.mxu1 %v13396_v46  ;;  %v7805_v51 = vunpack.i.h.bf16 %v7803_v3 }
 0x7ad   :  { %3397 = vmatmul.mubr.f32.gmra.mrb[52].mxu0 %v10067_v20  ;;  %v10075_v8 = vsel %vm2699_vm6, %v3134_v35, %v3140_v62  ;;  %6989 = vmatmul.mubr.msk.f32.gmra.mrb[54].mxu1 %vm430_vm4, %v8141_v33  ;;  %v2562_v5 = vsel %vm2543_vm10, %v2559_v11, %v2561_v55  ;;  %v10091_v9 = vsel %vm2699_vm6, %v3132_v4, %v3138_v44  ;;  %v13190_v7 = vrot.slane %v9310_v52, 4 }
 0x7ae   :  { %13410 = vst [vmem:[#allocation43_spill] sm:$0xff] %v10075_v8  ;;  %v2991_v37 = vsel %vm430_vm4, %v2971_v28, %v7804_v2  ;;  %3401 = vmatprep.mubr.f32.mxu0 %v10075_v8  ;;  %v2951_v27 = vsel %vm439_vm5, %v9795_v26, %v7810_v0  ;;  %v2972_v58 = vsel %vm179_vm3, %v2562_v5, %v7800_v25  ;;  %13411 = vst [vmem:[#allocation44_spill] sm:$0xff] %v10091_v9 }
 0x7af   :  { %v7818_v32 = vpop.permute.xlu1 %7817  ;;  %v7813_v38 = vpop.permute.xlu0 %7812  ;;  %v3011_v61 = vsel %vm439_vm5, %v2991_v37, %v7809_v15  ;;  %v3144_v35 = vrot.slane %v2951_v27, 2  ;;  %7388 = vmatpush1.bf16.msra.mxu1 %v9549_v49  ;;  %v2992_v43 = vsel %vm430_vm4, %v2972_v58, %v7805_v51  ;;  %v2564_v23 = vsel %vm2543_vm10, %v2561_v55, %v2563_v56 }
 0x7b0   :  { %v7815_v17 = vunpack.i.h.bf16 %v7813_v38  ;;  %v7814_v16 = vunpack.i.l.bf16 %v7813_v38  ;;  %7389 = vmatprep.subr.bf16.mxu1 %v13396_v46  ;;  %v7819_v26 = vunpack.i.l.bf16 %v7818_v32  ;;  %v3146_v11 = vrot.slane %v3011_v61, 2 }
 0x7b1   :  { %3402 = vmatmul.mubr.f32.gmra.mrb[54].mxu0 %v10091_v9  ;;  %v7820_v3 = vunpack.i.h.bf16 %v7818_v32  ;;  %v10105_v2 = vsel %vm2699_vm6, %v3138_v44, %v3144_v35 }
 0x7b2   :  { %v3012_v49 = vsel %vm439_vm5, %v2992_v43, %v7814_v16  ;;  %v2952_v25 = vsel %vm439_vm5, %v9814_v63, %v7815_v17  ;;  %v10102_v15 = vsel %vm2699_vm6, %v3140_v62, %v3146_v11  ;;  %13413 = vst [vmem:[#allocation46_spill] sm:$0xff] %v10105_v2  ;;  %v2973_v63 = vsel %vm179_vm3, %v2564_v23, %v7819_v26 }
 0x7b3   :  { %v7828_v4 = vpop.permute.xlu1 %7827  ;;  %v7823_v0 = vpop.permute.xlu0 %7822  ;;  %13412 = vst [vmem:[#allocation45_spill] sm:$0xff] %v10102_v15  ;;  %v3152_v28 = vrot.slane %v3012_v49, 2  ;;  %7391 = vmatpush1.bf16.msra.mxu1 %v9572_v19  ;;  %3406 = vmatprep.mubr.f32.mxu0 %v10102_v15  ;;  %v3150_v37 = vrot.slane %v2952_v25, 2  ;;  %v2566_v19 = vsel %vm2543_vm10, %v2563_v56, %v13190_v7 }
 0x7b4   :  { %v7830_v55 = vunpack.i.h.bf16 %v7828_v4  ;;  %v7829_v51 = vunpack.i.l.bf16 %v7828_v4  ;;  %v7824_v33 = vunpack.i.l.bf16 %v7823_v0  ;;  %7392 = vmatprep.subr.bf16.mxu1 %v13396_v46  ;;  %v7825_v27 = vunpack.i.h.bf16 %v7823_v0 }
 0x7b5   :  { %3407 = vmatmul.mubr.f32.gmra.mrb[56].mxu0 %v10105_v2  ;;  %v10113_v62 = vsel %vm2699_vm6, %v3146_v11, %v3152_v28  ;;  %v2974_v32 = vsel %vm179_vm3, %v2566_v19, %v7820_v3  ;;  %v10126_v16 = vsel %vm2699_vm6, %v3144_v35, %v3150_v37 }
 0x7b6   :  { %13414 = vst [vmem:[#allocation47_spill] sm:$0xff] %v10113_v62  ;;  %v2993_v44 = vsel %vm430_vm4, %v2973_v63, %v7824_v33  ;;  %3411 = vmatprep.mubr.f32.mxu0 %v10113_v62  ;;  %v2953_v5 = vsel %vm439_vm5, %v9811_v14, %v7830_v55  ;;  %13415 = vst [vmem:[#allocation48_spill] sm:$0xff] %v10126_v16  ;;  %v2994_v43 = vsel %vm430_vm4, %v2974_v32, %v7825_v27  ;;  %v6389_v32 = vld [vmem:[%s13132_s3 + $0x80] sm:$0xff] }
 0x7b7   :  { %v7833_v38 = vpop.permute.xlu0 %7832  ;;  %v3013_v61 = vsel %vm439_vm5, %v2993_v44, %v7829_v51  ;;  %7394 = vmatpush1.bf16.msra.mxu1 %v9595_v21  ;;  %v3156_v56 = vrot.slane %v2953_v5, 2  ;;  %v6390_v5 = vld [vmem:[%s13132_s3 + $0x88] sm:$0xff] }
 0x7b8   :  { %v7835_v58 = vunpack.i.h.bf16 %v7833_v38  ;;  %v7834_v17 = vunpack.i.l.bf16 %v7833_v38  ;;  %7395 = vmatprep.subr.bf16.mxu1 %v13396_v46  ;;  %v3158_v14 = vrot.slane %v3013_v61, 2 }
 0x7b9   :  { %3412 = vmatmul.mubr.f32.gmra.mrb[58].mxu0 %v10126_v16  ;;  %v10145_v23 = vsel %vm2699_vm6, %v3150_v37, %v3156_v56 }
 0x7ba   :  { %v10132_v26 = vsel %vm439_vm5, %v2994_v43, %v7834_v17  ;;  %v10136_v11 = vsel %vm439_vm5, %v9830_v41, %v7835_v58  ;;  %v10139_v21 = vsel %vm2699_vm6, %v3152_v28, %v3158_v14  ;;  %13417 = vst [vmem:[#allocation50_spill] sm:$0xff] %v10145_v23 }
 0x7bb   :  { %13416 = vst [vmem:[#allocation49_spill] sm:$0xff] %v10139_v21  ;;  %v13188_v35 = vrot.slane %v10132_v26, 2  ;;  %7397 = vmatpush1.bf16.msra.mxu1 %v9615_v57  ;;  %3416 = vmatprep.mubr.f32.mxu0 %v10139_v21  ;;  %v13189_v49 = vrot.slane %v10136_v11, 2 }
 0x7bc   :  { %7398 = vmatprep.subr.bf16.mxu1 %v13396_v46 }
 0x7bd   :  { %3417 = vmatmul.mubr.f32.gmra.mrb[60].mxu0 %v10145_v23  ;;  %v10153_v41 = vsel %vm2699_vm6, %v3158_v14, %v13188_v35  ;;  %v10160_v57 = vsel %vm2699_vm6, %v3156_v56, %v13189_v49  ;;  %v6392_v56 = vld [vmem:[%s13132_s3 + $0x98] sm:$0xff]  ;;  %v6391_v14 = vld [vmem:[%s13132_s3 + $0x90] sm:$0xff]  ;;  %v2723_v35 = vrot.slane %v9313_v48, 2  ;;  %v2625_v49 = vrot.slane %v9313_v48, 3 }
 0x7be   :  { %13418 = vst [vmem:[#allocation51_spill] sm:$0xff] %v10153_v41  ;;  %3421 = vmatprep.mubr.f32.mxu0 %v10153_v41  ;;  %13419 = vst [vmem:[#allocation52_spill] sm:$0xff] %v10160_v57 }
 0x7bf   :  { %7400 = vmatpush1.bf16.msra.mxu1 %v9635_v53 }
 0x7c0   :  { %7401 = vmatprep.subr.bf16.mxu1 %v13396_v46 }
 0x7c1   :  { %3422 = vmatmul.mubr.f32.gmra.mrb[62].mxu0 %v10160_v57 }
 0x7c3   :  { %7403 = vmatpush1.bf16.msra.mxu1 %v9655_v24 }
 0x7c4   :  { %7404 = vmatprep.subr.bf16.mxu1 %v13396_v46 }
 0x7c7   :  { %7406 = vmatpush1.bf16.msra.mxu1 %v9677_v6 }
 0x7c8   :  { %7407 = vmatprep.subr.bf16.mxu1 %v13396_v46 }
 0x7cb   :  { %7409 = vmatpush1.bf16.msra.mxu1 %v9699_v45 }
 0x7cc   :  { %7410 = vmatprep.subr.bf16.mxu1 %v13396_v46 }
 0x7cf   :  { %7412 = vmatpush1.bf16.msra.mxu1 %v9720_v10 }
 0x7d0   :  { %7413 = vmatprep.subr.bf16.mxu1 %v13396_v46 }
 0x820   :  { %v10172_v53 = vpop.f32.mrb[22].mxu1 }
 0x821   :  { %13420 = vst [vmem:[#allocation53_spill] sm:$0xff] %v10172_v53  ;;  %v10174_v25 = vpop.f32.mrb[23].mxu1 }
 0x822   :  { %13421 = vst [vmem:[#allocation54_spill] sm:$0xff] %v10174_v25 }
 0x828   :  { %v10176_v3 = vpop.f32.mrb[24].mxu1 }
 0x829   :  { %13422 = vst [vmem:[#allocation55_spill] sm:$0xff] %v10176_v3  ;;  %v10178_v24 = vpop.f32.mrb[25].mxu1 }
 0x82a   :  { %13423 = vst [vmem:[#allocation56_spill] sm:$0xff] %v10178_v24 }
 0x830   :  { %v10180_v4 = vpop.f32.mrb[26].mxu1 }
 0x831   :  { %13424 = vst [vmem:[#allocation57_spill] sm:$0xff] %v10180_v4  ;;  %v10182_v6 = vpop.f32.mrb[27].mxu1 }
 0x832   :  { %13425 = vst [vmem:[#allocation58_spill] sm:$0xff] %v10182_v6 }
 0x838   :  { %v10184_v0 = vpop.f32.mrb[28].mxu1 }
 0x839   :  { %13426 = vst [vmem:[#allocation59_spill] sm:$0xff] %v10184_v0  ;;  %v10186_v45 = vpop.f32.mrb[29].mxu1 }
 0x83a   :  { %13427 = vst [vmem:[#allocation60_spill] sm:$0xff] %v10186_v45  ;;  %v6395_v45 = vld [vmem:[%s13132_s3 + $0xb0] sm:$0xff] }
 0x840   :  { %v10188_v28 = vpop.f32.mrb[30].mxu1 }
 0x841   :  { %13428 = vst [vmem:[#allocation61_spill] sm:$0xff] %v10188_v28  ;;  %v10190_v10 = vpop.f32.mrb[31].mxu1 }
 0x842   :  { %13429 = vst [vmem:[#allocation62_spill] sm:$0xff] %v10190_v10 }
 0x848   :  { %v10192_v55 = vpop.f32.mrb[32].mxu1 }
 0x849   :  { %13430 = vst [vmem:[#allocation63_spill] sm:$0xff] %v10192_v55  ;;  %v10194_v51 = vpop.f32.mrb[33].mxu1 }
 0x84a   :  { %13431 = vst [vmem:[#allocation64_spill] sm:$0xff] %v10194_v51 }
 0x850   :  { %v10196_v33 = vpop.f32.mrb[34].mxu1 }
 0x851   :  { %13432 = vst [vmem:[#allocation65_spill] sm:$0xff] %v10196_v33  ;;  %v10198_v37 = vpop.f32.mrb[35].mxu1  ;;  %v13440_v33 = vrot.slane %v9310_v52, 3 }
 0x852   :  { %13433 = vst [vmem:[#allocation66_spill] sm:$0xff] %v10198_v37 }
 0x85b   :  { %v10200_v63 = vpop.f32.mrb[36].mxu1 }
 0x85c   :  { %13434 = vst [vmem:[#allocation67_spill] sm:$0xff] %v10200_v63  ;;  %v10202_v27 = vpop.f32.mrb[37].mxu1 }
 0x85d   :  { %13435 = vst [vmem:[#allocation68_spill] sm:$0xff] %v10202_v27 }
 0x860   :  { %v10204_v19 = vpop.f32.mrb[38].mxu1 }
 0x861   :  { %13436 = vst [vmem:[#allocation69_spill] sm:$0xff] %v10204_v19  ;;  %v10206_v44 = vpop.f32.mrb[39].mxu1 }
 0x862   :  { %13437 = vst [vmem:[#allocation70_spill] sm:$0xff] %v10206_v44 }
 0x864   :  { %v6969_v38 = vpop.f32.mrb[40].mxu1 }
 0x865   :  { %v4135_v61 = vmul.f32 %v6969_v38, %v6390_v5  ;;  %v4038_v58 = vpop.f32.mrb[41].mxu1 }
 0x866   :  { %v4134_v17 = vmul.f32 %v6389_v32, %v4038_v58  ;;  %v6394_v58 = vld [vmem:[%s13132_s3 + $0xa8] sm:$0xff] }
 0x867   :  { %v4167_v43 = vrot.slane %v4135_v61, 6 }
 0x868   :  { %v4166_v29 = vrot.slane %v4134_v17, 6  ;;  %v6972_v34 = vpop.f32.mrb[42].mxu1 }
 0x869   :  { %v4137_v7 = vmul.f32 %v6972_v34, %v6392_v56  ;;  %v4048_v19 = vpop.f32.mrb[43].mxu1  ;;  %v6393_v34 = vld [vmem:[%s13132_s3 + $0xa0] sm:$0xff] }
 0x86a   :  { %v10224_v32 = vsel %vm2202_vm7, %v4166_v29, %v4167_v43  ;;  %v10227_v38 = vsel %vm2202_vm7, 0.0, %v4166_v29  ;;  %v4136_v61 = vmul.f32 %v6391_v14, %v4048_v19  ;;  %v13439_v19 = vrot.slane %v9310_v52, 2 }
 0x86b   :  { %13438 = vst [vmem:[#allocation71_spill] sm:$0xff] %v10227_v38  ;;  %v4171_v44 = vrot.slane %v4137_v7, 6  ;;  %v4625_v56 = vrot.slane %v10227_v38, 2  ;;  %v4536_v5 = vrot.slane %v10227_v38, 3  ;;  %v2626_v7 = vsel %vm2601_vm8, %v13440_v33, %v2625_v49 }
 0x86c   :  { %v4169_v29 = vrot.slane %v4136_v61, 6  ;;  %v6975_v27 = vpop.f32.mrb[44].mxu1  ;;  %v2724_v14 = vsel %vm2699_vm6, %v13439_v19, %v2723_v35  ;;  %v13441_v61 = vrot.slane %v10224_v32, 2  ;;  %v13450_v6 = vrot.slane %v10224_v32, 5 }
 0x86d   :  { %v4139_v37 = vmul.f32 %v6975_v27, %v6394_v58  ;;  %v4058_v55 = vpop.f32.mrb[45].mxu1  ;;  %v4626_v51 = vsel %vm2699_vm6, %v9463_v31, %v4625_v56  ;;  %v4537_v63 = vsel %vm2601_vm8, %v9440_v1, %v4536_v5  ;;  %v6396_v27 = vld [vmem:[%s13132_s3 + $0xb8] sm:$0xff]  ;;  %v13469_v15 = vrot.slane %v10224_v32, 5 }
 0x86e   :  { %v4628_v28 = vsel %vm2699_vm6, %v4625_v56, %v13441_v61  ;;  %v10254_v19 = vsel %vm2202_vm7, %v4167_v43, %v4169_v29  ;;  %v10257_v10 = vsel %vm2202_vm7, %v4169_v29, %v4171_v44  ;;  %v4138_v33 = vmul.f32 %v6393_v34, %v4058_v55 }
 0x86f   :  { %v7851_v17 = vpack.i.bf16 %v4626_v51, %v2724_v14  ;;  %v4175_v58 = vrot.slane %v4139_v37, 6  ;;  %v7846_v0 = vpack.i.bf16 %v4537_v63, %v2626_v7  ;;  %v13442_v56 = vrot.slane %v10224_v32, 3 }
 0x870   :  { %v4173_v61 = vrot.slane %v4138_v33, 6  ;;  %v6978_v29 = vpop.f32.mrb[46].mxu1  ;;  %v13443_v55 = vrot.slane %v9330_v42, 2  ;;  %v13444_v34 = vrot.slane %v9330_v42, 3  ;;  %v4629_v24 = vrot.slane %v10254_v19, 2 }
 0x871   :  { %v4539_v43 = vsel %vm2601_vm8, %v4536_v5, %v13442_v56  ;;  %7852 = vrot.lane.b32.xlu0 %v7851_v17, %s8144_s24  ;;  %7847 = vrot.lane.b32.xlu1 %v7846_v0, %s8143_s20  ;;  %v10276_v63 = vmul.f32 %v6978_v29, %v6396_v27  ;;  %v4068_v14 = vpop.f32.mrb[47].mxu1  ;;  %v4714_v0 = vrot.slane %v10227_v38, 1  ;;  %v13193_v27 = vrot.slane %v10224_v32, 1 }
 0x872   :  { %v2726_v51 = vsel %vm2699_vm6, %v2723_v35, %v13443_v55  ;;  %v2628_v37 = vsel %vm2601_vm8, %v2625_v49, %v13444_v34  ;;  %v10279_v5 = vsel %vm2202_vm7, %v4171_v44, %v4173_v61  ;;  %v10282_v17 = vsel %vm2202_vm7, %v4173_v61, %v4175_v58 }
 0x873   :  { %v7861_v7 = vpack.i.bf16 %v2726_v51, %v4628_v28  ;;  %v7856_v4 = vpack.i.bf16 %v2628_v37, %v4539_v43  ;;  %v4140_v33 = vmul.f32 %v6395_v45, %v4068_v14  ;;  %v10285_v35 = vrot.slane %v10227_v38, 7 }
 0x874   :  { %v13191_v56 = vrot.slane %v10276_v63, 6  ;;  %v13192_v49 = vrot.slane %v10224_v32, 7  ;;  %v10293_v44 = vrot.slane %v10227_v38, 6  ;;  %v13194_v43 = vrot.slane %v10224_v32, 6  ;;  %v6981_v61 = vpop.f32.mrb[48].mxu1 }
 0x875   :  { %13445 = vst [vmem:[#allocation72_spill] sm:$0xff] %v10285_v35  ;;  %v4177_v28 = vrot.slane %v4140_v33, 6  ;;  %7857 = vrot.lane.b32.xlu0 %v7856_v4, %s8143_s20  ;;  %v4394_v45 = vrot.slane %v10227_v38, 5  ;;  %7862 = vrot.lane.b32.xlu1 %v7861_v7, %s8144_s24  ;;  %v4078_v29 = vpop.f32.mrb[49].mxu1  ;;  %v13195_v4 = vrot.slane %v9330_v42, 1  ;;  %v4715_v37 = vsel %vm60_vm0, %v9495_v12, %v4714_v0 }
 0x876   :  { %13446 = vst [vmem:[#allocation73_spill] sm:$0xff] %v10293_v44  ;;  %v4220_v34 = vsel %vm66_vm1, %v10285_v35, %v13192_v49  ;;  %v4308_v7 = vsel %vm2202_vm7, %v10293_v44, %v13194_v43  ;;  %v13451_v49 = vrot.slane %v10224_v32, 3  ;;  %v4221_v41 = vrot.slane %v10254_v19, 7 }
 0x877   :  { %v10299_v55 = vsel %vm2202_vm7, %v4175_v58, %v4177_v28  ;;  %v10304_v51 = vsel %vm2202_vm7, %v4177_v28, %v13191_v56  ;;  %v4717_v58 = vsel %vm60_vm0, %v4714_v0, %v13193_v27  ;;  %v4395_v33 = vsel %vm2445_vm9, %v9484_v40, %v4394_v45 }
 0x878   :  { %13447 = vst [vmem:[#allocation74_spill] sm:$0xff] %v10299_v55  ;;  %13448 = vst [vmem:[#allocation75_spill] sm:$0xff] %v10304_v51  ;;  %v4540_v28 = vrot.slane %v10254_v19, 3  ;;  %v6984_v56 = vpop.f32.mrb[50].mxu1  ;;  %v13449_v27 = vrot.slane %v9313_v48, 1  ;;  %v7866_v14 = vpack.i.bf16 %v4717_v58, %v4715_v37  ;;  %v4397_v3 = vsel %vm2445_vm9, %v4394_v45, %v13450_v6  ;;  %v13454_v6 = vld [vmem:[#allocation16_spill] sm:$0xff] }
 0x879   :  { %4254 = vrot.lane.b32.xlu0 %v4220_v34, %s8143_s20  ;;  %4342 = vrot.lane.b32.xlu1 %v4308_v7, %s8144_s24  ;;  %v10327_v0 = vpop.f32.mrb[51].mxu1  ;;  %v13198_v7 = vrot.slane %v10257_v10, 3  ;;  %v6398_v58 = vld [vmem:[%s13132_s3 + $0xc8] sm:$0xff]  ;;  %v6397_v45 = vld [vmem:[%s13132_s3 + $0xc0] sm:$0xff]  ;;  %v4718_v21 = vrot.slane %v10254_v19, 1  ;;  %v13467_v62 = vrot.slane %v10257_v10, 1 }
 0x87a   :  { %v2823_v43 = vsel %vm60_vm0, %v13449_v27, %v13195_v4  ;;  %v4541_v53 = vsel %vm2601_vm8, %v13451_v49, %v4540_v28  ;;  %v13452_v27 = vrot.slane %v9330_v42, 5  ;;  %v13455_v49 = vrot.slane %v10224_v32, 2 }
 0x87b   :  { %v7871_v34 = vpack.i.bf16 %v4395_v33, %v2823_v43  ;;  %v13453_v43 = vrot.slane %v9313_v48, 5  ;;  %v7881_v4 = vpack.i.bf16 %v4541_v53, %v10285_v35  ;;  %v4543_v57 = vsel %vm2601_vm8, %v4540_v28, %v13198_v7 }
 0x87c   :  { %v6987_v25 = vpop.f32.mrb[52].mxu1  ;;  %v13456_v53 = vrot.slane %v13454_v6, 3  ;;  %v13206_v28 = vrot.slane %v13454_v6, 2  ;;  %v4142_v23 = vmul.f32 %v6397_v45, %v4078_v29  ;;  %v13459_v45 = vrot.slane %v10224_v32, 7 }
 0x87d   :  { %7867 = vrot.lane.b32.xlu0 %v7866_v14, %s8147_s29  ;;  %7872 = vrot.lane.b32.xlu1 %v7871_v34, %s8147_s29  ;;  %v2472_v37 = vsel %vm2445_vm9, %v13453_v43, %v13452_v27  ;;  %v4098_v14 = vpop.f32.mrb[53].mxu1  ;;  %v4630_v34 = vsel %vm2699_vm6, %v13455_v49, %v4629_v24  ;;  %v13205_v27 = vrot.slane %v10257_v10, 2  ;;  %v4143_v43 = vmul.f32 %v6981_v61, %v6398_v58 }
 0x87e   :  { %v7876_v33 = vpack.i.bf16 %v2472_v37, %v4397_v3  ;;  %v13457_v37 = vrot.slane %v9330_v42, 3  ;;  %v7886_v61 = vpack.i.bf16 %v4630_v34, %v10293_v44  ;;  %v4181_v34 = vrot.slane %v4142_v23, 6 }
 0x87f   :  { %v13468_v2 = vrot.slane %v10254_v19, 5  ;;  %v4635_v47 = vrot.slane %v10282_v17, 2  ;;  %v4548_v30 = vrot.slane %v10299_v55, 3  ;;  %v13505_v35 = vrot.slane %v10224_v32, 4 }
 0x880   :  { %v10365_v3 = vpop.f32.mrb[54].mxu1  ;;  %v2630_v49 = vsel %vm2601_vm8, %v13457_v37, %v13456_v53  ;;  %v13458_v53 = vrot.slane %v9330_v42, 2 }
 0x881   :  { %7877 = vrot.lane.b32.xlu0 %v7876_v33, %s8147_s29  ;;  %7882 = vrot.lane.b32.xlu1 %v7881_v4, %s8143_s20  ;;  %v10374_v7 = vpop.f32.mrb[55].mxu1  ;;  %v7891_v58 = vpack.i.bf16 %v4543_v57, %v2630_v49  ;;  %v4632_v33 = vsel %vm2699_vm6, %v4629_v24, %v13205_v27  ;;  %v4183_v4 = vrot.slane %v4143_v43, 6  ;;  %v2824_v24 = vrot.slane %v13454_v6, 1 }
 0x882   :  { %v2728_v57 = vsel %vm2699_vm6, %v13458_v53, %v13206_v28  ;;  %v13215_v49 = vrot.slane %v10254_v19, 6  ;;  %v4222_v43 = vsel %vm66_vm1, %v13459_v45, %v4221_v41  ;;  %v13463_v53 = vrot.slane %v10224_v32, 1  ;;  %v13464_v45 = vld [vmem:[#allocation17_spill] sm:$0xff]  ;;  %v6402_v28 = vld [vmem:[%s13132_s3 + $0xe8] sm:$0xff] }
 0x883   :  { %v7896_v37 = vpack.i.bf16 %v4632_v33, %v2728_v57  ;;  %v10402_v23 = vsel %vm2202_vm7, %v4181_v34, %v4183_v4  ;;  %v6400_v33 = vld [vmem:[%s13132_s3 + $0xd8] sm:$0xff]  ;;  %v4147_v8 = vmul.f32 %v6987_v25, %v6402_v28 }
 0x884   :  { %13462 = vst [vmem:[#allocation76_spill] sm:$0xff] %v10402_v23  ;;  %v4719_v57 = vsel %vm60_vm0, %v13463_v53, %v4718_v21  ;;  %v4145_v29 = vmul.f32 %v6984_v56, %v6400_v33  ;;  %v13470_v33 = vrot.slane %v13464_v45, 1 }
 0x885   :  { %7887 = vrot.lane.b32.xlu0 %v7886_v61, %s8144_s24  ;;  %7892 = vrot.lane.b32.xlu1 %v7891_v58, %s8143_s20  ;;  %v13460_v58 = vrot.slane %v10276_v63, 6  ;;  %v6399_v63 = vld [vmem:[%s13132_s3 + $0xd0] sm:$0xff] }
 0x886   :  { %v4144_v56 = vmul.f32 %v6399_v63, %v10327_v0  ;;  %v4223_v63 = vrot.slane %v10257_v10, 7 }
 0x887   :  { %v10399_v27 = vsel %vm2202_vm7, %v13460_v58, %v4181_v34  ;;  %v2473_v34 = vrot.slane %v13454_v6, 5  ;;  %v13465_v58 = vrot.slane %v9330_v42, 1 }
 0x888   :  { %13461 = vst [vmem:[#allocation16_spill] sm:$0xff] %v10399_v27  ;;  %v4185_v9 = vrot.slane %v4144_v56, 6  ;;  %v13473_v56 = vrot.slane %v10257_v10, 3 }
 0x889   :  { %4256 = vrot.lane.b32.xlu0 %v4222_v43, %s8143_s20  ;;  %7897 = vrot.lane.b32.xlu1 %v7896_v37, %s8144_s24  ;;  %v2825_v61 = vsel %vm60_vm0, %v13465_v58, %v2824_v24  ;;  %v13466_v43 = vrot.slane %v10224_v32, 6  ;;  %v6401_v37 = vld [vmem:[%s13132_s3 + $0xe0] sm:$0xff]  ;;  %v4721_v58 = vsel %vm60_vm0, %v4718_v21, %v13467_v62  ;;  %v13471_v62 = vrot.slane %v9330_v42, 5 }
 0x88a   :  { %v7901_v16 = vpack.i.bf16 %v2825_v61, %v4719_v57  ;;  %v4544_v61 = vrot.slane %v10279_v5, 3  ;;  %v4187_v57 = vrot.slane %v4145_v29, 6 }
 0x88b   :  { %v4310_v53 = vsel %vm2202_vm7, %v13466_v43, %v13215_v49  ;;  %v4399_v43 = vsel %vm2445_vm9, %v13469_v15, %v13468_v2  ;;  %v2827_v49 = vsel %vm60_vm0, %v2824_v24, %v13470_v33  ;;  %v2474_v21 = vsel %vm2445_vm9, %v13471_v62, %v2473_v34 }
 0x88c   :  { %v4146_v15 = vmul.f32 %v6401_v37, %v4098_v14  ;;  %v7911_v2 = vpack.i.bf16 %v2827_v49, %v4721_v58  ;;  %v7906_v0 = vpack.i.bf16 %v2474_v21, %v4399_v43  ;;  %v10452_v24 = vsel %vm2202_vm7, %v4183_v4, %v4185_v9  ;;  %v6403_v21 = vld [vmem:[%s13132_s3 + $0xf0] sm:$0xff] }
 0x88d   :  { %4344 = vrot.lane.b32.xlu0 %v4310_v53, %s8144_s24  ;;  %7902 = vrot.lane.b32.xlu1 %v7901_v16, %s8147_s29  ;;  %v2631_v53 = vrot.slane %v13464_v45, 3  ;;  %13472 = vst [vmem:[#allocation17_spill] sm:$0xff] %v10452_v24  ;;  %v10455_v29 = vsel %vm2202_vm7, %v4185_v9, %v4187_v57  ;;  %v4191_v16 = vrot.slane %v4147_v8, 6  ;;  %v4545_v25 = vsel %vm2601_vm8, %v13473_v56, %v4544_v61  ;;  %v6404_v8 = vld [vmem:[%s13132_s3 + $0xf8] sm:$0xff]  ;;  %v13477_v56 = vld [vmem:[#allocation18_spill] sm:$0xff] }
 0x88e   :  { %v4189_v33 = vrot.slane %v4146_v15, 6  ;;  %v4633_v14 = vrot.slane %v10279_v5, 2  ;;  %v13475_v9 = vrot.slane %v13454_v6, 3  ;;  %v2729_v37 = vrot.slane %v13464_v45, 2 }
 0x88f   :  { %v4224_v58 = vsel %vm66_vm1, %v4221_v41, %v4223_v63  ;;  %v4311_v62 = vrot.slane %v10257_v10, 6  ;;  %v13476_v15 = vrot.slane %v10257_v10, 2  ;;  %v2475_v41 = vrot.slane %v13464_v45, 5 }
 0x890   :  { %v10464_v28 = vsel %vm2202_vm7, %v4187_v57, %v4189_v33  ;;  %v10467_v4 = vsel %vm2202_vm7, %v4189_v33, %v4191_v16  ;;  %v2632_v49 = vsel %vm2601_vm8, %v13475_v9, %v2631_v53  ;;  %v4400_v57 = vrot.slane %v10257_v10, 5 }
 0x891   :  { %7907 = vrot.lane.b32.xlu0 %v7906_v0, %s8147_s29  ;;  %7912 = vrot.lane.b32.xlu1 %v7911_v2, %s8147_s29  ;;  %13474 = vst [vmem:[#allocation77_spill] sm:$0xff] %v10464_v28  ;;  %v7921_v43 = vpack.i.bf16 %v4545_v25, %v2632_v49  ;;  %v4634_v2 = vsel %vm2699_vm6, %v13476_v15, %v4633_v14  ;;  %v4546_v0 = vrot.slane %v10282_v17, 3  ;;  %v2633_v25 = vrot.slane %v13477_v56, 3 }
 0x892   :  { %v10488_v33 = vmul.f32 %v10365_v3, %v6404_v8  ;;  %v13478_v9 = vrot.slane %v13454_v6, 2  ;;  %v4148_v20 = vmul.f32 %v6403_v21, %v10374_v7  ;;  %v13479_v15 = vrot.slane %v10254_v19, 6 }
 0x893   :  { %v13480_v8 = vrot.slane %v10254_v19, 5  ;;  %v4547_v54 = vsel %vm2601_vm8, %v4544_v61, %v4546_v0  ;;  %v2476_v7 = vsel %vm2445_vm9, %v2473_v34, %v2475_v41  ;;  %v2634_v21 = vsel %vm2601_vm8, %v2631_v53, %v2633_v25 }
 0x894   :  { %v2730_v49 = vsel %vm2699_vm6, %v13478_v9, %v2729_v37  ;;  %v4312_v50 = vsel %vm2202_vm7, %v13479_v15, %v4311_v62  ;;  %v4193_v9 = vrot.slane %v4148_v20, 6  ;;  %v13481_v15 = vrot.slane %v10488_v33, 6 }
 0x895   :  { %4258 = vrot.lane.b32.xlu0 %v4224_v58, %s8143_s20  ;;  %7922 = vrot.lane.b32.xlu1 %v7921_v43, %s8143_s20  ;;  %v7926_v3 = vpack.i.bf16 %v4634_v2, %v2730_v49  ;;  %v4401_v43 = vsel %vm2445_vm9, %v13480_v8, %v4400_v57  ;;  %v2731_v2 = vrot.slane %v13477_v56, 2  ;;  %v7931_v61 = vpack.i.bf16 %v4547_v54, %v2634_v21 }
 0x896   :  { %v7916_v58 = vpack.i.bf16 %v2476_v7, %v4401_v43  ;;  %v10512_v49 = vsel %vm2202_vm7, %v4191_v16, %v4193_v9  ;;  %v4225_v20 = vrot.slane %v10279_v5, 7  ;;  %v4636_v34 = vsel %vm2699_vm6, %v4633_v14, %v4635_v47 }
 0x897   :  { %v4722_v53 = vrot.slane %v10279_v5, 1  ;;  %v2828_v16 = vrot.slane %v13477_v56, 1  ;;  %v4402_v54 = vrot.slane %v10279_v5, 5  ;;  %v4724_v7 = vrot.slane %v10282_v17, 1 }
 0x898   :  { %v4226_v43 = vsel %vm66_vm1, %v4223_v63, %v4225_v20  ;;  %v13483_v21 = vrot.slane %v13464_v45, 1  ;;  %v4327_v59 = vrot.slane %v10455_v29, 6 }
 0x899   :  { %4346 = vrot.lane.b32.xlu0 %v4312_v50, %s8144_s24  ;;  %7927 = vrot.lane.b32.xlu1 %v7926_v3, %s8144_s24  ;;  %v10517_v50 = vsel %vm2202_vm7, %v4193_v9, %v13481_v15  ;;  %v2732_v3 = vsel %vm2699_vm6, %v2729_v37, %v2731_v2  ;;  %v4313_v9 = vrot.slane %v10279_v5, 6  ;;  %v2477_v37 = vrot.slane %v13477_v56, 5  ;;  %v13484_v15 = vld [vmem:[#allocation19_spill] sm:$0xff] }
 0x89a   :  { %v7936_v8 = vpack.i.bf16 %v4636_v34, %v2732_v3  ;;  %v2829_v63 = vsel %vm60_vm0, %v13483_v21, %v2828_v16  ;;  %v2635_v13 = vrot.slane %v13484_v15, 3 }
 0x89b   :  { %v4314_v3 = vsel %vm2202_vm7, %v4311_v62, %v4313_v9  ;;  %v4227_v62 = vrot.slane %v10282_v17, 7 }
 0x89d   :  { %7917 = vrot.lane.b32.xlu0 %v7916_v58, %s8147_s29  ;;  %7932 = vrot.lane.b32.xlu1 %v7931_v61, %s8143_s20  ;;  %v13482_v58 = vrot.slane %v10257_v10, 1  ;;  %v2830_v61 = vrot.slane %v13484_v15, 1 }
 0x89f   :  { %v4723_v14 = vsel %vm60_vm0, %v13482_v58, %v4722_v53  ;;  %v4725_v58 = vsel %vm60_vm0, %v4722_v53, %v4724_v7  ;;  %v2831_v18 = vsel %vm60_vm0, %v2828_v16, %v2830_v61  ;;  %v4637_v53 = vrot.slane %v10299_v55, 2 }
 0x8a0   :  { %v7941_v34 = vpack.i.bf16 %v2829_v63, %v4723_v14  ;;  %v7951_v14 = vpack.i.bf16 %v2831_v18, %v4725_v58  ;;  %v2636_v63 = vsel %vm2601_vm8, %v2633_v25, %v2635_v13  ;;  %v4315_v16 = vrot.slane %v10282_v17, 6 }
 0x8a1   :  { %4260 = vrot.lane.b32.xlu0 %v4226_v43, %s8143_s20  ;;  %7937 = vrot.lane.b32.xlu1 %v7936_v8, %s8144_s24  ;;  %v4403_v43 = vsel %vm2445_vm9, %v4400_v57, %v4402_v54  ;;  %v2478_v8 = vsel %vm2445_vm9, %v2475_v41, %v2477_v37  ;;  %v4549_v57 = vsel %vm2601_vm8, %v4546_v0, %v4548_v30  ;;  %v2479_v0 = vrot.slane %v13484_v15, 5 }
 0x8a2   :  { %v7946_v21 = vpack.i.bf16 %v2478_v8, %v4403_v43  ;;  %v4228_v41 = vsel %vm66_vm1, %v4225_v20, %v4227_v62  ;;  %v4638_v18 = vsel %vm2699_vm6, %v4635_v47, %v4637_v53  ;;  %v4550_v43 = vrot.slane %v10304_v51, 3 }
 0x8a3   :  { %v13485_v58 = vrot.slane %v13484_v15, 2  ;;  %v4316_v20 = vsel %vm2202_vm7, %v4313_v9, %v4315_v16  ;;  %v4726_v47 = vrot.slane %v10299_v55, 1  ;;  %v4229_v9 = vrot.slane %v10299_v55, 7 }
 0x8a5   :  { %4348 = vrot.lane.b32.xlu0 %v4314_v3, %s8144_s24  ;;  %7942 = vrot.lane.b32.xlu1 %v7941_v34, %s8147_s29  ;;  %v7961_v34 = vpack.i.bf16 %v4549_v57, %v2636_v63  ;;  %v4404_v3 = vrot.slane %v10282_v17, 5  ;;  %v2734_v25 = vsel %vm2699_vm6, %v2731_v2, %v13485_v58  ;;  %v2480_v57 = vsel %vm2445_vm9, %v2477_v37, %v2479_v0  ;;  %v1884_v37 = vld [vmem:[%s13129_s10 + $0x100] sm:$0xff] }
 0x8a6   :  { %v7966_v8 = vpack.i.bf16 %v4638_v18, %v2734_v25  ;;  %v4230_v58 = vsel %vm66_vm1, %v4227_v62, %v4229_v9  ;;  %v4406_v25 = vrot.slane %v10299_v55, 5  ;;  %v1887_v62 = vld [vmem:[%s13129_s10 + $0x118] sm:$0xff] }
 0x8a9   :  { %7947 = vrot.lane.b32.xlu0 %v7946_v21, %s8147_s29  ;;  %7952 = vrot.lane.b32.xlu1 %v7951_v14, %s8147_s29  ;;  %v4405_v21 = vsel %vm2445_vm9, %v4402_v54, %v4404_v3  ;;  %v4551_v14 = vsel %vm2601_vm8, %v4548_v30, %v4550_v43  ;;  %v4727_v54 = vsel %vm60_vm0, %v4724_v7, %v4726_v47  ;;  %v4317_v7 = vrot.slane %v10299_v55, 6 }
 0x8aa   :  { %v7956_v63 = vpack.i.bf16 %v2480_v57, %v4405_v21  ;;  %v2832_v30 = vsel %vm60_vm0, %v2830_v61, %v9495_v12  ;;  %v13502_v55 = vrot.slane %v10402_v23, 7 }
 0x8ab   :  { %v7976_v18 = vpack.i.bf16 %v2832_v30, %v4727_v54  ;;  %v4318_v57 = vsel %vm2202_vm7, %v4315_v16, %v4317_v7  ;;  %v1888_v16 = vld [vmem:[%s13129_s10 + $0x120] sm:$0xff]  ;;  %v2481_v54 = vsel %vm2445_vm9, %v2479_v0, %v9484_v40  ;;  %v1891_v0 = vld [vmem:[%s13129_s10 + $0x138] sm:$0xff] }
 0x8ad   :  { %4262 = vrot.lane.b32.xlu0 %v4228_v41, %s8143_s20  ;;  %7962 = vrot.lane.b32.xlu1 %v7961_v34, %s8143_s20  ;;  %v2637_v41 = vsel %vm2601_vm8, %v2635_v13, %v9440_v1  ;;  %v4639_v34 = vrot.slane %v10304_v51, 2  ;;  %v1885_v13 = vld [vmem:[%s13129_s10 + $0x108] sm:$0xff] }
 0x8ae   :  { %v7971_v2 = vpack.i.bf16 %v4551_v14, %v2637_v41  ;;  %v10603_v21 = vpack.c.bf16 %v1885_v13, %v1884_v37 }
 0x8af   :  { %v4640_v61 = vsel %vm2699_vm6, %v4637_v53, %v4639_v34  ;;  %v4407_v53 = vsel %vm2445_vm9, %v4404_v3, %v4406_v25  ;;  %v1889_v3 = vld [vmem:[%s13129_s10 + $0x128] sm:$0xff] }
 0x8b0   :  { %v7986_v14 = vpack.i.bf16 %v9463_v31, %v4640_v61  ;;  %7231 = vmatpush1.bf16.msra.mxu0 %v10603_v21  ;;  %v7981_v30 = vpack.i.bf16 %v2481_v54, %v4407_v53  ;;  %v10629_v13 = vpack.c.bf16 %v1889_v3, %v1888_v16  ;;  %v1893_v53 = vld [vmem:[%s13129_s10 + $0x148] sm:$0xff]  ;;  %v4643_v54 = vrot.slane %v10402_v23, 2 }
 0x8b1   :  { %4350 = vrot.lane.b32.xlu0 %v4316_v20, %s8144_s24  ;;  %7967 = vrot.lane.b32.xlu1 %v7966_v8, %s8144_s24  ;;  %v4728_v20 = vrot.slane %v10304_v51, 1  ;;  %v1886_v8 = vld [vmem:[%s13129_s10 + $0x110] sm:$0xff] }
 0x8b2   :  { %7232 = vmatprep.subr.bf16.mxu0 %v13396_v46 }
 0x8b3   :  { %v4729_v41 = vsel %vm60_vm0, %v4726_v47, %v4728_v20  ;;  %v4231_v47 = vrot.slane %v10304_v51, 7 }
 0x8b4   :  { %v7991_v37 = vpack.i.bf16 %v9495_v12, %v4729_v41  ;;  %v4641_v41 = vrot.slane %v10399_v27, 2 }
 0x8b5   :  { %7957 = vrot.lane.b32.xlu0 %v7956_v63, %s8147_s29  ;;  %7972 = vrot.lane.b32.xlu1 %v7971_v2, %s8143_s20  ;;  %v10609_v63 = vpack.c.bf16 %v1887_v62, %v1886_v8  ;;  %v4552_v2 = vrot.slane %v10399_v27, 3  ;;  %v4232_v61 = vsel %vm66_vm1, %v4229_v9, %v4231_v47  ;;  %v4319_v62 = vrot.slane %v10304_v51, 6  ;;  %v1892_v9 = vld [vmem:[%s13129_s10 + $0x140] sm:$0xff] }
 0x8b7   :  { %7234 = vmatpush1.bf16.msra.mxu0 %v10609_v63  ;;  %v4320_v16 = vsel %vm2202_vm7, %v4317_v7, %v4319_v62  ;;  %v1894_v7 = vld [vmem:[%s13129_s10 + $0x150] sm:$0xff] }
 0x8b8   :  { %7235 = vmatprep.subr.bf16.mxu0 %v13396_v46 }
 0x8b9   :  { %4264 = vrot.lane.b32.xlu0 %v4230_v58, %s8143_s20  ;;  %7977 = vrot.lane.b32.xlu1 %v7976_v18, %s8147_s29  ;;  %v4553_v18 = vsel %vm2601_vm8, %v4550_v43, %v4552_v2  ;;  %v1890_v58 = vld [vmem:[%s13129_s10 + $0x130] sm:$0xff]  ;;  %v4408_v43 = vrot.slane %v10304_v51, 5 }
 0x8ba   :  { %v8001_v8 = vpack.i.bf16 %v4553_v18, %v9440_v1  ;;  %v13234_v18 = vrot.slane %v10399_v27, 6 }
 0x8bb   :  { %7237 = vmatpush1.bf16.msra.mxu0 %v10629_v13  ;;  %v4409_v3 = vsel %vm2445_vm9, %v4406_v25, %v4408_v43  ;;  %v1895_v25 = vld [vmem:[%s13129_s10 + $0x158] sm:$0xff] }
 0x8bc   :  { %7238 = vmatprep.subr.bf16.mxu0 %v13396_v46 }
 0x8bd   :  { %4352 = vrot.lane.b32.xlu0 %v4318_v57, %s8144_s24  ;;  %7987 = vrot.lane.b32.xlu1 %v7986_v14, %s8144_s24  ;;  %v10646_v14 = vpack.c.bf16 %v1891_v0, %v1890_v58  ;;  %v4233_v57 = vrot.slane %v10399_v27, 7  ;;  %v4554_v58 = vrot.slane %v10402_v23, 3  ;;  %v7996_v0 = vpack.i.bf16 %v9484_v40, %v4409_v3 }
 0x8bf   :  { %7240 = vmatpush1.bf16.msra.mxu0 %v10646_v14  ;;  %v4555_v3 = vsel %vm2601_vm8, %v4552_v2, %v4554_v58 }
 0x8c0   :  { %7241 = vmatprep.subr.bf16.mxu0 %v13396_v46 }
 0x8c1   :  { %7982 = vrot.lane.b32.xlu0 %v7981_v30, %s8147_s29  ;;  %7992 = vrot.lane.b32.xlu1 %v7991_v37, %s8147_s29  ;;  %v10663_v30 = vpack.c.bf16 %v1893_v53, %v1892_v9  ;;  %v4234_v37 = vsel %vm66_vm1, %v4231_v47, %v4233_v57  ;;  %v4642_v47 = vsel %vm2699_vm6, %v4639_v34, %v4641_v41  ;;  %v4730_v9 = vrot.slane %v10399_v27, 1 }
 0x8c2   :  { %v10687_v53 = vpack.c.bf16 %v1895_v25, %v1894_v7  ;;  %v13235_v34 = vrot.slane %v10402_v23, 1  ;;  %v10703_v25 = vpop.permute.xlu1 %7837 }
 0x8c3   :  { %7243 = vmatpush1.bf16.msra.mxu0 %v10663_v30 }
 0x8c4   :  { %7244 = vmatprep.subr.bf16.mxu0 %v13396_v46 }
 0x8c5   :  { %4266 = vrot.lane.b32.xlu0 %v4232_v61, %s8143_s20  ;;  %8002 = vrot.lane.b32.xlu1 %v8001_v8, %s8143_s20  ;;  %v4644_v61 = vsel %vm2699_vm6, %v4641_v41, %v4643_v54  ;;  %v13237_v8 = vrot.slane %v10399_v27, 5  ;;  %v1896_v41 = vld [vmem:[%s13129_s10 + $0x160] sm:$0xff] }
 0x8c6   :  { %v8006_v7 = vpack.i.bf16 %v4644_v61, %v4642_v47  ;;  %v4733_v47 = vsel %vm60_vm0, %v4730_v9, %v13235_v34  ;;  %v13236_v61 = vrot.slane %v10452_v24, 2  ;;  %v4556_v34 = vrot.slane %v10452_v24, 3  ;;  %v10822_v22 = vpop.permute.xlu1 %7842 }
 0x8c7   :  { %v4411_v2 = vsel %vm2445_vm9, %v4408_v43, %v13237_v8  ;;  %7246 = vmatpush1.bf16.msra.mxu0 %v10687_v53  ;;  %v1898_v43 = vld [vmem:[%s13129_s10 + $0x170] sm:$0xff]  ;;  %v4412_v8 = vrot.slane %v10402_v23, 5  ;;  %13493 = vst [vmem:[#allocation78_spill] sm:$0xff] %v10822_v22  ;;  %v13501_v22 = vrot.slane %v10455_v29, 7 }
 0x8c8   :  { %7247 = vmatprep.subr.bf16.mxu0 %v13396_v46 }
 0x8c9   :  { %4354 = vrot.lane.b32.xlu0 %v4320_v16, %s8144_s24  ;;  %4268 = vrot.lane.b32.xlu1 %v4234_v37, %s8143_s20  ;;  %v4322_v16 = vsel %vm2202_vm7, %v4319_v62, %v13234_v18  ;;  %v1897_v37 = vld [vmem:[%s13129_s10 + $0x168] sm:$0xff]  ;;  %v8016_v62 = vpack.i.bf16 %v9440_v1, %v4555_v3 }
 0x8ca   :  { %v10713_v18 = vpack.c.bf16 %v1897_v37, %v1896_v41  ;;  %v8021_v41 = vpack.i.bf16 %v9495_v12, %v4733_v47  ;;  %v4323_v47 = vrot.slane %v10402_v23, 6 }
 0x8cc   :  { %7249 = vmatpush1.bf16.msra.mxu0 %v10713_v18 }
 0x8cd   :  { %7997 = vrot.lane.b32.xlu0 %v7996_v0, %s8147_s29  ;;  %4356 = vrot.lane.b32.xlu1 %v4322_v16, %s8144_s24  ;;  %v4731_v0 = vsel %vm60_vm0, %v4728_v20, %v4730_v9  ;;  %v1899_v20 = vld [vmem:[%s13129_s10 + $0x178] sm:$0xff]  ;;  %v7840_v16 = vunpack.i.h.bf16 %v10703_v25  ;;  %v13239_v9 = vrot.slane %v10402_v23, 7 }
 0x8ce   :  { %v8011_v3 = vpack.i.bf16 %v4411_v2, %v4731_v0  ;;  %v10732_v37 = vpack.c.bf16 %v1899_v20, %v1898_v43  ;;  %7250 = vmatprep.subr.bf16.mxu0 %v13396_v46  ;;  %v1900_v2 = vld [vmem:[%s13129_s10 + $0x180] sm:$0xff]  ;;  %v1901_v0 = vld [vmem:[%s13129_s10 + $0x188] sm:$0xff] }
 0x8cf   :  { %v13486_v43 = vld [vmem:[#allocation23_spill] sm:$0xff] }
 0x8d0   :  { %v10752_v20 = vsel %vm439_vm5, %v13486_v43, %v7840_v16  ;;  %7252 = vmatpush1.bf16.msra.mxu0 %v10732_v37  ;;  %v2569_v43 = vrot.slane %v9330_v42, 4 }
 0x8d1   :  { %8007 = vrot.lane.b32.xlu0 %v8006_v7, %s8144_s24  ;;  %8017 = vrot.lane.b32.xlu1 %v8016_v62, %s8143_s20  ;;  %v4646_v7 = vsel %vm2699_vm6, %v4643_v54, %v13236_v61  ;;  %v13238_v62 = vrot.slane %v10455_v29, 3  ;;  %v2567_v54 = vrot.slane %v9313_v48, 4  ;;  %v4557_v48 = vsel %vm2601_vm8, %v4554_v58, %v4556_v34 }
 0x8d2   :  { %v8031_v61 = vpack.i.bf16 %v4646_v7, %v9463_v31  ;;  %7253 = vmatprep.subr.bf16.mxu0 %v13396_v46  ;;  %v1902_v7 = vld [vmem:[%s13129_s10 + $0x190] sm:$0xff]  ;;  %v13488_v58 = vrot.slane %v9310_v52, 4  ;;  %v4325_v52 = vrot.slane %v10452_v24, 6  ;;  %v13495_v39 = vrot.slane %v10752_v20, 2 }
 0x8d3   :  { %v4559_v16 = vsel %vm2601_vm8, %v4556_v34, %v13238_v62 }
 0x8d4   :  { %v10782_v34 = vsel %vm2543_vm10, %v13488_v58, %v2567_v54  ;;  %v4483_v58 = vrot.slane %v10227_v38, 4 }
 0x8d5   :  { %8012 = vrot.lane.b32.xlu0 %v8011_v3, %s8147_s29  ;;  %8022 = vrot.lane.b32.xlu1 %v8021_v41, %s8147_s29  ;;  %v4236_v3 = vsel %vm66_vm1, %v4233_v57, %v13239_v9  ;;  %v10762_v41 = vpack.c.bf16 %v1901_v0, %v1900_v2  ;;  %v1903_v2 = vld [vmem:[%s13129_s10 + $0x198] sm:$0xff]  ;;  %v8036_v9 = vpack.i.bf16 %v4559_v16, %v4557_v48  ;;  %v13490_v57 = vrot.slane %v10399_v27, 5  ;;  %v1904_v16 = vld [vmem:[%s13129_s10 + $0x1a0] sm:$0xff] }
 0x8d6   :  { %v10799_v0 = vsel %vm2543_vm10, %v2567_v54, %v2569_v43  ;;  %v4237_v54 = vrot.slane %v10452_v24, 7 }
 0x8d7   :  { %13487 = vst [vmem:[#allocation18_spill] sm:$0xff] %v10762_v41  ;;  %v4413_v36 = vsel %vm2445_vm9, %v13490_v57, %v4412_v8  ;;  %7255 = vmatpush1.bf16.msra.mxu0 %v10762_v41  ;;  %v13494_v57 = vrot.slane %v10488_v33, 6  ;;  %v4326_v33 = vsel %vm2202_vm7, %v4323_v47, %v4325_v52 }
 0x8d8   :  { %7256 = vmatprep.subr.bf16.mxu0 %v13396_v46 }
 0x8d9   :  { %4270 = vrot.lane.b32.xlu0 %v4236_v3, %s8143_s20  ;;  %8032 = vrot.lane.b32.xlu1 %v8031_v61, %s8144_s24  ;;  %v13489_v3 = vrot.slane %v10399_v27, 6  ;;  %v10793_v61 = vpack.c.bf16 %v1903_v2, %v1902_v7  ;;  %v4414_v7 = vrot.slane %v10452_v24, 5  ;;  %v8026_v2 = vpack.i.bf16 %v9484_v40, %v4413_v36 }
 0x8da   :  { %v13496_v27 = vrot.slane %v10136_v11, 2  ;;  %v1907_v11 = vld [vmem:[%s13129_s10 + $0x1b8] sm:$0xff] }
 0x8db   :  { %v4324_v62 = vsel %vm2202_vm7, %v13489_v3, %v4323_v47  ;;  %13491 = vst [vmem:[#allocation23_spill] sm:$0xff] %v10793_v61  ;;  %v13492_v3 = vrot.slane %v13454_v6, 4  ;;  %7258 = vmatpush1.bf16.msra.mxu0 %v10793_v61  ;;  %v13500_v47 = vrot.slane %v10402_v23, 1 }
 0x8dc   :  { %v10835_v36 = vsel %vm2699_vm6, %v13496_v27, %v13495_v39  ;;  %7259 = vmatprep.subr.bf16.mxu0 %v13396_v46  ;;  %v1906_v39 = vld [vmem:[%s13129_s10 + $0x1b0] sm:$0xff]  ;;  %v4415_v27 = vsel %vm2445_vm9, %v4412_v8, %v4414_v7  ;;  %v13503_v8 = vrot.slane %v10455_v29, 5 }
 0x8dd   :  { %4358 = vrot.lane.b32.xlu0 %v4324_v62, %s8144_s24  ;;  %v10804_v48 = vsel %vm2543_vm10, %v2569_v43, %v13492_v3  ;;  %v1905_v62 = vld [vmem:[%s13129_s10 + $0x1a8] sm:$0xff]  ;;  %8037 = vrot.lane.b32.xlu1 %v8036_v9, %s8143_s20  ;;  %v4734_v43 = vrot.slane %v10452_v24, 1  ;;  %v10827_v9 = vsel %vm2202_vm7, %v13494_v57, 0.0  ;;  %13497 = vst [vmem:[#allocation79_spill] sm:$0xff] %v10835_v36  ;;  %v10844_v57 = vsel %vm2543_vm10, %v13499_v60, %v4483_v58 }
 0x8de   :  { %v10838_v42 = vpack.c.bf16 %v1905_v62, %v1904_v16  ;;  %v4560_v3 = vrot.slane %v10464_v28, 3  ;;  %v4240_v60 = vsel %vm66_vm1, %v4237_v54, %v13501_v22  ;;  %v4417_v61 = vsel %vm2445_vm9, %v4414_v7, %v13503_v8 }
 0x8df   :  { %v4735_v16 = vsel %vm60_vm0, %v13500_v47, %v4734_v43  ;;  %v13504_v47 = vrot.slane %v10455_v29, 1  ;;  %v10882_v22 = vsel %vm2543_vm10, %v4483_v58, %v13505_v35  ;;  %v4328_v7 = vsel %vm2202_vm7, %v4325_v52, %v4327_v59  ;;  %v1908_v35 = vld [vmem:[%s13129_s10 + $0x1c0] sm:$0xff]  ;;  %v1909_v58 = vld [vmem:[%s13129_s10 + $0x1c8] sm:$0xff] }
 0x8e0   :  { %13498 = vst [vmem:[#allocation80_spill] sm:$0xff] %v10838_v42  ;;  %7261 = vmatpush1.bf16.msra.mxu0 %v10838_v42  ;;  %v13507_v8 = vrot.slane %v10455_v29, 3  ;;  %v13508_v52 = vrot.slane %v10467_v4, 3  ;;  %v4487_v42 = vrot.slane %v10254_v19, 4 }
 0x8e1   :  { %8027 = vrot.lane.b32.xlu0 %v8026_v2, %s8147_s29  ;;  %4360 = vrot.lane.b32.xlu1 %v4326_v33, %s8144_s24  ;;  %v4647_v2 = vrot.slane %v10455_v29, 2  ;;  %v4238_v33 = vsel %vm66_vm1, %v13502_v55, %v4237_v54  ;;  %v4737_v62 = vsel %vm60_vm0, %v4734_v43, %v13504_v47  ;;  %v10886_v55 = vpack.c.bf16 %v1907_v11, %v1906_v39 }
 0x8e2   :  { %v8041_v43 = vpack.i.bf16 %v4415_v27, %v4735_v16  ;;  %v4561_v47 = vsel %vm2601_vm8, %v13507_v8, %v4560_v3  ;;  %7262 = vmatprep.subr.bf16.mxu0 %v13396_v46  ;;  %v8046_v39 = vpack.i.bf16 %v4417_v61, %v4737_v62  ;;  %v4563_v11 = vsel %vm2601_vm8, %v4560_v3, %v13508_v52 }
 0x8e3   :  { %v10862_v51 = vpop.permute.xlu0 %7852  ;;  %v10876_v15 = vpop.permute.xlu1 %7847  ;;  %13506 = vst [vmem:[#allocation81_spill] sm:$0xff] %v10886_v55  ;;  %v13509_v27 = vrot.slane %v10452_v24, 2  ;;  %v13510_v52 = vrot.slane %v10464_v28, 2 }
 0x8e4   :  { %v7854_v41 = vunpack.i.l.bf16 %v10862_v51  ;;  %v7849_v54 = vunpack.i.l.bf16 %v10876_v15  ;;  %7264 = vmatpush1.bf16.msra.mxu0 %v10886_v55  ;;  %v7855_v55 = vunpack.i.h.bf16 %v10862_v51  ;;  %v1912_v51 = vld [vmem:[%s13129_s10 + $0x1e0] sm:$0xff] }
 0x8e5   :  { %4272 = vrot.lane.b32.xlu0 %v4238_v33, %s8143_s20  ;;  %4274 = vrot.lane.b32.xlu1 %v4240_v60, %s8143_s20  ;;  %v10908_v16 = vsel %vm2699_vm6, %v13509_v27, %v4647_v2  ;;  %v4329_v33 = vrot.slane %v10464_v28, 6  ;;  %v4241_v60 = vrot.slane %v10464_v28, 7  ;;  %v4650_v27 = vsel %vm2699_vm6, %v4647_v2, %v13510_v52  ;;  %v1910_v2 = vld [vmem:[%s13129_s10 + $0x1d0] sm:$0xff] }
 0x8e6   :  { %v2975_v8 = vsel %vm179_vm3, %v10782_v34, %v7849_v54  ;;  %v10924_v34 = vpack.c.bf16 %v1909_v58, %v1908_v35  ;;  %v13511_v54 = vunpack.i.l.bf16 %v10703_v25  ;;  %7265 = vmatprep.subr.bf16.mxu0 %v13396_v46  ;;  %v7850_v25 = vunpack.i.h.bf16 %v10876_v15 }
 0x8e7   :  { %v7858_v23 = vpop.permute.xlu0 %7857  ;;  %v2995_v62 = vsel %vm430_vm4, %v2975_v8, %v7854_v41  ;;  %v10917_v3 = vpop.permute.xlu1 %7862  ;;  %v8056_v41 = vpack.i.bf16 %v4563_v11, %v4561_v47  ;;  %v4330_v58 = vsel %vm2202_vm7, %v4327_v59, %v4329_v33  ;;  %v8051_v52 = vpack.i.bf16 %v4650_v27, %v10908_v16 }
 0x8e8   :  { %v10930_v61 = vsel %vm439_vm5, %v2995_v62, %v13511_v54  ;;  %v7859_v35 = vunpack.i.l.bf16 %v7858_v23  ;;  %v7860_v11 = vunpack.i.h.bf16 %v7858_v23  ;;  %v13512_v54 = vrot.slane %v10224_v32, 4  ;;  %7267 = vmatpush1.bf16.msra.mxu0 %v10924_v34 }
 0x8e9   :  { %8042 = vrot.lane.b32.xlu0 %v8041_v43, %s8147_s29  ;;  %v1911_v43 = vld [vmem:[%s13129_s10 + $0x1d8] sm:$0xff]  ;;  %4362 = vrot.lane.b32.xlu1 %v4328_v7, %s8144_s24  ;;  %v13265_v47 = vrot.slane %v10930_v61, 2  ;;  %v13513_v8 = vrot.slane %v10467_v4, 7  ;;  %v13514_v59 = vrot.slane %v10132_v26, 2  ;;  %v13516_v7 = vrot.slane %v10455_v29, 7 }
 0x8ea   :  { %v10949_v44 = vsel %vm2543_vm10, %v13512_v54, %v4487_v42  ;;  %v13517_v27 = vrot.slane %v10257_v10, 4  ;;  %v7864_v26 = vunpack.i.l.bf16 %v10917_v3  ;;  %7268 = vmatprep.subr.bf16.mxu0 %v13396_v46 }
 0x8eb   :  { %v4255_v62 = vpop.permute.xlu0 %4254  ;;  %v10954_v15 = vsel %vm66_vm1, %v4241_v60, %v13513_v8  ;;  %v10956_v24 = vpop.permute.xlu1 %4342  ;;  %v10963_v23 = vsel %vm2699_vm6, %v13514_v59, %v13265_v47  ;;  %v4242_v16 = vsel %vm66_vm1, %v13516_v7, %v4241_v60  ;;  %v10974_v8 = vpack.c.bf16 %v1911_v43, %v1910_v2 }
 0x8ec   :  { %13515 = vst [vmem:[#allocation82_spill] sm:$0xff] %v10963_v23  ;;  %v10971_v54 = vsel %vm2543_vm10, %v4487_v42, %v13517_v27  ;;  %3426 = vmatprep.mubr.f32.mxu0 %v10963_v23  ;;  %v13518_v59 = vrot.slane %v10467_v4, 6  ;;  %v13519_v42 = vrot.slane %v10464_v28, 5  ;;  %v13520_v7 = vrot.slane %v10455_v29, 5 }
 0x8ed   :  { %8047 = vrot.lane.b32.xlu0 %v8046_v39, %s8147_s29  ;;  %v1913_v39 = vld [vmem:[%s13129_s10 + $0x1e8] sm:$0xff]  ;;  %v4865_v43 = vsel %vm179_vm3, %v10844_v57, %v7850_v25  ;;  %v4866_v27 = vsel %vm179_vm3, %v10882_v22, %v7859_v35  ;;  %8057 = vrot.lane.b32.xlu1 %v8056_v41, %s8143_s20  ;;  %v4651_v25 = vrot.slane %v10467_v4, 2 }
 0x8ee   :  { %v10983_v60 = vsel %vm2202_vm7, %v4329_v33, %v13518_v59  ;;  %v10990_v2 = vsel %vm2445_vm9, %v13520_v7, %v13519_v42  ;;  %v7865_v33 = vunpack.i.h.bf16 %v10917_v3  ;;  %3427 = vmatmul.mubr.f32.gmra.mrb[64].mxu0 %v10835_v36  ;;  %v4738_v59 = vrot.slane %v10464_v28, 1  ;;  %v13528_v36 = vld [vmem:[#allocation25_spill] sm:$0xff] }
 0x8ef   :  { %v2976_v42 = vsel %vm179_vm3, %v10799_v0, %v7860_v11  ;;  %v7868_v7 = vpop.permute.xlu0 %7867  ;;  %v11012_v3 = vpop.permute.xlu1 %7872  ;;  %7270 = vmatpush1.bf16.msra.mxu0 %v10974_v8  ;;  %v11016_v35 = vpack.c.bf16 %v1913_v39, %v1912_v51  ;;  %v4883_v0 = vsel %vm430_vm4, %v4865_v43, %v7855_v55  ;;  %v4884_v23 = vsel %vm430_vm4, %v4866_v27, %v7864_v26  ;;  %v1915_v51 = vld [vmem:[%s13129_s10 + $0x1f8] sm:$0xff] }
 0x8f0   :  { %v7870_v22 = vunpack.i.h.bf16 %v7868_v7  ;;  %v7869_v41 = vunpack.i.l.bf16 %v7868_v7  ;;  %v7874_v11 = vunpack.i.l.bf16 %v11012_v3  ;;  %7271 = vmatprep.subr.bf16.mxu0 %v13396_v46  ;;  %v1914_v7 = vld [vmem:[%s13129_s10 + $0x1f0] sm:$0xff]  ;;  %v2996_v55 = vsel %vm430_vm4, %v2976_v42, %v7865_v33 }
 0x8f1   :  { %8052 = vrot.lane.b32.xlu0 %v8051_v52, %s8144_s24  ;;  %4364 = vrot.lane.b32.xlu1 %v4330_v58, %s8144_s24  ;;  %v13522_v52 = vrot.slane %v10455_v29, 1  ;;  %v13523_v42 = vrot.slane %v10467_v4, 5 }
 0x8f2   :  { %v11032_v39 = vsel %vm439_vm5, %v4883_v0, %v7869_v41  ;;  %v11035_v26 = vsel %vm439_vm5, %v4884_v23, %v7870_v22  ;;  %v11042_v27 = vsel %vm439_vm5, %v2996_v55, %v7874_v11  ;;  %v13524_v41 = vrot.slane %v10464_v28, 5 }
 0x8f3   :  { %13521 = vst [vmem:[#allocation83_spill] sm:$0xff] %v11032_v39  ;;  %v4739_v43 = vsel %vm60_vm0, %v13522_v52, %v4738_v59  ;;  %v7878_v57 = vpop.permute.xlu0 %7877  ;;  %v11051_v22 = vpop.permute.xlu1 %7882  ;;  %v4564_v52 = vrot.slane %v10512_v49, 3  ;;  %7273 = vmatpush1.bf16.msra.mxu0 %v11016_v35  ;;  %v11056_v11 = vpack.c.bf16 %v1915_v51, %v1914_v7  ;;  %v4812_v55 = vsel %vm179_vm3, %v10224_v32, %v4255_v62 }
 0x8f4   :  { %v4421_v23 = vsel %vm2445_vm9, %v13524_v41, %v13523_v42  ;;  %v7880_v58 = vunpack.i.h.bf16 %v7878_v57  ;;  %v7884_v47 = vunpack.i.l.bf16 %v11051_v22  ;;  %v7879_v33 = vunpack.i.l.bf16 %v7878_v57  ;;  %7274 = vmatprep.subr.bf16.mxu0 %v13396_v46 }
 0x8f5   :  { %4276 = vrot.lane.b32.xlu0 %v4242_v16, %s8143_s20  ;;  %v13525_v42 = vrot.slane %v11035_v26, 2  ;;  %v13526_v41 = vrot.slane %v11032_v39, 2  ;;  %4278 = vrot.lane.b32.xlu1 %v10954_v15, %s8143_s20  ;;  %v13529_v32 = vrot.slane %v11042_v27, 2  ;;  %v13530_v62 = vrot.slane %v10930_v61, 2  ;;  %v13533_v61 = vld [vmem:[#allocation3_spill] sm:$0xff] }
 0x8f6   :  { %v11072_v7 = vsel %vm439_vm5, %v13528_v36, %v7880_v58  ;;  %v8061_v57 = vpack.i.bf16 %v10990_v2, %v4739_v43  ;;  %v13532_v15 = vrot.slane %v10467_v4, 1  ;;  %v11102_v43 = vsel %vm430_vm4, %v4812_v55, %v10956_v24 }
 0x8f7   :  { %v11067_v0 = vsel %vm2699_vm6, %v13526_v41, %v13525_v42  ;;  %v11081_v16 = vsel %vm2699_vm6, %v13530_v62, %v13529_v32  ;;  %v11087_v36 = vpop.permute.xlu0 %7887  ;;  %v13534_v41 = vrot.slane %v10827_v9, 7  ;;  %v13535_v62 = vrot.slane %v10464_v28, 2  ;;  %v7893_v51 = vpop.permute.xlu1 %7892  ;;  %7276 = vmatpush1.bf16.msra.mxu0 %v11056_v11 }
 0x8f8   :  { %13527 = vst [vmem:[#allocation84_spill] sm:$0xff] %v11067_v0  ;;  %13531 = vst [vmem:[#allocation25_spill] sm:$0xff] %v11081_v16  ;;  %5238 = vmatprep.mubr.f32.mxu1 %v11067_v0  ;;  %3431 = vmatprep.mubr.f32.mxu0 %v11081_v16  ;;  %v4741_v42 = vsel %vm60_vm0, %v4738_v59, %v13532_v15  ;;  %v7889_v58 = vunpack.i.l.bf16 %v11087_v36  ;;  %v13536_v0 = vrot.slane %v10512_v49, 2  ;;  %v13537_v55 = vrot.slane %v11072_v7, 2 }
 0x8f9   :  { %v4251_v32 = vsel %vm66_vm1, %v13534_v41, %v13533_v61  ;;  %v4652_v2 = vsel %vm2699_vm6, %v13535_v62, %v4651_v25  ;;  %v13280_v41 = vunpack.i.h.bf16 %v11012_v3  ;;  %v4811_v62 = vsel %vm179_vm3, %v10227_v38, %v7884_v47  ;;  %8062 = vrot.lane.b32.xlu0 %v8061_v57, %s8147_s29  ;;  %7277 = vmatprep.subr.bf16.mxu0 %v13396_v46 }
 0x8fa   :  { %v4654_v59 = vsel %vm2699_vm6, %v4651_v25, %v13536_v0  ;;  %v4848_v24 = vsel %vm439_vm5, %v11102_v43, %v7879_v33  ;;  %v13538_v39 = vrot.slane %v10752_v20, 2  ;;  %v4829_v0 = vsel %vm430_vm4, %v4811_v62, %v7889_v58  ;;  %4366 = vrot.lane.b32.xlu1 %v10983_v60, %s8144_s24 }
 0x8fb   :  { %v13540_v47 = vrot.slane %v10467_v4, 3  ;;  %v13541_v57 = vrot.slane %v10517_v50, 3  ;;  %v4257_v58 = vpop.permute.xlu0 %4256  ;;  %v8066_v62 = vpack.i.bf16 %v4421_v23, %v4741_v42  ;;  %v8071_v15 = vpack.i.bf16 %v4654_v59, %v4652_v2  ;;  %v7898_v28 = vpop.permute.xlu1 %7897 }
 0x8fc   :  { %v11121_v25 = vsel %vm2699_vm6, %v13538_v39, %v13537_v55  ;;  %v4847_v55 = vsel %vm439_vm5, %v4829_v0, %v13280_v41  ;;  %v4422_v60 = vrot.slane %v10512_v49, 5  ;;  %v7885_v38 = vunpack.i.h.bf16 %v11051_v22 }
 0x8fd   :  { %13539 = vst [vmem:[#allocation3_spill] sm:$0xff] %v11121_v25  ;;  %3432 = vmatmul.mubr.f32.gmra.mrb[66].mxu0 %v11121_v25  ;;  %v4565_v33 = vsel %vm2601_vm8, %v13540_v47, %v4564_v52  ;;  %v4567_v20 = vsel %vm2601_vm8, %v4564_v52, %v13541_v57  ;;  %v11140_v25 = vrot.slane %v4848_v24, 2  ;;  %v7894_v47 = vunpack.i.l.bf16 %v7893_v51  ;;  %8067 = vrot.lane.b32.xlu0 %v8066_v62, %s8147_s29 }
 0x8fe   :  { %v4981_v16 = vrot.slane %v4847_v55, 2  ;;  %v8076_v52 = vpack.i.bf16 %v4567_v20, %v4565_v33  ;;  %v13542_v57 = vrot.slane %v10512_v49, 6  ;;  %v13543_v39 = vrot.slane %v10467_v4, 6  ;;  %4286 = vrot.lane.b32.xlu1 %v4251_v32, %s8143_s20 }
 0x8ff   :  { %v13289_v23 = vrot.slane %v10517_v50, 7  ;;  %v4742_v42 = vrot.slane %v10512_v49, 1  ;;  %v7890_v22 = vunpack.i.h.bf16 %v11087_v36  ;;  %v7899_v2 = vunpack.i.l.bf16 %v7898_v28  ;;  %v4345_v62 = vpop.permute.xlu0 %4344 }
 0x900   :  { %v4334_v0 = vsel %vm2202_vm7, %v13543_v39, %v13542_v57  ;;  %v4983_v59 = vsel %vm2699_vm6, %v4981_v16, %v11140_v25  ;;  %v13544_v24 = vrot.slane %v10512_v49, 7  ;;  %v13545_v33 = vrot.slane %v10467_v4, 7 }
 0x901   :  { %v7895_v55 = vunpack.i.h.bf16 %v7893_v51  ;;  %v4813_v39 = vsel %vm179_vm3, %v10254_v19, %v4257_v58  ;;  %5239 = vmatmul.mubr.f32.vlgmr.msra.gmra.mrb[56].mxu1 %v4983_v59  ;;  %v13546_v36 = vrot.slane %v10467_v4, 5  ;;  %v4655_v16 = vrot.slane %v10517_v50, 2  ;;  %8072 = vrot.lane.b32.xlu0 %v8071_v15, %s8144_s24 }
 0x902   :  { %v4246_v20 = vsel %vm66_vm1, %v13545_v33, %v13544_v24  ;;  %v13281_v57 = vrot.slane %v11102_v43, 2  ;;  %v4867_v41 = vsel %vm179_vm3, %v10949_v44, %v7885_v38  ;;  %v2977_v51 = vsel %vm179_vm3, %v10804_v48, %v7894_v47  ;;  %v7903_v24 = vpop.permute.xlu1 %7902  ;;  %7415 = vmatpush1.bf16.msra.mxu1 %v10603_v21  ;;  %8077 = vrot.lane.b32.xlu1 %v8076_v52, %s8143_s20 }
 0x903   :  { %v4423_v32 = vsel %vm2445_vm9, %v13546_v36, %v4422_v60  ;;  %v11173_v19 = vsel %vm430_vm4, %v4813_v39, %v4345_v62  ;;  %v7900_v58 = vunpack.i.h.bf16 %v7898_v28  ;;  %v7905_v59 = vunpack.i.h.bf16 %v7903_v24  ;;  %7416 = vmatprep.subr.bf16.mxu1 %v13396_v46 }
 0x904   :  { %v7904_v33 = vunpack.i.l.bf16 %v7903_v24  ;;  %v5012_v36 = vrot.slane %v11173_v19, 2  ;;  %v4885_v38 = vsel %vm430_vm4, %v4867_v41, %v7890_v22  ;;  %v2997_v44 = vsel %vm430_vm4, %v2977_v51, %v7899_v2  ;;  %v7908_v22 = vpop.permute.xlu0 %7907 }
 0x905   :  { %v13547_v48 = vrot.slane %v10467_v4, 1  ;;  %v13282_v21 = vrot.slane %v10827_v9, 2  ;;  %v4868_v47 = vsel %vm179_vm3, %v10971_v54, %v7895_v55  ;;  %v11191_v15 = vsel %vm439_vm5, %v2997_v44, %v7905_v59  ;;  %4280 = vrot.lane.b32.xlu0 %v4246_v20, %s8143_s20  ;;  %v13550_v44 = vld [vmem:[#allocation24_spill] sm:$0xff] }
 0x906   :  { %v4903_v41 = vsel %vm439_vm5, %v4885_v38, %v7904_v33  ;;  %v11199_v52 = vsel %vm2699_vm6, %v13281_v57, %v5012_v36  ;;  %v11201_v2 = vpop.permute.xlu1 %7912  ;;  %v7910_v39 = vunpack.i.h.bf16 %v7908_v22  ;;  %v7909_v62 = vunpack.i.l.bf16 %v7908_v22  ;;  %7418 = vmatpush1.bf16.msra.mxu1 %v10609_v63  ;;  %4368 = vrot.lane.b32.xlu1 %v4334_v0, %s8144_s24 }
 0x907   :  { %v4743_v28 = vsel %vm60_vm0, %v13547_v48, %v4742_v42  ;;  %13548 = vst [vmem:[#allocation85_spill] sm:$0xff] %v11199_v52  ;;  %v13285_v51 = vrot.slane %v11191_v15, 2  ;;  %v4992_v54 = vrot.slane %v4903_v41, 2  ;;  %v4886_v55 = vsel %vm430_vm4, %v4868_v47, %v7900_v58  ;;  %7419 = vmatprep.subr.bf16.mxu1 %v13396_v46 }
 0x908   :  { %v7914_v24 = vunpack.i.l.bf16 %v11201_v2  ;;  %v8081_v59 = vpack.i.bf16 %v4423_v32, %v4743_v28  ;;  %v13549_v33 = vrot.slane %v10512_v49, 2  ;;  %v11214_v48 = vsel %vm439_vm5, %v13550_v44, %v7910_v39  ;;  %v4259_v0 = vpop.permute.xlu0 %4258 }
 0x909   :  { %v11218_v63 = vsel %vm439_vm5, %v11173_v19, %v7909_v62  ;;  %v13551_v20 = vrot.slane %v11042_v27, 2  ;;  %v13552_v58 = vrot.slane %v11035_v26, 2  ;;  %v13284_v41 = vrot.slane %v11214_v48, 2 }
 0x90a   :  { %v4656_v38 = vsel %vm2699_vm6, %v13549_v33, %v4655_v16  ;;  %v11234_v47 = vsel %vm439_vm5, %v4886_v55, %v7914_v24  ;;  %v13283_v27 = vrot.slane %v11218_v63, 2  ;;  %v4568_v22 = vrot.slane %v10827_v9, 3  ;;  %v11241_v39 = vpop.permute.xlu1 %7922  ;;  %7421 = vmatpush1.bf16.msra.mxu1 %v10629_v13  ;;  %8082 = vrot.lane.b32.xlu0 %v8081_v59, %s8147_s29 }
 0x90b   :  { %v11226_v32 = vsel %vm2699_vm6, %v13551_v20, %v13285_v51  ;;  %v11231_v28 = vsel %vm2699_vm6, %v13552_v58, %v4992_v54  ;;  %v13286_v26 = vrot.slane %v11234_v47, 2  ;;  %v4658_v62 = vsel %vm2699_vm6, %v4655_v16, %v13282_v21  ;;  %7422 = vmatprep.subr.bf16.mxu1 %v13396_v46 }
 0x90c   :  { %3436 = vmatprep.mubr.f32.mxu0 %v11226_v32  ;;  %5243 = vmatprep.mubr.f32.mxu1 %v11231_v28  ;;  %v13288_v55 = vrot.slane %v10517_v50, 5  ;;  %v13287_v24 = vrot.slane %v10517_v50, 1  ;;  %v13553_v33 = vrot.slane %v10512_v49, 7  ;;  %v13554_v20 = vrot.slane %v11072_v7, 2 }
 0x90d   :  { %v11267_v13 = vsel %vm2699_vm6, %v11140_v25, %v13283_v27  ;;  %v4335_v58 = vrot.slane %v10517_v50, 6  ;;  %v13556_v59 = vrot.slane %v13454_v6, 4  ;;  %v7924_v7 = vunpack.i.l.bf16 %v11241_v39  ;;  %v4347_v27 = vpop.permute.xlu0 %4346 }
 0x90e   :  { %v4248_v44 = vsel %vm66_vm1, %v13553_v33, %v13289_v23  ;;  %v11261_v16 = vsel %vm2699_vm6, %v13554_v20, %v13284_v41  ;;  %v13555_v33 = vrot.slane %v13464_v45, 4  ;;  %v11282_v20 = vsel %vm2699_vm6, %v4992_v54, %v13286_v26  ;;  %5244 = vmatmul.mubr.f32.gmra.mrb[58].mxu1 %v11267_v13  ;;  %v11292_v41 = vpop.permute.xlu1 %7927 }
 0x90f   :  { %4282 = vrot.lane.b32.xlu1 %v4248_v44, %s8143_s20  ;;  %3437 = vmatmul.mubr.f32.gmra.mrb[68].mxu0 %v11261_v16  ;;  %v4814_v21 = vsel %vm179_vm3, %v10257_v10, %v4259_v0  ;;  %v8086_v6 = vpack.i.bf16 %v4658_v62, %v4656_v38  ;;  %v4570_v44 = vsel %vm2601_vm8, %v4568_v22, %v9440_v1  ;;  %v13290_v54 = vrot.slane %v13477_v56, 4 }
 0x910   :  { %v2574_v57 = vsel %vm2543_vm10, %v13556_v59, %v13555_v33  ;;  %v13557_v33 = vrot.slane %v10517_v50, 3  ;;  %v11295_v51 = vsel %vm430_vm4, %v4814_v21, %v4347_v27  ;;  %5248 = vmatprep.mubr.f32.mxu1 %v11282_v20  ;;  %v4425_v38 = vsel %vm2445_vm9, %v4422_v60, %v13288_v55  ;;  %7424 = vmatpush1.bf16.msra.mxu1 %v10646_v14 }
 0x911   :  { %v4745_v1 = vsel %vm60_vm0, %v4742_v42, %v13287_v24  ;;  %v13295_v21 = vrot.slane %v10279_v5, 4  ;;  %v7929_v0 = vunpack.i.l.bf16 %v11292_v41  ;;  %v13294_v27 = vrot.slane %v11295_v51, 2  ;;  %8087 = vrot.lane.b32.xlu0 %v8086_v6, %s8144_s24  ;;  %7425 = vmatprep.subr.bf16.mxu1 %v13396_v46  ;;  %v7918_v24 = vpop.permute.xlu0 %7917 }
 0x912   :  { %v4569_v59 = vsel %vm2601_vm8, %v13557_v33, %v4568_v22  ;;  %v13558_v22 = vrot.slane %v10512_v49, 6  ;;  %v7915_v60 = vunpack.i.h.bf16 %v11201_v2  ;;  %v2978_v42 = vsel %vm179_vm3, %v2574_v57, %v7924_v7  ;;  %v11333_v57 = vpop.permute.xlu1 %7932 }
 0x913   :  { %v11322_v14 = vrot.slane %v10827_v9, 6  ;;  %v4426_v33 = vrot.slane %v10827_v9, 5  ;;  %v2998_v26 = vsel %vm430_vm4, %v2978_v42, %v7929_v0  ;;  %v8096_v55 = vpack.i.bf16 %v4570_v44, %v4569_v59  ;;  %v13562_v44 = vld [vmem:[#allocation26_spill] sm:$0xff] }
 0x914   :  { %v4336_v62 = vsel %vm2202_vm7, %v13558_v22, %v4335_v58  ;;  %v8091_v22 = vpack.i.bf16 %v4425_v38, %v4745_v1  ;;  %v11331_v2 = vsel %vm2699_vm6, %v5012_v36, %v13294_v27  ;;  %v7920_v7 = vunpack.i.h.bf16 %v7918_v24  ;;  %7427 = vmatpush1.bf16.msra.mxu1 %v10663_v30 }
 0x915   :  { %4370 = vrot.lane.b32.xlu1 %v4336_v62, %s8144_s24  ;;  %13559 = vst [vmem:[#allocation24_spill] sm:$0xff] %v11331_v2  ;;  %v7919_v6 = vunpack.i.l.bf16 %v7918_v24  ;;  %v11336_v62 = vsel %vm439_vm5, %v2998_v26, %v7915_v60  ;;  %v4746_v23 = vrot.slane %v10827_v9, 1  ;;  %v13560_v59 = vrot.slane %v13464_v45, 4  ;;  %7428 = vmatprep.subr.bf16.mxu1 %v13396_v46  ;;  %v4261_v60 = vpop.permute.xlu0 %4260 }
 0x916   :  { %8092 = vrot.lane.b32.xlu0 %v8091_v22, %s8147_s29  ;;  %v13293_v36 = vrot.slane %v11336_v62, 2  ;;  %v13561_v26 = vrot.slane %v10257_v10, 4  ;;  %v11355_v30 = vsel %vm439_vm5, %v13562_v44, %v7920_v7  ;;  %v13563_v38 = vrot.slane %v10827_v9, 7  ;;  %v7938_v44 = vpop.permute.xlu1 %7937 }
 0x917   :  { %v2576_v19 = vsel %vm2543_vm10, %v13560_v59, %v13290_v54  ;;  %v11359_v45 = vsel %vm439_vm5, %v11295_v51, %v7919_v6  ;;  %v13564_v1 = vrot.slane %v10517_v50, 7  ;;  %v13565_v10 = vrot.slane %v11191_v15, 2 }
 0x918   :  { %v4492_v24 = vsel %vm2543_vm10, %v13561_v26, %v13295_v21  ;;  %v4338_v22 = vsel %vm2202_vm7, %v4335_v58, %v11322_v14  ;;  %v13292_v7 = vrot.slane %v11355_v30, 2  ;;  %v7925_v59 = vunpack.i.h.bf16 %v11241_v39  ;;  %7430 = vmatpush1.bf16.msra.mxu1 %v10687_v53 }
 0x919   :  { %8097 = vrot.lane.b32.xlu1 %v8096_v55, %s8143_s20  ;;  %v4250_v0 = vsel %vm66_vm1, %v13564_v1, %v13563_v38  ;;  %v11372_v42 = vsel %vm2699_vm6, %v13565_v10, %v13293_v36  ;;  %v13566_v55 = vrot.slane %v10517_v50, 5  ;;  %v7934_v26 = vunpack.i.l.bf16 %v11333_v57  ;;  %7431 = vmatprep.subr.bf16.mxu1 %v13396_v46 }
 0x91a   :  { %3441 = vmatprep.mubr.f32.mxu0 %v11372_v42  ;;  %v13291_v15 = vrot.slane %v11359_v45, 2  ;;  %v13567_v38 = vrot.slane %v10517_v50, 1  ;;  %v4493_v58 = vrot.slane %v10282_v17, 4  ;;  %4284 = vrot.lane.b32.xlu0 %v4250_v0, %s8143_s20  ;;  %v13568_v39 = vrot.slane %v11214_v48, 2 }
 0x91b   :  { %v4427_v6 = vsel %vm2445_vm9, %v13566_v55, %v4426_v33  ;;  %v4428_v55 = vsel %vm2445_vm9, %v4426_v33, %v9484_v40  ;;  %v4748_v54 = vsel %vm60_vm0, %v4746_v23, %v9495_v12  ;;  %v7930_v53 = vunpack.i.h.bf16 %v11292_v41  ;;  %v13570_v40 = vld [vmem:[#allocation4_spill] sm:$0xff]  ;;  %v4349_v33 = vpop.permute.xlu0 %4348 }
 0x91c   :  { %v4747_v1 = vsel %vm60_vm0, %v13567_v38, %v4746_v23  ;;  %v11395_v10 = vsel %vm2699_vm6, %v13568_v39, %v13292_v7  ;;  %v7939_v38 = vunpack.i.l.bf16 %v7938_v44  ;;  %v13569_v48 = vrot.slane %v11218_v63, 2  ;;  %v7943_v7 = vpop.permute.xlu1 %7942  ;;  %7433 = vmatpush1.bf16.msra.mxu1 %v10713_v18 }
 0x91d   :  { %4372 = vrot.lane.b32.xlu1 %v4338_v22, %s8144_s24  ;;  %3442 = vmatmul.mubr.f32.gmra.mrb[70].mxu0 %v11395_v10  ;;  %v4339_v12 = vsel %vm2202_vm7, %v11322_v14, %v13570_v40  ;;  %v7935_v23 = vunpack.i.h.bf16 %v11333_v57  ;;  %v4815_v41 = vsel %vm179_vm3, %v10279_v5, %v4261_v60  ;;  %v8101_v22 = vpack.i.bf16 %v4427_v6, %v4747_v1 }
 0x91e   :  { %v11410_v0 = vsel %vm2699_vm6, %v13569_v48, %v13291_v15  ;;  %v13571_v39 = vrot.slane %v10827_v9, 2  ;;  %v4869_v48 = vsel %vm179_vm3, %v4492_v24, %v7925_v59  ;;  %v2979_v15 = vsel %vm179_vm3, %v2576_v19, %v7934_v26  ;;  %7434 = vmatprep.subr.bf16.mxu1 %v13396_v46 }
 0x91f   :  { %5249 = vmatmul.mubr.f32.gmra.mrb[60].mxu1 %v11410_v0  ;;  %v11426_v36 = vsel %vm430_vm4, %v4815_v41, %v4349_v33  ;;  %v8111_v57 = vpack.i.bf16 %v4428_v55, %v4748_v54  ;;  %v7940_v60 = vunpack.i.h.bf16 %v7938_v44  ;;  %v7945_v27 = vunpack.i.h.bf16 %v7943_v7  ;;  %8102 = vrot.lane.b32.xlu0 %v8101_v22, %s8147_s29  ;;  %v7948_v44 = vpop.permute.xlu0 %7947 }
 0x920   :  { %v4659_v63 = vsel %vm2699_vm6, %v13571_v39, %v9463_v31  ;;  %v7944_v21 = vunpack.i.l.bf16 %v7943_v7  ;;  %v5024_v6 = vrot.slane %v11426_v36, 2  ;;  %v4887_v31 = vsel %vm430_vm4, %v4869_v48, %v7930_v53  ;;  %v7953_v55 = vpop.permute.xlu1 %7952  ;;  %7436 = vmatpush1.bf16.msra.mxu1 %v10732_v37 }
 0x921   :  { %v13572_v19 = vrot.slane %v10279_v5, 4  ;;  %v2999_v54 = vsel %vm430_vm4, %v2979_v15, %v7939_v38  ;;  %8112 = vrot.lane.b32.xlu1 %v8111_v57, %s8147_s29  ;;  %v8106_v18 = vpack.i.bf16 %v4339_v12, %v4659_v63  ;;  %v13573_v1 = vrot.slane %v11295_v51, 2  ;;  %7437 = vmatprep.subr.bf16.mxu1 %v13396_v46  ;;  %v13576_v51 = vld [vmem:[#allocation27_spill] sm:$0xff] }
 0x922   :  { %v11442_v59 = vsel %vm439_vm5, %v2999_v54, %v7945_v27  ;;  %v4905_v26 = vsel %vm439_vm5, %v4887_v31, %v7944_v21  ;;  %v7950_v15 = vunpack.i.h.bf16 %v7948_v44  ;;  %v7949_v53 = vunpack.i.l.bf16 %v7948_v44  ;;  %v13575_v21 = vld [vmem:[#allocation73_spill] sm:$0xff]  ;;  %v13580_v54 = vld [vmem:[#allocation18_spill] sm:$0xff] }
 0x923   :  { %v4494_v24 = vsel %vm2543_vm10, %v13572_v19, %v4493_v58  ;;  %v11450_v5 = vsel %vm2699_vm6, %v13573_v1, %v5024_v6  ;;  %v3194_v38 = vrot.slane %v11442_v59, 2  ;;  %v5004_v12 = vrot.slane %v4905_v26, 2  ;;  %8107 = vrot.lane.b32.xlu0 %v8106_v18, %s8144_s24  ;;  %v4263_v57 = vpop.permute.xlu0 %4262  ;;  %v13579_v19 = vld [vmem:[#allocation72_spill] sm:$0xff]  ;;  %v13581_v18 = vld [vmem:[#allocation19_spill] sm:$0xff] }
 0x924   :  { %v4870_v7 = vsel %vm179_vm3, %v4494_v24, %v7935_v23  ;;  %13574 = vst [vmem:[#allocation26_spill] sm:$0xff] %v11450_v5  ;;  %v7954_v23 = vunpack.i.l.bf16 %v7953_v55  ;;  %v4807_v41 = vsel %vm2202_vm7, %v13570_v40, %v13575_v21  ;;  %v11462_v33 = vsel %vm439_vm5, %v13576_v51, %v7950_v15  ;;  %v7963_v31 = vpop.permute.xlu1 %7962  ;;  %7439 = vmatpush1.bf16.msra.mxu1 %v13580_v54  ;;  %v13586_v21 = vld [vmem:[#allocation23_spill] sm:$0xff] }
 0x925   :  { %v4888_v27 = vsel %vm430_vm4, %v4870_v7, %v7940_v60  ;;  %v11466_v22 = vsel %vm439_vm5, %v11426_v36, %v7949_v53  ;;  %4808 = vrot.lane.b32.xlu1 %v4807_v41, %s8144_s24  ;;  %v13577_v37 = vrot.slane %v11336_v62, 2  ;;  %v13578_v39 = vrot.slane %v11234_v47, 2  ;;  %7440 = vmatprep.subr.bf16.mxu1 %v13396_v46 }
 0x926   :  { %v11482_v48 = vsel %vm439_vm5, %v4888_v27, %v7954_v23  ;;  %v3192_v60 = vrot.slane %v11462_v33, 2  ;;  %v5002_v62 = vrot.slane %v11466_v22, 2  ;;  %v4803_v47 = vsel %vm66_vm1, %v13533_v61, %v13579_v19 }
 0x927   :  { %v11474_v40 = vsel %vm2699_vm6, %v13577_v37, %v3194_v38  ;;  %v11479_v63 = vsel %vm2699_vm6, %v13578_v39, %v5004_v12  ;;  %v5010_v24 = vrot.slane %v11482_v48, 2  ;;  %v2577_v7 = vrot.slane %v13581_v18, 4  ;;  %4804 = vrot.lane.b32.xlu0 %v4803_v47, %s8143_s20  ;;  %v4351_v27 = vpop.permute.xlu0 %4350  ;;  %v13589_v47 = vld [vmem:[#allocation74_spill] sm:$0xff] }
 0x928   :  { %3446 = vmatprep.mubr.f32.mxu0 %v11474_v40  ;;  %5253 = vmatprep.mubr.f32.mxu1 %v11479_v63  ;;  %v13582_v26 = vrot.slane %v11355_v30, 2  ;;  %v13583_v1 = vrot.slane %v11359_v45, 2  ;;  %v7964_v61 = vunpack.i.l.bf16 %v7963_v31  ;;  %v4816_v53 = vsel %vm179_vm3, %v10282_v17, %v4263_v57  ;;  %v7968_v45 = vpop.permute.xlu1 %7967 }
 0x929   :  { %v11513_v30 = vsel %vm2699_vm6, %v5004_v12, %v5010_v24  ;;  %v11519_v23 = vsel %vm430_vm4, %v4816_v53, %v4351_v27  ;;  %7442 = vmatpush1.bf16.msra.mxu1 %v13586_v21  ;;  %v13587_v41 = vrot.slane %v13477_v56, 4  ;;  %v7969_v33 = vunpack.i.l.bf16 %v7968_v45 }
 0x92a   :  { %v11498_v44 = vsel %vm2699_vm6, %v13582_v26, %v3192_v60  ;;  %v11505_v15 = vsel %vm2699_vm6, %v13583_v1, %v5002_v62  ;;  %13585 = vst [vmem:[#allocation73_spill] sm:$0xff] %v11513_v30  ;;  %v5030_v12 = vrot.slane %v11519_v23, 2  ;;  %7443 = vmatprep.subr.bf16.mxu1 %v13396_v46  ;;  %v7955_v37 = vunpack.i.h.bf16 %v7953_v55  ;;  %v13590_v55 = vld [vmem:[#allocation80_spill] sm:$0xff] }
 0x92b   :  { %13584 = vst [vmem:[#allocation4_spill] sm:$0xff] %v11505_v15  ;;  %3447 = vmatmul.mubr.f32.gmra.mrb[72].mxu0 %v11498_v44  ;;  %5254 = vmatmul.mubr.f32.gmra.mrb[62].mxu1 %v11505_v15  ;;  %v2578_v51 = vsel %vm2543_vm10, %v13587_v41, %v2577_v7  ;;  %v7958_v19 = vpop.permute.xlu0 %7957  ;;  %v4495_v54 = vrot.slane %v13589_v47, 4  ;;  %v7970_v21 = vunpack.i.h.bf16 %v7968_v45  ;;  %v13591_v41 = vld [vmem:[#allocation30_spill] sm:$0xff] }
 0x92c   :  { %5258 = vmatprep.mubr.f32.mxu1 %v11513_v30  ;;  %4922 = vrot.lane.b32.xlu0 %v11322_v14, %s8144_s24  ;;  %v2980_v39 = vsel %vm179_vm3, %v2578_v51, %v7964_v61  ;;  %v11536_v56 = vsel %vm2699_vm6, %v5024_v6, %v5030_v12  ;;  %v7973_v18 = vpop.permute.xlu1 %7972  ;;  %v7960_v26 = vunpack.i.h.bf16 %v7958_v19  ;;  %v7959_v14 = vunpack.i.l.bf16 %v7958_v19  ;;  %v13592_v6 = vld [vmem:[#allocation29_spill] sm:$0xff] }
 0x92d   :  { %v3000_v57 = vsel %vm430_vm4, %v2980_v39, %v7969_v33  ;;  %13588 = vst [vmem:[#allocation27_spill] sm:$0xff] %v11536_v56  ;;  %7445 = vmatpush1.bf16.msra.mxu1 %v13590_v55  ;;  %v7965_v61 = vunpack.i.h.bf16 %v7963_v31  ;;  %v7974_v53 = vunpack.i.l.bf16 %v7973_v18  ;;  %v2579_v36 = vsel %vm2543_vm10, %v2577_v7, %v13591_v41 }
 0x92e   :  { %v3020_v1 = vsel %vm439_vm5, %v3000_v57, %v7955_v37  ;;  %7446 = vmatprep.subr.bf16.mxu1 %v13396_v46  ;;  %v11546_v51 = vsel %vm439_vm5, %v13592_v6, %v7960_v26  ;;  %v11550_v33 = vsel %vm439_vm5, %v11519_v23, %v7959_v14  ;;  %v13593_v57 = vld [vmem:[#allocation78_spill] sm:$0xff]  ;;  %v4496_v19 = vsel %vm2543_vm10, %v4493_v58, %v4495_v54 }
 0x92f   :  { %v3200_v27 = vrot.slane %v3020_v1, 2  ;;  %v2981_v37 = vsel %vm179_vm3, %v2579_v36, %v7974_v53  ;;  %v4265_v39 = vpop.permute.xlu0 %4264  ;;  %v3198_v45 = vrot.slane %v11546_v51, 2  ;;  %v7844_v7 = vunpack.i.l.bf16 %v13593_v57  ;;  %v13594_v1 = vld [vmem:[#allocation81_spill] sm:$0xff] }
 0x930   :  { %v7978_v26 = vpop.permute.xlu1 %7977  ;;  %v5008_v14 = vrot.slane %v11550_v33, 2  ;;  %v4871_v59 = vsel %vm179_vm3, %v4496_v19, %v7965_v61 }
 0x931   :  { %v11556_v31 = vsel %vm2699_vm6, %v3194_v38, %v3200_v27  ;;  %7448 = vmatpush1.bf16.msra.mxu1 %v13594_v1  ;;  %v7980_v55 = vunpack.i.h.bf16 %v7978_v26  ;;  %v7979_v38 = vunpack.i.l.bf16 %v7978_v26  ;;  %v11568_v53 = vsel %vm2699_vm6, %v3192_v60, %v3198_v45 }
 0x932   :  { %3451 = vmatprep.mubr.f32.mxu0 %v11556_v31  ;;  %7449 = vmatprep.subr.bf16.mxu1 %v13396_v46  ;;  %v4889_v17 = vsel %vm430_vm4, %v4871_v59, %v7970_v21  ;;  %v3001_v58 = vsel %vm430_vm4, %v2981_v37, %v7844_v7  ;;  %v11577_v36 = vsel %vm2699_vm6, %v5002_v62, %v5008_v14  ;;  %v13596_v21 = vld [vmem:[#allocation75_spill] sm:$0xff]  ;;  %v7845_v62 = vunpack.i.h.bf16 %v13593_v57 }
 0x933   :  { %3452 = vmatmul.mubr.f32.gmra.mrb[74].mxu0 %v11568_v53  ;;  %13595 = vst [vmem:[#allocation72_spill] sm:$0xff] %v11577_v36  ;;  %v3021_v61 = vsel %vm439_vm5, %v3001_v58, %v7980_v55  ;;  %v4907_v6 = vsel %vm439_vm5, %v4889_v17, %v7979_v38  ;;  %v4817_v60 = vsel %vm179_vm3, %v13589_v47, %v4265_v39  ;;  %v4353_v51 = vpop.permute.xlu0 %4352  ;;  %v13297_v33 = vrot.slane %v13596_v21, 4 }
 0x934   :  { %5259 = vmatmul.mubr.f32.gmra.mrb[64].mxu1 %v11577_v36  ;;  %v7988_v37 = vpop.permute.xlu1 %7987  ;;  %v4835_v7 = vsel %vm430_vm4, %v4817_v60, %v4353_v51  ;;  %v11586_v19 = vrot.slane %v3021_v61, 2  ;;  %v5016_v22 = vrot.slane %v4907_v6, 2  ;;  %v7975_v26 = vunpack.i.h.bf16 %v7973_v18 }
 0x935   :  { %7451 = vmatpush1.bf16.msra.mxu1 %v10924_v34  ;;  %v5036_v1 = vrot.slane %v4835_v7, 2  ;;  %v7989_v47 = vunpack.i.l.bf16 %v7988_v37 }
 0x936   :  { %13597 = vst [vmem:[#allocation18_spill] sm:$0xff] %v11586_v19  ;;  %7452 = vmatprep.subr.bf16.mxu1 %v13396_v46  ;;  %v11593_v39 = vsel %vm2699_vm6, %v3200_v27, %v11586_v19  ;;  %v11598_v59 = vsel %vm2699_vm6, %v5010_v24, %v5016_v22  ;;  %v4498_v27 = vsel %vm2543_vm10, %v4495_v54, %v13297_v33  ;;  %v13600_v24 = vld [vmem:[#allocation28_spill] sm:$0xff] }
 0x937   :  { %13598 = vst [vmem:[#allocation19_spill] sm:$0xff] %v11598_v59  ;;  %3456 = vmatprep.mubr.f32.mxu0 %v11593_v39  ;;  %5263 = vmatprep.mubr.f32.mxu1 %v11598_v59  ;;  %v7983_v34 = vpop.permute.xlu0 %7982  ;;  %v11605_v18 = vsel %vm2699_vm6, %v5030_v12, %v5036_v1  ;;  %v2941_v38 = vsel %vm430_vm4, %v13600_v24, %v7845_v62  ;;  %v13641_v59 = vld [vmem:[#allocation36_spill] sm:$0xff] }
 0x938   :  { %13599 = vst [vmem:[#allocation23_spill] sm:$0xff] %v11605_v18  ;;  %v7993_v57 = vpop.permute.xlu1 %7992  ;;  %v7985_v55 = vunpack.i.h.bf16 %v7983_v34  ;;  %v7984_v48 = vunpack.i.l.bf16 %v7983_v34  ;;  %v4872_v17 = vsel %vm179_vm3, %v4498_v27, %v7975_v26 }
 0x939   :  { %7454 = vmatpush1.bf16.msra.mxu1 %v10974_v8  ;;  %v7994_v58 = vunpack.i.l.bf16 %v7993_v57  ;;  %v4890_v23 = vsel %vm430_vm4, %v4872_v17, %v7989_v47 }
 0x93a   :  { %7455 = vmatprep.subr.bf16.mxu1 %v13396_v46  ;;  %v2961_v12 = vsel %vm439_vm5, %v2941_v38, %v7985_v55  ;;  %v4853_v61 = vsel %vm439_vm5, %v4835_v7, %v7984_v48  ;;  %v7990_v7 = vunpack.i.h.bf16 %v7988_v37 }
 0x93b   :  { %v11619_v54 = vsel %vm439_vm5, %v4890_v23, %v7994_v58  ;;  %v4267_v6 = vpop.permute.xlu0 %4266  ;;  %v11621_v60 = vrot.slane %v2961_v12, 2  ;;  %v5014_v8 = vrot.slane %v4853_v61, 2  ;;  %v13605_v23 = vld [vmem:[#allocation16_spill] sm:$0xff] }
 0x93c   :  { %v8003_v51 = vpop.permute.xlu1 %8002  ;;  %v13296_v62 = vrot.slane %v11619_v54, 2 }
 0x93d   :  { %13601 = vst [vmem:[#allocation74_spill] sm:$0xff] %v11621_v60  ;;  %7457 = vmatpush1.bf16.msra.mxu1 %v11016_v35  ;;  %v8004_v26 = vunpack.i.l.bf16 %v8003_v51  ;;  %v11627_v47 = vsel %vm2699_vm6, %v3198_v45, %v11621_v60  ;;  %v11630_v34 = vsel %vm2699_vm6, %v5008_v14, %v5014_v8  ;;  %v7995_v35 = vunpack.i.h.bf16 %v7993_v57 }
 0x93e   :  { %13602 = vst [vmem:[#allocation80_spill] sm:$0xff] %v11630_v34  ;;  %7458 = vmatprep.subr.bf16.mxu1 %v13396_v46  ;;  %3457 = vmatmul.mubr.f32.gmra.mrb[76].mxu0 %v11627_v47  ;;  %v11638_v27 = vsel %vm2699_vm6, %v5016_v22, %v13296_v62  ;;  %v4818_v14 = vsel %vm179_vm3, %v13596_v21, %v4267_v6  ;;  %v8005_v33 = vunpack.i.h.bf16 %v8003_v51 }
 0x93f   :  { %5264 = vmatmul.mubr.f32.gmra.mrb[66].mxu1 %v11630_v34  ;;  %13603 = vst [vmem:[#allocation30_spill] sm:$0xff] %v11638_v27  ;;  %v2982_v45 = vsel %vm179_vm3, %v13591_v41, %v8004_v26  ;;  %v4355_v55 = vpop.permute.xlu0 %4354 }
 0x940   :  { %5268 = vmatprep.mubr.f32.mxu1 %v11638_v27  ;;  %v3002_v37 = vsel %vm430_vm4, %v2982_v45, %v7990_v7  ;;  %v4269_v48 = vpop.permute.xlu1 %4268  ;;  %v4836_v24 = vsel %vm430_vm4, %v4818_v14, %v4355_v55  ;;  %v4499_v7 = vrot.slane %v13605_v23, 4  ;;  %v13606_v45 = vld [vmem:[#allocation10_spill] sm:$0xff] }
 0x941   :  { %7460 = vmatpush1.bf16.msra.mxu1 %v11056_v11  ;;  %v3022_v22 = vsel %vm439_vm5, %v3002_v37, %v7995_v35  ;;  %v5042_v38 = vrot.slane %v4836_v24, 2  ;;  %v4819_v12 = vsel %vm179_vm3, %v13605_v23, %v4269_v48  ;;  %v13607_v37 = vld [vmem:[#allocation76_spill] sm:$0xff] }
 0x942   :  { %7461 = vmatprep.subr.bf16.mxu1 %v13396_v46  ;;  %v11650_v57 = vrot.slane %v3022_v22, 2  ;;  %v13300_v48 = vrot.slane %v13607_v37, 4 }
 0x943   :  { %v11652_v17 = vpop.permute.xlu0 %7997  ;;  %v11655_v58 = vsel %vm2699_vm6, %v5036_v1, %v5042_v38 }
 0x944   :  { %13604 = vst [vmem:[#allocation29_spill] sm:$0xff] %v11655_v58  ;;  %v4357_v61 = vpop.permute.xlu1 %4356  ;;  %v13298_v6 = vunpack.i.h.bf16 %v11652_v17  ;;  %v7999_v11 = vunpack.i.l.bf16 %v11652_v17  ;;  %v11664_v26 = vsel %vm2699_vm6, %v11586_v19, %v11650_v57  ;;  %v4502_v51 = vsel %vm2543_vm10, %v4499_v7, %v13300_v48 }
 0x945   :  { %v11668_v35 = vsel %vm430_vm4, %v4819_v12, %v4357_v61  ;;  %3461 = vmatprep.mubr.f32.mxu0 %v11664_v26 }
 0x946   :  { %v13299_v1 = vrot.slane %v11668_v35, 2  ;;  %v2962_v14 = vsel %vm439_vm5, %v13606_v45, %v13298_v6  ;;  %v4854_v55 = vsel %vm439_vm5, %v4836_v24, %v7999_v11 }
 0x947   :  { %v11678_v22 = vrot.slane %v2962_v14, 2  ;;  %v8008_v62 = vpop.permute.xlu0 %8007  ;;  %v5020_v23 = vrot.slane %v4854_v55, 2 }
 0x948   :  { %v8018_v12 = vpop.permute.xlu1 %8017  ;;  %v11683_v61 = vsel %vm2699_vm6, %v5042_v38, %v13299_v1  ;;  %v8009_v18 = vunpack.i.l.bf16 %v8008_v62  ;;  %v8010_v11 = vunpack.i.h.bf16 %v8008_v62  ;;  %v13610_v38 = vrot.slane %v13596_v21, 4 }
 0x949   :  { %13608 = vst [vmem:[#allocation78_spill] sm:$0xff] %v11683_v61  ;;  %v8019_v58 = vunpack.i.l.bf16 %v8018_v12  ;;  %v11688_v45 = vsel %vm2699_vm6, %v11621_v60, %v11678_v22  ;;  %v11691_v24 = vsel %vm2699_vm6, %v5014_v8, %v5020_v23  ;;  %v8020_v5 = vunpack.i.h.bf16 %v8018_v12  ;;  %v13621_v60 = vld [vmem:[#allocation9_spill] sm:$0xff] }
 0x94a   :  { %13609 = vst [vmem:[#allocation81_spill] sm:$0xff] %v11691_v24  ;;  %3462 = vmatmul.mubr.f32.gmra.mrb[78].mxu0 %v11688_v45  ;;  %5269 = vmatmul.mubr.f32.gmra.mrb[68].mxu1 %v11691_v24  ;;  %v4500_v14 = vsel %vm2543_vm10, %v13610_v38, %v4499_v7  ;;  %v13611_v12 = vrot.slane %v11619_v54, 2 }
 0x94b   :  { %v4874_v55 = vsel %vm179_vm3, %v4502_v51, %v8019_v58  ;;  %v8013_v6 = vpop.permute.xlu0 %8012  ;;  %3466 = vmatprep.mubr.f32.mxu0 %v11650_v57  ;;  %v4873_v8 = vsel %vm179_vm3, %v4500_v14, %v8005_v33 }
 0x94c   :  { %v8023_v1 = vpop.permute.xlu1 %8022  ;;  %v8015_v61 = vunpack.i.h.bf16 %v8013_v6  ;;  %v8014_v56 = vunpack.i.l.bf16 %v8013_v6  ;;  %v4891_v62 = vsel %vm430_vm4, %v4873_v8, %v8009_v18  ;;  %v4892_v2 = vsel %vm430_vm4, %v4874_v55, %v8010_v11 }
 0x94d   :  { %v8024_v48 = vunpack.i.l.bf16 %v8023_v1 }
 0x94e   :  { %v4855_v21 = vsel %vm439_vm5, %v11668_v35, %v8015_v61  ;;  %v4909_v7 = vsel %vm439_vm5, %v4891_v62, %v8014_v56  ;;  %3467 = vmatmul.mubr.f32.gmra.mrb[80].mxu0 %v11678_v22  ;;  %v2983_v56 = vsel %vm179_vm3, %v13591_v41, %v8020_v5 }
 0x94f   :  { %v11711_v58 = vsel %vm439_vm5, %v4892_v2, %v8024_v48  ;;  %v4271_v33 = vpop.permute.xlu0 %4270  ;;  %v5028_v51 = vrot.slane %v4909_v7, 2  ;;  %v5026_v38 = vrot.slane %v4855_v21, 2  ;;  %v8025_v2 = vunpack.i.h.bf16 %v8023_v1 }
 0x950   :  { %v8033_v6 = vpop.permute.xlu1 %8032  ;;  %v13301_v18 = vrot.slane %v11711_v58, 2  ;;  %v4820_v55 = vsel %vm179_vm3, %v13607_v37, %v4271_v33 }
 0x951   :  { %v8034_v14 = vunpack.i.l.bf16 %v8033_v6  ;;  %v11717_v11 = vsel %vm2699_vm6, %v13611_v12, %v5028_v51  ;;  %v11720_v61 = vsel %vm2699_vm6, %v5020_v23, %v5026_v38 }
 0x952   :  { %13612 = vst [vmem:[#allocation75_spill] sm:$0xff] %v11717_v11  ;;  %13613 = vst [vmem:[#allocation28_spill] sm:$0xff] %v11720_v61  ;;  %5273 = vmatprep.mubr.f32.mxu1 %v11717_v11  ;;  %v11732_v54 = vsel %vm2699_vm6, %v5028_v51, %v13301_v18 }
 0x953   :  { %v3003_v48 = vsel %vm430_vm4, %v2983_v56, %v8034_v14  ;;  %v4359_v8 = vpop.permute.xlu0 %4358  ;;  %5274 = vmatmul.mubr.f32.gmra.mrb[70].mxu1 %v11720_v61  ;;  %13614 = vst [vmem:[#allocation16_spill] sm:$0xff] %v11732_v54  ;;  %v13616_v14 = vld [vmem:[#allocation17_spill] sm:$0xff] }
 0x954   :  { %v11734_v23 = vpop.permute.xlu1 %8037  ;;  %v4838_v5 = vsel %vm430_vm4, %v4820_v55, %v4359_v8  ;;  %5278 = vmatprep.mubr.f32.mxu1 %v11732_v54  ;;  %v3023_v1 = vsel %vm439_vm5, %v3003_v48, %v8025_v2  ;;  %v13617_v55 = vrot.slane %v11668_v35, 2  ;;  %v13619_v48 = vunpack.i.h.bf16 %v11652_v17  ;;  %v13620_v8 = vld [vmem:[#allocation11_spill] sm:$0xff] }
 0x955   :  { %v5054_v62 = vrot.slane %v4838_v5, 2  ;;  %v11739_v21 = vrot.slane %v3023_v1, 2  ;;  %v8039_v52 = vunpack.i.l.bf16 %v11734_v23  ;;  %v13623_v35 = vld [vmem:[#allocation31_spill] sm:$0xff]  ;;  %v13626_v17 = vrot.slane %v13616_v14, 4 }
 0x956   :  { %v3028_v1 = vsel %vm439_vm5, %v13620_v8, %v13619_v48  ;;  %v13624_v61 = vunpack.i.l.bf16 %v13623_v35  ;;  %v13627_v48 = vrot.slane %v13607_v37, 4  ;;  %v13629_v35 = vld [vmem:[#allocation32_spill] sm:$0xff] }
 0x957   :  { %13615 = vst [vmem:[#allocation10_spill] sm:$0xff] %v11739_v21  ;;  %v8028_v7 = vpop.permute.xlu0 %8027  ;;  %v11744_v33 = vsel %vm2699_vm6, %v11650_v57, %v11739_v21  ;;  %v11751_v2 = vsel %vm2699_vm6, %v13617_v55, %v5054_v62  ;;  %v13625_v55 = vld [vmem:[#allocation22_spill] sm:$0xff] }
 0x958   :  { %v4361_v12 = vpop.permute.xlu1 %4360  ;;  %v8030_v56 = vunpack.i.h.bf16 %v8028_v7  ;;  %v8029_v18 = vunpack.i.l.bf16 %v8028_v7  ;;  %3471 = vmatprep.mubr.f32.mxu0 %v11744_v33  ;;  %13618 = vst [vmem:[#allocation76_spill] sm:$0xff] %v11751_v2  ;;  %v3029_v2 = vsel %vm439_vm5, %v13625_v55, %v13624_v61  ;;  %v4504_v8 = vsel %vm2543_vm10, %v13627_v48, %v13626_v17 }
 0x959   :  { %v11800_v55 = vrot.slane %v3029_v2, 2  ;;  %v8035_v17 = vunpack.i.h.bf16 %v8033_v6 }
 0x95a   :  { %v2963_v51 = vsel %vm439_vm5, %v13621_v60, %v8030_v56  ;;  %v4856_v19 = vsel %vm439_vm5, %v4838_v5, %v8029_v18  ;;  %v1916_v18 = vld [vmem:[%s13129_s10 + $0x200] sm:$0xff]  ;;  %v11780_v5 = vrot.slane %v3028_v1, 2  ;;  %v13630_v1 = vrot.slane %v13629_v35, 2 }
 0x95b   :  { %v11761_v7 = vrot.slane %v2963_v51, 2  ;;  %v4273_v21 = vpop.permute.xlu0 %4272  ;;  %v5032_v54 = vrot.slane %v4856_v19, 2  ;;  %v1917_v19 = vld [vmem:[%s13129_s10 + $0x208] sm:$0xff] }
 0x95c   :  { %v4275_v11 = vpop.permute.xlu1 %4274  ;;  %v4821_v60 = vsel %vm179_vm3, %v13616_v14, %v4273_v21  ;;  %v4875_v21 = vsel %vm179_vm3, %v4504_v8, %v8039_v52  ;;  %v3104_v6 = vsel %vm2699_vm6, %v11780_v5, %v11800_v55 }
 0x95d   :  { %13622 = vst [vmem:[#allocation17_spill] sm:$0xff] %v11761_v7  ;;  %v4839_v61 = vsel %vm430_vm4, %v4821_v60, %v4361_v12  ;;  %v11786_v37 = vsel %vm2699_vm6, %v11678_v22, %v11761_v7  ;;  %v11789_v51 = vsel %vm2699_vm6, %v5026_v38, %v5032_v54  ;;  %v11798_v12 = vsel %vm2699_vm6, %v11650_v57, %v13630_v1 }
 0x95e   :  { %13628 = vst [vmem:[#allocation11_spill] sm:$0xff] %v11789_v51  ;;  %v5060_v56 = vrot.slane %v4839_v61, 2  ;;  %3472 = vmatmul.mubr.f32.gmra.mrb[82].mxu0 %v11786_v37  ;;  %5279 = vmatmul.mubr.f32.gmra.mrb[72].mxu1 %v11789_v51  ;;  %v11803_v38 = vpack.c.bf16 %v1917_v19, %v1916_v18  ;;  %v4822_v52 = vsel %vm179_vm3, %v10455_v29, %v4275_v11  ;;  %v1918_v18 = vld [vmem:[%s13129_s10 + $0x210] sm:$0xff]  ;;  %v1919_v11 = vld [vmem:[%s13129_s10 + $0x218] sm:$0xff] }
 0x95f   :  { %v8043_v48 = vpop.permute.xlu0 %8042  ;;  %3541 = vmatprep.mubr.f32.mxu0 %v11798_v12  ;;  %v4893_v2 = vsel %vm430_vm4, %v4875_v21, %v8035_v17  ;;  %v13632_v17 = vld [vmem:[#allocation34_spill] sm:$0xff] }
 0x960   :  { %v4363_v8 = vpop.permute.xlu1 %4362  ;;  %v8045_v60 = vunpack.i.h.bf16 %v8043_v48  ;;  %v8044_v7 = vunpack.i.l.bf16 %v8043_v48  ;;  %v11808_v35 = vsel %vm2699_vm6, %v5054_v62, %v5060_v56 }
 0x961   :  { %13631 = vst [vmem:[#allocation9_spill] sm:$0xff] %v11808_v35  ;;  %v11811_v1 = vsel %vm430_vm4, %v4822_v52, %v4363_v8  ;;  %v4505_v35 = vrot.slane %v10455_v29, 4  ;;  %v13635_v29 = vrot.slane %v11711_v58, 2  ;;  %v13638_v58 = vld [vmem:[#allocation35_spill] sm:$0xff] }
 0x962   :  { %v13318_v62 = vrot.slane %v11811_v1, 2  ;;  %v11825_v19 = vsel %vm439_vm5, %v4839_v61, %v8045_v60  ;;  %v4911_v48 = vsel %vm439_vm5, %v4893_v2, %v8044_v7  ;;  %3542 = vmatmul.mubr.f32.vlgmr.msra.gmra.mrb[44].mxu0 %v3104_v6  ;;  %v11835_v61 = vpack.c.bf16 %v1919_v11, %v1918_v18  ;;  %v13634_v2 = vld [vmem:[#allocation33_spill] sm:$0xff] }
 0x963   :  { %v8048_v21 = vpop.permute.xlu0 %8047  ;;  %3546 = vmatprep.mubr.f32.mxu0 %v13632_v17  ;;  %v5040_v52 = vrot.slane %v4911_v48, 2  ;;  %v5038_v8 = vrot.slane %v11825_v19, 2  ;;  %7279 = vmatpush1.bf16.msra.mxu0 %v11803_v38  ;;  %v8040_v60 = vunpack.i.h.bf16 %v11734_v23  ;;  %v11846_v6 = vsel %vm2699_vm6, %v11800_v55, %v13634_v2  ;;  %v1921_v23 = vld [vmem:[%s13129_s10 + $0x228] sm:$0xff] }
 0x964   :  { %v11832_v51 = vpop.permute.xlu1 %8057  ;;  %v8050_v24 = vunpack.i.h.bf16 %v8048_v21  ;;  %7280 = vmatprep.subr.bf16.mxu0 %v13396_v46  ;;  %v11840_v7 = vsel %vm2699_vm6, %v5060_v56, %v13318_v62  ;;  %v1920_v56 = vld [vmem:[%s13129_s10 + $0x220] sm:$0xff]  ;;  %v8049_v27 = vunpack.i.l.bf16 %v8048_v21  ;;  %v13642_v21 = vld [vmem:[#allocation37_spill] sm:$0xff] }
 0x965   :  { %13633 = vst [vmem:[#allocation31_spill] sm:$0xff] %v11840_v7  ;;  %v11851_v19 = vsel %vm2699_vm6, %v13635_v29, %v5040_v52  ;;  %v11854_v18 = vsel %vm2699_vm6, %v5032_v54, %v5038_v8  ;;  %v13639_v54 = vrot.slane %v13616_v14, 4  ;;  %v11874_v7 = vpack.c.bf16 %v1921_v23, %v1920_v56  ;;  %v1922_v14 = vld [vmem:[%s13129_s10 + $0x230] sm:$0xff] }
 0x966   :  { %13636 = vst [vmem:[#allocation22_spill] sm:$0xff] %v11851_v19  ;;  %13637 = vst [vmem:[#allocation32_spill] sm:$0xff] %v11854_v18  ;;  %3547 = vmatmul.mubr.f32.gmra.mrb[46].mxu0 %v11846_v6  ;;  %5283 = vmatprep.mubr.f32.mxu1 %v11851_v19  ;;  %v11871_v2 = vsel %vm439_vm5, %v11811_v1, %v8050_v24  ;;  %v1923_v24 = vld [vmem:[%s13129_s10 + $0x238] sm:$0xff]  ;;  %v8059_v56 = vunpack.i.l.bf16 %v11832_v51 }
 0x967   :  { %v8053_v11 = vpop.permute.xlu0 %8052  ;;  %3551 = vmatprep.mubr.f32.mxu0 %v13638_v58  ;;  %5284 = vmatmul.mubr.f32.gmra.mrb[74].mxu1 %v11854_v18  ;;  %v4506_v48 = vsel %vm2543_vm10, %v13639_v54, %v4505_v35  ;;  %v13640_v54 = vld [vmem:[#allocation77_spill] sm:$0xff]  ;;  %v11894_v18 = vpack.c.bf16 %v1923_v24, %v1922_v14  ;;  %v13644_v14 = vld [vmem:[#allocation38_spill] sm:$0xff]  ;;  %v13646_v58 = vld [vmem:[#allocation39_spill] sm:$0xff] }
 0x968   :  { %v4365_v29 = vpop.permute.xlu1 %4364  ;;  %v8054_v62 = vunpack.i.l.bf16 %v8053_v11  ;;  %7282 = vmatpush1.bf16.msra.mxu0 %v11835_v61  ;;  %v4876_v19 = vsel %vm179_vm3, %v4506_v48, %v8040_v60  ;;  %v5044_v48 = vrot.slane %v11871_v2, 2  ;;  %v13643_v2 = vrot.slane %v13640_v54, 4 }
 0x969   :  { %7283 = vmatprep.subr.bf16.mxu0 %v13396_v46 }
 0x96a   :  { %v4894_v34 = vsel %vm430_vm4, %v4876_v19, %v8054_v62  ;;  %3552 = vmatmul.mubr.f32.gmra.mrb[48].mxu0 %v13641_v59  ;;  %v1924_v62 = vld [vmem:[%s13129_s10 + $0x240] sm:$0xff]  ;;  %v1925_v19 = vld [vmem:[%s13129_s10 + $0x248] sm:$0xff] }
 0x96b   :  { %v4277_v60 = vpop.permute.xlu0 %4276  ;;  %3556 = vmatprep.mubr.f32.mxu0 %v13642_v21  ;;  %v4912_v23 = vsel %vm439_vm5, %v4894_v34, %v8049_v27  ;;  %v8055_v34 = vunpack.i.h.bf16 %v8053_v11  ;;  %v11917_v11 = vpack.c.bf16 %v1925_v19, %v1924_v62 }
 0x96c   :  { %v4279_v36 = vpop.permute.xlu1 %4278  ;;  %v4823_v30 = vsel %vm179_vm3, %v13640_v54, %v4277_v60  ;;  %v5046_v15 = vrot.slane %v4912_v23, 2  ;;  %7285 = vmatpush1.bf16.msra.mxu0 %v11874_v7  ;;  %v4508_v60 = vsel %vm2543_vm10, %v4505_v35, %v13643_v2 }
 0x96d   :  { %v4841_v27 = vsel %vm430_vm4, %v4823_v30, %v4365_v29  ;;  %7286 = vmatprep.subr.bf16.mxu0 %v13396_v46  ;;  %v4877_v21 = vsel %vm179_vm3, %v4508_v60, %v8059_v56  ;;  %v11915_v30 = vsel %vm2699_vm6, %v5038_v8, %v5044_v48  ;;  %v4824_v35 = vsel %vm179_vm3, %v10467_v4, %v4279_v36  ;;  %v1926_v36 = vld [vmem:[%s13129_s10 + $0x250] sm:$0xff] }
 0x96e   :  { %v5072_v23 = vrot.slane %v4841_v27, 2  ;;  %3557 = vmatmul.mubr.f32.gmra.mrb[50].mxu0 %v13644_v14  ;;  %v11909_v24 = vsel %vm2699_vm6, %v5040_v52, %v5046_v15  ;;  %13647 = vst [vmem:[#allocation33_spill] sm:$0xff] %v11915_v30  ;;  %v13648_v52 = vrot.slane %v11811_v1, 2  ;;  %v4895_v8 = vsel %vm430_vm4, %v4877_v21, %v8055_v34  ;;  %v13650_v34 = vld [vmem:[#allocation40_spill] sm:$0xff] }
 0x96f   :  { %13645 = vst [vmem:[#allocation34_spill] sm:$0xff] %v11909_v24  ;;  %v8063_v59 = vpop.permute.xlu0 %8062  ;;  %3561 = vmatprep.mubr.f32.mxu0 %v13646_v58  ;;  %5288 = vmatprep.mubr.f32.mxu1 %v11909_v24 }
 0x970   :  { %v4367_v29 = vpop.permute.xlu1 %4366  ;;  %v8065_v2 = vunpack.i.h.bf16 %v8063_v59  ;;  %v8064_v14 = vunpack.i.l.bf16 %v8063_v59  ;;  %5289 = vmatmul.mubr.f32.gmra.mrb[76].mxu1 %v11915_v30  ;;  %7288 = vmatpush1.bf16.msra.mxu0 %v11894_v18  ;;  %v11926_v56 = vsel %vm2699_vm6, %v13648_v52, %v5072_v23  ;;  %v1927_v59 = vld [vmem:[%s13129_s10 + $0x258] sm:$0xff] }
 0x971   :  { %13649 = vst [vmem:[#allocation77_spill] sm:$0xff] %v11926_v56  ;;  %v11930_v62 = vsel %vm430_vm4, %v4824_v35, %v4367_v29  ;;  %7289 = vmatprep.subr.bf16.mxu0 %v13396_v46  ;;  %v13651_v35 = vld [vmem:[#allocation41_spill] sm:$0xff]  ;;  %v4509_v56 = vrot.slane %v10467_v4, 4  ;;  %v11951_v1 = vpack.c.bf16 %v1927_v59, %v1926_v36  ;;  %v1928_v4 = vld [vmem:[%s13129_s10 + $0x260] sm:$0xff]  ;;  %v1929_v36 = vld [vmem:[%s13129_s10 + $0x268] sm:$0xff] }
 0x972   :  { %v11941_v19 = vsel %vm439_vm5, %v4841_v27, %v8065_v2  ;;  %v4913_v21 = vsel %vm439_vm5, %v4895_v8, %v8064_v14  ;;  %3562 = vmatmul.mubr.f32.gmra.mrb[52].mxu0 %v13650_v34  ;;  %v13653_v27 = vrot.slane %v11930_v62, 2  ;;  %v8060_v2 = vunpack.i.h.bf16 %v11832_v51 }
 0x973   :  { %v8068_v60 = vpop.permute.xlu0 %8067  ;;  %3566 = vmatprep.mubr.f32.mxu0 %v13651_v35  ;;  %v5052_v29 = vrot.slane %v4913_v21, 2  ;;  %v5050_v52 = vrot.slane %v11941_v19, 2  ;;  %13652 = vst [vmem:[#allocation86_spill] sm:$0xff] %v11951_v1 }
 0x974   :  { %v11948_v30 = vpop.permute.xlu1 %4286  ;;  %v8070_v24 = vunpack.i.h.bf16 %v8068_v60  ;;  %7291 = vmatpush1.bf16.msra.mxu0 %v11917_v11  ;;  %v11956_v14 = vsel %vm2699_vm6, %v5072_v23, %v13653_v27  ;;  %v13657_v23 = vld [vmem:[#allocation42_spill] sm:$0xff] }
 0x975   :  { %13654 = vst [vmem:[#allocation87_spill] sm:$0xff] %v11956_v14  ;;  %v11960_v8 = vsel %vm2699_vm6, %v5046_v15, %v5052_v29  ;;  %v11963_v19 = vsel %vm2699_vm6, %v5044_v48, %v5050_v52  ;;  %7292 = vmatprep.subr.bf16.mxu0 %v13396_v46  ;;  %v13658_v15 = vld [vmem:[#allocation43_spill] sm:$0xff]  ;;  %v13659_v48 = vrot.slane %v13640_v54, 4  ;;  %v1930_v54 = vld [vmem:[%s13129_s10 + $0x270] sm:$0xff] }
 0x976   :  { %13655 = vst [vmem:[#allocation88_spill] sm:$0xff] %v11960_v8  ;;  %13656 = vst [vmem:[#allocation89_spill] sm:$0xff] %v11963_v19  ;;  %3567 = vmatmul.mubr.f32.gmra.mrb[54].mxu0 %v13657_v23  ;;  %5293 = vmatprep.mubr.f32.mxu1 %v11960_v8  ;;  %v11981_v21 = vsel %vm439_vm5, %v11930_v62, %v8070_v24  ;;  %v11986_v23 = vpack.c.bf16 %v1929_v36, %v1928_v4  ;;  %v1931_v24 = vld [vmem:[%s13129_s10 + $0x278] sm:$0xff]  ;;  %v13660_v36 = vld [vmem:[#allocation44_spill] sm:$0xff] }
 0x977   :  { %v8073_v51 = vpop.permute.xlu0 %8072  ;;  %3571 = vmatprep.mubr.f32.mxu0 %v13658_v15  ;;  %5294 = vmatmul.mubr.f32.gmra.mrb[78].mxu1 %v11963_v19  ;;  %v4510_v59 = vsel %vm2543_vm10, %v13659_v48, %v4509_v56  ;;  %v8069_v15 = vunpack.i.l.bf16 %v8068_v60  ;;  %v13661_v60 = vld [vmem:[#allocation45_spill] sm:$0xff]  ;;  %v5056_v19 = vrot.slane %v11981_v21, 2  ;;  %v1933_v21 = vld [vmem:[%s13129_s10 + $0x288] sm:$0xff] }
 0x978   :  { %v11983_v27 = vpop.permute.xlu1 %8077  ;;  %v8074_v14 = vunpack.i.l.bf16 %v8073_v51  ;;  %7294 = vmatpush1.bf16.msra.mxu0 %v11951_v1  ;;  %v4878_v8 = vsel %vm179_vm3, %v4510_v59, %v8060_v2  ;;  %v12006_v1 = vpack.c.bf16 %v1931_v24, %v1930_v54 }
 0x979   :  { %7295 = vmatprep.subr.bf16.mxu0 %v13396_v46  ;;  %v8079_v48 = vunpack.i.l.bf16 %v11983_v27 }
 0x97a   :  { %v4896_v4 = vsel %vm430_vm4, %v4878_v8, %v8074_v14  ;;  %3572 = vmatmul.mubr.f32.gmra.mrb[56].mxu0 %v13660_v36  ;;  %13662 = vst [vmem:[#allocation90_spill] sm:$0xff] %v12006_v1  ;;  %v13663_v14 = vrot.slane %v10512_v49, 4  ;;  %v8075_v36 = vunpack.i.h.bf16 %v8073_v51 }
 0x97b   :  { %v4281_v2 = vpop.permute.xlu0 %4280  ;;  %3576 = vmatprep.mubr.f32.mxu0 %v13661_v60  ;;  %v4914_v59 = vsel %vm439_vm5, %v4896_v4, %v8069_v15  ;;  %v1932_v15 = vld [vmem:[%s13129_s10 + $0x280] sm:$0xff] }
 0x97c   :  { %v4369_v35 = vpop.permute.xlu1 %4368  ;;  %v4825_v34 = vsel %vm179_vm3, %v10512_v49, %v4281_v2  ;;  %v5058_v58 = vrot.slane %v4914_v59, 2  ;;  %7297 = vmatpush1.bf16.msra.mxu0 %v11986_v23  ;;  %v4512_v8 = vsel %vm2543_vm10, %v4509_v56, %v13663_v14  ;;  %v13664_v4 = vld [vmem:[#allocation46_spill] sm:$0xff] }
 0x97d   :  { %v4843_v60 = vsel %vm430_vm4, %v4825_v34, %v4369_v35  ;;  %7298 = vmatprep.subr.bf16.mxu0 %v13396_v46  ;;  %v4879_v54 = vsel %vm179_vm3, %v4512_v8, %v8079_v48  ;;  %v13666_v34 = vld [vmem:[#allocation47_spill] sm:$0xff]  ;;  %v12027_v35 = vsel %vm2699_vm6, %v5050_v52, %v5056_v19  ;;  %v12031_v48 = vpack.c.bf16 %v1933_v21, %v1932_v15  ;;  %v1934_v52 = vld [vmem:[%s13129_s10 + $0x290] sm:$0xff] }
 0x97e   :  { %v5084_v24 = vrot.slane %v4843_v60, 2  ;;  %3577 = vmatmul.mubr.f32.gmra.mrb[58].mxu0 %v13664_v4  ;;  %v12022_v56 = vsel %vm2699_vm6, %v5052_v29, %v5058_v58  ;;  %13667 = vst [vmem:[#allocation92_spill] sm:$0xff] %v12027_v35  ;;  %v13669_v29 = vrot.slane %v11930_v62, 2  ;;  %v13671_v62 = vld [vmem:[#allocation48_spill] sm:$0xff] }
 0x97f   :  { %13665 = vst [vmem:[#allocation91_spill] sm:$0xff] %v12022_v56  ;;  %v8083_v51 = vpop.permute.xlu0 %8082  ;;  %3581 = vmatprep.mubr.f32.mxu0 %v13666_v34  ;;  %5298 = vmatprep.mubr.f32.mxu1 %v12022_v56  ;;  %13668 = vst [vmem:[#allocation93_spill] sm:$0xff] %v12031_v48  ;;  %v4897_v34 = vsel %vm430_vm4, %v4879_v54, %v8075_v36  ;;  %v13672_v36 = vld [vmem:[#allocation49_spill] sm:$0xff]  ;;  %v8080_v56 = vunpack.i.h.bf16 %v11983_v27 }
 0x980   :  { %v8085_v59 = vunpack.i.h.bf16 %v8083_v51  ;;  %v8084_v14 = vunpack.i.l.bf16 %v8083_v51  ;;  %5299 = vmatmul.mubr.f32.gmra.mrb[80].mxu1 %v12027_v35  ;;  %7300 = vmatpush1.bf16.msra.mxu0 %v12006_v1  ;;  %v12036_v8 = vsel %vm2699_vm6, %v13669_v29, %v5084_v24  ;;  %v1935_v51 = vld [vmem:[%s13129_s10 + $0x298] sm:$0xff]  ;;  %v4513_v29 = vrot.slane %v10517_v50, 4 }
 0x981   :  { %v4283_v2 = vpop.permute.xlu1 %4282  ;;  %13670 = vst [vmem:[#allocation94_spill] sm:$0xff] %v12036_v8  ;;  %7301 = vmatprep.subr.bf16.mxu0 %v13396_v46 }
 0x982   :  { %v4861_v15 = vsel %vm439_vm5, %v4843_v60, %v8085_v59  ;;  %v4915_v21 = vsel %vm439_vm5, %v4897_v34, %v8084_v14  ;;  %3582 = vmatmul.mubr.f32.gmra.mrb[60].mxu0 %v13671_v62  ;;  %v4826_v4 = vsel %vm179_vm3, %v10517_v50, %v4283_v2  ;;  %v12057_v60 = vpack.c.bf16 %v1935_v51, %v1934_v52  ;;  %v1936_v34 = vld [vmem:[%s13129_s10 + $0x2a0] sm:$0xff]  ;;  %v1937_v59 = vld [vmem:[%s13129_s10 + $0x2a8] sm:$0xff] }
 0x983   :  { %v12050_v8 = vpop.permute.xlu0 %8087  ;;  %3586 = vmatprep.mubr.f32.mxu0 %v13672_v36  ;;  %v5064_v54 = vrot.slane %v4915_v21, 2  ;;  %v5062_v35 = vrot.slane %v4861_v15, 2  ;;  %v13676_v52 = vld [vmem:[#allocation50_spill] sm:$0xff]  ;;  %v13677_v51 = vrot.slane %v10512_v49, 4 }
 0x984   :  { %7303 = vmatpush1.bf16.msra.mxu0 %v12031_v48  ;;  %13673 = vst [vmem:[#allocation95_spill] sm:$0xff] %v12057_v60  ;;  %v8089_v27 = vunpack.i.l.bf16 %v12050_v8 }
 0x985   :  { %v12068_v15 = vsel %vm2699_vm6, %v5058_v58, %v5064_v54  ;;  %v12071_v50 = vsel %vm2699_vm6, %v5056_v19, %v5062_v35  ;;  %7304 = vmatprep.subr.bf16.mxu0 %v13396_v46  ;;  %v4514_v21 = vsel %vm2543_vm10, %v13677_v51, %v4513_v29  ;;  %v12081_v58 = vpack.c.bf16 %v1937_v59, %v1936_v34  ;;  %v1938_v34 = vld [vmem:[%s13129_s10 + $0x2b0] sm:$0xff] }
 0x986   :  { %13674 = vst [vmem:[#allocation96_spill] sm:$0xff] %v12068_v15  ;;  %13675 = vst [vmem:[#allocation97_spill] sm:$0xff] %v12071_v50  ;;  %3587 = vmatmul.mubr.f32.gmra.mrb[62].mxu0 %v13676_v52  ;;  %5303 = vmatprep.mubr.f32.mxu1 %v12068_v15  ;;  %v4880_v19 = vsel %vm179_vm3, %v4514_v21, %v8080_v56  ;;  %v4515_v51 = vrot.slane %v10827_v9, 4  ;;  %v1939_v56 = vld [vmem:[%s13129_s10 + $0x2b8] sm:$0xff] }
 0x987   :  { %v4371_v1 = vpop.permute.xlu1 %4370  ;;  %5304 = vmatmul.mubr.f32.gmra.mrb[82].mxu1 %v12071_v50  ;;  %v4898_v49 = vsel %vm430_vm4, %v4880_v19, %v8089_v27  ;;  %v13681_v19 = vld [vmem:[#allocation82_spill] sm:$0xff] }
 0x988   :  { %v4844_v14 = vsel %vm430_vm4, %v4826_v4, %v4371_v1  ;;  %v8093_v1 = vpop.permute.xlu0 %8092  ;;  %v13678_v4 = vld [vmem:[#allocation51_spill] sm:$0xff]  ;;  %7306 = vmatpush1.bf16.msra.mxu0 %v12057_v60  ;;  %v12104_v60 = vpack.c.bf16 %v1939_v56, %v1938_v34 }
 0x989   :  { %v5088_v2 = vrot.slane %v4844_v14, 2  ;;  %3591 = vmatprep.mubr.f32.mxu0 %v13678_v4  ;;  %v8095_v62 = vunpack.i.h.bf16 %v8093_v1  ;;  %v8094_v48 = vunpack.i.l.bf16 %v8093_v1  ;;  %7307 = vmatprep.subr.bf16.mxu0 %v13396_v46  ;;  %v13680_v1 = vld [vmem:[#allocation52_spill] sm:$0xff] }
 0x98a   :  { %3592 = vmatmul.mubr.f32.gmra.mrb[64].mxu0 %v13680_v1 }
 0x98b   :  { %v8098_v36 = vpop.permute.xlu1 %8097  ;;  %v12086_v15 = vsel %vm2699_vm6, %v5084_v24, %v5088_v2  ;;  %v4862_v21 = vsel %vm439_vm5, %v4844_v14, %v8095_v62  ;;  %v4916_v24 = vsel %vm439_vm5, %v4898_v49, %v8094_v48  ;;  %3596 = vmatprep.mubr.f32.mxu0 %v13681_v19  ;;  %v1940_v62 = vld [vmem:[%s13129_s10 + $0x2c0] sm:$0xff]  ;;  %v1941_v48 = vld [vmem:[%s13129_s10 + $0x2c8] sm:$0xff]  ;;  %v4516_v14 = vsel %vm2543_vm10, %v4513_v29, %v4515_v51 }
 0x98c   :  { %13679 = vst [vmem:[#allocation98_spill] sm:$0xff] %v12086_v15  ;;  %v8099_v59 = vunpack.i.l.bf16 %v8098_v36  ;;  %v4285_v27 = vpop.permute.xlu0 %4284  ;;  %v5070_v15 = vrot.slane %v4916_v24, 2  ;;  %v5068_v50 = vrot.slane %v4862_v21, 2  ;;  %7309 = vmatpush1.bf16.msra.mxu0 %v12081_v58  ;;  %v13684_v24 = vld [vmem:[#allocation79_spill] sm:$0xff]  ;;  %v8090_v29 = vunpack.i.h.bf16 %v12050_v8  ;;  %v1943_v8 = vld [vmem:[%s13129_s10 + $0x2d8] sm:$0xff] }
 0x98d   :  { %v4827_v52 = vsel %vm179_vm3, %v10827_v9, %v4285_v27  ;;  %7310 = vmatprep.subr.bf16.mxu0 %v13396_v46 }
 0x98e   :  { %v12117_v21 = vsel %vm2699_vm6, %v5064_v54, %v5070_v15  ;;  %v12120_v9 = vsel %vm2699_vm6, %v5062_v35, %v5068_v50  ;;  %v4881_v34 = vsel %vm179_vm3, %v4516_v14, %v8099_v59  ;;  %3597 = vmatmul.mubr.f32.gmra.mrb[66].mxu0 %v13684_v24  ;;  %v12130_v54 = vpack.c.bf16 %v1941_v48, %v1940_v62  ;;  %v1942_v59 = vld [vmem:[%s13129_s10 + $0x2d0] sm:$0xff] }
 0x98f   :  { %v4373_v4 = vpop.permute.xlu1 %4372  ;;  %13682 = vst [vmem:[#allocation52_spill] sm:$0xff] %v12117_v21  ;;  %13683 = vst [vmem:[#allocation99_spill] sm:$0xff] %v12120_v9  ;;  %5308 = vmatprep.mubr.f32.mxu1 %v12117_v21  ;;  %v8100_v35 = vunpack.i.h.bf16 %v8098_v36  ;;  %v4899_v62 = vsel %vm430_vm4, %v4881_v34, %v8090_v29  ;;  %v4517_v21 = vsel %vm2543_vm10, %v4515_v51, %v13591_v41  ;;  %v4828_v34 = vsel %vm179_vm3, 0.0, %v11948_v30  ;;  %v1944_v30 = vld [vmem:[%s13129_s10 + $0x2e0] sm:$0xff] }
 0x990   :  { %v12114_v49 = vsel %vm430_vm4, %v4827_v52, %v4373_v4  ;;  %v13685_v4 = vld [vmem:[#allocation25_spill] sm:$0xff]  ;;  %5309 = vmatmul.mubr.f32.gmra.mrb[84].mxu1 %v12120_v9  ;;  %7312 = vmatpush1.bf16.msra.mxu0 %v12104_v60  ;;  %v13687_v9 = vld [vmem:[#allocation3_spill] sm:$0xff] }
 0x991   :  { %v13359_v56 = vrot.slane %v12114_v49, 2  ;;  %v8103_v52 = vpop.permute.xlu0 %8102  ;;  %3601 = vmatprep.mubr.f32.mxu0 %v13685_v4  ;;  %7313 = vmatprep.subr.bf16.mxu0 %v13396_v46  ;;  %v4882_v29 = vsel %vm179_vm3, %v4517_v21, %v8100_v35  ;;  %v1945_v21 = vld [vmem:[%s13129_s10 + $0x2e8] sm:$0xff] }
 0x992   :  { %v8105_v27 = vunpack.i.h.bf16 %v8103_v52  ;;  %v8104_v19 = vunpack.i.l.bf16 %v8103_v52  ;;  %3602 = vmatmul.mubr.f32.gmra.mrb[68].mxu0 %v13687_v9 }
 0x993   :  { %v12142_v14 = vsel %vm2699_vm6, %v5088_v2, %v13359_v56  ;;  %v8113_v36 = vpop.permute.xlu1 %8112  ;;  %3606 = vmatprep.mubr.f32.mxu0 %v11226_v32 }
 0x994   :  { %13686 = vst [vmem:[#allocation100_spill] sm:$0xff] %v12142_v14  ;;  %v4863_v48 = vsel %vm439_vm5, %v12114_v49, %v8105_v27  ;;  %v4917_v52 = vsel %vm439_vm5, %v4899_v62, %v8104_v19  ;;  %v12153_v14 = vpack.c.bf16 %v1943_v8, %v1942_v59  ;;  %7315 = vmatpush1.bf16.msra.mxu0 %v12130_v54  ;;  %v8115_v19 = vunpack.i.h.bf16 %v8113_v36 }
 0x995   :  { %v8108_v4 = vpop.permute.xlu0 %8107  ;;  %v5076_v2 = vrot.slane %v4917_v52, 2  ;;  %v5074_v56 = vrot.slane %v4863_v48, 2  ;;  %v8114_v62 = vunpack.i.l.bf16 %v8113_v36  ;;  %7316 = vmatprep.subr.bf16.mxu0 %v13396_v46  ;;  %v13688_v36 = vld [vmem:[#allocation71_spill] sm:$0xff] }
 0x996   :  { %v8110_v27 = vunpack.i.h.bf16 %v8108_v4  ;;  %v8109_v24 = vunpack.i.l.bf16 %v8108_v4  ;;  %3607 = vmatmul.mubr.f32.gmra.mrb[70].mxu0 %v11261_v16 }
 0x997   :  { %v12160_v41 = vsel %vm2699_vm6, %v5070_v15, %v5076_v2  ;;  %v12163_v51 = vsel %vm2699_vm6, %v5068_v50, %v5074_v56  ;;  %3611 = vmatprep.mubr.f32.mxu0 %v11372_v42  ;;  %v4809_v8 = vpop.permute.xlu1 %4808 }
 0x998   :  { %v4846_v4 = vsel %vm430_vm4, %v4828_v34, %v8110_v27  ;;  %v4900_v35 = vsel %vm430_vm4, %v4882_v29, %v8109_v24  ;;  %5313 = vmatprep.mubr.f32.mxu1 %v12160_v41  ;;  %7318 = vmatpush1.bf16.msra.mxu0 %v12153_v14  ;;  %v12187_v29 = vpack.c.bf16 %v1945_v21, %v1944_v30  ;;  %v1946_v27 = vld [vmem:[%s13129_s10 + $0x2f0] sm:$0xff] }
 0x999   :  { %v4805_v15 = vpop.permute.xlu0 %4804  ;;  %5314 = vmatmul.mubr.f32.gmra.mrb[86].mxu1 %v12163_v51  ;;  %v4918_v50 = vsel %vm439_vm5, %v4900_v35, %v8114_v62  ;;  %v4864_v59 = vsel %vm439_vm5, %v4846_v4, %v8115_v19  ;;  %v1947_v19 = vld [vmem:[%s13129_s10 + $0x2f8] sm:$0xff]  ;;  %7319 = vmatprep.subr.bf16.mxu0 %v13396_v46 }
 0x99a   :  { %v4919_v48 = vsel %vm179_vm3, %v13688_v36, %v4805_v15  ;;  %v12182_v52 = vrot.slane %v4918_v50, 2  ;;  %v12184_v24 = vrot.slane %v4864_v59, 2  ;;  %3612 = vmatmul.mubr.f32.gmra.mrb[72].mxu0 %v11395_v10  ;;  %v12211_v15 = vpack.c.bf16 %v1947_v19, %v1946_v27 }
 0x99b   :  { %v12196_v62 = vsel %vm430_vm4, %v4919_v48, %v4809_v8  ;;  %3616 = vmatprep.mubr.f32.mxu0 %v11474_v40  ;;  %v13693_v48 = vld [vmem:[#allocation5_spill] sm:$0xff]  ;;  %v13694_v27 = vunpack.i.h.bf16 %v11012_v3 }
 0x99c   :  { %13689 = vst [vmem:[#allocation3_spill] sm:$0xff] %v12182_v52  ;;  %13690 = vst [vmem:[#allocation71_spill] sm:$0xff] %v12184_v24  ;;  %v13360_v4 = vrot.slane %v12196_v62, 2  ;;  %v12203_v30 = vsel %vm2699_vm6, %v5076_v2, %v12182_v52  ;;  %v12207_v21 = vsel %vm2699_vm6, %v5074_v56, %v12184_v24  ;;  %v12218_v2 = vsel %vm2699_vm6, %v12182_v52, %v11650_v57  ;;  %v13747_v52 = vld [vmem:[#allocation97_spill] sm:$0xff] }
 0x99d   :  { %5318 = vmatprep.mubr.f32.mxu1 %v12203_v30  ;;  %7321 = vmatpush1.bf16.msra.mxu0 %v12187_v29  ;;  %v13691_v56 = vrot.slane %v11102_v43, 2  ;;  %v13692_v43 = vrot.slane %v12114_v49, 2  ;;  %v4921_v49 = vsel %vm439_vm5, %v12196_v62, %v13694_v27  ;;  %v13709_v27 = vld [vmem:[#allocation86_spill] sm:$0xff] }
 0x99e   :  { %v4923_v35 = vpop.permute.xlu0 %4922  ;;  %5319 = vmatmul.mubr.f32.gmra.mrb[88].mxu1 %v12207_v21  ;;  %7322 = vmatprep.subr.bf16.mxu0 %v13396_v46  ;;  %v12255_v19 = vrot.slane %v4921_v49, 2  ;;  %v13710_v49 = vld [vmem:[#allocation38_spill] sm:$0xff] }
 0x99f   :  { %v4925_v50 = vsel %vm430_vm4, %v4828_v34, %v4923_v35  ;;  %v12226_v59 = vsel %vm2699_vm6, %v13360_v4, %v13691_v56  ;;  %5323 = vmatprep.mubr.f32.mxu1 %v12218_v2  ;;  %3617 = vmatmul.mubr.f32.gmra.mrb[74].mxu0 %v11498_v44  ;;  %v12235_v34 = vsel %vm2699_vm6, %v12184_v24, %v11678_v22  ;;  %v13695_v35 = vld [vmem:[#allocation83_spill] sm:$0xff]  ;;  %v13736_v4 = vld [vmem:[#allocation33_spill] sm:$0xff] }
 0x9a0   :  { %v5094_v8 = vrot.slane %v4925_v50, 2  ;;  %3621 = vmatprep.mubr.f32.mxu0 %v11556_v31  ;;  %v13696_v50 = vrot.slane %v13695_v35, 2  ;;  %v4988_v56 = vsel %vm2699_vm6, %v11780_v5, %v12255_v19  ;;  %v13712_v35 = vld [vmem:[#allocation80_spill] sm:$0xff]  ;;  %v13740_v24 = vld [vmem:[#allocation89_spill] sm:$0xff] }
 0x9a1   :  { %7324 = vmatpush1.bf16.msra.mxu0 %v12211_v15 }
 0x9a2   :  { %v12240_v36 = vsel %vm2699_vm6, %v13692_v43, %v5094_v8  ;;  %5324 = vmatmul.mubr.f32.gmra.mrb[90].mxu1 %v12235_v34  ;;  %7510 = vmatprep.subr.bf16.mxu0 %v13693_v48  ;;  %v12263_v3 = vsel %vm2699_vm6, %v11650_v57, %v13696_v50  ;;  %v12286_v8 = vsel %vm2699_vm6, %v11780_v5, %v11678_v22  ;;  %v13707_v43 = vld [vmem:[#allocation13_spill] sm:$0xff]  ;;  %v13713_v50 = vld [vmem:[#allocation15_spill] sm:$0xff] }
 0x9a3   :  { %5328 = vmatprep.mubr.f32.mxu1 %v11650_v57  ;;  %3622 = vmatmul.mubr.f32.gmra.mrb[76].mxu0 %v11568_v53  ;;  %v3118_v5 = vsel %vm2699_vm6, %v11678_v22, %v11800_v55  ;;  %v13700_v55 = vld [vmem:[#allocation35_spill] sm:$0xff] }
 0x9a4   :  { %3626 = vmatprep.mubr.f32.mxu0 %v11593_v39 }
 0x9a6   :  { %5329 = vmatmul.mubr.f32.gmra.mrb[92].mxu1 %v11678_v22 }
 0x9a7   :  { %5333 = vmatprep.mubr.f32.mxu1 %v11744_v33  ;;  %3627 = vmatmul.mubr.f32.gmra.mrb[78].mxu0 %v11627_v47 }
 0x9a8   :  { %3631 = vmatprep.mubr.f32.mxu0 %v11664_v26  ;;  %v13697_v26 = vld [vmem:[#allocation84_spill] sm:$0xff] }
 0x9aa   :  { %5334 = vmatmul.mubr.f32.gmra.mrb[94].mxu1 %v11786_v37 }
 0x9ab   :  { %5403 = vmatprep.mubr.f32.mxu1 %v12263_v3  ;;  %3632 = vmatmul.mubr.f32.gmra.mrb[80].mxu0 %v11688_v45  ;;  %v12279_v45 = vsel %vm2699_vm6, %v12255_v19, %v11140_v25  ;;  %v13698_v25 = vld [vmem:[#allocation6_spill] sm:$0xff] }
 0x9ac   :  { %3636 = vmatprep.mubr.f32.mxu0 %v11744_v33 }
 0x9ae   :  { %5404 = vmatmul.mubr.f32.vlgmr.msra.gmra.mrb[56].mxu1 %v4988_v56  ;;  %v13714_v56 = vld [vmem:[#allocation30_spill] sm:$0xff] }
 0x9af   :  { %5408 = vmatprep.mubr.f32.mxu1 %v13697_v26  ;;  %7463 = vmatpush1.bf16.msra.mxu1 %v11803_v38  ;;  %v13701_v38 = vld [vmem:[#allocation4_spill] sm:$0xff] }
 0x9b0   :  { %3637 = vmatmul.mubr.f32.gmra.mrb[82].mxu0 %v11786_v37  ;;  %7464 = vmatprep.subr.bf16.mxu1 %v13396_v46 }
 0x9b1   :  { %3706 = vmatprep.mubr.f32.mxu0 %v11650_v57 }
 0x9b2   :  { %5409 = vmatmul.mubr.f32.gmra.mrb[58].mxu1 %v12279_v45 }
 0x9b3   :  { %5413 = vmatprep.mubr.f32.mxu1 %v11231_v28  ;;  %7466 = vmatpush1.bf16.msra.mxu1 %v11835_v61  ;;  %v13703_v61 = vld [vmem:[#allocation73_spill] sm:$0xff] }
 0x9b4   :  { %3707 = vmatmul.mubr.f32.vlgmr.msra.gmra.mrb[44].mxu0 %v12286_v8  ;;  %7467 = vmatprep.subr.bf16.mxu1 %v13396_v46 }
 0x9b5   :  { %3711 = vmatprep.mubr.f32.mxu0 %v11798_v12  ;;  %7512 = vmatpush3.bf16.msra.mxu0 %v13693_v48  ;;  %v13699_v12 = vld [vmem:[#allocation7_spill] sm:$0xff] }
 0x9b6   :  { %5414 = vmatmul.mubr.f32.gmra.mrb[60].mxu1 %v11267_v13  ;;  %7514 = vmatprep.subr.bf16.mxu0 %v13698_v25  ;;  %v13708_v48 = vld [vmem:[#allocation19_spill] sm:$0xff] }
 0x9b7   :  { %5418 = vmatprep.mubr.f32.mxu1 %v11282_v20  ;;  %7469 = vmatpush1.bf16.msra.mxu1 %v11874_v7  ;;  %v13704_v7 = vld [vmem:[#allocation36_spill] sm:$0xff] }
 0x9b8   :  { %3712 = vmatmul.mubr.f32.gmra.mrb[46].mxu0 %v3118_v5  ;;  %7470 = vmatprep.subr.bf16.mxu1 %v13396_v46  ;;  %v13716_v5 = vld [vmem:[#allocation41_spill] sm:$0xff] }
 0x9b9   :  { %3716 = vmatprep.mubr.f32.mxu0 %v13632_v17  ;;  %7516 = vmatpush3.bf16.msra.mxu0 %v13698_v25  ;;  %v13702_v17 = vld [vmem:[#allocation8_spill] sm:$0xff] }
 0x9ba   :  { %5419 = vmatmul.mubr.f32.gmra.mrb[62].mxu1 %v11410_v0  ;;  %7518 = vmatprep.subr.bf16.mxu0 %v13699_v12  ;;  %v13715_v25 = vld [vmem:[#allocation40_spill] sm:$0xff] }
 0x9bb   :  { %5423 = vmatprep.mubr.f32.mxu1 %v11479_v63  ;;  %7472 = vmatpush1.bf16.msra.mxu1 %v11894_v18  ;;  %v13705_v18 = vld [vmem:[#allocation37_spill] sm:$0xff] }
 0x9bc   :  { %3717 = vmatmul.mubr.f32.gmra.mrb[48].mxu0 %v11846_v6  ;;  %7473 = vmatprep.subr.bf16.mxu1 %v13396_v46  ;;  %v13706_v6 = vld [vmem:[#allocation72_spill] sm:$0xff] }
 0x9bd   :  { %3721 = vmatprep.mubr.f32.mxu0 %v13700_v55  ;;  %7520 = vmatpush3.bf16.msra.mxu0 %v13699_v12  ;;  %v13717_v12 = vld [vmem:[#allocation81_spill] sm:$0xff]  ;;  %v13718_v55 = vld [vmem:[#allocation75_spill] sm:$0xff] }
 0x9be   :  { %5424 = vmatmul.mubr.f32.gmra.mrb[64].mxu1 %v13701_v38  ;;  %7522 = vmatprep.subr.bf16.mxu0 %v13702_v17 }
 0x9bf   :  { %5428 = vmatprep.mubr.f32.mxu1 %v13703_v61  ;;  %7475 = vmatpush1.bf16.msra.mxu1 %v11917_v11  ;;  %v13711_v11 = vld [vmem:[#allocation39_spill] sm:$0xff] }
 0x9c0   :  { %3722 = vmatmul.mubr.f32.gmra.mrb[50].mxu0 %v13704_v7  ;;  %7476 = vmatprep.subr.bf16.mxu1 %v13396_v46  ;;  %v13720_v7 = vld [vmem:[#allocation42_spill] sm:$0xff] }
 0x9c1   :  { %3726 = vmatprep.mubr.f32.mxu0 %v13705_v18  ;;  %7524 = vmatpush3.bf16.msra.mxu0 %v13702_v17  ;;  %v13719_v17 = vld [vmem:[#allocation90_spill] sm:$0xff]  ;;  %v13721_v18 = vld [vmem:[#allocation43_spill] sm:$0xff] }
 0x9c2   :  { %5429 = vmatmul.mubr.f32.gmra.mrb[66].mxu1 %v13706_v6  ;;  %7526 = vmatprep.subr.bf16.mxu0 %v13707_v43 }
 0x9c3   :  { %5433 = vmatprep.mubr.f32.mxu1 %v13708_v48  ;;  %7478 = vmatpush1.bf16.msra.mxu1 %v13709_v27  ;;  %v13724_v27 = vld [vmem:[#allocation93_spill] sm:$0xff] }
 0x9c4   :  { %3727 = vmatmul.mubr.f32.gmra.mrb[52].mxu0 %v13710_v49  ;;  %7479 = vmatprep.subr.bf16.mxu1 %v13396_v46  ;;  %v13725_v49 = vld [vmem:[#allocation44_spill] sm:$0xff] }
 0x9c5   :  { %3731 = vmatprep.mubr.f32.mxu0 %v13711_v11  ;;  %7528 = vmatpush3.bf16.msra.mxu0 %v13707_v43  ;;  %v13723_v43 = vld [vmem:[#allocation16_spill] sm:$0xff]  ;;  %v13726_v11 = vld [vmem:[#allocation45_spill] sm:$0xff] }
 0x9c6   :  { %5434 = vmatmul.mubr.f32.gmra.mrb[68].mxu1 %v13712_v35  ;;  %7530 = vmatprep.subr.bf16.mxu0 %v13713_v50 }
 0x9c7   :  { %5438 = vmatprep.mubr.f32.mxu1 %v13714_v56  ;;  %7481 = vmatpush1.bf16.msra.mxu1 %v11986_v23  ;;  %v13722_v23 = vld [vmem:[#allocation28_spill] sm:$0xff] }
 0x9c8   :  { %3732 = vmatmul.mubr.f32.gmra.mrb[54].mxu0 %v13715_v25  ;;  %7482 = vmatprep.subr.bf16.mxu1 %v13396_v46  ;;  %v13728_v25 = vld [vmem:[#allocation22_spill] sm:$0xff] }
 0x9c9   :  { %3736 = vmatprep.mubr.f32.mxu0 %v13716_v5  ;;  %7532 = vmatpush3.bf16.msra.mxu0 %v13713_v50  ;;  %v13727_v50 = vld [vmem:[#allocation11_spill] sm:$0xff] }
 0x9ca   :  { %5439 = vmatmul.mubr.f32.gmra.mrb[70].mxu1 %v13717_v12  ;;  %v13729_v5 = vld [vmem:[#allocation95_spill] sm:$0xff] }
 0x9cb   :  { %5443 = vmatprep.mubr.f32.mxu1 %v13718_v55  ;;  %7484 = vmatpush1.bf16.msra.mxu1 %v13719_v17  ;;  %v13730_v17 = vld [vmem:[#allocation46_spill] sm:$0xff] }
 0x9cc   :  { %3737 = vmatmul.mubr.f32.gmra.mrb[56].mxu0 %v13720_v7  ;;  %7485 = vmatprep.subr.bf16.mxu1 %v13396_v46  ;;  %v13731_v7 = vld [vmem:[#allocation47_spill] sm:$0xff] }
 0x9cd   :  { %3741 = vmatprep.mubr.f32.mxu0 %v13721_v18  ;;  %v13732_v18 = vld [vmem:[#allocation32_spill] sm:$0xff] }
 0x9ce   :  { %5444 = vmatmul.mubr.f32.gmra.mrb[72].mxu1 %v13722_v23 }
 0x9cf   :  { %5448 = vmatprep.mubr.f32.mxu1 %v13723_v43  ;;  %7487 = vmatpush1.bf16.msra.mxu1 %v13724_v27  ;;  %v13733_v27 = vld [vmem:[#allocation34_spill] sm:$0xff] }
 0x9d0   :  { %3742 = vmatmul.mubr.f32.gmra.mrb[58].mxu0 %v13725_v49  ;;  %7488 = vmatprep.subr.bf16.mxu1 %v13396_v46  ;;  %v13734_v49 = vld [vmem:[#allocation48_spill] sm:$0xff] }
 0x9d1   :  { %3746 = vmatprep.mubr.f32.mxu0 %v13726_v11  ;;  %v13735_v11 = vld [vmem:[#allocation49_spill] sm:$0xff] }
 0x9d2   :  { %5449 = vmatmul.mubr.f32.gmra.mrb[74].mxu1 %v13727_v50 }
 0x9d3   :  { %5453 = vmatprep.mubr.f32.mxu1 %v13728_v25  ;;  %7490 = vmatpush1.bf16.msra.mxu1 %v13729_v5  ;;  %v13737_v5 = vld [vmem:[#allocation88_spill] sm:$0xff] }
 0x9d4   :  { %3747 = vmatmul.mubr.f32.gmra.mrb[60].mxu0 %v13730_v17  ;;  %7491 = vmatprep.subr.bf16.mxu1 %v13396_v46  ;;  %v13738_v17 = vld [vmem:[#allocation50_spill] sm:$0xff] }
 0x9d5   :  { %3751 = vmatprep.mubr.f32.mxu0 %v13731_v7  ;;  %v13739_v7 = vld [vmem:[#allocation51_spill] sm:$0xff] }
 0x9d6   :  { %5454 = vmatmul.mubr.f32.gmra.mrb[76].mxu1 %v13732_v18 }
 0x9d7   :  { %5458 = vmatprep.mubr.f32.mxu1 %v13733_v27  ;;  %7493 = vmatpush1.bf16.msra.mxu1 %v12081_v58  ;;  %v13741_v58 = vld [vmem:[#allocation91_spill] sm:$0xff] }
 0x9d8   :  { %3752 = vmatmul.mubr.f32.gmra.mrb[62].mxu0 %v13734_v49  ;;  %7494 = vmatprep.subr.bf16.mxu1 %v13396_v46  ;;  %v13742_v49 = vld [vmem:[#allocation82_spill] sm:$0xff] }
 0x9d9   :  { %3756 = vmatprep.mubr.f32.mxu0 %v13735_v11  ;;  %v13743_v11 = vld [vmem:[#allocation92_spill] sm:$0xff] }
 0x9da   :  { %5459 = vmatmul.mubr.f32.gmra.mrb[78].mxu1 %v13736_v4 }
 0x9db   :  { %5463 = vmatprep.mubr.f32.mxu1 %v13737_v5  ;;  %7496 = vmatpush1.bf16.msra.mxu1 %v12104_v60  ;;  %v13744_v60 = vld [vmem:[#allocation96_spill] sm:$0xff] }
 0x9dc   :  { %3757 = vmatmul.mubr.f32.gmra.mrb[64].mxu0 %v13738_v17  ;;  %7497 = vmatprep.subr.bf16.mxu1 %v13396_v46  ;;  %v13745_v17 = vld [vmem:[#allocation79_spill] sm:$0xff] }
 0x9dd   :  { %3761 = vmatprep.mubr.f32.mxu0 %v13739_v7  ;;  %v13746_v7 = vld [vmem:[#allocation25_spill] sm:$0xff] }
 0x9de   :  { %5464 = vmatmul.mubr.f32.gmra.mrb[80].mxu1 %v13740_v24 }
 0x9df   :  { %5468 = vmatprep.mubr.f32.mxu1 %v13741_v58  ;;  %7499 = vmatpush1.bf16.msra.mxu1 %v12130_v54  ;;  %v13748_v54 = vld [vmem:[#allocation52_spill] sm:$0xff] }
 0x9e0   :  { %3762 = vmatmul.mubr.f32.gmra.mrb[66].mxu0 %v13680_v1  ;;  %7500 = vmatprep.subr.bf16.mxu1 %v13396_v46  ;;  %v13749_v1 = vld [vmem:[#allocation99_spill] sm:$0xff] }
 0x9e1   :  { %3766 = vmatprep.mubr.f32.mxu0 %v13742_v49 }
 0x9e2   :  { %5469 = vmatmul.mubr.f32.gmra.mrb[82].mxu1 %v13743_v11 }
 0x9e3   :  { %5473 = vmatprep.mubr.f32.mxu1 %v13744_v60  ;;  %7502 = vmatpush1.bf16.msra.mxu1 %v12153_v14  ;;  %v13767_v14 = vld [vmem:[#allocation77_spill] sm:$0xff] }
 0x9e4   :  { %3767 = vmatmul.mubr.f32.gmra.mrb[68].mxu0 %v13745_v17  ;;  %7503 = vmatprep.subr.bf16.mxu1 %v13396_v46 }
 0x9e5   :  { %3771 = vmatprep.mubr.f32.mxu0 %v13746_v7 }
 0x9e6   :  { %5474 = vmatmul.mubr.f32.gmra.mrb[84].mxu1 %v13747_v52 }
 0x9e7   :  { %5478 = vmatprep.mubr.f32.mxu1 %v13748_v54  ;;  %7505 = vmatpush1.bf16.msra.mxu1 %v12187_v29  ;;  %v13768_v29 = vld [vmem:[#allocation87_spill] sm:$0xff] }
 0x9e8   :  { %3772 = vmatmul.mubr.f32.gmra.mrb[70].mxu0 %v13687_v9  ;;  %7506 = vmatprep.subr.bf16.mxu1 %v13396_v46  ;;  %v13750_v46 = vld [vmem:[#allocation10_spill] sm:$0xff]  ;;  %v13766_v9 = vld [vmem:[#allocation31_spill] sm:$0xff] }
 0x9e9   :  { %3776 = vmatprep.mubr.f32.mxu0 %v11226_v32  ;;  %v13751_v32 = vld [vmem:[#allocation18_spill] sm:$0xff] }
 0x9ea   :  { %5479 = vmatmul.mubr.f32.gmra.mrb[86].mxu1 %v13749_v1 }
 0x9eb   :  { %5483 = vmatprep.mubr.f32.mxu1 %v12160_v41  ;;  %7508 = vmatpush1.bf16.msra.mxu1 %v12211_v15  ;;  %v13770_v15 = vld [vmem:[#allocation98_spill] sm:$0xff] }
 0x9ec   :  { %3777 = vmatmul.mubr.f32.gmra.mrb[72].mxu0 %v11261_v16  ;;  %v3222_v16 = vsel %vm2699_vm6, %v13751_v32, %v13750_v46 }
 0x9ed   :  { %3781 = vmatprep.mubr.f32.mxu0 %v11372_v42  ;;  %v13752_v42 = vld [vmem:[#allocation17_spill] sm:$0xff] }
 0x9ee   :  { %5484 = vmatmul.mubr.f32.gmra.mrb[88].mxu1 %v12163_v51 }
 0x9ef   :  { %5488 = vmatprep.mubr.f32.mxu1 %v12203_v30 }
 0x9f0   :  { %3782 = vmatmul.mubr.f32.gmra.mrb[74].mxu0 %v11395_v10  ;;  %v13753_v10 = vld [vmem:[#allocation74_spill] sm:$0xff] }
 0x9f1   :  { %3786 = vmatprep.mubr.f32.mxu0 %v11474_v40  ;;  %v3221_v40 = vsel %vm2699_vm6, %v13753_v10, %v13752_v42 }
 0x9f2   :  { %5489 = vmatmul.mubr.f32.gmra.mrb[90].mxu1 %v12207_v21 }
 0x9f3   :  { %5493 = vmatprep.mubr.f32.mxu1 %v12218_v2  ;;  %v13771_v2 = vld [vmem:[#allocation100_spill] sm:$0xff] }
 0x9f4   :  { %3787 = vmatmul.mubr.f32.gmra.mrb[76].mxu0 %v11498_v44  ;;  %v13754_v44 = vld [vmem:[#allocation14_spill] sm:$0xff] }
 0x9f5   :  { %3791 = vmatprep.mubr.f32.mxu0 %v11556_v31  ;;  %v4995_v31 = vsel %vm2699_vm6, %v11678_v22, %v12255_v19  ;;  %v13758_v22 = vld [vmem:[#allocation24_spill] sm:$0xff] }
 0x9f6   :  { %5494 = vmatmul.mubr.f32.gmra.mrb[92].mxu1 %v12235_v34 }
 0x9f7   :  { %5498 = vmatprep.mubr.f32.mxu1 %v11744_v33  ;;  %v13759_v33 = vld [vmem:[#allocation26_spill] sm:$0xff] }
 0x9f8   :  { %3792 = vmatmul.mubr.f32.gmra.mrb[78].mxu0 %v11568_v53  ;;  %v13755_v53 = vld [vmem:[#allocation12_spill] sm:$0xff] }
 0x9f9   :  { %3796 = vmatprep.mubr.f32.mxu0 %v11593_v39  ;;  %v13756_v39 = vrot.slane %v12196_v62, 2  ;;  %v13769_v62 = vld [vmem:[#allocation94_spill] sm:$0xff] }
 0x9fa   :  { %5499 = vmatmul.mubr.f32.gmra.mrb[94].mxu1 %v11786_v37  ;;  %v13761_v37 = vld [vmem:[#allocation23_spill] sm:$0xff] }
 0x9fb   :  { %5568 = vmatprep.mubr.f32.mxu1 %v11650_v57  ;;  %v13757_v57 = vld [vmem:[#allocation85_spill] sm:$0xff] }
 0x9fc   :  { %3797 = vmatmul.mubr.f32.gmra.mrb[80].mxu0 %v11627_v47  ;;  %v5001_v47 = vsel %vm2699_vm6, %v13755_v53, %v13756_v39 }
 0x9fd   :  { %3801 = vmatprep.mubr.f32.mxu0 %v3222_v16 }
 0x9fe   :  { %5569 = vmatmul.mubr.f32.vlgmr.msra.gmra.mrb[56].mxu1 %v12286_v8 }
 0x9ff   :  { %5573 = vmatprep.mubr.f32.mxu1 %v12263_v3  ;;  %v13775_v3 = vld [vmem:[#allocation20_spill] sm:$0xff] }
 0xa00   :  { %3802 = vmatmul.mubr.f32.gmra.mrb[82].mxu0 %v3221_v40 }
 0xa01   :  { %7015 = vmatprep.mubr.msk.f32.mxu0 %vm439_vm5, %v13754_v44 }
 0xa02   :  { %5574 = vmatmul.mubr.f32.gmra.mrb[58].mxu1 %v4995_v31 }
 0xa03   :  { %5578 = vmatprep.mubr.f32.mxu1 %v13697_v26 }
 0xa04   :  { %7016 = vmatmul.mubr.msk.f32.vlgmr.msra.gmra.mrb[84].mxu0 %vm439_vm5, %v13755_v53 }
 0xa05   :  { %7018 = vmatprep.mubr.msk.f32.mxu0 %vm439_vm5, %v5001_v47 }
 0xa06   :  { %5579 = vmatmul.mubr.f32.gmra.mrb[60].mxu1 %v12279_v45  ;;  %v13776_v45 = vld [vmem:[#allocation54_spill] sm:$0xff] }
 0xa07   :  { %5583 = vmatprep.mubr.f32.mxu1 %v11231_v28  ;;  %v13760_v28 = vld [vmem:[#allocation27_spill] sm:$0xff] }
 0xa08   :  { %7019 = vmatmul.mubr.msk.f32.gmra.mrb[86].mxu0 %vm439_vm5, %v12226_v59  ;;  %v13773_v59 = vld [vmem:[#allocation71_spill] sm:$0xff] }
 0xa09   :  { %7021 = vmatprep.mubr.msk.f32.mxu0 %vm439_vm5, %v13757_v57  ;;  %v13784_v57 = vld [vmem:[#allocation62_spill] sm:$0xff] }
 0xa0a   :  { %5584 = vmatmul.mubr.f32.gmra.mrb[62].mxu1 %v11267_v13  ;;  %v13762_v13 = vld [vmem:[#allocation29_spill] sm:$0xff] }
 0xa0b   :  { %5588 = vmatprep.mubr.f32.mxu1 %v11282_v20  ;;  %v13763_v20 = vld [vmem:[#allocation78_spill] sm:$0xff] }
 0xa0c   :  { %7022 = vmatmul.mubr.msk.f32.gmra.mrb[88].mxu0 %vm439_vm5, %v13758_v22 }
 0xa0d   :  { %7024 = vmatprep.mubr.msk.f32.mxu0 %vm439_vm5, %v13759_v33 }
 0xa0e   :  { %5589 = vmatmul.mubr.f32.gmra.mrb[64].mxu1 %v11410_v0  ;;  %v13764_v0 = vld [vmem:[#allocation76_spill] sm:$0xff] }
 0xa0f   :  { %5593 = vmatprep.mubr.f32.mxu1 %v11479_v63  ;;  %v13765_v63 = vld [vmem:[#allocation9_spill] sm:$0xff] }
 0xa10   :  { %7025 = vmatmul.mubr.msk.f32.gmra.mrb[90].mxu0 %vm439_vm5, %v13760_v28 }
 0xa11   :  { %7027 = vmatprep.mubr.msk.f32.mxu0 %vm439_vm5, %v13761_v37 }
 0xa12   :  { %5594 = vmatmul.mubr.f32.gmra.mrb[66].mxu1 %v13701_v38 }
 0xa13   :  { %5598 = vmatprep.mubr.f32.mxu1 %v13703_v61 }
 0xa14   :  { %7028 = vmatmul.mubr.msk.f32.gmra.mrb[92].mxu0 %vm439_vm5, %v13762_v13 }
 0xa15   :  { %7030 = vmatprep.mubr.msk.f32.mxu0 %vm439_vm5, %v13763_v20 }
 0xa16   :  { %5599 = vmatmul.mubr.f32.gmra.mrb[68].mxu1 %v13706_v6  ;;  %v13777_v6 = vld [vmem:[#allocation53_spill] sm:$0xff] }
 0xa17   :  { %5603 = vmatprep.mubr.f32.mxu1 %v13708_v48 }
 0xa18   :  { %7031 = vmatmul.mubr.msk.f32.gmra.mrb[94].mxu0 %vm439_vm5, %v13764_v0 }
 0xa19   :  { %7033 = vmatprep.mubr.msk.f32.mxu0 %vm439_vm5, %v13765_v63 }
 0xa1a   :  { %5604 = vmatmul.mubr.f32.gmra.mrb[70].mxu1 %v13712_v35 }
 0xa1b   :  { %5608 = vmatprep.mubr.f32.mxu1 %v13714_v56 }
 0xa1c   :  { %7034 = vmatmul.mubr.msk.f32.gmra.mrb[96].mxu0 %vm439_vm5, %v13766_v9 }
 0xa1d   :  { %7036 = vmatprep.mubr.msk.f32.mxu0 %vm439_vm5, %v13767_v14 }
 0xa1e   :  { %5609 = vmatmul.mubr.f32.gmra.mrb[72].mxu1 %v13717_v12  ;;  %v13778_v12 = vld [vmem:[#allocation56_spill] sm:$0xff] }
 0xa1f   :  { %5613 = vmatprep.mubr.f32.mxu1 %v13718_v55 }
 0xa20   :  { %7037 = vmatmul.mubr.msk.f32.gmra.mrb[98].mxu0 %vm439_vm5, %v13768_v29 }
 0xa21   :  { %7039 = vmatprep.mubr.msk.f32.mxu0 %vm439_vm5, %v13769_v62 }
 0xa22   :  { %5614 = vmatmul.mubr.f32.gmra.mrb[74].mxu1 %v13722_v23 }
 0xa23   :  { %5618 = vmatprep.mubr.f32.mxu1 %v13723_v43 }
 0xa24   :  { %7040 = vmatmul.mubr.msk.f32.gmra.mrb[100].mxu0 %vm439_vm5, %v13770_v15  ;;  %v13785_v15 = vld [vmem:[#allocation61_spill] sm:$0xff] }
 0xa25   :  { %7042 = vmatprep.mubr.msk.f32.mxu0 %vm439_vm5, %v13771_v2 }
 0xa26   :  { %5619 = vmatmul.mubr.f32.gmra.mrb[76].mxu1 %v13727_v50  ;;  %v13779_v50 = vld [vmem:[#allocation55_spill] sm:$0xff] }
 0xa27   :  { %5623 = vmatprep.mubr.f32.mxu1 %v13728_v25 }
 0xa28   :  { %7043 = vmatmul.mubr.msk.f32.gmra.mrb[102].mxu0 %vm439_vm5, %v12240_v36  ;;  %v13774_v36 = vld [vmem:[#allocation21_spill] sm:$0xff] }
 0xa2a   :  { %5624 = vmatmul.mubr.f32.gmra.mrb[78].mxu1 %v13732_v18 }
 0xa2b   :  { %5628 = vmatprep.mubr.f32.mxu1 %v13733_v27 }
 0xa2e   :  { %5629 = vmatmul.mubr.f32.gmra.mrb[80].mxu1 %v13736_v4 }
 0xa2f   :  { %5633 = vmatprep.mubr.f32.mxu1 %v13737_v5  ;;  %v13780_v5 = vld [vmem:[#allocation58_spill] sm:$0xff] }
 0xa32   :  { %5634 = vmatmul.mubr.f32.gmra.mrb[82].mxu1 %v13740_v24  ;;  %v13772_v24 = vld [vmem:[#allocation3_spill] sm:$0xff] }
 0xa33   :  { %5638 = vmatprep.mubr.f32.mxu1 %v13741_v58  ;;  %v5093_v4 = vsel %vm2699_vm6, %v13772_v24, %v13750_v46 }
 0xa36   :  { %5639 = vmatmul.mubr.f32.gmra.mrb[84].mxu1 %v13743_v11 }
 0xa37   :  { %5643 = vmatprep.mubr.f32.mxu1 %v13744_v60  ;;  %v13781_v60 = vld [vmem:[#allocation57_spill] sm:$0xff] }
 0xa3a   :  { %5644 = vmatmul.mubr.f32.gmra.mrb[86].mxu1 %v13747_v52  ;;  %v5092_v52 = vsel %vm2699_vm6, %v13773_v59, %v13752_v42  ;;  %v13783_v42 = vld [vmem:[#allocation59_spill] sm:$0xff] }
 0xa3b   :  { %5648 = vmatprep.mubr.f32.mxu1 %v13748_v54 }
 0xa3e   :  { %5649 = vmatmul.mubr.f32.gmra.mrb[88].mxu1 %v13749_v1  ;;  %v13782_v1 = vld [vmem:[#allocation60_spill] sm:$0xff] }
 0xa3f   :  { %5653 = vmatprep.mubr.f32.mxu1 %v12160_v41 }
 0xa42   :  { %5654 = vmatmul.mubr.f32.gmra.mrb[90].mxu1 %v12163_v51 }
 0xa43   :  { %5658 = vmatprep.mubr.f32.mxu1 %v12203_v30 }
 0xa46   :  { %5659 = vmatmul.mubr.f32.gmra.mrb[92].mxu1 %v12207_v21 }
 0xa47   :  { %5663 = vmatprep.mubr.f32.mxu1 %v5093_v4 }
 0xa4a   :  { %5664 = vmatmul.mubr.f32.gmra.mrb[94].mxu1 %v5092_v52 }
 0xa87   :  { %v3708_v34 = vpop.f32.mrb[44].mxu0 }
 0xa88   :  { %v12498_v19 = vadd.f32 %v13774_v36, %v3708_v34  ;;  %v3710_v41 = vpop.f32.mrb[45].mxu0 }
 0xa8a   :  { %v5884_v31 = vmul.f32 %v12498_v19, %v12498_v19  ;;  %v5835_v28 = vsel %vm5834_vm11, %v12498_v19, 0.0 }
 0xa8b   :  { %v3713_v51 = vpop.f32.mrb[46].mxu0 }
 0xa8c   :  { %v12501_v30 = vadd.f32 %v13775_v3, %v3713_v51  ;;  %v3715_v21 = vpop.f32.mrb[47].mxu0  ;;  %v5904_v0 = vsel %vm5834_vm11, %v5884_v31, 0.0 }
 0xa8e   :  { %v5885_v44 = vmul.f32 %v12501_v30, %v12501_v30  ;;  %v5836_v39 = vsel %vm5834_vm11, %v12501_v30, 0.0 }
 0xa8f   :  { %v3718_v26 = vpop.f32.mrb[48].mxu0  ;;  %v5837_v63 = vadd.f32 %v5836_v39, %v5835_v28 }
 0xa90   :  { %v12504_v8 = vadd.f32 %v13776_v45, %v3718_v26  ;;  %v3720_v38 = vpop.f32.mrb[49].mxu0  ;;  %v5905_v37 = vsel %vm5834_vm11, %v5885_v44, 0.0 }
 0xa91   :  { %v5906_v4 = vadd.f32 %v5905_v37, %v5904_v0  ;;  %v13786_v38 = vld [vmem:[#allocation64_spill] sm:$0xff] }
 0xa92   :  { %v5886_v47 = vmul.f32 %v12504_v8, %v12504_v8  ;;  %v5838_v13 = vsel %vm5834_vm11, %v12504_v8, 0.0 }
 0xa93   :  { %v3723_v61 = vpop.f32.mrb[50].mxu0  ;;  %v5839_v59 = vadd.f32 %v5838_v13, %v5837_v63 }
 0xa94   :  { %v12507_v48 = vadd.f32 %v13777_v6, %v3723_v61  ;;  %v3725_v35 = vpop.f32.mrb[51].mxu0  ;;  %v5907_v14 = vsel %vm5834_vm11, %v5886_v47, 0.0 }
 0xa95   :  { %v5908_v41 = vadd.f32 %v5907_v14, %v5906_v4 }
 0xa96   :  { %v5887_v20 = vmul.f32 %v12507_v48, %v12507_v48  ;;  %v5840_v29 = vsel %vm5834_vm11, %v12507_v48, 0.0 }
 0xa97   :  { %v3728_v56 = vpop.f32.mrb[52].mxu0  ;;  %v5841_v51 = vadd.f32 %v5840_v29, %v5839_v59  ;;  %v13789_v59 = vld [vmem:[#allocation65_spill] sm:$0xff] }
 0xa98   :  { %v12510_v55 = vadd.f32 %v13778_v12, %v3728_v56  ;;  %v3730_v23 = vpop.f32.mrb[53].mxu0  ;;  %v5909_v52 = vsel %vm5834_vm11, %v5887_v20, 0.0 }
 0xa99   :  { %v5910_v35 = vadd.f32 %v5909_v52, %v5908_v41 }
 0xa9a   :  { %v5888_v62 = vmul.f32 %v12510_v55, %v12510_v55  ;;  %v5842_v34 = vsel %vm5834_vm11, %v12510_v55, 0.0 }
 0xa9b   :  { %v3733_v43 = vpop.f32.mrb[54].mxu0  ;;  %v5843_v56 = vadd.f32 %v5842_v34, %v5841_v51 }
 0xa9c   :  { %v12513_v25 = vadd.f32 %v13779_v50, %v3733_v43  ;;  %v3735_v18 = vpop.f32.mrb[55].mxu0  ;;  %v5911_v21 = vsel %vm5834_vm11, %v5888_v62, 0.0 }
 0xa9d   :  { %v5912_v50 = vadd.f32 %v5911_v21, %v5910_v35 }
 0xa9e   :  { %v5889_v36 = vmul.f32 %v12513_v25, %v12513_v25  ;;  %v5844_v26 = vsel %vm5834_vm11, %v12513_v25, 0.0 }
 0xa9f   :  { %v3738_v27 = vpop.f32.mrb[56].mxu0  ;;  %v5845_v18 = vadd.f32 %v5844_v26, %v5843_v56 }
 0xaa0   :  { %v12516_v58 = vadd.f32 %v13780_v5, %v3738_v27  ;;  %v3740_v49 = vpop.f32.mrb[57].mxu0  ;;  %v5913_v12 = vsel %vm5834_vm11, %v5889_v36, 0.0 }
 0xaa2   :  { %v5890_v45 = vmul.f32 %v12516_v58, %v12516_v58  ;;  %v5846_v23 = vsel %vm5834_vm11, %v12516_v58, 0.0 }
 0xaa3   :  { %v3743_v11 = vpop.f32.mrb[58].mxu0 }
 0xaa4   :  { %v12519_v17 = vadd.f32 %v13781_v60, %v3743_v11  ;;  %v3745_v7 = vpop.f32.mrb[59].mxu0  ;;  %v5915_v5 = vsel %vm5834_vm11, %v5890_v45, 0.0  ;;  %v13787_v60 = vld [vmem:[#allocation63_spill] sm:$0xff] }
 0xaa6   :  { %v5891_v43 = vmul.f32 %v12519_v17, %v12519_v17  ;;  %v5848_v49 = vsel %vm5834_vm11, %v12519_v17, 0.0 }
 0xaa7   :  { %v3748_v54 = vpop.f32.mrb[60].mxu0 }
 0xaa8   :  { %v12522_v46 = vadd.f32 %v13782_v1, %v3748_v54  ;;  %v3750_v32 = vpop.f32.mrb[61].mxu0  ;;  %v5914_v1 = vadd.f32 %v5913_v12, %v5912_v50  ;;  %v13790_v12 = vld [vmem:[#allocation68_spill] sm:$0xff] }
 0xaa9   :  { %v5847_v32 = vadd.f32 %v5846_v23, %v5845_v18 }
 0xaaa   :  { %v5892_v11 = vmul.f32 %v12522_v46, %v12522_v46  ;;  %v5916_v44 = vadd.f32 %v5915_v5, %v5914_v1 }
 0xaab   :  { %v3753_v16 = vpop.f32.mrb[62].mxu0  ;;  %v5849_v31 = vadd.f32 %v5848_v49, %v5847_v32 }
 0xaac   :  { %v12525_v10 = vadd.f32 %v13783_v42, %v3753_v16  ;;  %v3755_v40 = vpop.f32.mrb[63].mxu0  ;;  %v5917_v16 = vsel %vm5834_vm11, %v5891_v43, 0.0  ;;  %v5850_v42 = vsel %vm5834_vm11, %v12522_v46, 0.0  ;;  %v5919_v39 = vsel %vm5834_vm11, %v5892_v11, 0.0 }
 0xaad   :  { %v5918_v13 = vadd.f32 %v5917_v16, %v5916_v44  ;;  %v5851_v20 = vadd.f32 %v5850_v42, %v5849_v31  ;;  %v13791_v42 = vld [vmem:[#allocation67_spill] sm:$0xff] }
 0xaae   :  { %v5893_v40 = vmul.f32 %v12525_v10, %v12525_v10  ;;  %v5852_v47 = vsel %vm5834_vm11, %v12525_v10, 0.0 }
 0xaaf   :  { %v3758_v53 = vpop.f32.mrb[64].mxu0  ;;  %v5920_v14 = vadd.f32 %v5919_v39, %v5918_v13  ;;  %v5853_v29 = vadd.f32 %v5852_v47, %v5851_v20 }
 0xab0   :  { %v12536_v22 = vadd.f32 %v13784_v57, %v3758_v53  ;;  %v3760_v33 = vpop.f32.mrb[65].mxu0  ;;  %v5921_v0 = vsel %vm5834_vm11, %v5893_v40, 0.0 }
 0xab1   :  { %v13788_v33 = vld [vmem:[#allocation66_spill] sm:$0xff]  ;;  %v5922_v36 = vadd.f32 %v5921_v0, %v5920_v14 }
 0xab2   :  { %v5894_v57 = vmul.f32 %v12536_v22, %v12536_v22  ;;  %v5854_v63 = vsel %vm5834_vm11, %v12536_v22, 0.0 }
 0xab3   :  { %v3763_v9 = vpop.f32.mrb[66].mxu0  ;;  %v5855_v41 = vadd.f32 %v5854_v63, %v5853_v29  ;;  %v13792_v63 = vld [vmem:[#allocation70_spill] sm:$0xff] }
 0xab4   :  { %v12552_v2 = vadd.f32 %v13785_v15, %v3763_v9  ;;  %v3765_v24 = vpop.f32.mrb[67].mxu0  ;;  %v5923_v15 = vsel %vm5834_vm11, %v5894_v57, 0.0 }
 0xab5   :  { %v5924_v26 = vadd.f32 %v5923_v15, %v5922_v36 }
 0xab6   :  { %v5895_v9 = vmul.f32 %v12552_v2, %v12552_v2  ;;  %v5856_v24 = vsel %vm5834_vm11, %v12552_v2, 0.0 }
 0xab7   :  { %v3768_v3 = vpop.f32.mrb[68].mxu0  ;;  %v5857_v45 = vadd.f32 %v5856_v24, %v5855_v41 }
 0xab8   :  { %v12565_v61 = vadd.f32 %v13786_v38, %v3768_v3  ;;  %v3770_v6 = vpop.f32.mrb[69].mxu0  ;;  %v5925_v51 = vsel %vm5834_vm11, %v5895_v9, 0.0 }
 0xab9   :  { %v5926_v50 = vadd.f32 %v5925_v51, %v5924_v26 }
 0xaba   :  { %v5896_v4 = vmul.f32 %v12565_v61, %v12565_v61  ;;  %v5858_v3 = vsel %vm5834_vm11, %v12565_v61, 0.0 }
 0xabb   :  { %v3773_v27 = vpop.f32.mrb[70].mxu0  ;;  %v5859_v18 = vadd.f32 %v5858_v3, %v5857_v45  ;;  %v13793_v3 = vld [vmem:[#allocation69_spill] sm:$0xff] }
 0xabc   :  { %v12578_v7 = vadd.f32 %v13787_v60, %v3773_v27  ;;  %v3775_v54 = vpop.f32.mrb[71].mxu0  ;;  %v5927_v6 = vsel %vm5834_vm11, %v5896_v4, 0.0 }
 0xabd   :  { %v5928_v11 = vadd.f32 %v5927_v6, %v5926_v50 }
 0xabe   :  { %v5897_v21 = vmul.f32 %v12578_v7, %v12578_v7  ;;  %v5860_v35 = vsel %vm5834_vm11, %v12578_v7, 0.0 }
 0xabf   :  { %v3778_v53 = vpop.f32.mrb[72].mxu0  ;;  %v5861_v60 = vadd.f32 %v5860_v35, %v5859_v18 }
 0xac0   :  { %v12591_v28 = vadd.f32 %v13788_v33, %v3778_v53  ;;  %v3780_v37 = vpop.f32.mrb[73].mxu0  ;;  %v5929_v27 = vsel %vm5834_vm11, %v5897_v21, 0.0 }
 0xac1   :  { %v5930_v31 = vadd.f32 %v5929_v27, %v5928_v11 }
 0xac2   :  { %v5898_v56 = vmul.f32 %v12591_v28, %v12591_v28  ;;  %v5862_v5 = vsel %vm5834_vm11, %v12591_v28, 0.0 }
 0xac3   :  { %v3783_v62 = vpop.f32.mrb[74].mxu0  ;;  %v5863_v53 = vadd.f32 %v5862_v5, %v5861_v60 }
 0xac4   :  { %v12604_v52 = vadd.f32 %v13789_v59, %v3783_v62  ;;  %v3785_v34 = vpop.f32.mrb[75].mxu0  ;;  %v5931_v1 = vsel %vm5834_vm11, %v5898_v56, 0.0 }
 0xac5   :  { %v5932_v33 = vadd.f32 %v5931_v1, %v5930_v31 }
 0xac6   :  { %v5899_v49 = vmul.f32 %v12604_v52, %v12604_v52  ;;  %v5864_v32 = vsel %vm5834_vm11, %v12604_v52, 0.0 }
 0xac7   :  { %v3788_v38 = vpop.f32.mrb[76].mxu0  ;;  %v5865_v37 = vadd.f32 %v5864_v32, %v5863_v53 }
 0xac8   :  { %v12617_v23 = vadd.f32 %v13790_v12, %v3788_v38  ;;  %v3790_v43 = vpop.f32.mrb[77].mxu0  ;;  %v5933_v39 = vsel %vm5834_vm11, %v5899_v49, 0.0 }
 0xac9   :  { %v5934_v29 = vadd.f32 %v5933_v39, %v5932_v33 }
 0xaca   :  { %v5900_v16 = vmul.f32 %v12617_v23, %v12617_v23  ;;  %v5866_v47 = vsel %vm5834_vm11, %v12617_v23, 0.0 }
 0xacb   :  { %v3793_v54 = vpop.f32.mrb[78].mxu0  ;;  %v5867_v62 = vadd.f32 %v5866_v47, %v5865_v37 }
 0xacc   :  { %v12630_v40 = vadd.f32 %v13791_v42, %v3793_v54  ;;  %v3795_v44 = vpop.f32.mrb[79].mxu0  ;;  %v5935_v20 = vsel %vm5834_vm11, %v5900_v16, 0.0 }
 0xacd   :  { %v5936_v36 = vadd.f32 %v5935_v20, %v5934_v29 }
 0xace   :  { %v5901_v57 = vmul.f32 %v12630_v40, %v12630_v40  ;;  %v5868_v0 = vsel %vm5834_vm11, %v12630_v40, 0.0 }
 0xacf   :  { %v3798_v13 = vpop.f32.mrb[80].mxu0  ;;  %v5869_v41 = vadd.f32 %v5868_v0, %v5867_v62 }
 0xad0   :  { %v12641_v9 = vadd.f32 %v13792_v63, %v3798_v13  ;;  %v3800_v14 = vpop.f32.mrb[81].mxu0  ;;  %v5937_v24 = vsel %vm5834_vm11, %v5901_v57, 0.0 }
 0xad1   :  { %v5570_v15 = vpop.f32.mrb[56].mxu1  ;;  %v5938_v35 = vadd.f32 %v5937_v24, %v5936_v36 }
 0xad2   :  { %v5870_v4 = vsel %vm5834_vm11, %v12641_v9, 0.0  ;;  %v5902_v59 = vmul.f32 %v12641_v9, %v12641_v9  ;;  %v5572_v34 = vpop.f32.mrb[57].mxu1 }
 0xad3   :  { %v3803_v51 = vpop.f32.mrb[82].mxu0  ;;  %v5871_v6 = vadd.f32 %v5870_v4, %v5869_v41 }
 0xad4   :  { %v12649_v21 = vadd.f32 %v13793_v3, %v3803_v51  ;;  %v3805_v26 = vpop.f32.mrb[83].mxu0  ;;  %v5939_v45 = vsel %vm5834_vm11, %v5902_v59, 0.0 }
 0xad5   :  { %v5575_v38 = vpop.f32.mrb[58].mxu1  ;;  %v5940_v27 = vadd.f32 %v5939_v45, %v5938_v35 }
 0xad6   :  { %v5903_v56 = vmul.f32 %v12649_v21, %v12649_v21  ;;  %v5577_v12 = vpop.f32.mrb[59].mxu1  ;;  %v5872_v43 = vsel %vm5834_vm11, %v12649_v21, 0.0 }
 0xad7   :  { %v7017_v50 = vpop.f32.mrb[84].mxu0  ;;  %v5873_v18 = vadd.f32 %v5872_v43, %v5871_v6 }
 0xad8   :  { %v12656_v5 = vadd.f32 %v7017_v50, %v5575_v38  ;;  %v5735_v49 = vpop.f32.mrb[85].mxu0  ;;  %v5941_v11 = vsel %vm5834_vm11, %v5903_v56, 0.0 }
 0xad9   :  { %v12659_v60 = vadd.f32 %v5735_v49, %v5570_v15  ;;  %v5580_v54 = vpop.f32.mrb[60].mxu1  ;;  %5874 = vadd.xlane.f32.xlu1 %v5873_v18  ;;  %v5942_v1 = vadd.f32 %v5941_v11, %v5940_v27 }
 0xada   :  { %v5582_v32 = vpop.f32.mrb[61].mxu1  ;;  %v6004_v12 = vmul.f32 %v12656_v5, %v12656_v5  ;;  %v5954_v27 = vsel %vm5834_vm11, %v12656_v5, 0.0 }
 0xadb   :  { %5943 = vadd.xlane.f32.xlu0 %v5942_v1  ;;  %v7020_v16 = vpop.f32.mrb[86].mxu0  ;;  %v6003_v43 = vmul.f32 %v12659_v60, %v12659_v60  ;;  %v5953_v49 = vsel %vm5834_vm11, %v12659_v60, 0.0 }
 0xadc   :  { %v5745_v42 = vpop.f32.mrb[87].mxu0 }
 0xadd   :  { %v12661_v44 = vadd.f32 %v5745_v42, %v5580_v54  ;;  %v5585_v31 = vpop.f32.mrb[62].mxu1  ;;  %v6023_v42 = vsel %vm5834_vm11, %v6003_v43, 0.0 }
 0xade   :  { %v12663_v53 = vadd.f32 %v7020_v16, %v5585_v31  ;;  %v5587_v39 = vpop.f32.mrb[63].mxu1  ;;  %v6024_v16 = vsel %vm5834_vm11, %v6004_v12, 0.0 }
 0xadf   :  { %v7023_v47 = vpop.f32.mrb[88].mxu0  ;;  %v6005_v11 = vmul.f32 %v12661_v44, %v12661_v44  ;;  %v5956_v31 = vsel %vm5834_vm11, %v12661_v44, 0.0 }
 0xae0   :  { %v5755_v57 = vpop.f32.mrb[89].mxu0 }
 0xae1   :  { %v5590_v33 = vpop.f32.mrb[64].mxu1 }
 0xae2   :  { %v12665_v37 = vadd.f32 %v5755_v57, %v5590_v33  ;;  %v5592_v13 = vpop.f32.mrb[65].mxu1  ;;  %v6026_v33 = vsel %vm5834_vm11, %v6005_v11, 0.0 }
 0xae3   :  { %v7026_v20 = vpop.f32.mrb[90].mxu0  ;;  %v6006_v13 = vmul.f32 %v12663_v53, %v12663_v53 }
 0xae4   :  { %v5765_v0 = vpop.f32.mrb[91].mxu0  ;;  %v5960_v43 = vsel %vm5834_vm11, %v12665_v37, 0.0 }
 0xae5   :  { %v5595_v63 = vpop.f32.mrb[66].mxu1 }
 0xae6   :  { %v12667_v14 = vadd.f32 %v7023_v47, %v5595_v63  ;;  %v5597_v29 = vpop.f32.mrb[67].mxu1  ;;  %v5955_v47 = vadd.f32 %v5954_v27, %v5953_v49  ;;  %v6025_v63 = vadd.f32 %v6024_v16, %v6023_v42 }
 0xae7   :  { %v7029_v62 = vpop.f32.mrb[92].mxu0 }
 0xae8   :  { %v5775_v15 = vpop.f32.mrb[93].mxu0  ;;  %v5957_v29 = vadd.f32 %v5956_v31, %v5955_v47 }
 0xae9   :  { %v5600_v24 = vpop.f32.mrb[68].mxu1 }
 0xaea   :  { %v12669_v4 = vadd.f32 %v5765_v0, %v5600_v24  ;;  %v5602_v59 = vpop.f32.mrb[69].mxu1 }
 0xaeb   :  { %v7032_v34 = vpop.f32.mrb[94].mxu0  ;;  %v6027_v59 = vadd.f32 %v6026_v33, %v6025_v63 }
 0xaec   :  { %v5785_v36 = vpop.f32.mrb[95].mxu0  ;;  %v6009_v16 = vmul.f32 %v12669_v4, %v12669_v4 }
 0xaed   :  { %v5605_v41 = vpop.f32.mrb[70].mxu1 }
 0xaee   :  { %v12671_v51 = vadd.f32 %v7026_v20, %v5605_v41  ;;  %v5607_v3 = vpop.f32.mrb[71].mxu1 }
 0xaef   :  { %v7035_v26 = vpop.f32.mrb[96].mxu0  ;;  %v6028_v3 = vsel %vm5834_vm11, %v6006_v13, 0.0 }
 0xaf0   :  { %v5795_v45 = vpop.f32.mrb[97].mxu0  ;;  %v6029_v27 = vadd.f32 %v6028_v3, %v6027_v59  ;;  %v6010_v33 = vmul.f32 %v12671_v51, %v12671_v51 }
 0xaf1   :  { %v5610_v38 = vpop.f32.mrb[72].mxu1 }
 0xaf2   :  { %v12673_v6 = vadd.f32 %v5775_v15, %v5610_v38  ;;  %v5612_v35 = vpop.f32.mrb[73].mxu1  ;;  %v5958_v15 = vsel %vm5834_vm11, %v12663_v53, 0.0  ;;  %v6007_v38 = vmul.f32 %v12665_v37, %v12665_v37 }
 0xaf3   :  { %v12675_v56 = vpop.f32.mrb[98].mxu0  ;;  %v5959_v12 = vadd.f32 %v5958_v15, %v5957_v29  ;;  %v6034_v29 = vsel %vm5834_vm11, %v6009_v16, 0.0  ;;  %v5966_v15 = vsel %vm5834_vm11, %v12671_v51, 0.0 }
 0xaf4   :  { %v5805_v50 = vpop.f32.mrb[99].mxu0  ;;  %v6030_v11 = vsel %vm5834_vm11, %v6007_v38, 0.0 }
 0xaf5   :  { %v5615_v18 = vpop.f32.mrb[74].mxu1  ;;  %v5961_v31 = vadd.f32 %v5960_v43, %v5959_v12  ;;  %v6031_v13 = vadd.f32 %v6030_v11, %v6029_v27  ;;  %v5968_v12 = vsel %vm5834_vm11, %v12673_v6, 0.0 }
 0xaf6   :  { %v12687_v54 = vadd.f32 %v7029_v62, %v5615_v18  ;;  %v5617_v1 = vpop.f32.mrb[75].mxu1  ;;  %v6008_v18 = vmul.f32 %v12667_v14, %v12667_v14 }
 0xaf7   :  { %v12689_v32 = vpop.f32.mrb[100].mxu0  ;;  %v5962_v1 = vsel %vm5834_vm11, %v12667_v14, 0.0 }
 0xaf8   :  { %v12695_v39 = vpop.f32.mrb[101].mxu0  ;;  %v6032_v47 = vsel %vm5834_vm11, %v6008_v18, 0.0  ;;  %v6012_v43 = vmul.f32 %v12687_v54, %v12687_v54 }
 0xaf9   :  { %v5620_v57 = vpop.f32.mrb[76].mxu1  ;;  %v6033_v3 = vadd.f32 %v6032_v47, %v6031_v13 }
 0xafa   :  { %v12700_v20 = vadd.f32 %v5785_v36, %v5620_v57  ;;  %v5622_v0 = vpop.f32.mrb[77].mxu1  ;;  %v5964_v57 = vsel %vm5834_vm11, %v12669_v4, 0.0 }
 0xafb   :  { %v12702_v62 = vpop.f32.mrb[102].mxu0  ;;  %v5963_v0 = vadd.f32 %v5962_v1, %v5961_v31  ;;  %v6035_v18 = vadd.f32 %v6034_v29, %v6033_v3 }
 0xafc   :  { %v12706_v24 = vpop.f32.mrb[103].mxu0  ;;  %v6013_v1 = vmul.f32 %v12700_v20, %v12700_v20 }
 0xafd   :  { %v5625_v41 = vpop.f32.mrb[78].mxu1  ;;  %v5965_v38 = vadd.f32 %v5964_v57, %v5963_v0  ;;  %v6040_v57 = vsel %vm5834_vm11, %v6012_v43, 0.0 }
 0xafe   :  { %v12711_v35 = vadd.f32 %v7032_v34, %v5625_v41  ;;  %v5627_v36 = vpop.f32.mrb[79].mxu1 }
 0xaff   :  { %v6036_v36 = vsel %vm5834_vm11, %v6010_v33, 0.0  ;;  %v5967_v27 = vadd.f32 %v5966_v15, %v5965_v38  ;;  %v5972_v33 = vsel %vm5834_vm11, %v12700_v20, 0.0  ;;  %v6042_v15 = vsel %vm5834_vm11, %v6013_v1, 0.0 }
 0xb00   :  { %v6037_v31 = vadd.f32 %v6036_v36, %v6035_v18  ;;  %v6014_v13 = vmul.f32 %v12711_v35, %v12711_v35 }
 0xb01   :  { %v5630_v49 = vpop.f32.mrb[80].mxu1  ;;  %v5969_v47 = vadd.f32 %v5968_v12, %v5967_v27 }
 0xb02   :  { %v12722_v34 = vadd.f32 %v5795_v45, %v5630_v49  ;;  %v5632_v42 = vpop.f32.mrb[81].mxu1  ;;  %v6011_v45 = vmul.f32 %v12673_v6, %v12673_v6  ;;  %v6044_v12 = vsel %vm5834_vm11, %v6014_v13, 0.0 }
 0xb04   :  { %v6038_v11 = vsel %vm5834_vm11, %v6011_v45, 0.0  ;;  %v6015_v45 = vmul.f32 %v12722_v34, %v12722_v34  ;;  %v5976_v43 = vsel %vm5834_vm11, %v12722_v34, 0.0 }
 0xb05   :  { %v5635_v63 = vpop.f32.mrb[82].mxu1  ;;  %v6039_v0 = vadd.f32 %v6038_v11, %v6037_v31 }
 0xb06   :  { %v12734_v59 = vadd.f32 %v7035_v26, %v5635_v63  ;;  %v5637_v41 = vpop.f32.mrb[83].mxu1  ;;  %v5970_v26 = vsel %vm5834_vm11, %v12687_v54, 0.0 }
 0xb07   :  { %v5971_v63 = vadd.f32 %v5970_v26, %v5969_v47  ;;  %v6041_v38 = vadd.f32 %v6040_v57, %v6039_v0  ;;  %v6046_v26 = vsel %vm5834_vm11, %v6015_v45, 0.0 }
 0xb08   :  { %v6016_v18 = vmul.f32 %v12734_v59, %v12734_v59 }
 0xb09   :  { %v5640_v49 = vpop.f32.mrb[84].mxu1  ;;  %v5973_v36 = vadd.f32 %v5972_v33, %v5971_v63  ;;  %v6043_v27 = vadd.f32 %v6042_v15, %v6041_v38 }
 0xb0a   :  { %v12746_v16 = vadd.f32 %v5805_v50, %v5640_v49  ;;  %v5642_v42 = vpop.f32.mrb[85].mxu1  ;;  %v5974_v50 = vsel %vm5834_vm11, %v12711_v35, 0.0  ;;  %v6048_v33 = vsel %vm5834_vm11, %v6016_v18, 0.0 }
 0xb0b   :  { %v5975_v49 = vadd.f32 %v5974_v50, %v5973_v36  ;;  %v6045_v47 = vadd.f32 %v6044_v12, %v6043_v27 }
 0xb0c   :  { %v6017_v1 = vmul.f32 %v12746_v16, %v12746_v16  ;;  %v5980_v13 = vsel %vm5834_vm11, %v12746_v16, 0.0 }
 0xb0d   :  { %v5645_v29 = vpop.f32.mrb[86].mxu1  ;;  %v5977_v57 = vadd.f32 %v5976_v43, %v5975_v49  ;;  %v6047_v63 = vadd.f32 %v6046_v26, %v6045_v47 }
 0xb0e   :  { %v12759_v41 = vadd.f32 %v12675_v56, %v5645_v29  ;;  %v5647_v3 = vpop.f32.mrb[87].mxu1  ;;  %v5978_v56 = vsel %vm5834_vm11, %v12734_v59, 0.0  ;;  %v6050_v50 = vsel %vm5834_vm11, %v6017_v1, 0.0 }
 0xb0f   :  { %v5979_v29 = vadd.f32 %v5978_v56, %v5977_v57  ;;  %v6049_v36 = vadd.f32 %v6048_v33, %v6047_v63 }
 0xb10   :  { %v6018_v0 = vmul.f32 %v12759_v41, %v12759_v41 }
 0xb11   :  { %v5650_v11 = vpop.f32.mrb[88].mxu1  ;;  %v5981_v12 = vadd.f32 %v5980_v13, %v5979_v29  ;;  %v6051_v49 = vadd.f32 %v6050_v50, %v6049_v36 }
 0xb12   :  { %v12772_v42 = vadd.f32 %v12695_v39, %v5650_v11  ;;  %v5652_v31 = vpop.f32.mrb[89].mxu1  ;;  %v5982_v39 = vsel %vm5834_vm11, %v12759_v41, 0.0  ;;  %v6052_v43 = vsel %vm5834_vm11, %v6018_v0, 0.0 }
 0xb13   :  { %v5983_v11 = vadd.f32 %v5982_v39, %v5981_v12  ;;  %v6053_v47 = vadd.f32 %v6052_v43, %v6051_v49 }
 0xb14   :  { %v6019_v45 = vmul.f32 %v12772_v42, %v12772_v42  ;;  %v5984_v18 = vsel %vm5834_vm11, %v12772_v42, 0.0 }
 0xb15   :  { %v5655_v15 = vpop.f32.mrb[90].mxu1  ;;  %v5985_v57 = vadd.f32 %v5984_v18, %v5983_v11 }
 0xb16   :  { %v12785_v3 = vadd.f32 %v12689_v32, %v5655_v15  ;;  %v5657_v38 = vpop.f32.mrb[91].mxu1  ;;  %v6054_v56 = vsel %vm5834_vm11, %v6019_v45, 0.0 }
 0xb17   :  { %v6055_v63 = vadd.f32 %v6054_v56, %v6053_v47 }
 0xb18   :  { %v6020_v27 = vmul.f32 %v12785_v3, %v12785_v3  ;;  %v5986_v32 = vsel %vm5834_vm11, %v12785_v3, 0.0 }
 0xb19   :  { %v5660_v26 = vpop.f32.mrb[92].mxu1  ;;  %v5987_v29 = vadd.f32 %v5986_v32, %v5985_v57 }
 0xb1a   :  { %v12796_v1 = vadd.f32 %v12706_v24, %v5660_v26  ;;  %v5662_v31 = vpop.f32.mrb[93].mxu1  ;;  %v6056_v33 = vsel %vm5834_vm11, %v6020_v27, 0.0 }
 0xb1b   :  { %v6057_v38 = vadd.f32 %v6056_v33, %v6055_v63 }
 0xb1c   :  { %v5988_v13 = vsel %vm5834_vm11, %v12796_v1, 0.0  ;;  %v6021_v0 = vmul.f32 %v12796_v1, %v12796_v1 }
 0xb1d   :  { %v5665_v15 = vpop.f32.mrb[94].mxu1  ;;  %v5989_v45 = vadd.f32 %v5988_v13, %v5987_v29 }
 0xb1e   :  { %v12804_v50 = vadd.f32 %v12702_v62, %v5665_v15  ;;  %v5667_v39 = vpop.f32.mrb[95].mxu1  ;;  %v6058_v24 = vsel %vm5834_vm11, %v6021_v0, 0.0 }
 0xb1f   :  { %v6059_v18 = vadd.f32 %v6058_v24, %v6057_v38 }
 0xb20   :  { %v6022_v36 = vmul.f32 %v12804_v50, %v12804_v50  ;;  %v5990_v12 = vsel %vm5834_vm11, %v12804_v50, 0.0 }
 0xb21   :  { %v5991_v43 = vadd.f32 %v5990_v12, %v5989_v45 }
 0xb22   :  { %v6060_v27 = vsel %vm5834_vm11, %v6022_v36, 0.0 }
 0xb23   :  { %5992 = vadd.xlane.f32.xlu0 %v5991_v43  ;;  %v6061_v49 = vadd.f32 %v6060_v27, %v6059_v18 }
 0xb25   :  { %6062 = vadd.xlane.f32.xlu1 %v6061_v49 }
 0xb66   :  { %v5875_v62 = vpop.xlane.xlu1 %5874 }
 0xb67   :  { %v5876_v11 = vrot.slane %v5875_v62, 4 }
 0xb68   :  { %v5944_v26 = vpop.xlane.xlu0 %5943 }
 0xb69   :  { %v5877_v56 = vadd.f32 %v5876_v11, %v5875_v62  ;;  %v5945_v32 = vrot.slane %v5944_v26, 4 }
 0xb6b   :  { %v5878_v31 = vrot.slane %v5877_v56, 2  ;;  %v5946_v47 = vadd.f32 %v5945_v32, %v5944_v26 }
 0xb6d   :  { %v5947_v57 = vrot.slane %v5946_v47, 2  ;;  %v5879_v33 = vadd.f32 %v5878_v31, %v5877_v56 }
 0xb6f   :  { %v5880_v13 = vrot.slane %v5879_v33, 1  ;;  %v5948_v0 = vadd.f32 %v5947_v57, %v5946_v47 }
 0xb71   :  { %v5881_v63 = vadd.f32 %v5880_v13, %v5879_v33  ;;  %v5949_v29 = vrot.slane %v5948_v0, 1 }
 0xb73   :  { %7693 = vpush %v5881_v63  ;;  %v5950_v15 = vadd.f32 %v5949_v29, %v5948_v0 }
 0xb75   :  { %7695 = vpush %v5950_v15 }
 0xba4   :  { %s7694_s10 = spop %7693 }
 0xba5   :  { %v5883_v32 = vstv %s7694_s10 }
 0xba6   :  { %s7696_s9 = spop %7695 }
 0xba7   :  { %v5952_v57 = vstv %s7696_s9 }
 0xbb0   :  { %v5993_v39 = vpop.xlane.xlu0 %5992 }
 0xbb1   :  { %v5994_v24 = vrot.slane %v5993_v39, 4 }
 0xbb2   :  { %v6063_v45 = vpop.xlane.xlu1 %6062 }
 0xbb3   :  { %v5995_v38 = vadd.f32 %v5994_v24, %v5993_v39  ;;  %v6064_v36 = vrot.slane %v6063_v45, 4  ;;  %v8148_v24 = vmov 1  }
 0xbb4   :  { %8117 = vset.pattern.permute.xlu0 %v8148_v24 }
 0xbb5   :  { %v5996_v12 = vrot.slane %v5995_v38, 2  ;;  %v6065_v43 = vadd.f32 %v6064_v36, %v6063_v45  ;;  %v1960_v45 = vld [vmem:[%s13133_s14] sm:$0x1] }
 0xbb7   :  { %v6066_v18 = vrot.slane %v6065_v43, 2  ;;  %v5997_v27 = vadd.f32 %v5996_v12, %v5995_v38  ;;  %v13794_v12 = vld [vmem:[#allocation2_spill] sm:$0xff] }
 0xbb9   :  { %v5998_v49 = vrot.slane %v5997_v27, 1  ;;  %v6067_v62 = vadd.f32 %v6066_v18, %v6065_v43 }
 0xbbb   :  { %v5999_v11 = vadd.f32 %v5998_v49, %v5997_v27  ;;  %v6068_v26 = vrot.slane %v6067_v62, 1 }
 0xbbd   :  { %7697 = vpush %v5999_v11  ;;  %v6069_v56 = vadd.f32 %v6068_v26, %v6067_v62 }
 0xbbf   :  { %7699 = vpush %v6069_v56 }
 0xbee   :  { %s7698_s26 = spop %7697 }
 0xbef   :  { %v6001_v31 = vstv %s7698_s26 }
 0xbf0   :  { %v6002_v47 = vadd.f32 %v6001_v31, %v5883_v32  ;;  %s7700_s27 = spop %7699 }
 0xbf1   :  { %v6071_v33 = vstv %s7700_s27 }
 0xbf2   :  { %v6073_v13 = vmul.f32 0.0006510417, %v6002_v47  ;;  %v6072_v0 = vadd.f32 %v6071_v33, %v5952_v57 }
 0xbf4   :  { %v6075_v63 = vmul.f32 %v6073_v13, %v6073_v13  ;;  %v6074_v29 = vmul.f32 0.0006510417, %v6072_v0 }
 0xbf6   :  { %v6076_v15 = vsub.f32 %v6074_v29, %v6075_v63 }
 0xbf8   :  { %v6077_v39 = vadd.f32 1e-05, %v6076_v15 }
 0xbfa   :  { %8124 = vrsqrt.f32 %v6077_v39 }
 0xc04   :  { %v8125_v38 = vpop.eup %8124 }
 0xc05   :  { %v6079_v36 = vmul.f32 %v8125_v38, %v1960_v45 }
 0xc07   :  { %v6090_v43 = vrot.slane %v6079_v36, %v13794_v12  ;;  %v6080_v18 = vmul.f32 %v6079_v36, %v6073_v13 }
 0xc09   :  { %6092 = vperm.xlu1 %7709, %v6090_v43   ;;  %6082 = vrot.lane.b32.xlu0 %v6080_v18, %s8149_s13 }
 0xc0d   :  { %8116 = vset.pattern.permute.xlu1 %v8148_v24 }
 0xc7b   :  { %v6083_v27 = vpop.permute.xlu0 %6082 }
 0xc7c   :  { %v6085_v49 = vsub.f32 %v1960_v45, %v6083_v27 }
 0xc7e   :  { %v6119_v62 = vrot.slane %v6085_v49, %v13794_v12 }
 0xc80   :  { %6121 = vperm.xlu1 %8116, %v6119_v62  }
 0xc88   :  { %v6093_v11 = vpop.permute.xlu1 %6092 }
 0xc89   :  { %v6095_v26 = vmul.f32 %v6093_v11, %v12498_v19  ;;  %v6096_v56 = vmul.f32 %v6093_v11, %v12501_v30  ;;  %v6097_v32 = vmul.f32 %v6093_v11, %v12504_v8  ;;  %v6098_v31 = vmul.f32 %v6093_v11, %v12507_v48 }
 0xc8a   :  { %v6099_v47 = vmul.f32 %v6093_v11, %v12510_v55  ;;  %v6100_v57 = vmul.f32 %v6093_v11, %v12513_v25  ;;  %v6101_v33 = vmul.f32 %v6093_v11, %v12516_v58  ;;  %v6102_v13 = vmul.f32 %v6093_v11, %v12519_v17 }
 0xc8b   :  { %v6103_v0 = vmul.f32 %v6093_v11, %v12522_v46  ;;  %v6104_v63 = vmul.f32 %v6093_v11, %v12525_v10  ;;  %v6105_v19 = vmul.f32 %v6093_v11, %v12536_v22  ;;  %v6106_v30 = vmul.f32 %v6093_v11, %v12552_v2 }
 0xc8c   :  { %v6107_v8 = vmul.f32 %v6093_v11, %v12565_v61  ;;  %v6108_v48 = vmul.f32 %v6093_v11, %v12578_v7  ;;  %v6109_v55 = vmul.f32 %v6093_v11, %v12591_v28  ;;  %v6110_v25 = vmul.f32 %v6093_v11, %v12604_v52 }
 0xc8d   :  { %v6111_v58 = vmul.f32 %v6093_v11, %v12617_v23  ;;  %v6112_v17 = vmul.f32 %v6093_v11, %v12630_v40  ;;  %v6113_v46 = vmul.f32 %v6093_v11, %v12641_v9  ;;  %v6114_v10 = vmul.f32 %v6093_v11, %v12649_v21 }
 0xc8e   :  { %v12838_v22 = vmul.f32 %v6093_v11, %v12659_v60  ;;  %v12841_v2 = vmul.f32 %v6093_v11, %v12656_v5  ;;  %v12844_v61 = vmul.f32 %v6093_v11, %v12661_v44  ;;  %v12847_v7 = vmul.f32 %v6093_v11, %v12663_v53 }
 0xc8f   :  { %v12850_v28 = vmul.f32 %v6093_v11, %v12665_v37  ;;  %v12853_v52 = vmul.f32 %v6093_v11, %v12667_v14  ;;  %v12856_v23 = vmul.f32 %v6093_v11, %v12669_v4  ;;  %v12859_v40 = vmul.f32 %v6093_v11, %v12671_v51 }
 0xc90   :  { %v12862_v9 = vmul.f32 %v6093_v11, %v12673_v6  ;;  %v12865_v21 = vmul.f32 %v6093_v11, %v12687_v54  ;;  %v12868_v5 = vmul.f32 %v6093_v11, %v12700_v20  ;;  %v12871_v60 = vmul.f32 %v6093_v11, %v12711_v35 }
 0xc91   :  { %v12874_v44 = vmul.f32 %v6093_v11, %v12722_v34  ;;  %v12877_v53 = vmul.f32 %v6093_v11, %v12734_v59  ;;  %v12880_v37 = vmul.f32 %v6093_v11, %v12746_v16  ;;  %v12883_v14 = vmul.f32 %v6093_v11, %v12759_v41 }
 0xc92   :  { %v12886_v4 = vmul.f32 %v6093_v11, %v12772_v42  ;;  %v12889_v51 = vmul.f32 %v6093_v11, %v12785_v3  ;;  %v12892_v6 = vmul.f32 %v6093_v11, %v12796_v1  ;;  %v12895_v54 = vmul.f32 %v6093_v11, %v12804_v50 }
 0xcff   :  { %v12897_v20 = vpop.permute.xlu1 %6121 }
 0xd00   :  { %v6124_v35 = vadd.f32 %v12897_v20, %v6095_v26  ;;  %v6125_v34 = vadd.f32 %v12897_v20, %v6096_v56  ;;  %v6126_v59 = vadd.f32 %v12897_v20, %v6097_v32  ;;  %v6127_v16 = vadd.f32 %v12897_v20, %v6098_v31 }
 0xd01   :  { %v6128_v41 = vadd.f32 %v12897_v20, %v6099_v47  ;;  %v6129_v42 = vadd.f32 %v12897_v20, %v6100_v57  ;;  %v6130_v3 = vadd.f32 %v12897_v20, %v6101_v33  ;;  %v6131_v1 = vadd.f32 %v12897_v20, %v6102_v13 }
 0xd02   :  { %v6132_v50 = vadd.f32 %v12897_v20, %v6103_v0  ;;  %v6133_v29 = vadd.f32 %v12897_v20, %v6104_v63  ;;  %v6134_v15 = vadd.f32 %v12897_v20, %v6105_v19  ;;  %v6135_v39 = vadd.f32 %v12897_v20, %v6106_v30 }
 0xd03   :  { %v6136_v24 = vadd.f32 %v12897_v20, %v6107_v8  ;;  %v6137_v45 = vadd.f32 %v12897_v20, %v6108_v48  ;;  %v6138_v38 = vadd.f32 %v12897_v20, %v6109_v55  ;;  %v6139_v36 = vadd.f32 %v12897_v20, %v6110_v25 }
 0xd04   :  { %v6140_v12 = vadd.f32 %v12897_v20, %v6111_v58  ;;  %v6141_v43 = vadd.f32 %v12897_v20, %v6112_v17  ;;  %v6142_v18 = vadd.f32 %v12897_v20, %v6113_v46  ;;  %v6143_v27 = vadd.f32 %v12897_v20, %v6114_v10 }
 0xd05   :  { %v6144_v49 = vmax.f32 %v6124_v35, 0.0  ;;  %v6145_v62 = vmax.f32 %v6125_v34, 0.0  ;;  %v6146_v11 = vmax.f32 %v6126_v59, 0.0  ;;  %v6147_v26 = vmax.f32 %v6127_v16, 0.0 }
 0xd06   :  { %v6148_v56 = vmax.f32 %v6128_v41, 0.0  ;;  %v6149_v32 = vmax.f32 %v6129_v42, 0.0  ;;  %v6150_v31 = vmax.f32 %v6130_v3, 0.0  ;;  %v6151_v47 = vmax.f32 %v6131_v1, 0.0 }
 0xd07   :  { %v6152_v57 = vmax.f32 %v6132_v50, 0.0  ;;  %v6153_v33 = vmax.f32 %v6133_v29, 0.0  ;;  %v6154_v13 = vmax.f32 %v6134_v15, 0.0  ;;  %v6155_v0 = vmax.f32 %v6135_v39, 0.0  ;;  %6164 = vst.msk [vmem:[%s13134_s15] sm:$0xff] %vm5834_vm11, %v6144_v49  ;;  %6165 = vst.msk [vmem:[%s13134_s15 + $0x8] sm:$0xff] %vm5834_vm11, %v6145_v62 }
 0xd08   :  { %6166 = vst.msk [vmem:[%s13134_s15 + $0x10] sm:$0xff] %vm5834_vm11, %v6146_v11  ;;  %6167 = vst.msk [vmem:[%s13134_s15 + $0x18] sm:$0xff] %vm5834_vm11, %v6147_v26  ;;  %v6156_v63 = vmax.f32 %v6136_v24, 0.0  ;;  %v6157_v19 = vmax.f32 %v6137_v45, 0.0  ;;  %v6158_v30 = vmax.f32 %v6138_v38, 0.0  ;;  %v6159_v8 = vmax.f32 %v6139_v36, 0.0 }
 0xd09   :  { %6168 = vst.msk [vmem:[%s13134_s15 + $0x20] sm:$0xff] %vm5834_vm11, %v6148_v56  ;;  %6169 = vst.msk [vmem:[%s13134_s15 + $0x28] sm:$0xff] %vm5834_vm11, %v6149_v32  ;;  %v6160_v48 = vmax.f32 %v6140_v12, 0.0  ;;  %v6161_v55 = vmax.f32 %v6141_v43, 0.0  ;;  %v6162_v25 = vmax.f32 %v6142_v18, 0.0  ;;  %v6163_v58 = vmax.f32 %v6143_v27, 0.0 }
 0xd0a   :  { %6170 = vst.msk [vmem:[%s13134_s15 + $0x30] sm:$0xff] %vm5834_vm11, %v6150_v31  ;;  %6171 = vst.msk [vmem:[%s13134_s15 + $0x38] sm:$0xff] %vm5834_vm11, %v6151_v47  ;;  %v6204_v17 = vadd.f32 %v12838_v22, %v12897_v20  ;;  %v6205_v46 = vadd.f32 %v12841_v2, %v12897_v20  ;;  %v6206_v10 = vadd.f32 %v12844_v61, %v12897_v20 }
 0xd0b   :  { %6172 = vst.msk [vmem:[%s13134_s15 + $0x40] sm:$0xff] %vm5834_vm11, %v6152_v57  ;;  %6173 = vst.msk [vmem:[%s13134_s15 + $0x48] sm:$0xff] %vm5834_vm11, %v6153_v33  ;;  %v6207_v35 = vadd.f32 %v12847_v7, %v12897_v20  ;;  %v6208_v22 = vadd.f32 %v12850_v28, %v12897_v20  ;;  %v6209_v2 = vadd.f32 %v12853_v52, %v12897_v20 }
 0xd0c   :  { %6174 = vst.msk [vmem:[%s13134_s15 + $0x50] sm:$0xff] %vm5834_vm11, %v6154_v13  ;;  %6175 = vst.msk [vmem:[%s13134_s15 + $0x58] sm:$0xff] %vm5834_vm11, %v6155_v0  ;;  %v6210_v61 = vadd.f32 %v12856_v23, %v12897_v20  ;;  %v6211_v7 = vadd.f32 %v12859_v40, %v12897_v20  ;;  %v6212_v34 = vadd.f32 %v12862_v9, %v12897_v20  ;;  %v6224_v41 = vmax.f32 %v6204_v17, 0.0 }
 0xd0d   :  { %6176 = vst.msk [vmem:[%s13134_s15 + $0x60] sm:$0xff] %vm5834_vm11, %v6156_v63  ;;  %6177 = vst.msk [vmem:[%s13134_s15 + $0x68] sm:$0xff] %vm5834_vm11, %v6157_v19  ;;  %v6213_v59 = vadd.f32 %v12865_v21, %v12897_v20  ;;  %v6214_v16 = vadd.f32 %v12868_v5, %v12897_v20  ;;  %v6215_v28 = vadd.f32 %v12871_v60, %v12897_v20  ;;  %v6226_v42 = vmax.f32 %v6206_v10, 0.0 }
 0xd0e   :  { %6178 = vst.msk [vmem:[%s13134_s15 + $0x70] sm:$0xff] %vm5834_vm11, %v6158_v30  ;;  %6179 = vst.msk [vmem:[%s13134_s15 + $0x78] sm:$0xff] %vm5834_vm11, %v6159_v8  ;;  %v6216_v52 = vadd.f32 %v12874_v44, %v12897_v20  ;;  %v6217_v23 = vadd.f32 %v12877_v53, %v12897_v20  ;;  %v6218_v40 = vadd.f32 %v12880_v37, %v12897_v20  ;;  %v6225_v53 = vmax.f32 %v6205_v46, 0.0 }
 0xd0f   :  { %6180 = vst.msk [vmem:[%s13134_s15 + $0x80] sm:$0xff] %vm5834_vm11, %v6160_v48  ;;  %6181 = vst.msk [vmem:[%s13134_s15 + $0x88] sm:$0xff] %vm5834_vm11, %v6161_v55  ;;  %v6219_v9 = vadd.f32 %v12883_v14, %v12897_v20  ;;  %v6220_v21 = vadd.f32 %v12886_v4, %v12897_v20  ;;  %v6221_v5 = vadd.f32 %v12889_v51, %v12897_v20  ;;  %v6227_v3 = vmax.f32 %v6207_v35, 0.0 }
 0xd10   :  { %6182 = vst.msk [vmem:[%s13134_s15 + $0x90] sm:$0xff] %vm5834_vm11, %v6162_v25  ;;  %6183 = vst.msk [vmem:[%s13134_s15 + $0x98] sm:$0xff] %vm5834_vm11, %v6163_v58  ;;  %v6222_v60 = vadd.f32 %v12892_v6, %v12897_v20  ;;  %v6223_v44 = vadd.f32 %v12895_v54, %v12897_v20  ;;  %v6228_v37 = vmax.f32 %v6208_v22, 0.0  ;;  %v6229_v1 = vmax.f32 %v6209_v2, 0.0 }
 0xd11   :  { %v6230_v50 = vmax.f32 %v6210_v61, 0.0  ;;  %v6231_v14 = vmax.f32 %v6211_v7, 0.0  ;;  %v6232_v29 = vmax.f32 %v6212_v34, 0.0  ;;  %v6233_v15 = vmax.f32 %v6213_v59, 0.0  ;;  %6425 = vst.msk [vmem:[%s13134_s15 + $0xa0] sm:$0xff] %vm5834_vm11, %v6224_v41  ;;  %6426 = vst.msk [vmem:[%s13134_s15 + $0xa8] sm:$0xff] %vm5834_vm11, %v6225_v53 }
 0xd12   :  { %v6234_v4 = vmax.f32 %v6214_v16, 0.0  ;;  %v6235_v39 = vmax.f32 %v6215_v28, 0.0  ;;  %6427 = vst.msk [vmem:[%s13134_s15 + $0xb0] sm:$0xff] %vm5834_vm11, %v6226_v42  ;;  %6428 = vst.msk [vmem:[%s13134_s15 + $0xb8] sm:$0xff] %vm5834_vm11, %v6227_v3  ;;  %v6236_v51 = vmax.f32 %v6216_v52, 0.0  ;;  %v6237_v6 = vmax.f32 %v6217_v23, 0.0 }
 0xd13   :  { %v6238_v54 = vmax.f32 %v6218_v40, 0.0  ;;  %v6239_v20 = vmax.f32 %v6219_v9, 0.0  ;;  %6429 = vst.msk [vmem:[%s13134_s15 + $0xc0] sm:$0xff] %vm5834_vm11, %v6228_v37  ;;  %6430 = vst.msk [vmem:[%s13134_s15 + $0xc8] sm:$0xff] %vm5834_vm11, %v6229_v1  ;;  %v6240_v24 = vmax.f32 %v6220_v21, 0.0  ;;  %v6241_v45 = vmax.f32 %v6221_v5, 0.0 }
 0xd14   :  { %6431 = vst.msk [vmem:[%s13134_s15 + $0xd0] sm:$0xff] %vm5834_vm11, %v6230_v50  ;;  %6432 = vst.msk [vmem:[%s13134_s15 + $0xd8] sm:$0xff] %vm5834_vm11, %v6231_v14  ;;  %v6242_v38 = vmax.f32 %v6222_v60, 0.0  ;;  %v6243_v36 = vmax.f32 %v6223_v44, 0.0 }
 0xd15   :  { %6433 = vst.msk [vmem:[%s13134_s15 + $0xe0] sm:$0xff] %vm5834_vm11, %v6232_v29  ;;  %6434 = vst.msk [vmem:[%s13134_s15 + $0xe8] sm:$0xff] %vm5834_vm11, %v6233_v15 }
 0xd16   :  { %6435 = vst.msk [vmem:[%s13134_s15 + $0xf0] sm:$0xff] %vm5834_vm11, %v6234_v4  ;;  %6436 = vst.msk [vmem:[%s13134_s15 + $0xf8] sm:$0xff] %vm5834_vm11, %v6235_v39 }
 0xd17   :  { %6437 = vst.msk [vmem:[%s13134_s15 + $0x100] sm:$0xff] %vm5834_vm11, %v6236_v51  ;;  %6438 = vst.msk [vmem:[%s13134_s15 + $0x108] sm:$0xff] %vm5834_vm11, %v6237_v6 }
 0xd18   :  { %6439 = vst.msk [vmem:[%s13134_s15 + $0x110] sm:$0xff] %vm5834_vm11, %v6238_v54  ;;  %6440 = vst.msk [vmem:[%s13134_s15 + $0x118] sm:$0xff] %vm5834_vm11, %v6239_v20 }
 0xd19   :  { %6441 = vst.msk [vmem:[%s13134_s15 + $0x120] sm:$0xff] %vm5834_vm11, %v6240_v24  ;;  %6442 = vst.msk [vmem:[%s13134_s15 + $0x128] sm:$0xff] %vm5834_vm11, %v6241_v45 }
 0xd1a   :  { %6443 = vst.msk [vmem:[%s13134_s15 + $0x130] sm:$0xff] %vm5834_vm11, %v6242_v38  ;;  %6444 = vst.msk [vmem:[%s13134_s15 + $0x138] sm:$0xff] %vm5834_vm11, %v6243_v36 }

</bundles_post_ra>
